<compile_context>
chip_gen: v7x
topology: tpu7x:2x2x1
jax: 0.10.0
libtpu: 0.0.40
codegen_flags: <defaults>
</compile_context>

<pallas_src>
import functools

import jax
import jax.numpy as jnp
from jax.experimental import pallas as pl
from jax.experimental.pallas import tpu as pltpu

_EPS = 1e-5
_TM_MAX = 256   # M-tile cap (rows of the im2col matrix)
_TN_MAX = 256   # cout-tile cap (always a multiple of 128 -> lane-dense stores)


# ---------------------------------------------------------------------------
# Small helpers
# ---------------------------------------------------------------------------
def _round_up(x, m):
    return (x + m - 1) // m * m


def _cpad(c):
    return _round_up(c, 128)


def _pick_tk(k_pad):
    for t in (512, 384, 256, 128):
        if k_pad % t == 0:
            return t
    return 128


def _vmem_spec():
    return pl.BlockSpec(memory_space=pltpu.MemorySpace.VMEM)


# ---------------------------------------------------------------------------
# Pallas kernels
# ---------------------------------------------------------------------------
def _gemm_stats_kernel(a_ref, w_ref, y_ref, sum_ref, ssq_ref, acc_ref):
    """Pass 1: y = a @ w (bf16 in, f32 acc) + per-channel sum / sum-of-squares.

    grid = (n_cout_tiles, m_tiles, k_tiles); k is the reduction axis (last),
    stats accumulate across m tiles into a grid-resident (1, tn) output block.
    """
    m_i = pl.program_id(1)
    k_i = pl.program_id(2)
    nk = pl.num_programs(2)

    @pl.when(k_i == 0)
    def _():
        acc_ref[...] = jnp.zeros_like(acc_ref)

    @pl.when((k_i == 0) & (m_i == 0))
    def _():
        sum_ref[...] = jnp.zeros_like(sum_ref)
        ssq_ref[...] = jnp.zeros_like(ssq_ref)

    acc_ref[...] += jnp.dot(a_ref[...], w_ref[...],
                            preferred_element_type=jnp.float32)

    @pl.when(k_i == nk - 1)
    def _():
        y = acc_ref[...]
        y_ref[...] = y
        sum_ref[...] = sum_ref[...] + jnp.sum(y, axis=0, keepdims=True)
        ssq_ref[...] = ssq_ref[...] + jnp.sum(y * y, axis=0, keepdims=True)


def _bn_act_kernel(y_ref, sum_ref, ssq_ref, g_ref, b_ref, o_ref, *, relu, inv_m):
    """Pass 2: out = relu?( (y - mean) * rsqrt(var + eps) * gamma + beta )."""
    mean = sum_ref[...] * inv_m
    var = jnp.maximum(ssq_ref[...] * inv_m - mean * mean, 0.0)
    scale = jax.lax.rsqrt(var + _EPS) * g_ref[...]
    y = (y_ref[...] - mean) * scale + b_ref[...]
    if relu:
        y = jnp.maximum(y, 0.0)
    o_ref[...] = y.astype(o_ref.dtype)


def _bn_act_res_kernel(y_ref, sum_ref, ssq_ref, g_ref, b_ref, r_ref, o_ref, *,
                       relu, inv_m):
    """Pass 2 with residual: out = relu?( BN(y)*gamma + beta + residual )."""
    mean = sum_ref[...] * inv_m
    var = jnp.maximum(ssq_ref[...] * inv_m - mean * mean, 0.0)
    scale = jax.lax.rsqrt(var + _EPS) * g_ref[...]
    y = (y_ref[...] - mean) * scale + b_ref[...]
    y = y + r_ref[...].astype(jnp.float32)
    if relu:
        y = jnp.maximum(y, 0.0)
    o_ref[...] = y.astype(o_ref.dtype)


def _maxpool_kernel(ee_ref, eo_ref, oe_ref, oo_ref, o_ref):
    """3x3/s2 max pool from 4 parity planes; 9 taps via static VMEM slices."""
    oh = o_ref.shape[1]
    ow = o_ref.shape[2]
    ee = ee_ref[0].astype(jnp.float32)   # [oh+1, ow+1, C]
    eo = eo_ref[0].astype(jnp.float32)   # [oh+1, ow,   C]
    oe = oe_ref[0].astype(jnp.float32)   # [oh,   ow+1, C]
    oo = oo_ref[0].astype(jnp.float32)   # [oh,   ow,   C]
    r = oo
    r = jnp.maximum(r, ee[:oh, :ow, :])
    r = jnp.maximum(r, ee[:oh, 1:, :])
    r = jnp.maximum(r, ee[1:, :ow, :])
    r = jnp.maximum(r, ee[1:, 1:, :])
    r = jnp.maximum(r, eo[:oh, :, :])
    r = jnp.maximum(r, eo[1:, :, :])
    r = jnp.maximum(r, oe[:, :ow, :])
    r = jnp.maximum(r, oe[:, 1:, :])
    o_ref[0] = r.astype(o_ref.dtype)


def _avgpool_fc_kernel(x_ref, w_ref, b_ref, o_ref):
    """x_ref: [N, HW, C] bf16. out = mean_over_HW(x) @ w + b (lane-dense [N,512])."""
    pooled = jnp.mean(x_ref[...].astype(jnp.float32), axis=1)       # [N, C]
    o_ref[...] = (
        jnp.dot(pooled.astype(jnp.bfloat16), w_ref[...],
                preferred_element_type=jnp.float32)
        + b_ref[...]
    )


# ---------------------------------------------------------------------------
# Wrapper-side layout glue
# ---------------------------------------------------------------------------
def _im2col(x, kh, kw, stride, pad):
    """x: [N, H, W, C] -> ([N*OH*OW, kh*kw*C], OH, OW)."""
    N, H, W, C = x.shape
    if pad:
        x = jnp.pad(x, ((0, 0), (pad, pad), (pad, pad), (0, 0)))
    Hp, Wp = H + 2 * pad, W + 2 * pad
    OH = (Hp - kh) // stride + 1
    OW = (Wp - kw) // stride + 1
    cols = [
        x[:, i:i + stride * OH:stride, j:j + stride * OW:stride, :]
        for i in range(kh) for j in range(kw)
    ]
    patches = jnp.stack(cols, axis=3)                   # [N, OH, OW, kh*kw, C]
    return patches.reshape(N * OH * OW, kh * kw * C), OH, OW


# ---------------------------------------------------------------------------
# Fused conv + BN (+ residual) (+ ReLU): tiled GEMM + stats, then epilogue
# ---------------------------------------------------------------------------
def conv_bn(x, prm, *, kh, kw, stride, pad, relu, residual=None):
    N = x.shape[0]
    k_pad, c_out = prm["w"].shape                       # already padded / bf16

    a, OH, OW = _im2col(x, kh, kw, stride, pad)         # bf16 patches
    m = a.shape[0]
    k_dim = a.shape[1]
    if k_pad > k_dim:                                   # K alignment (e.g. 49 -> 128)
        a = jnp.pad(a, ((0, 0), (0, k_pad - k_dim)))

    tm = min(_TM_MAX, _round_up(m, 8))
    mp = _round_up(m, tm)
    if mp > m:                                          # zero rows: no effect on stats
        a = jnp.pad(a, ((0, mp - m), (0, 0)))
    tn = _TN_MAX if c_out % _TN_MAX == 0 else 128
    tk = _pick_tk(k_pad)

    # ---- pass 1: tiled GEMM + per-channel sum / sum-of-squares ----
    grid = (c_out // tn, mp // tm, k_pad // tk)
    y, s1, s2 = pl.pallas_call(
        _gemm_stats_kernel,
        out_shape=(
            jax.ShapeDtypeStruct((mp, c_out), jnp.float32),
            jax.ShapeDtypeStruct((1, c_out), jnp.float32),
            jax.ShapeDtypeStruct((1, c_out), jnp.float32),
        ),
        grid_spec=pltpu.PrefetchScalarGridSpec(
            num_scalar_prefetch=0,
            grid=grid,
            in_specs=[
                pl.BlockSpec((tm, tk), lambda n, i, k: (i, k)),
                pl.BlockSpec((tk, tn), lambda n, i, k: (k, n)),
            ],
            out_specs=(
                pl.BlockSpec((tm, tn), lambda n, i, k: (i, n)),
                pl.BlockSpec((1, tn), lambda n, i, k: (0, n)),
                pl.BlockSpec((1, tn), lambda n, i, k: (0, n)),
            ),
            scratch_shapes=[pltpu.VMEM((tm, tn), jnp.float32)],
        ),
        compiler_params=pltpu.CompilerParams(
            dimension_semantics=("parallel", "arbitrary", "arbitrary")),
    )(a, prm["w"])

    # ---- pass 2: normalize + gamma/beta (+ residual) (+ ReLU) ----
    inv_m = 1.0 / float(m)                              # true row count (not padded)
    ep_in = [y, s1, s2, prm["gamma"], prm["beta"]]
    ep_specs = [
        pl.BlockSpec((tm, tn), lambda i, n: (i, n)),
        pl.BlockSpec((1, tn), lambda i, n: (0, n)),
        pl.BlockSpec((1, tn), lambda i, n: (0, n)),
        pl.BlockSpec((1, tn), lambda i, n: (0, n)),
        pl.BlockSpec((1, tn), lambda i, n: (0, n)),
    ]
    if residual is not None:
        r = residual.reshape(m, c_out)
        if mp > m:
            r = jnp.pad(r, ((0, mp - m), (0, 0)))
        ep_in.append(r)
        ep_specs.append(pl.BlockSpec((tm, tn), lambda i, n: (i, n)))
        kern = functools.partial(_bn_act_res_kernel, relu=relu, inv_m=inv_m)
    else:
        kern = functools.partial(_bn_act_kernel, relu=relu, inv_m=inv_m)

    out = pl.pallas_call(
        kern,
        out_shape=jax.ShapeDtypeStruct((mp, c_out), jnp.bfloat16),
        grid_spec=pltpu.PrefetchScalarGridSpec(
            num_scalar_prefetch=0,
            grid=(mp // tm, c_out // tn),
            in_specs=ep_specs,
            out_specs=pl.BlockSpec((tm, tn), lambda i, n: (i, n)),
        ),
        compiler_params=pltpu.CompilerParams(
            dimension_semantics=("parallel", "parallel")),
    )(*ep_in)

    return out[:m].reshape(N, OH, OW, c_out)


# ---------------------------------------------------------------------------
# MaxPool 3x3 stride 2 pad 1 (parity-plane decomposition, ~1x HBM traffic)
# ---------------------------------------------------------------------------
def maxpool_3x3_s2(x):
    N, H, W, C = x.shape
    k, s, pad = 3, 2, 1
    OH = (H + 2 * pad - k) // s + 1
    OW = (W + 2 * pad - k) // s + 1
    xp = jnp.pad(x, ((0, 0), (pad, pad), (pad, pad), (0, 0)),
                 constant_values=-jnp.inf)
    # Disjoint parity planes (even/odd rows x even/odd cols) -> no 9x expansion.
    ee = xp[:, 0::2, 0::2, :][:, :OH + 1, :OW + 1, :]
    eo = xp[:, 0::2, 1::2, :][:, :OH + 1, :OW, :]
    oe = xp[:, 1::2, 0::2, :][:, :OH, :OW + 1, :]
    oo = xp[:, 1::2, 1::2, :][:, :OH, :OW, :]

    return pl.pallas_call(
        _maxpool_kernel,
        out_shape=jax.ShapeDtypeStruct((N, OH, OW, C), x.dtype),
        grid_spec=pltpu.PrefetchScalarGridSpec(
            num_scalar_prefetch=0,
            grid=(N,),
            in_specs=[
                pl.BlockSpec((1, OH + 1, OW + 1, C), lambda n: (n, 0, 0, 0)),
                pl.BlockSpec((1, OH + 1, OW, C), lambda n: (n, 0, 0, 0)),
                pl.BlockSpec((1, OH, OW + 1, C), lambda n: (n, 0, 0, 0)),
                pl.BlockSpec((1, OH, OW, C), lambda n: (n, 0, 0, 0)),
            ],
            out_specs=pl.BlockSpec((1, OH, OW, C), lambda n: (n, 0, 0, 0)),
        ),
        compiler_params=pltpu.CompilerParams(dimension_semantics=("parallel",)),
    )(ee, eo, oe, oo)


# ---------------------------------------------------------------------------
# Global average pool + fc (single fused kernel, lane-dense [N, 512] output)
# ---------------------------------------------------------------------------
def avgpool_fc(x, fc_w, fc_b):
    N, H, W, C = x.shape
    xr = x.reshape(N, H * W, C)
    return pl.pallas_call(
        _avgpool_fc_kernel,
        out_shape=jax.ShapeDtypeStruct((N, fc_w.shape[1]), jnp.float32),
        in_specs=[_vmem_spec()] * 3,
        out_specs=_vmem_spec(),
    )(xr, fc_w, fc_b)


# ---------------------------------------------------------------------------
# ResNet-18 structure (architecture constants are static; params hold arrays only)
# ---------------------------------------------------------------------------
def resnet_ultra_forward(x_nchw, p):
    # PyTorch NCHW -> NHWC, bf16 MXU inputs.
    x = jnp.transpose(x_nchw, (0, 2, 3, 1)).astype(jnp.bfloat16)
    x = conv_bn(x, p["conv1"], kh=7, kw=7, stride=2, pad=3, relu=True)
    x = maxpool_3x3_s2(x)
    for si, stage in enumerate(p["layers"]):
        for bi, blk in enumerate(stage):
            stride = 2 if (si > 0 and bi == 0) else 1
            identity = x
            out = conv_bn(x, blk["c1"], kh=3, kw=3, stride=stride, pad=1, relu=True)
            if "down" in blk:
                identity = conv_bn(x, blk["down"], kh=1, kw=1, stride=stride,
                                   pad=0, relu=False)
            x = conv_bn(out, blk["c2"], kh=3, kw=3, stride=1, pad=1, relu=True,
                        residual=identity)
    return avgpool_fc(x, p["fc_w"], p["fc_b"])           # [N, 512] f32


# ---------------------------------------------------------------------------
# Deterministic synthetic parameters (shapes follow torchvision resnet18 with
# the modified conv1 / fc of ResNetUltra).  Weights are pre-reshaped to
# [K_pad, Cout_pad], zero-padded to lane-aligned sizes, and pre-cast to bf16.
# ---------------------------------------------------------------------------
def _conv_bn_param(key, kh, kw, cin_l, cout_l, cin_s):
    k_w, k_g, k_b = jax.random.split(key, 3)
    cout_s = _cpad(cout_l)
    fan_in = kh * kw * cin_l
    w = jax.random.normal(k_w, (kh, kw, cin_l, cout_l), jnp.float32)
    w = w * (2.0 / fan_in) ** 0.5
    wp = jnp.zeros((kh, kw, cin_s, cout_s), jnp.float32)
    wp = wp.at[:, :, :cin_l, :cout_l].set(w)
    k_dim = kh * kw * cin_s
    k_pad = _round_up(k_dim, 128)
    wm = wp.reshape(k_dim, cout_s)
    if k_pad > k_dim:
        wm = jnp.pad(wm, ((0, k_pad - k_dim), (0, 0)))
    g = 1.0 + 0.1 * jax.random.normal(k_g, (cout_l,), jnp.float32)
    b = 0.1 * jax.random.normal(k_b, (cout_l,), jnp.float32)
    gamma = jnp.zeros((1, cout_s), jnp.float32).at[0, :cout_l].set(g)
    beta = jnp.zeros((1, cout_s), jnp.float32).at[0, :cout_l].set(b)
    return {"w": wm.astype(jnp.bfloat16), "gamma": gamma, "beta": beta}


def init_params(key):
    keys = iter(jax.random.split(key, 64))
    p = {"conv1": _conv_bn_param(next(keys), 7, 7, 1, 64, 1)}   # 1-channel conv1
    p["layers"] = []
    in_l = 64
    for si, c in enumerate([64, 128, 256, 512]):
        stage = []
        for bi in range(2):
            stride = 2 if (si > 0 and bi == 0) else 1
            blk = {
                "c1": _conv_bn_param(next(keys), 3, 3, in_l, c, _cpad(in_l)),
                "c2": _conv_bn_param(next(keys), 3, 3, c, c, _cpad(c)),
            }
            if stride != 1 or in_l != c:
                blk["down"] = _conv_bn_param(next(keys), 1, 1, in_l, c, _cpad(in_l))
            stage.append(blk)
            in_l = c
        p["layers"].append(stage)
    # fc: Linear(512, 512), stored as [in, out] so the kernel does x @ W + b.
    k_fw, k_fb = jax.random.split(next(keys))
    p["fc_w"] = (jax.random.normal(k_fw, (512, 512), jnp.float32)
                 * (1.0 / 512) ** 0.5).astype(jnp.bfloat16)
    p["fc_b"] = 0.01 * jax.random.normal(k_fb, (1, 512), jnp.float32)
    return p


if __name__ == "__main__":
    key = jax.random.PRNGKey(0)
    kx, kp = jax.random.split(key)
    x = jax.random.normal(kx, (2, 1, 16, 16), jnp.float32)   # N, C=1, H, W
    params = init_params(kp)

    fwd = jax.jit(resnet_ultra_forward)
    out = jax.block_until_ready(fwd(x, params))

    assert out.shape == (2, 512) and out.dtype == jnp.float32
    assert bool(jnp.all(jnp.isfinite(out)))
    print("KERNEL_OK")
</pallas_src>

<mosaic_0001>
module attributes {stable_mosaic.version = 11 : i64} {
  func.func @_bn_act_kernel(%arg0: i32, %arg1: i32, %arg2: memref<128x128xf32, #tpu.memory_space<vmem>>, %arg3: memref<1x128xf32, #tpu.memory_space<vmem>>, %arg4: memref<1x128xf32, #tpu.memory_space<vmem>>, %arg5: memref<1x128xf32, #tpu.memory_space<vmem>>, %arg6: memref<1x128xf32, #tpu.memory_space<vmem>>, %arg7: memref<128x128xbf16, #tpu.memory_space<vmem>>) attributes {dimension_semantics = [#tpu.dimension_semantics<parallel>, #tpu.dimension_semantics<parallel>], iteration_bounds = array<i64: 1, 1>, scalar_prefetch = 0 : i64, scratch_operands = 0 : i64, tpu.core_type = #tpu.core_type<tc>, window_params = [{transform_indices = @transform_0, window_bounds = array<i64: 128, 128>}, {transform_indices = @transform_1, window_bounds = array<i64: 1, 128>}, {transform_indices = @transform_2, window_bounds = array<i64: 1, 128>}, {transform_indices = @transform_3, window_bounds = array<i64: 1, 128>}, {transform_indices = @transform_4, window_bounds = array<i64: 1, 128>}, {transform_indices = @transform_5, window_bounds = array<i64: 128, 128>}]} {
    %c0 = arith.constant 0 : index
    %c0_0 = arith.constant 0 : index
    %0 = vector.load %arg3[%c0, %c0_0] : memref<1x128xf32, #tpu.memory_space<vmem>>, vector<1x128xf32>
    %cst = arith.constant 7.812500e-03 : f32
    %1 = vector.broadcast %cst : f32 to vector<1x128xf32>
    %2 = arith.mulf %0, %1 : vector<1x128xf32>
    %c0_1 = arith.constant 0 : index
    %c0_2 = arith.constant 0 : index
    %3 = vector.load %arg4[%c0_1, %c0_2] : memref<1x128xf32, #tpu.memory_space<vmem>>, vector<1x128xf32>
    %cst_3 = arith.constant 7.812500e-03 : f32
    %4 = vector.broadcast %cst_3 : f32 to vector<1x128xf32>
    %5 = arith.mulf %3, %4 : vector<1x128xf32>
    %6 = arith.mulf %2, %2 : vector<1x128xf32>
    %7 = arith.subf %5, %6 : vector<1x128xf32>
    %cst_4 = arith.constant 0.000000e+00 : f32
    %8 = vector.broadcast %cst_4 : f32 to vector<1x128xf32>
    %9 = arith.maximumf %7, %8 : vector<1x128xf32>
    %cst_5 = arith.constant 9.99999974E-6 : f32
    %10 = vector.broadcast %cst_5 : f32 to vector<1x128xf32>
    %11 = arith.addf %9, %10 : vector<1x128xf32>
    %12 = math.rsqrt %11 : vector<1x128xf32>
    %c0_6 = arith.constant 0 : index
    %c0_7 = arith.constant 0 : index
    %13 = vector.load %arg5[%c0_6, %c0_7] : memref<1x128xf32, #tpu.memory_space<vmem>>, vector<1x128xf32>
    %14 = arith.mulf %12, %13 : vector<1x128xf32>
    %c0_8 = arith.constant 0 : index
    %c0_9 = arith.constant 0 : index
    %15 = vector.load %arg2[%c0_8, %c0_9] : memref<128x128xf32, #tpu.memory_space<vmem>>, vector<128x128xf32>
    %16 = vector.broadcast %2 : vector<1x128xf32> to vector<128x128xf32>
    %17 = arith.subf %15, %16 : vector<128x128xf32>
    %18 = vector.broadcast %14 : vector<1x128xf32> to vector<128x128xf32>
    %19 = arith.mulf %17, %18 : vector<128x128xf32>
    %c0_10 = arith.constant 0 : index
    %c0_11 = arith.constant 0 : index
    %20 = vector.load %arg6[%c0_10, %c0_11] : memref<1x128xf32, #tpu.memory_space<vmem>>, vector<1x128xf32>
    %21 = vector.broadcast %20 : vector<1x128xf32> to vector<128x128xf32>
    %22 = arith.addf %19, %21 : vector<128x128xf32>
    %cst_12 = arith.constant 0.000000e+00 : f32
    %23 = vector.broadcast %cst_12 : f32 to vector<128x128xf32>
    %24 = arith.maximumf %22, %23 : vector<128x128xf32>
    %25 = arith.truncf %24 : vector<128x128xf32> to vector<128x128xbf16>
    %c0_13 = arith.constant 0 : index
    %c0_14 = arith.constant 0 : index
    %26 = vector.load %arg7[%c0_13, %c0_14] : memref<128x128xbf16, #tpu.memory_space<vmem>>, vector<128x128xbf16>
    tpu.vector_store %arg7[%c0_13, %c0_14], %25 {strides = array<i32>} : memref<128x128xbf16, #tpu.memory_space<vmem>>, vector<128x128xbf16>,
    return
  }
  func.func @transform_0(%arg0: i32, %arg1: i32) -> (i32, i32) {
    %c0_i32 = arith.constant 0 : i32
    return %arg0, %arg1 : i32, i32
  }
  func.func @transform_1(%arg0: i32, %arg1: i32) -> (i32, i32) {
    %c0_i32 = arith.constant 0 : i32
    %c0_i32_0 = arith.constant 0 : i32
    return %c0_i32, %arg1 : i32, i32
  }
  func.func @transform_2(%arg0: i32, %arg1: i32) -> (i32, i32) {
    %c0_i32 = arith.constant 0 : i32
    %c0_i32_0 = arith.constant 0 : i32
    return %c0_i32, %arg1 : i32, i32
  }
  func.func @transform_3(%arg0: i32, %arg1: i32) -> (i32, i32) {
    %c0_i32 = arith.constant 0 : i32
    %c0_i32_0 = arith.constant 0 : i32
    return %c0_i32, %arg1 : i32, i32
  }
  func.func @transform_4(%arg0: i32, %arg1: i32) -> (i32, i32) {
    %c0_i32 = arith.constant 0 : i32
    %c0_i32_0 = arith.constant 0 : i32
    return %c0_i32, %arg1 : i32, i32
  }
  func.func @transform_5(%arg0: i32, %arg1: i32) -> (i32, i32) {
    %c0_i32 = arith.constant 0 : i32
    return %arg0, %arg1 : i32, i32
  }
}

module attributes {stable_mosaic.version = 11 : i64} {
  func.func @_gemm_stats_kernel(%arg0: i32, %arg1: i32, %arg2: i32, %arg3: memref<128x128xbf16, #tpu.memory_space<vmem>>, %arg4: memref<128x128xbf16, #tpu.memory_space<vmem>>, %arg5: memref<128x128xf32, #tpu.memory_space<vmem>>, %arg6: memref<1x128xf32, #tpu.memory_space<vmem>>, %arg7: memref<1x128xf32, #tpu.memory_space<vmem>>, %arg8: memref<128x128xf32, #tpu.memory_space<vmem>>) attributes {dimension_semantics = [#tpu.dimension_semantics<parallel>, #tpu.dimension_semantics<arbitrary>, #tpu.dimension_semantics<arbitrary>], iteration_bounds = array<i64: 1, 1, 1>, scalar_prefetch = 0 : i64, scratch_operands = 1 : i64, tpu.core_type = #tpu.core_type<tc>, window_params = [{transform_indices = @transform_0, window_bounds = array<i64: 128, 128>}, {transform_indices = @transform_1, window_bounds = array<i64: 128, 128>}, {transform_indices = @transform_2, window_bounds = array<i64: 128, 128>}, {transform_indices = @transform_3, window_bounds = array<i64: 1, 128>}, {transform_indices = @transform_4, window_bounds = array<i64: 1, 128>}]} {
    %c0_i32 = arith.constant 0 : i32
    %0 = arith.cmpi eq, %arg2, %c0_i32 : i32
    %1 = arith.extui %0 : i1 to i32
    %c0_i32_0 = arith.constant 0 : i32
    %2 = arith.cmpi ne, %1, %c0_i32_0 : i32
    scf.if %2 {
      %cst_13 = arith.constant 0.000000e+00 : f32
      %17 = vector.broadcast %cst_13 : f32 to vector<128x128xf32>
      %c0_14 = arith.constant 0 : index
      %c0_15 = arith.constant 0 : index
      %18 = vector.load %arg8[%c0_14, %c0_15] : memref<128x128xf32, #tpu.memory_space<vmem>>, vector<128x128xf32>
      tpu.vector_store %arg8[%c0_14, %c0_15], %17 {strides = array<i32>} : memref<128x128xf32, #tpu.memory_space<vmem>>, vector<128x128xf32>,
    } else {
    }
    %c0_i32_1 = arith.constant 0 : i32
    %3 = arith.cmpi eq, %arg2, %c0_i32_1 : i32
    %c0_i32_2 = arith.constant 0 : i32
    %4 = arith.cmpi eq, %arg1, %c0_i32_2 : i32
    %5 = arith.andi %3, %4 : i1
    %6 = arith.extui %5 : i1 to i32
    %c0_i32_3 = arith.constant 0 : i32
    %7 = arith.cmpi ne, %6, %c0_i32_3 : i32
    scf.if %7 {
      %cst_13 = arith.constant 0.000000e+00 : f32
      %17 = vector.broadcast %cst_13 : f32 to vector<1x128xf32>
      %c0_14 = arith.constant 0 : index
      %c0_15 = arith.constant 0 : index
      %18 = vector.load %arg6[%c0_14, %c0_15] : memref<1x128xf32, #tpu.memory_space<vmem>>, vector<1x128xf32>
      tpu.vector_store %arg6[%c0_14, %c0_15], %17 {strides = array<i32>} : memref<1x128xf32, #tpu.memory_space<vmem>>, vector<1x128xf32>,
      %cst_16 = arith.constant 0.000000e+00 : f32
      %19 = vector.broadcast %cst_16 : f32 to vector<1x128xf32>
      %c0_17 = arith.constant 0 : index
      %c0_18 = arith.constant 0 : index
      %20 = vector.load %arg7[%c0_17, %c0_18] : memref<1x128xf32, #tpu.memory_space<vmem>>, vector<1x128xf32>
      tpu.vector_store %arg7[%c0_17, %c0_18], %19 {strides = array<i32>} : memref<1x128xf32, #tpu.memory_space<vmem>>, vector<1x128xf32>,
    } else {
    }
    %c0 = arith.constant 0 : index
    %c0_4 = arith.constant 0 : index
    %8 = vector.load %arg8[%c0, %c0_4] : memref<128x128xf32, #tpu.memory_space<vmem>>, vector<128x128xf32>
    %c0_5 = arith.constant 0 : index
    %c0_6 = arith.constant 0 : index
    %9 = vector.load %arg3[%c0_5, %c0_6] : memref<128x128xbf16, #tpu.memory_space<vmem>>, vector<128x128xbf16>
    %c0_7 = arith.constant 0 : index
    %c0_8 = arith.constant 0 : index
    %10 = vector.load %arg4[%c0_7, %c0_8] : memref<128x128xbf16, #tpu.memory_space<vmem>>, vector<128x128xbf16>
    %cst = arith.constant dense<0.000000e+00> : vector<128x128xf32>
    %11 = tpu.matmul %9, %10, %cst {dimension_numbers = #tpu.dot_dimension_numbers<[1], [0], [0], [1], [0, 0, 1, 1], [], []>} : vector<128x128xbf16>, vector<128x128xbf16>, vector<128x128xf32> -> vector<128x128xf32>
    %12 = arith.addf %8, %11 : vector<128x128xf32>
    %c0_9 = arith.constant 0 : index
    %c0_10 = arith.constant 0 : index
    %13 = vector.load %arg8[%c0_9, %c0_10] : memref<128x128xf32, #tpu.memory_space<vmem>>, vector<128x128xf32>
    tpu.vector_store %arg8[%c0_9, %c0_10], %12 {strides = array<i32>} : memref<128x128xf32, #tpu.memory_space<vmem>>, vector<128x128xf32>,
    %c0_i32_11 = arith.constant 0 : i32
    %14 = arith.cmpi eq, %arg2, %c0_i32_11 : i32
    %15 = arith.extui %14 : i1 to i32
    %c0_i32_12 = arith.constant 0 : i32
    %16 = arith.cmpi ne, %15, %c0_i32_12 : i32
    scf.if %16 {
      %c0_13 = arith.constant 0 : index
      %c0_14 = arith.constant 0 : index
      %17 = vector.load %arg8[%c0_13, %c0_14] : memref<128x128xf32, #tpu.memory_space<vmem>>, vector<128x128xf32>
      %c0_15 = arith.constant 0 : index
      %c0_16 = arith.constant 0 : index
      %18 = vector.load %arg5[%c0_15, %c0_16] : memref<128x128xf32, #tpu.memory_space<vmem>>, vector<128x128xf32>
      tpu.vector_store %arg5[%c0_15, %c0_16], %17 {strides = array<i32>} : memref<128x128xf32, #tpu.memory_space<vmem>>, vector<128x128xf32>,
      %c0_17 = arith.constant 0 : index
      %c0_18 = arith.constant 0 : index
      %19 = vector.load %arg6[%c0_17, %c0_18] : memref<1x128xf32, #tpu.memory_space<vmem>>, vector<1x128xf32>
      %cst_19 = arith.constant dense<0.000000e+00> : vector<128xf32>
      %20 = vector.multi_reduction <add>, %17, %cst_19 [0] : vector<128x128xf32> to vector<128xf32>
      %21 = vector.shape_cast %20 : vector<128xf32> to vector<1x128xf32>
      %22 = arith.addf %19, %21 : vector<1x128xf32>
      %c0_20 = arith.constant 0 : index
      %c0_21 = arith.constant 0 : index
      %23 = vector.load %arg6[%c0_20, %c0_21] : memref<1x128xf32, #tpu.memory_space<vmem>>, vector<1x128xf32>
      tpu.vector_store %arg6[%c0_20, %c0_21], %22 {strides = array<i32>} : memref<1x128xf32, #tpu.memory_space<vmem>>, vector<1x128xf32>,
      %c0_22 = arith.constant 0 : index
      %c0_23 = arith.constant 0 : index
      %24 = vector.load %arg7[%c0_22, %c0_23] : memref<1x128xf32, #tpu.memory_space<vmem>>, vector<1x128xf32>
      %25 = arith.mulf %17, %17 : vector<128x128xf32>
      %cst_24 = arith.constant dense<0.000000e+00> : vector<128xf32>
      %26 = vector.multi_reduction <add>, %25, %cst_24 [0] : vector<128x128xf32> to vector<128xf32>
      %27 = vector.shape_cast %26 : vector<128xf32> to vector<1x128xf32>
      %28 = arith.addf %24, %27 : vector<1x128xf32>
      %c0_25 = arith.constant 0 : index
      %c0_26 = arith.constant 0 : index
      %29 = vector.load %arg7[%c0_25, %c0_26] : memref<1x128xf32, #tpu.memory_space<vmem>>, vector<1x128xf32>
      tpu.vector_store %arg7[%c0_25, %c0_26], %28 {strides = array<i32>} : memref<1x128xf32, #tpu.memory_space<vmem>>, vector<1x128xf32>,
    } else {
    }
    return
  }
  func.func @transform_0(%arg0: i32, %arg1: i32, %arg2: i32) -> (i32, i32) {
    %c0_i32 = arith.constant 0 : i32
    return %arg1, %arg2 : i32, i32
  }
  func.func @transform_1(%arg0: i32, %arg1: i32, %arg2: i32) -> (i32, i32) {
    %c0_i32 = arith.constant 0 : i32
    return %arg2, %arg0 : i32, i32
  }
  func.func @transform_2(%arg0: i32, %arg1: i32, %arg2: i32) -> (i32, i32) {
    %c0_i32 = arith.constant 0 : i32
    return %arg1, %arg0 : i32, i32
  }
  func.func @transform_3(%arg0: i32, %arg1: i32, %arg2: i32) -> (i32, i32) {
    %c0_i32 = arith.constant 0 : i32
    %c0_i32_0 = arith.constant 0 : i32
    return %c0_i32, %arg0 : i32, i32
  }
  func.func @transform_4(%arg0: i32, %arg1: i32, %arg2: i32) -> (i32, i32) {
    %c0_i32 = arith.constant 0 : i32
    %c0_i32_0 = arith.constant 0 : i32
    return %c0_i32, %arg0 : i32, i32
  }
}

module attributes {stable_mosaic.version = 11 : i64} {
  func.func @_maxpool_kernel(%arg0: i32, %arg1: memref<1x5x5x128xbf16, #tpu.memory_space<vmem>>, %arg2: memref<1x5x4x128xbf16, #tpu.memory_space<vmem>>, %arg3: memref<1x4x5x128xbf16, #tpu.memory_space<vmem>>, %arg4: memref<1x4x4x128xbf16, #tpu.memory_space<vmem>>, %arg5: memref<1x4x4x128xbf16, #tpu.memory_space<vmem>>) attributes {dimension_semantics = [#tpu.dimension_semantics<parallel>], iteration_bounds = array<i64: 2>, scalar_prefetch = 0 : i64, scratch_operands = 0 : i64, tpu.core_type = #tpu.core_type<tc>, window_params = [{transform_indices = @transform_0, window_bounds = array<i64: 1, 5, 5, 128>}, {transform_indices = @transform_1, window_bounds = array<i64: 1, 5, 4, 128>}, {transform_indices = @transform_2, window_bounds = array<i64: 1, 4, 5, 128>}, {transform_indices = @transform_3, window_bounds = array<i64: 1, 4, 4, 128>}, {transform_indices = @transform_4, window_bounds = array<i64: 1, 4, 4, 128>}]} {
    %c0 = arith.constant 0 : index
    %c0_0 = arith.constant 0 : index
    %c0_1 = arith.constant 0 : index
    %c0_2 = arith.constant 0 : index
    %0 = vector.load %arg1[%c0, %c0_0, %c0_1, %c0_2] : memref<1x5x5x128xbf16, #tpu.memory_space<vmem>>, vector<1x5x5x128xbf16>
    %1 = vector.shape_cast %0 : vector<1x5x5x128xbf16> to vector<5x5x128xbf16>
    %2 = arith.extf %1 : vector<5x5x128xbf16> to vector<5x5x128xf32>
    %c0_3 = arith.constant 0 : index
    %c0_4 = arith.constant 0 : index
    %c0_5 = arith.constant 0 : index
    %c0_6 = arith.constant 0 : index
    %3 = vector.load %arg2[%c0_3, %c0_4, %c0_5, %c0_6] : memref<1x5x4x128xbf16, #tpu.memory_space<vmem>>, vector<1x5x4x128xbf16>
    %4 = vector.shape_cast %3 : vector<1x5x4x128xbf16> to vector<5x4x128xbf16>
    %5 = arith.extf %4 : vector<5x4x128xbf16> to vector<5x4x128xf32>
    %c0_7 = arith.constant 0 : index
    %c0_8 = arith.constant 0 : index
    %c0_9 = arith.constant 0 : index
    %c0_10 = arith.constant 0 : index
    %6 = vector.load %arg3[%c0_7, %c0_8, %c0_9, %c0_10] : memref<1x4x5x128xbf16, #tpu.memory_space<vmem>>, vector<1x4x5x128xbf16>
    %7 = vector.shape_cast %6 : vector<1x4x5x128xbf16> to vector<4x5x128xbf16>
    %8 = arith.extf %7 : vector<4x5x128xbf16> to vector<4x5x128xf32>
    %c0_11 = arith.constant 0 : index
    %c0_12 = arith.constant 0 : index
    %c0_13 = arith.constant 0 : index
    %c0_14 = arith.constant 0 : index
    %9 = vector.load %arg4[%c0_11, %c0_12, %c0_13, %c0_14] : memref<1x4x4x128xbf16, #tpu.memory_space<vmem>>, vector<1x4x4x128xbf16>
    %10 = vector.shape_cast %9 : vector<1x4x4x128xbf16> to vector<4x4x128xbf16>
    %11 = arith.extf %10 : vector<4x4x128xbf16> to vector<4x4x128xf32>
    %12 = vector.extract_strided_slice %2 {offsets = [0, 0, 0], sizes = [4, 4, 128], strides = [1, 1, 1]} : vector<5x5x128xf32> to vector<4x4x128xf32>
    %13 = arith.maximumf %11, %12 : vector<4x4x128xf32>
    %14 = vector.extract_strided_slice %2 {offsets = [0, 1, 0], sizes = [4, 4, 128], strides = [1, 1, 1]} : vector<5x5x128xf32> to vector<4x4x128xf32>
    %15 = arith.maximumf %13, %14 : vector<4x4x128xf32>
    %16 = vector.extract_strided_slice %2 {offsets = [1, 0, 0], sizes = [4, 4, 128], strides = [1, 1, 1]} : vector<5x5x128xf32> to vector<4x4x128xf32>
    %17 = arith.maximumf %15, %16 : vector<4x4x128xf32>
    %18 = vector.extract_strided_slice %2 {offsets = [1, 1, 0], sizes = [4, 4, 128], strides = [1, 1, 1]} : vector<5x5x128xf32> to vector<4x4x128xf32>
    %19 = arith.maximumf %17, %18 : vector<4x4x128xf32>
    %20 = vector.extract_strided_slice %5 {offsets = [0, 0, 0], sizes = [4, 4, 128], strides = [1, 1, 1]} : vector<5x4x128xf32> to vector<4x4x128xf32>
    %21 = arith.maximumf %19, %20 : vector<4x4x128xf32>
    %22 = vector.extract_strided_slice %5 {offsets = [1, 0, 0], sizes = [4, 4, 128], strides = [1, 1, 1]} : vector<5x4x128xf32> to vector<4x4x128xf32>
    %23 = arith.maximumf %21, %22 : vector<4x4x128xf32>
    %24 = vector.extract_strided_slice %8 {offsets = [0, 0, 0], sizes = [4, 4, 128], strides = [1, 1, 1]} : vector<4x5x128xf32> to vector<4x4x128xf32>
    %25 = arith.maximumf %23, %24 : vector<4x4x128xf32>
    %26 = vector.extract_strided_slice %8 {offsets = [0, 1, 0], sizes = [4, 4, 128], strides = [1, 1, 1]} : vector<4x5x128xf32> to vector<4x4x128xf32>
    %27 = arith.maximumf %25, %26 : vector<4x4x128xf32>
    %28 = arith.truncf %27 : vector<4x4x128xf32> to vector<4x4x128xbf16>
    %c0_15 = arith.constant 0 : index
    %c0_16 = arith.constant 0 : index
    %c0_17 = arith.constant 0 : index
    %c0_18 = arith.constant 0 : index
    %29 = vector.load %arg5[%c0_15, %c0_16, %c0_17, %c0_18] : memref<1x4x4x128xbf16, #tpu.memory_space<vmem>>, vector<1x4x4x128xbf16>
    %30 = vector.shape_cast %29 : vector<1x4x4x128xbf16> to vector<4x4x128xbf16>
    %31 = vector.shape_cast %28 : vector<4x4x128xbf16> to vector<1x4x4x128xbf16>
    tpu.vector_store %arg5[%c0_15, %c0_16, %c0_17, %c0_18], %31 {strides = array<i32>} : memref<1x4x4x128xbf16, #tpu.memory_space<vmem>>, vector<1x4x4x128xbf16>,
    return
  }
  func.func @transform_0(%arg0: i32) -> (i32, i32, i32, i32) {
    %c0_i32 = arith.constant 0 : i32
    %c0_i32_0 = arith.constant 0 : i32
    %c0_i32_1 = arith.constant 0 : i32
    %c0_i32_2 = arith.constant 0 : i32
    return %arg0, %c0_i32, %c0_i32_0, %c0_i32_1 : i32, i32, i32, i32
  }
  func.func @transform_1(%arg0: i32) -> (i32, i32, i32, i32) {
    %c0_i32 = arith.constant 0 : i32
    %c0_i32_0 = arith.constant 0 : i32
    %c0_i32_1 = arith.constant 0 : i32
    %c0_i32_2 = arith.constant 0 : i32
    return %arg0, %c0_i32, %c0_i32_0, %c0_i32_1 : i32, i32, i32, i32
  }
  func.func @transform_2(%arg0: i32) -> (i32, i32, i32, i32) {
    %c0_i32 = arith.constant 0 : i32
    %c0_i32_0 = arith.constant 0 : i32
    %c0_i32_1 = arith.constant 0 : i32
    %c0_i32_2 = arith.constant 0 : i32
    return %arg0, %c0_i32, %c0_i32_0, %c0_i32_1 : i32, i32, i32, i32
  }
  func.func @transform_3(%arg0: i32) -> (i32, i32, i32, i32) {
    %c0_i32 = arith.constant 0 : i32
    %c0_i32_0 = arith.constant 0 : i32
    %c0_i32_1 = arith.constant 0 : i32
    %c0_i32_2 = arith.constant 0 : i32
    return %arg0, %c0_i32, %c0_i32_0, %c0_i32_1 : i32, i32, i32, i32
  }
  func.func @transform_4(%arg0: i32) -> (i32, i32, i32, i32) {
    %c0_i32 = arith.constant 0 : i32
    %c0_i32_0 = arith.constant 0 : i32
    %c0_i32_1 = arith.constant 0 : i32
    %c0_i32_2 = arith.constant 0 : i32
    return %arg0, %c0_i32, %c0_i32_0, %c0_i32_1 : i32, i32, i32, i32
  }
}

module attributes {stable_mosaic.version = 11 : i64} {
  func.func @_gemm_stats_kernel(%arg0: i32, %arg1: i32, %arg2: i32, %arg3: memref<32x384xbf16, #tpu.memory_space<vmem>>, %arg4: memref<384x128xbf16, #tpu.memory_space<vmem>>, %arg5: memref<32x128xf32, #tpu.memory_space<vmem>>, %arg6: memref<1x128xf32, #tpu.memory_space<vmem>>, %arg7: memref<1x128xf32, #tpu.memory_space<vmem>>, %arg8: memref<32x128xf32, #tpu.memory_space<vmem>>) attributes {dimension_semantics = [#tpu.dimension_semantics<parallel>, #tpu.dimension_semantics<arbitrary>, #tpu.dimension_semantics<arbitrary>], iteration_bounds = array<i64: 1, 1, 3>, scalar_prefetch = 0 : i64, scratch_operands = 1 : i64, tpu.core_type = #tpu.core_type<tc>, window_params = [{transform_indices = @transform_0, window_bounds = array<i64: 32, 384>}, {transform_indices = @transform_1, window_bounds = array<i64: 384, 128>}, {transform_indices = @transform_2, window_bounds = array<i64: 32, 128>}, {transform_indices = @transform_3, window_bounds = array<i64: 1, 128>}, {transform_indices = @transform_4, window_bounds = array<i64: 1, 128>}]} {
    %c0_i32 = arith.constant 0 : i32
    %0 = arith.cmpi eq, %arg2, %c0_i32 : i32
    %1 = arith.extui %0 : i1 to i32
    %c0_i32_0 = arith.constant 0 : i32
    %2 = arith.cmpi ne, %1, %c0_i32_0 : i32
    scf.if %2 {
      %cst_12 = arith.constant 0.000000e+00 : f32
      %17 = vector.broadcast %cst_12 : f32 to vector<32x128xf32>
      %c0_13 = arith.constant 0 : index
      %c0_14 = arith.constant 0 : index
      %18 = vector.load %arg8[%c0_13, %c0_14] : memref<32x128xf32, #tpu.memory_space<vmem>>, vector<32x128xf32>
      tpu.vector_store %arg8[%c0_13, %c0_14], %17 {strides = array<i32>} : memref<32x128xf32, #tpu.memory_space<vmem>>, vector<32x128xf32>,
    } else {
    }
    %c0_i32_1 = arith.constant 0 : i32
    %3 = arith.cmpi eq, %arg2, %c0_i32_1 : i32
    %c0_i32_2 = arith.constant 0 : i32
    %4 = arith.cmpi eq, %arg1, %c0_i32_2 : i32
    %5 = arith.andi %3, %4 : i1
    %6 = arith.extui %5 : i1 to i32
    %c0_i32_3 = arith.constant 0 : i32
    %7 = arith.cmpi ne, %6, %c0_i32_3 : i32
    scf.if %7 {
      %cst_12 = arith.constant 0.000000e+00 : f32
      %17 = vector.broadcast %cst_12 : f32 to vector<1x128xf32>
      %c0_13 = arith.constant 0 : index
      %c0_14 = arith.constant 0 : index
      %18 = vector.load %arg6[%c0_13, %c0_14] : memref<1x128xf32, #tpu.memory_space<vmem>>, vector<1x128xf32>
      tpu.vector_store %arg6[%c0_13, %c0_14], %17 {strides = array<i32>} : memref<1x128xf32, #tpu.memory_space<vmem>>, vector<1x128xf32>,
      %cst_15 = arith.constant 0.000000e+00 : f32
      %19 = vector.broadcast %cst_15 : f32 to vector<1x128xf32>
      %c0_16 = arith.constant 0 : index
      %c0_17 = arith.constant 0 : index
      %20 = vector.load %arg7[%c0_16, %c0_17] : memref<1x128xf32, #tpu.memory_space<vmem>>, vector<1x128xf32>
      tpu.vector_store %arg7[%c0_16, %c0_17], %19 {strides = array<i32>} : memref<1x128xf32, #tpu.memory_space<vmem>>, vector<1x128xf32>,
    } else {
    }
    %c0 = arith.constant 0 : index
    %c0_4 = arith.constant 0 : index
    %8 = vector.load %arg8[%c0, %c0_4] : memref<32x128xf32, #tpu.memory_space<vmem>>, vector<32x128xf32>
    %c0_5 = arith.constant 0 : index
    %c0_6 = arith.constant 0 : index
    %9 = vector.load %arg3[%c0_5, %c0_6] : memref<32x384xbf16, #tpu.memory_space<vmem>>, vector<32x384xbf16>
    %c0_7 = arith.constant 0 : index
    %c0_8 = arith.constant 0 : index
    %10 = vector.load %arg4[%c0_7, %c0_8] : memref<384x128xbf16, #tpu.memory_space<vmem>>, vector<384x128xbf16>
    %cst = arith.constant dense<0.000000e+00> : vector<32x128xf32>
    %11 = tpu.matmul %9, %10, %cst {dimension_numbers = #tpu.dot_dimension_numbers<[1], [0], [0], [1], [0, 0, 1, 1], [], []>} : vector<32x384xbf16>, vector<384x128xbf16>, vector<32x128xf32> -> vector<32x128xf32>
    %12 = arith.addf %8, %11 : vector<32x128xf32>
    %c0_9 = arith.constant 0 : index
    %c0_10 = arith.constant 0 : index
    %13 = vector.load %arg8[%c0_9, %c0_10] : memref<32x128xf32, #tpu.memory_space<vmem>>, vector<32x128xf32>
    tpu.vector_store %arg8[%c0_9, %c0_10], %12 {strides = array<i32>} : memref<32x128xf32, #tpu.memory_space<vmem>>, vector<32x128xf32>,
    %c2_i32 = arith.constant 2 : i32
    %14 = arith.cmpi eq, %arg2, %c2_i32 : i32
    %15 = arith.extui %14 : i1 to i32
    %c0_i32_11 = arith.constant 0 : i32
    %16 = arith.cmpi ne, %15, %c0_i32_11 : i32
    scf.if %16 {
      %c0_12 = arith.constant 0 : index
      %c0_13 = arith.constant 0 : index
      %17 = vector.load %arg8[%c0_12, %c0_13] : memref<32x128xf32, #tpu.memory_space<vmem>>, vector<32x128xf32>
      %c0_14 = arith.constant 0 : index
      %c0_15 = arith.constant 0 : index
      %18 = vector.load %arg5[%c0_14, %c0_15] : memref<32x128xf32, #tpu.memory_space<vmem>>, vector<32x128xf32>
      tpu.vector_store %arg5[%c0_14, %c0_15], %17 {strides = array<i32>} : memref<32x128xf32, #tpu.memory_space<vmem>>, vector<32x128xf32>,
      %c0_16 = arith.constant 0 : index
      %c0_17 = arith.constant 0 : index
      %19 = vector.load %arg6[%c0_16, %c0_17] : memref<1x128xf32, #tpu.memory_space<vmem>>, vector<1x128xf32>
      %cst_18 = arith.constant dense<0.000000e+00> : vector<128xf32>
      %20 = vector.multi_reduction <add>, %17, %cst_18 [0] : vector<32x128xf32> to vector<128xf32>
      %21 = vector.shape_cast %20 : vector<128xf32> to vector<1x128xf32>
      %22 = arith.addf %19, %21 : vector<1x128xf32>
      %c0_19 = arith.constant 0 : index
      %c0_20 = arith.constant 0 : index
      %23 = vector.load %arg6[%c0_19, %c0_20] : memref<1x128xf32, #tpu.memory_space<vmem>>, vector<1x128xf32>
      tpu.vector_store %arg6[%c0_19, %c0_20], %22 {strides = array<i32>} : memref<1x128xf32, #tpu.memory_space<vmem>>, vector<1x128xf32>,
      %c0_21 = arith.constant 0 : index
      %c0_22 = arith.constant 0 : index
      %24 = vector.load %arg7[%c0_21, %c0_22] : memref<1x128xf32, #tpu.memory_space<vmem>>, vector<1x128xf32>
      %25 = arith.mulf %17, %17 : vector<32x128xf32>
      %cst_23 = arith.constant dense<0.000000e+00> : vector<128xf32>
      %26 = vector.multi_reduction <add>, %25, %cst_23 [0] : vector<32x128xf32> to vector<128xf32>
      %27 = vector.shape_cast %26 : vector<128xf32> to vector<1x128xf32>
      %28 = arith.addf %24, %27 : vector<1x128xf32>
      %c0_24 = arith.constant 0 : index
      %c0_25 = arith.constant 0 : index
      %29 = vector.load %arg7[%c0_24, %c0_25] : memref<1x128xf32, #tpu.memory_space<vmem>>, vector<1x128xf32>
      tpu.vector_store %arg7[%c0_24, %c0_25], %28 {strides = array<i32>} : memref<1x128xf32, #tpu.memory_space<vmem>>, vector<1x128xf32>,
    } else {
    }
    return
  }
  func.func @transform_0(%arg0: i32, %arg1: i32, %arg2: i32) -> (i32, i32) {
    %c0_i32 = arith.constant 0 : i32
    return %arg1, %arg2 : i32, i32
  }
  func.func @transform_1(%arg0: i32, %arg1: i32, %arg2: i32) -> (i32, i32) {
    %c0_i32 = arith.constant 0 : i32
    return %arg2, %arg0 : i32, i32
  }
  func.func @transform_2(%arg0: i32, %arg1: i32, %arg2: i32) -> (i32, i32) {
    %c0_i32 = arith.constant 0 : i32
    return %arg1, %arg0 : i32, i32
  }
  func.func @transform_3(%arg0: i32, %arg1: i32, %arg2: i32) -> (i32, i32) {
    %c0_i32 = arith.constant 0 : i32
    %c0_i32_0 = arith.constant 0 : i32
    return %c0_i32, %arg0 : i32, i32
  }
  func.func @transform_4(%arg0: i32, %arg1: i32, %arg2: i32) -> (i32, i32) {
    %c0_i32 = arith.constant 0 : i32
    %c0_i32_0 = arith.constant 0 : i32
    return %c0_i32, %arg0 : i32, i32
  }
}

module attributes {stable_mosaic.version = 11 : i64} {
  func.func @_gemm_stats_kernel(%arg0: i32, %arg1: i32, %arg2: i32, %arg3: memref<32x384xbf16, #tpu.memory_space<vmem>>, %arg4: memref<384x128xbf16, #tpu.memory_space<vmem>>, %arg5: memref<32x128xf32, #tpu.memory_space<vmem>>, %arg6: memref<1x128xf32, #tpu.memory_space<vmem>>, %arg7: memref<1x128xf32, #tpu.memory_space<vmem>>, %arg8: memref<32x128xf32, #tpu.memory_space<vmem>>) attributes {dimension_semantics = [#tpu.dimension_semantics<parallel>, #tpu.dimension_semantics<arbitrary>, #tpu.dimension_semantics<arbitrary>], iteration_bounds = array<i64: 1, 1, 3>, scalar_prefetch = 0 : i64, scratch_operands = 1 : i64, tpu.core_type = #tpu.core_type<tc>, window_params = [{transform_indices = @transform_0, window_bounds = array<i64: 32, 384>}, {transform_indices = @transform_1, window_bounds = array<i64: 384, 128>}, {transform_indices = @transform_2, window_bounds = array<i64: 32, 128>}, {transform_indices = @transform_3, window_bounds = array<i64: 1, 128>}, {transform_indices = @transform_4, window_bounds = array<i64: 1, 128>}]} {
    %c0_i32 = arith.constant 0 : i32
    %0 = arith.cmpi eq, %arg2, %c0_i32 : i32
    %1 = arith.extui %0 : i1 to i32
    %c0_i32_0 = arith.constant 0 : i32
    %2 = arith.cmpi ne, %1, %c0_i32_0 : i32
    scf.if %2 {
      %cst_12 = arith.constant 0.000000e+00 : f32
      %17 = vector.broadcast %cst_12 : f32 to vector<32x128xf32>
      %c0_13 = arith.constant 0 : index
      %c0_14 = arith.constant 0 : index
      %18 = vector.load %arg8[%c0_13, %c0_14] : memref<32x128xf32, #tpu.memory_space<vmem>>, vector<32x128xf32>
      tpu.vector_store %arg8[%c0_13, %c0_14], %17 {strides = array<i32>} : memref<32x128xf32, #tpu.memory_space<vmem>>, vector<32x128xf32>,
    } else {
    }
    %c0_i32_1 = arith.constant 0 : i32
    %3 = arith.cmpi eq, %arg2, %c0_i32_1 : i32
    %c0_i32_2 = arith.constant 0 : i32
    %4 = arith.cmpi eq, %arg1, %c0_i32_2 : i32
    %5 = arith.andi %3, %4 : i1
    %6 = arith.extui %5 : i1 to i32
    %c0_i32_3 = arith.constant 0 : i32
    %7 = arith.cmpi ne, %6, %c0_i32_3 : i32
    scf.if %7 {
      %cst_12 = arith.constant 0.000000e+00 : f32
      %17 = vector.broadcast %cst_12 : f32 to vector<1x128xf32>
      %c0_13 = arith.constant 0 : index
      %c0_14 = arith.constant 0 : index
      %18 = vector.load %arg6[%c0_13, %c0_14] : memref<1x128xf32, #tpu.memory_space<vmem>>, vector<1x128xf32>
      tpu.vector_store %arg6[%c0_13, %c0_14], %17 {strides = array<i32>} : memref<1x128xf32, #tpu.memory_space<vmem>>, vector<1x128xf32>,
      %cst_15 = arith.constant 0.000000e+00 : f32
      %19 = vector.broadcast %cst_15 : f32 to vector<1x128xf32>
      %c0_16 = arith.constant 0 : index
      %c0_17 = arith.constant 0 : index
      %20 = vector.load %arg7[%c0_16, %c0_17] : memref<1x128xf32, #tpu.memory_space<vmem>>, vector<1x128xf32>
      tpu.vector_store %arg7[%c0_16, %c0_17], %19 {strides = array<i32>} : memref<1x128xf32, #tpu.memory_space<vmem>>, vector<1x128xf32>,
    } else {
    }
    %c0 = arith.constant 0 : index
    %c0_4 = arith.constant 0 : index
    %8 = vector.load %arg8[%c0, %c0_4] : memref<32x128xf32, #tpu.memory_space<vmem>>, vector<32x128xf32>
    %c0_5 = arith.constant 0 : index
    %c0_6 = arith.constant 0 : index
    %9 = vector.load %arg3[%c0_5, %c0_6] : memref<32x384xbf16, #tpu.memory_space<vmem>>, vector<32x384xbf16>
    %c0_7 = arith.constant 0 : index
    %c0_8 = arith.constant 0 : index
    %10 = vector.load %arg4[%c0_7, %c0_8] : memref<384x128xbf16, #tpu.memory_space<vmem>>, vector<384x128xbf16>
    %cst = arith.constant dense<0.000000e+00> : vector<32x128xf32>
    %11 = tpu.matmul %9, %10, %cst {dimension_numbers = #tpu.dot_dimension_numbers<[1], [0], [0], [1], [0, 0, 1, 1], [], []>} : vector<32x384xbf16>, vector<384x128xbf16>, vector<32x128xf32> -> vector<32x128xf32>
    %12 = arith.addf %8, %11 : vector<32x128xf32>
    %c0_9 = arith.constant 0 : index
    %c0_10 = arith.constant 0 : index
    %13 = vector.load %arg8[%c0_9, %c0_10] : memref<32x128xf32, #tpu.memory_space<vmem>>, vector<32x128xf32>
    tpu.vector_store %arg8[%c0_9, %c0_10], %12 {strides = array<i32>} : memref<32x128xf32, #tpu.memory_space<vmem>>, vector<32x128xf32>,
    %c2_i32 = arith.constant 2 : i32
    %14 = arith.cmpi eq, %arg2, %c2_i32 : i32
    %15 = arith.extui %14 : i1 to i32
    %c0_i32_11 = arith.constant 0 : i32
    %16 = arith.cmpi ne, %15, %c0_i32_11 : i32
    scf.if %16 {
      %c0_12 = arith.constant 0 : index
      %c0_13 = arith.constant 0 : index
      %17 = vector.load %arg8[%c0_12, %c0_13] : memref<32x128xf32, #tpu.memory_space<vmem>>, vector<32x128xf32>
      %c0_14 = arith.constant 0 : index
      %c0_15 = arith.constant 0 : index
      %18 = vector.load %arg5[%c0_14, %c0_15] : memref<32x128xf32, #tpu.memory_space<vmem>>, vector<32x128xf32>
      tpu.vector_store %arg5[%c0_14, %c0_15], %17 {strides = array<i32>} : memref<32x128xf32, #tpu.memory_space<vmem>>, vector<32x128xf32>,
      %c0_16 = arith.constant 0 : index
      %c0_17 = arith.constant 0 : index
      %19 = vector.load %arg6[%c0_16, %c0_17] : memref<1x128xf32, #tpu.memory_space<vmem>>, vector<1x128xf32>
      %cst_18 = arith.constant dense<0.000000e+00> : vector<128xf32>
      %20 = vector.multi_reduction <add>, %17, %cst_18 [0] : vector<32x128xf32> to vector<128xf32>
      %21 = vector.shape_cast %20 : vector<128xf32> to vector<1x128xf32>
      %22 = arith.addf %19, %21 : vector<1x128xf32>
      %c0_19 = arith.constant 0 : index
      %c0_20 = arith.constant 0 : index
      %23 = vector.load %arg6[%c0_19, %c0_20] : memref<1x128xf32, #tpu.memory_space<vmem>>, vector<1x128xf32>
      tpu.vector_store %arg6[%c0_19, %c0_20], %22 {strides = array<i32>} : memref<1x128xf32, #tpu.memory_space<vmem>>, vector<1x128xf32>,
      %c0_21 = arith.constant 0 : index
      %c0_22 = arith.constant 0 : index
      %24 = vector.load %arg7[%c0_21, %c0_22] : memref<1x128xf32, #tpu.memory_space<vmem>>, vector<1x128xf32>
      %25 = arith.mulf %17, %17 : vector<32x128xf32>
      %cst_23 = arith.constant dense<0.000000e+00> : vector<128xf32>
      %26 = vector.multi_reduction <add>, %25, %cst_23 [0] : vector<32x128xf32> to vector<128xf32>
      %27 = vector.shape_cast %26 : vector<128xf32> to vector<1x128xf32>
      %28 = arith.addf %24, %27 : vector<1x128xf32>
      %c0_24 = arith.constant 0 : index
      %c0_25 = arith.constant 0 : index
      %29 = vector.load %arg7[%c0_24, %c0_25] : memref<1x128xf32, #tpu.memory_space<vmem>>, vector<1x128xf32>
      tpu.vector_store %arg7[%c0_24, %c0_25], %28 {strides = array<i32>} : memref<1x128xf32, #tpu.memory_space<vmem>>, vector<1x128xf32>,
    } else {
    }
    return
  }
  func.func @transform_0(%arg0: i32, %arg1: i32, %arg2: i32) -> (i32, i32) {
    %c0_i32 = arith.constant 0 : i32
    return %arg1, %arg2 : i32, i32
  }
  func.func @transform_1(%arg0: i32, %arg1: i32, %arg2: i32) -> (i32, i32) {
    %c0_i32 = arith.constant 0 : i32
    return %arg2, %arg0 : i32, i32
  }
  func.func @transform_2(%arg0: i32, %arg1: i32, %arg2: i32) -> (i32, i32) {
    %c0_i32 = arith.constant 0 : i32
    return %arg1, %arg0 : i32, i32
  }
  func.func @transform_3(%arg0: i32, %arg1: i32, %arg2: i32) -> (i32, i32) {
    %c0_i32 = arith.constant 0 : i32
    %c0_i32_0 = arith.constant 0 : i32
    return %c0_i32, %arg0 : i32, i32
  }
  func.func @transform_4(%arg0: i32, %arg1: i32, %arg2: i32) -> (i32, i32) {
    %c0_i32 = arith.constant 0 : i32
    %c0_i32_0 = arith.constant 0 : i32
    return %c0_i32, %arg0 : i32, i32
  }
}

module attributes {stable_mosaic.version = 11 : i64} {
  func.func @_bn_act_kernel(%arg0: i32, %arg1: i32, %arg2: memref<32x128xf32, #tpu.memory_space<vmem>>, %arg3: memref<1x128xf32, #tpu.memory_space<vmem>>, %arg4: memref<1x128xf32, #tpu.memory_space<vmem>>, %arg5: memref<1x128xf32, #tpu.memory_space<vmem>>, %arg6: memref<1x128xf32, #tpu.memory_space<vmem>>, %arg7: memref<32x128xbf16, #tpu.memory_space<vmem>>) attributes {dimension_semantics = [#tpu.dimension_semantics<parallel>, #tpu.dimension_semantics<parallel>], iteration_bounds = array<i64: 1, 1>, scalar_prefetch = 0 : i64, scratch_operands = 0 : i64, tpu.core_type = #tpu.core_type<tc>, window_params = [{transform_indices = @transform_0, window_bounds = array<i64: 32, 128>}, {transform_indices = @transform_1, window_bounds = array<i64: 1, 128>}, {transform_indices = @transform_2, window_bounds = array<i64: 1, 128>}, {transform_indices = @transform_3, window_bounds = array<i64: 1, 128>}, {transform_indices = @transform_4, window_bounds = array<i64: 1, 128>}, {transform_indices = @transform_5, window_bounds = array<i64: 32, 128>}]} {
    %c0 = arith.constant 0 : index
    %c0_0 = arith.constant 0 : index
    %0 = vector.load %arg3[%c0, %c0_0] : memref<1x128xf32, #tpu.memory_space<vmem>>, vector<1x128xf32>
    %cst = arith.constant 3.125000e-02 : f32
    %1 = vector.broadcast %cst : f32 to vector<1x128xf32>
    %2 = arith.mulf %0, %1 : vector<1x128xf32>
    %c0_1 = arith.constant 0 : index
    %c0_2 = arith.constant 0 : index
    %3 = vector.load %arg4[%c0_1, %c0_2] : memref<1x128xf32, #tpu.memory_space<vmem>>, vector<1x128xf32>
    %cst_3 = arith.constant 3.125000e-02 : f32
    %4 = vector.broadcast %cst_3 : f32 to vector<1x128xf32>
    %5 = arith.mulf %3, %4 : vector<1x128xf32>
    %6 = arith.mulf %2, %2 : vector<1x128xf32>
    %7 = arith.subf %5, %6 : vector<1x128xf32>
    %cst_4 = arith.constant 0.000000e+00 : f32
    %8 = vector.broadcast %cst_4 : f32 to vector<1x128xf32>
    %9 = arith.maximumf %7, %8 : vector<1x128xf32>
    %cst_5 = arith.constant 9.99999974E-6 : f32
    %10 = vector.broadcast %cst_5 : f32 to vector<1x128xf32>
    %11 = arith.addf %9, %10 : vector<1x128xf32>
    %12 = math.rsqrt %11 : vector<1x128xf32>
    %c0_6 = arith.constant 0 : index
    %c0_7 = arith.constant 0 : index
    %13 = vector.load %arg5[%c0_6, %c0_7] : memref<1x128xf32, #tpu.memory_space<vmem>>, vector<1x128xf32>
    %14 = arith.mulf %12, %13 : vector<1x128xf32>
    %c0_8 = arith.constant 0 : index
    %c0_9 = arith.constant 0 : index
    %15 = vector.load %arg2[%c0_8, %c0_9] : memref<32x128xf32, #tpu.memory_space<vmem>>, vector<32x128xf32>
    %16 = vector.broadcast %2 : vector<1x128xf32> to vector<32x128xf32>
    %17 = arith.subf %15, %16 : vector<32x128xf32>
    %18 = vector.broadcast %14 : vector<1x128xf32> to vector<32x128xf32>
    %19 = arith.mulf %17, %18 : vector<32x128xf32>
    %c0_10 = arith.constant 0 : index
    %c0_11 = arith.constant 0 : index
    %20 = vector.load %arg6[%c0_10, %c0_11] : memref<1x128xf32, #tpu.memory_space<vmem>>, vector<1x128xf32>
    %21 = vector.broadcast %20 : vector<1x128xf32> to vector<32x128xf32>
    %22 = arith.addf %19, %21 : vector<32x128xf32>
    %cst_12 = arith.constant 0.000000e+00 : f32
    %23 = vector.broadcast %cst_12 : f32 to vector<32x128xf32>
    %24 = arith.maximumf %22, %23 : vector<32x128xf32>
    %25 = arith.truncf %24 : vector<32x128xf32> to vector<32x128xbf16>
    %c0_13 = arith.constant 0 : index
    %c0_14 = arith.constant 0 : index
    %26 = vector.load %arg7[%c0_13, %c0_14] : memref<32x128xbf16, #tpu.memory_space<vmem>>, vector<32x128xbf16>
    tpu.vector_store %arg7[%c0_13, %c0_14], %25 {strides = array<i32>} : memref<32x128xbf16, #tpu.memory_space<vmem>>, vector<32x128xbf16>,
    return
  }
  func.func @transform_0(%arg0: i32, %arg1: i32) -> (i32, i32) {
    %c0_i32 = arith.constant 0 : i32
    return %arg0, %arg1 : i32, i32
  }
  func.func @transform_1(%arg0: i32, %arg1: i32) -> (i32, i32) {
    %c0_i32 = arith.constant 0 : i32
    %c0_i32_0 = arith.constant 0 : i32
    return %c0_i32, %arg1 : i32, i32
  }
  func.func @transform_2(%arg0: i32, %arg1: i32) -> (i32, i32) {
    %c0_i32 = arith.constant 0 : i32
    %c0_i32_0 = arith.constant 0 : i32
    return %c0_i32, %arg1 : i32, i32
  }
  func.func @transform_3(%arg0: i32, %arg1: i32) -> (i32, i32) {
    %c0_i32 = arith.constant 0 : i32
    %c0_i32_0 = arith.constant 0 : i32
    return %c0_i32, %arg1 : i32, i32
  }
  func.func @transform_4(%arg0: i32, %arg1: i32) -> (i32, i32) {
    %c0_i32 = arith.constant 0 : i32
    %c0_i32_0 = arith.constant 0 : i32
    return %c0_i32, %arg1 : i32, i32
  }
  func.func @transform_5(%arg0: i32, %arg1: i32) -> (i32, i32) {
    %c0_i32 = arith.constant 0 : i32
    return %arg0, %arg1 : i32, i32
  }
}

module attributes {stable_mosaic.version = 11 : i64} {
  func.func @_bn_act_res_kernel(%arg0: i32, %arg1: i32, %arg2: memref<32x128xf32, #tpu.memory_space<vmem>>, %arg3: memref<1x128xf32, #tpu.memory_space<vmem>>, %arg4: memref<1x128xf32, #tpu.memory_space<vmem>>, %arg5: memref<1x128xf32, #tpu.memory_space<vmem>>, %arg6: memref<1x128xf32, #tpu.memory_space<vmem>>, %arg7: memref<32x128xbf16, #tpu.memory_space<vmem>>, %arg8: memref<32x128xbf16, #tpu.memory_space<vmem>>) attributes {dimension_semantics = [#tpu.dimension_semantics<parallel>, #tpu.dimension_semantics<parallel>], iteration_bounds = array<i64: 1, 1>, scalar_prefetch = 0 : i64, scratch_operands = 0 : i64, tpu.core_type = #tpu.core_type<tc>, window_params = [{transform_indices = @transform_0, window_bounds = array<i64: 32, 128>}, {transform_indices = @transform_1, window_bounds = array<i64: 1, 128>}, {transform_indices = @transform_2, window_bounds = array<i64: 1, 128>}, {transform_indices = @transform_3, window_bounds = array<i64: 1, 128>}, {transform_indices = @transform_4, window_bounds = array<i64: 1, 128>}, {transform_indices = @transform_5, window_bounds = array<i64: 32, 128>}, {transform_indices = @transform_6, window_bounds = array<i64: 32, 128>}]} {
    %c0 = arith.constant 0 : index
    %c0_0 = arith.constant 0 : index
    %0 = vector.load %arg3[%c0, %c0_0] : memref<1x128xf32, #tpu.memory_space<vmem>>, vector<1x128xf32>
    %cst = arith.constant 3.125000e-02 : f32
    %1 = vector.broadcast %cst : f32 to vector<1x128xf32>
    %2 = arith.mulf %0, %1 : vector<1x128xf32>
    %c0_1 = arith.constant 0 : index
    %c0_2 = arith.constant 0 : index
    %3 = vector.load %arg4[%c0_1, %c0_2] : memref<1x128xf32, #tpu.memory_space<vmem>>, vector<1x128xf32>
    %cst_3 = arith.constant 3.125000e-02 : f32
    %4 = vector.broadcast %cst_3 : f32 to vector<1x128xf32>
    %5 = arith.mulf %3, %4 : vector<1x128xf32>
    %6 = arith.mulf %2, %2 : vector<1x128xf32>
    %7 = arith.subf %5, %6 : vector<1x128xf32>
    %cst_4 = arith.constant 0.000000e+00 : f32
    %8 = vector.broadcast %cst_4 : f32 to vector<1x128xf32>
    %9 = arith.maximumf %7, %8 : vector<1x128xf32>
    %cst_5 = arith.constant 9.99999974E-6 : f32
    %10 = vector.broadcast %cst_5 : f32 to vector<1x128xf32>
    %11 = arith.addf %9, %10 : vector<1x128xf32>
    %12 = math.rsqrt %11 : vector<1x128xf32>
    %c0_6 = arith.constant 0 : index
    %c0_7 = arith.constant 0 : index
    %13 = vector.load %arg5[%c0_6, %c0_7] : memref<1x128xf32, #tpu.memory_space<vmem>>, vector<1x128xf32>
    %14 = arith.mulf %12, %13 : vector<1x128xf32>
    %c0_8 = arith.constant 0 : index
    %c0_9 = arith.constant 0 : index
    %15 = vector.load %arg2[%c0_8, %c0_9] : memref<32x128xf32, #tpu.memory_space<vmem>>, vector<32x128xf32>
    %16 = vector.broadcast %2 : vector<1x128xf32> to vector<32x128xf32>
    %17 = arith.subf %15, %16 : vector<32x128xf32>
    %18 = vector.broadcast %14 : vector<1x128xf32> to vector<32x128xf32>
    %19 = arith.mulf %17, %18 : vector<32x128xf32>
    %c0_10 = arith.constant 0 : index
    %c0_11 = arith.constant 0 : index
    %20 = vector.load %arg6[%c0_10, %c0_11] : memref<1x128xf32, #tpu.memory_space<vmem>>, vector<1x128xf32>
    %21 = vector.broadcast %20 : vector<1x128xf32> to vector<32x128xf32>
    %22 = arith.addf %19, %21 : vector<32x128xf32>
    %c0_12 = arith.constant 0 : index
    %c0_13 = arith.constant 0 : index
    %23 = vector.load %arg7[%c0_12, %c0_13] : memref<32x128xbf16, #tpu.memory_space<vmem>>, vector<32x128xbf16>
    %24 = arith.extf %23 : vector<32x128xbf16> to vector<32x128xf32>
    %25 = arith.addf %22, %24 : vector<32x128xf32>
    %cst_14 = arith.constant 0.000000e+00 : f32
    %26 = vector.broadcast %cst_14 : f32 to vector<32x128xf32>
    %27 = arith.maximumf %25, %26 : vector<32x128xf32>
    %28 = arith.truncf %27 : vector<32x128xf32> to vector<32x128xbf16>
    %c0_15 = arith.constant 0 : index
    %c0_16 = arith.constant 0 : index
    %29 = vector.load %arg8[%c0_15, %c0_16] : memref<32x128xbf16, #tpu.memory_space<vmem>>, vector<32x128xbf16>
    tpu.vector_store %arg8[%c0_15, %c0_16], %28 {strides = array<i32>} : memref<32x128xbf16, #tpu.memory_space<vmem>>, vector<32x128xbf16>,
    return
  }
  func.func @transform_0(%arg0: i32, %arg1: i32) -> (i32, i32) {
    %c0_i32 = arith.constant 0 : i32
    return %arg0, %arg1 : i32, i32
  }
  func.func @transform_1(%arg0: i32, %arg1: i32) -> (i32, i32) {
    %c0_i32 = arith.constant 0 : i32
    %c0_i32_0 = arith.constant 0 : i32
    return %c0_i32, %arg1 : i32, i32
  }
  func.func @transform_2(%arg0: i32, %arg1: i32) -> (i32, i32) {
    %c0_i32 = arith.constant 0 : i32
    %c0_i32_0 = arith.constant 0 : i32
    return %c0_i32, %arg1 : i32, i32
  }
  func.func @transform_3(%arg0: i32, %arg1: i32) -> (i32, i32) {
    %c0_i32 = arith.constant 0 : i32
    %c0_i32_0 = arith.constant 0 : i32
    return %c0_i32, %arg1 : i32, i32
  }
  func.func @transform_4(%arg0: i32, %arg1: i32) -> (i32, i32) {
    %c0_i32 = arith.constant 0 : i32
    %c0_i32_0 = arith.constant 0 : i32
    return %c0_i32, %arg1 : i32, i32
  }
  func.func @transform_5(%arg0: i32, %arg1: i32) -> (i32, i32) {
    %c0_i32 = arith.constant 0 : i32
    return %arg0, %arg1 : i32, i32
  }
  func.func @transform_6(%arg0: i32, %arg1: i32) -> (i32, i32) {
    %c0_i32 = arith.constant 0 : i32
    return %arg0, %arg1 : i32, i32
  }
}

module attributes {stable_mosaic.version = 11 : i64} {
  func.func @_gemm_stats_kernel(%arg0: i32, %arg1: i32, %arg2: i32, %arg3: memref<8x128xbf16, #tpu.memory_space<vmem>>, %arg4: memref<128x128xbf16, #tpu.memory_space<vmem>>, %arg5: memref<8x128xf32, #tpu.memory_space<vmem>>, %arg6: memref<1x128xf32, #tpu.memory_space<vmem>>, %arg7: memref<1x128xf32, #tpu.memory_space<vmem>>, %arg8: memref<8x128xf32, #tpu.memory_space<vmem>>) attributes {dimension_semantics = [#tpu.dimension_semantics<parallel>, #tpu.dimension_semantics<arbitrary>, #tpu.dimension_semantics<arbitrary>], iteration_bounds = array<i64: 1, 1, 1>, scalar_prefetch = 0 : i64, scratch_operands = 1 : i64, tpu.core_type = #tpu.core_type<tc>, window_params = [{transform_indices = @transform_0, window_bounds = array<i64: 8, 128>}, {transform_indices = @transform_1, window_bounds = array<i64: 128, 128>}, {transform_indices = @transform_2, window_bounds = array<i64: 8, 128>}, {transform_indices = @transform_3, window_bounds = array<i64: 1, 128>}, {transform_indices = @transform_4, window_bounds = array<i64: 1, 128>}]} {
    %c0_i32 = arith.constant 0 : i32
    %0 = arith.cmpi eq, %arg2, %c0_i32 : i32
    %1 = arith.extui %0 : i1 to i32
    %c0_i32_0 = arith.constant 0 : i32
    %2 = arith.cmpi ne, %1, %c0_i32_0 : i32
    scf.if %2 {
      %cst_13 = arith.constant 0.000000e+00 : f32
      %17 = vector.broadcast %cst_13 : f32 to vector<8x128xf32>
      %c0_14 = arith.constant 0 : index
      %c0_15 = arith.constant 0 : index
      %18 = vector.load %arg8[%c0_14, %c0_15] : memref<8x128xf32, #tpu.memory_space<vmem>>, vector<8x128xf32>
      tpu.vector_store %arg8[%c0_14, %c0_15], %17 {strides = array<i32>} : memref<8x128xf32, #tpu.memory_space<vmem>>, vector<8x128xf32>,
    } else {
    }
    %c0_i32_1 = arith.constant 0 : i32
    %3 = arith.cmpi eq, %arg2, %c0_i32_1 : i32
    %c0_i32_2 = arith.constant 0 : i32
    %4 = arith.cmpi eq, %arg1, %c0_i32_2 : i32
    %5 = arith.andi %3, %4 : i1
    %6 = arith.extui %5 : i1 to i32
    %c0_i32_3 = arith.constant 0 : i32
    %7 = arith.cmpi ne, %6, %c0_i32_3 : i32
    scf.if %7 {
      %cst_13 = arith.constant 0.000000e+00 : f32
      %17 = vector.broadcast %cst_13 : f32 to vector<1x128xf32>
      %c0_14 = arith.constant 0 : index
      %c0_15 = arith.constant 0 : index
      %18 = vector.load %arg6[%c0_14, %c0_15] : memref<1x128xf32, #tpu.memory_space<vmem>>, vector<1x128xf32>
      tpu.vector_store %arg6[%c0_14, %c0_15], %17 {strides = array<i32>} : memref<1x128xf32, #tpu.memory_space<vmem>>, vector<1x128xf32>,
      %cst_16 = arith.constant 0.000000e+00 : f32
      %19 = vector.broadcast %cst_16 : f32 to vector<1x128xf32>
      %c0_17 = arith.constant 0 : index
      %c0_18 = arith.constant 0 : index
      %20 = vector.load %arg7[%c0_17, %c0_18] : memref<1x128xf32, #tpu.memory_space<vmem>>, vector<1x128xf32>
      tpu.vector_store %arg7[%c0_17, %c0_18], %19 {strides = array<i32>} : memref<1x128xf32, #tpu.memory_space<vmem>>, vector<1x128xf32>,
    } else {
    }
    %c0 = arith.constant 0 : index
    %c0_4 = arith.constant 0 : index
    %8 = vector.load %arg8[%c0, %c0_4] : memref<8x128xf32, #tpu.memory_space<vmem>>, vector<8x128xf32>
    %c0_5 = arith.constant 0 : index
    %c0_6 = arith.constant 0 : index
    %9 = vector.load %arg3[%c0_5, %c0_6] : memref<8x128xbf16, #tpu.memory_space<vmem>>, vector<8x128xbf16>
    %c0_7 = arith.constant 0 : index
    %c0_8 = arith.constant 0 : index
    %10 = vector.load %arg4[%c0_7, %c0_8] : memref<128x128xbf16, #tpu.memory_space<vmem>>, vector<128x128xbf16>
    %cst = arith.constant dense<0.000000e+00> : vector<8x128xf32>
    %11 = tpu.matmul %9, %10, %cst {dimension_numbers = #tpu.dot_dimension_numbers<[1], [0], [0], [1], [0, 0, 1, 1], [], []>} : vector<8x128xbf16>, vector<128x128xbf16>, vector<8x128xf32> -> vector<8x128xf32>
    %12 = arith.addf %8, %11 : vector<8x128xf32>
    %c0_9 = arith.constant 0 : index
    %c0_10 = arith.constant 0 : index
    %13 = vector.load %arg8[%c0_9, %c0_10] : memref<8x128xf32, #tpu.memory_space<vmem>>, vector<8x128xf32>
    tpu.vector_store %arg8[%c0_9, %c0_10], %12 {strides = array<i32>} : memref<8x128xf32, #tpu.memory_space<vmem>>, vector<8x128xf32>,
    %c0_i32_11 = arith.constant 0 : i32
    %14 = arith.cmpi eq, %arg2, %c0_i32_11 : i32
    %15 = arith.extui %14 : i1 to i32
    %c0_i32_12 = arith.constant 0 : i32
    %16 = arith.cmpi ne, %15, %c0_i32_12 : i32
    scf.if %16 {
      %c0_13 = arith.constant 0 : index
      %c0_14 = arith.constant 0 : index
      %17 = vector.load %arg8[%c0_13, %c0_14] : memref<8x128xf32, #tpu.memory_space<vmem>>, vector<8x128xf32>
      %c0_15 = arith.constant 0 : index
      %c0_16 = arith.constant 0 : index
      %18 = vector.load %arg5[%c0_15, %c0_16] : memref<8x128xf32, #tpu.memory_space<vmem>>, vector<8x128xf32>
      tpu.vector_store %arg5[%c0_15, %c0_16], %17 {strides = array<i32>} : memref<8x128xf32, #tpu.memory_space<vmem>>, vector<8x128xf32>,
      %c0_17 = arith.constant 0 : index
      %c0_18 = arith.constant 0 : index
      %19 = vector.load %arg6[%c0_17, %c0_18] : memref<1x128xf32, #tpu.memory_space<vmem>>, vector<1x128xf32>
      %cst_19 = arith.constant dense<0.000000e+00> : vector<128xf32>
      %20 = vector.multi_reduction <add>, %17, %cst_19 [0] : vector<8x128xf32> to vector<128xf32>
      %21 = vector.shape_cast %20 : vector<128xf32> to vector<1x128xf32>
      %22 = arith.addf %19, %21 : vector<1x128xf32>
      %c0_20 = arith.constant 0 : index
      %c0_21 = arith.constant 0 : index
      %23 = vector.load %arg6[%c0_20, %c0_21] : memref<1x128xf32, #tpu.memory_space<vmem>>, vector<1x128xf32>
      tpu.vector_store %arg6[%c0_20, %c0_21], %22 {strides = array<i32>} : memref<1x128xf32, #tpu.memory_space<vmem>>, vector<1x128xf32>,
      %c0_22 = arith.constant 0 : index
      %c0_23 = arith.constant 0 : index
      %24 = vector.load %arg7[%c0_22, %c0_23] : memref<1x128xf32, #tpu.memory_space<vmem>>, vector<1x128xf32>
      %25 = arith.mulf %17, %17 : vector<8x128xf32>
      %cst_24 = arith.constant dense<0.000000e+00> : vector<128xf32>
      %26 = vector.multi_reduction <add>, %25, %cst_24 [0] : vector<8x128xf32> to vector<128xf32>
      %27 = vector.shape_cast %26 : vector<128xf32> to vector<1x128xf32>
      %28 = arith.addf %24, %27 : vector<1x128xf32>
      %c0_25 = arith.constant 0 : index
      %c0_26 = arith.constant 0 : index
      %29 = vector.load %arg7[%c0_25, %c0_26] : memref<1x128xf32, #tpu.memory_space<vmem>>, vector<1x128xf32>
      tpu.vector_store %arg7[%c0_25, %c0_26], %28 {strides = array<i32>} : memref<1x128xf32, #tpu.memory_space<vmem>>, vector<1x128xf32>,
    } else {
    }
    return
  }
  func.func @transform_0(%arg0: i32, %arg1: i32, %arg2: i32) -> (i32, i32) {
    %c0_i32 = arith.constant 0 : i32
    return %arg1, %arg2 : i32, i32
  }
  func.func @transform_1(%arg0: i32, %arg1: i32, %arg2: i32) -> (i32, i32) {
    %c0_i32 = arith.constant 0 : i32
    return %arg2, %arg0 : i32, i32
  }
  func.func @transform_2(%arg0: i32, %arg1: i32, %arg2: i32) -> (i32, i32) {
    %c0_i32 = arith.constant 0 : i32
    return %arg1, %arg0 : i32, i32
  }
  func.func @transform_3(%arg0: i32, %arg1: i32, %arg2: i32) -> (i32, i32) {
    %c0_i32 = arith.constant 0 : i32
    %c0_i32_0 = arith.constant 0 : i32
    return %c0_i32, %arg0 : i32, i32
  }
  func.func @transform_4(%arg0: i32, %arg1: i32, %arg2: i32) -> (i32, i32) {
    %c0_i32 = arith.constant 0 : i32
    %c0_i32_0 = arith.constant 0 : i32
    return %c0_i32, %arg0 : i32, i32
  }
}

module attributes {stable_mosaic.version = 11 : i64} {
  func.func @_bn_act_kernel(%arg0: i32, %arg1: i32, %arg2: memref<8x128xf32, #tpu.memory_space<vmem>>, %arg3: memref<1x128xf32, #tpu.memory_space<vmem>>, %arg4: memref<1x128xf32, #tpu.memory_space<vmem>>, %arg5: memref<1x128xf32, #tpu.memory_space<vmem>>, %arg6: memref<1x128xf32, #tpu.memory_space<vmem>>, %arg7: memref<8x128xbf16, #tpu.memory_space<vmem>>) attributes {dimension_semantics = [#tpu.dimension_semantics<parallel>, #tpu.dimension_semantics<parallel>], iteration_bounds = array<i64: 1, 1>, scalar_prefetch = 0 : i64, scratch_operands = 0 : i64, tpu.core_type = #tpu.core_type<tc>, window_params = [{transform_indices = @transform_0, window_bounds = array<i64: 8, 128>}, {transform_indices = @transform_1, window_bounds = array<i64: 1, 128>}, {transform_indices = @transform_2, window_bounds = array<i64: 1, 128>}, {transform_indices = @transform_3, window_bounds = array<i64: 1, 128>}, {transform_indices = @transform_4, window_bounds = array<i64: 1, 128>}, {transform_indices = @transform_5, window_bounds = array<i64: 8, 128>}]} {
    %c0 = arith.constant 0 : index
    %c0_0 = arith.constant 0 : index
    %0 = vector.load %arg3[%c0, %c0_0] : memref<1x128xf32, #tpu.memory_space<vmem>>, vector<1x128xf32>
    %cst = arith.constant 1.250000e-01 : f32
    %1 = vector.broadcast %cst : f32 to vector<1x128xf32>
    %2 = arith.mulf %0, %1 : vector<1x128xf32>
    %c0_1 = arith.constant 0 : index
    %c0_2 = arith.constant 0 : index
    %3 = vector.load %arg4[%c0_1, %c0_2] : memref<1x128xf32, #tpu.memory_space<vmem>>, vector<1x128xf32>
    %cst_3 = arith.constant 1.250000e-01 : f32
    %4 = vector.broadcast %cst_3 : f32 to vector<1x128xf32>
    %5 = arith.mulf %3, %4 : vector<1x128xf32>
    %6 = arith.mulf %2, %2 : vector<1x128xf32>
    %7 = arith.subf %5, %6 : vector<1x128xf32>
    %cst_4 = arith.constant 0.000000e+00 : f32
    %8 = vector.broadcast %cst_4 : f32 to vector<1x128xf32>
    %9 = arith.maximumf %7, %8 : vector<1x128xf32>
    %cst_5 = arith.constant 9.99999974E-6 : f32
    %10 = vector.broadcast %cst_5 : f32 to vector<1x128xf32>
    %11 = arith.addf %9, %10 : vector<1x128xf32>
    %12 = math.rsqrt %11 : vector<1x128xf32>
    %c0_6 = arith.constant 0 : index
    %c0_7 = arith.constant 0 : index
    %13 = vector.load %arg5[%c0_6, %c0_7] : memref<1x128xf32, #tpu.memory_space<vmem>>, vector<1x128xf32>
    %14 = arith.mulf %12, %13 : vector<1x128xf32>
    %c0_8 = arith.constant 0 : index
    %c0_9 = arith.constant 0 : index
    %15 = vector.load %arg2[%c0_8, %c0_9] : memref<8x128xf32, #tpu.memory_space<vmem>>, vector<8x128xf32>
    %16 = vector.broadcast %2 : vector<1x128xf32> to vector<8x128xf32>
    %17 = arith.subf %15, %16 : vector<8x128xf32>
    %18 = vector.broadcast %14 : vector<1x128xf32> to vector<8x128xf32>
    %19 = arith.mulf %17, %18 : vector<8x128xf32>
    %c0_10 = arith.constant 0 : index
    %c0_11 = arith.constant 0 : index
    %20 = vector.load %arg6[%c0_10, %c0_11] : memref<1x128xf32, #tpu.memory_space<vmem>>, vector<1x128xf32>
    %21 = vector.broadcast %20 : vector<1x128xf32> to vector<8x128xf32>
    %22 = arith.addf %19, %21 : vector<8x128xf32>
    %23 = arith.truncf %22 : vector<8x128xf32> to vector<8x128xbf16>
    %c0_12 = arith.constant 0 : index
    %c0_13 = arith.constant 0 : index
    %24 = vector.load %arg7[%c0_12, %c0_13] : memref<8x128xbf16, #tpu.memory_space<vmem>>, vector<8x128xbf16>
    tpu.vector_store %arg7[%c0_12, %c0_13], %23 {strides = array<i32>} : memref<8x128xbf16, #tpu.memory_space<vmem>>, vector<8x128xbf16>,
    return
  }
  func.func @transform_0(%arg0: i32, %arg1: i32) -> (i32, i32) {
    %c0_i32 = arith.constant 0 : i32
    return %arg0, %arg1 : i32, i32
  }
  func.func @transform_1(%arg0: i32, %arg1: i32) -> (i32, i32) {
    %c0_i32 = arith.constant 0 : i32
    %c0_i32_0 = arith.constant 0 : i32
    return %c0_i32, %arg1 : i32, i32
  }
  func.func @transform_2(%arg0: i32, %arg1: i32) -> (i32, i32) {
    %c0_i32 = arith.constant 0 : i32
    %c0_i32_0 = arith.constant 0 : i32
    return %c0_i32, %arg1 : i32, i32
  }
  func.func @transform_3(%arg0: i32, %arg1: i32) -> (i32, i32) {
    %c0_i32 = arith.constant 0 : i32
    %c0_i32_0 = arith.constant 0 : i32
    return %c0_i32, %arg1 : i32, i32
  }
  func.func @transform_4(%arg0: i32, %arg1: i32) -> (i32, i32) {
    %c0_i32 = arith.constant 0 : i32
    %c0_i32_0 = arith.constant 0 : i32
    return %c0_i32, %arg1 : i32, i32
  }
  func.func @transform_5(%arg0: i32, %arg1: i32) -> (i32, i32) {
    %c0_i32 = arith.constant 0 : i32
    return %arg0, %arg1 : i32, i32
  }
}

module attributes {stable_mosaic.version = 11 : i64} {
  func.func @_gemm_stats_kernel(%arg0: i32, %arg1: i32, %arg2: i32, %arg3: memref<8x384xbf16, #tpu.memory_space<vmem>>, %arg4: memref<384x128xbf16, #tpu.memory_space<vmem>>, %arg5: memref<8x128xf32, #tpu.memory_space<vmem>>, %arg6: memref<1x128xf32, #tpu.memory_space<vmem>>, %arg7: memref<1x128xf32, #tpu.memory_space<vmem>>, %arg8: memref<8x128xf32, #tpu.memory_space<vmem>>) attributes {dimension_semantics = [#tpu.dimension_semantics<parallel>, #tpu.dimension_semantics<arbitrary>, #tpu.dimension_semantics<arbitrary>], iteration_bounds = array<i64: 1, 1, 3>, scalar_prefetch = 0 : i64, scratch_operands = 1 : i64, tpu.core_type = #tpu.core_type<tc>, window_params = [{transform_indices = @transform_0, window_bounds = array<i64: 8, 384>}, {transform_indices = @transform_1, window_bounds = array<i64: 384, 128>}, {transform_indices = @transform_2, window_bounds = array<i64: 8, 128>}, {transform_indices = @transform_3, window_bounds = array<i64: 1, 128>}, {transform_indices = @transform_4, window_bounds = array<i64: 1, 128>}]} {
    %c0_i32 = arith.constant 0 : i32
    %0 = arith.cmpi eq, %arg2, %c0_i32 : i32
    %1 = arith.extui %0 : i1 to i32
    %c0_i32_0 = arith.constant 0 : i32
    %2 = arith.cmpi ne, %1, %c0_i32_0 : i32
    scf.if %2 {
      %cst_12 = arith.constant 0.000000e+00 : f32
      %17 = vector.broadcast %cst_12 : f32 to vector<8x128xf32>
      %c0_13 = arith.constant 0 : index
      %c0_14 = arith.constant 0 : index
      %18 = vector.load %arg8[%c0_13, %c0_14] : memref<8x128xf32, #tpu.memory_space<vmem>>, vector<8x128xf32>
      tpu.vector_store %arg8[%c0_13, %c0_14], %17 {strides = array<i32>} : memref<8x128xf32, #tpu.memory_space<vmem>>, vector<8x128xf32>,
    } else {
    }
    %c0_i32_1 = arith.constant 0 : i32
    %3 = arith.cmpi eq, %arg2, %c0_i32_1 : i32
    %c0_i32_2 = arith.constant 0 : i32
    %4 = arith.cmpi eq, %arg1, %c0_i32_2 : i32
    %5 = arith.andi %3, %4 : i1
    %6 = arith.extui %5 : i1 to i32
    %c0_i32_3 = arith.constant 0 : i32
    %7 = arith.cmpi ne, %6, %c0_i32_3 : i32
    scf.if %7 {
      %cst_12 = arith.constant 0.000000e+00 : f32
      %17 = vector.broadcast %cst_12 : f32 to vector<1x128xf32>
      %c0_13 = arith.constant 0 : index
      %c0_14 = arith.constant 0 : index
      %18 = vector.load %arg6[%c0_13, %c0_14] : memref<1x128xf32, #tpu.memory_space<vmem>>, vector<1x128xf32>
      tpu.vector_store %arg6[%c0_13, %c0_14], %17 {strides = array<i32>} : memref<1x128xf32, #tpu.memory_space<vmem>>, vector<1x128xf32>,
      %cst_15 = arith.constant 0.000000e+00 : f32
      %19 = vector.broadcast %cst_15 : f32 to vector<1x128xf32>
      %c0_16 = arith.constant 0 : index
      %c0_17 = arith.constant 0 : index
      %20 = vector.load %arg7[%c0_16, %c0_17] : memref<1x128xf32, #tpu.memory_space<vmem>>, vector<1x128xf32>
      tpu.vector_store %arg7[%c0_16, %c0_17], %19 {strides = array<i32>} : memref<1x128xf32, #tpu.memory_space<vmem>>, vector<1x128xf32>,
    } else {
    }
    %c0 = arith.constant 0 : index
    %c0_4 = arith.constant 0 : index
    %8 = vector.load %arg8[%c0, %c0_4] : memref<8x128xf32, #tpu.memory_space<vmem>>, vector<8x128xf32>
    %c0_5 = arith.constant 0 : index
    %c0_6 = arith.constant 0 : index
    %9 = vector.load %arg3[%c0_5, %c0_6] : memref<8x384xbf16, #tpu.memory_space<vmem>>, vector<8x384xbf16>
    %c0_7 = arith.constant 0 : index
    %c0_8 = arith.constant 0 : index
    %10 = vector.load %arg4[%c0_7, %c0_8] : memref<384x128xbf16, #tpu.memory_space<vmem>>, vector<384x128xbf16>
    %cst = arith.constant dense<0.000000e+00> : vector<8x128xf32>
    %11 = tpu.matmul %9, %10, %cst {dimension_numbers = #tpu.dot_dimension_numbers<[1], [0], [0], [1], [0, 0, 1, 1], [], []>} : vector<8x384xbf16>, vector<384x128xbf16>, vector<8x128xf32> -> vector<8x128xf32>
    %12 = arith.addf %8, %11 : vector<8x128xf32>
    %c0_9 = arith.constant 0 : index
    %c0_10 = arith.constant 0 : index
    %13 = vector.load %arg8[%c0_9, %c0_10] : memref<8x128xf32, #tpu.memory_space<vmem>>, vector<8x128xf32>
    tpu.vector_store %arg8[%c0_9, %c0_10], %12 {strides = array<i32>} : memref<8x128xf32, #tpu.memory_space<vmem>>, vector<8x128xf32>,
    %c2_i32 = arith.constant 2 : i32
    %14 = arith.cmpi eq, %arg2, %c2_i32 : i32
    %15 = arith.extui %14 : i1 to i32
    %c0_i32_11 = arith.constant 0 : i32
    %16 = arith.cmpi ne, %15, %c0_i32_11 : i32
    scf.if %16 {
      %c0_12 = arith.constant 0 : index
      %c0_13 = arith.constant 0 : index
      %17 = vector.load %arg8[%c0_12, %c0_13] : memref<8x128xf32, #tpu.memory_space<vmem>>, vector<8x128xf32>
      %c0_14 = arith.constant 0 : index
      %c0_15 = arith.constant 0 : index
      %18 = vector.load %arg5[%c0_14, %c0_15] : memref<8x128xf32, #tpu.memory_space<vmem>>, vector<8x128xf32>
      tpu.vector_store %arg5[%c0_14, %c0_15], %17 {strides = array<i32>} : memref<8x128xf32, #tpu.memory_space<vmem>>, vector<8x128xf32>,
      %c0_16 = arith.constant 0 : index
      %c0_17 = arith.constant 0 : index
      %19 = vector.load %arg6[%c0_16, %c0_17] : memref<1x128xf32, #tpu.memory_space<vmem>>, vector<1x128xf32>
      %cst_18 = arith.constant dense<0.000000e+00> : vector<128xf32>
      %20 = vector.multi_reduction <add>, %17, %cst_18 [0] : vector<8x128xf32> to vector<128xf32>
      %21 = vector.shape_cast %20 : vector<128xf32> to vector<1x128xf32>
      %22 = arith.addf %19, %21 : vector<1x128xf32>
      %c0_19 = arith.constant 0 : index
      %c0_20 = arith.constant 0 : index
      %23 = vector.load %arg6[%c0_19, %c0_20] : memref<1x128xf32, #tpu.memory_space<vmem>>, vector<1x128xf32>
      tpu.vector_store %arg6[%c0_19, %c0_20], %22 {strides = array<i32>} : memref<1x128xf32, #tpu.memory_space<vmem>>, vector<1x128xf32>,
      %c0_21 = arith.constant 0 : index
      %c0_22 = arith.constant 0 : index
      %24 = vector.load %arg7[%c0_21, %c0_22] : memref<1x128xf32, #tpu.memory_space<vmem>>, vector<1x128xf32>
      %25 = arith.mulf %17, %17 : vector<8x128xf32>
      %cst_23 = arith.constant dense<0.000000e+00> : vector<128xf32>
      %26 = vector.multi_reduction <add>, %25, %cst_23 [0] : vector<8x128xf32> to vector<128xf32>
      %27 = vector.shape_cast %26 : vector<128xf32> to vector<1x128xf32>
      %28 = arith.addf %24, %27 : vector<1x128xf32>
      %c0_24 = arith.constant 0 : index
      %c0_25 = arith.constant 0 : index
      %29 = vector.load %arg7[%c0_24, %c0_25] : memref<1x128xf32, #tpu.memory_space<vmem>>, vector<1x128xf32>
      tpu.vector_store %arg7[%c0_24, %c0_25], %28 {strides = array<i32>} : memref<1x128xf32, #tpu.memory_space<vmem>>, vector<1x128xf32>,
    } else {
    }
    return
  }
  func.func @transform_0(%arg0: i32, %arg1: i32, %arg2: i32) -> (i32, i32) {
    %c0_i32 = arith.constant 0 : i32
    return %arg1, %arg2 : i32, i32
  }
  func.func @transform_1(%arg0: i32, %arg1: i32, %arg2: i32) -> (i32, i32) {
    %c0_i32 = arith.constant 0 : i32
    return %arg2, %arg0 : i32, i32
  }
  func.func @transform_2(%arg0: i32, %arg1: i32, %arg2: i32) -> (i32, i32) {
    %c0_i32 = arith.constant 0 : i32
    return %arg1, %arg0 : i32, i32
  }
  func.func @transform_3(%arg0: i32, %arg1: i32, %arg2: i32) -> (i32, i32) {
    %c0_i32 = arith.constant 0 : i32
    %c0_i32_0 = arith.constant 0 : i32
    return %c0_i32, %arg0 : i32, i32
  }
  func.func @transform_4(%arg0: i32, %arg1: i32, %arg2: i32) -> (i32, i32) {
    %c0_i32 = arith.constant 0 : i32
    %c0_i32_0 = arith.constant 0 : i32
    return %c0_i32, %arg0 : i32, i32
  }
}

module attributes {stable_mosaic.version = 11 : i64} {
  func.func @_bn_act_kernel(%arg0: i32, %arg1: i32, %arg2: memref<8x128xf32, #tpu.memory_space<vmem>>, %arg3: memref<1x128xf32, #tpu.memory_space<vmem>>, %arg4: memref<1x128xf32, #tpu.memory_space<vmem>>, %arg5: memref<1x128xf32, #tpu.memory_space<vmem>>, %arg6: memref<1x128xf32, #tpu.memory_space<vmem>>, %arg7: memref<8x128xbf16, #tpu.memory_space<vmem>>) attributes {dimension_semantics = [#tpu.dimension_semantics<parallel>, #tpu.dimension_semantics<parallel>], iteration_bounds = array<i64: 1, 1>, scalar_prefetch = 0 : i64, scratch_operands = 0 : i64, tpu.core_type = #tpu.core_type<tc>, window_params = [{transform_indices = @transform_0, window_bounds = array<i64: 8, 128>}, {transform_indices = @transform_1, window_bounds = array<i64: 1, 128>}, {transform_indices = @transform_2, window_bounds = array<i64: 1, 128>}, {transform_indices = @transform_3, window_bounds = array<i64: 1, 128>}, {transform_indices = @transform_4, window_bounds = array<i64: 1, 128>}, {transform_indices = @transform_5, window_bounds = array<i64: 8, 128>}]} {
    %c0 = arith.constant 0 : index
    %c0_0 = arith.constant 0 : index
    %0 = vector.load %arg3[%c0, %c0_0] : memref<1x128xf32, #tpu.memory_space<vmem>>, vector<1x128xf32>
    %cst = arith.constant 1.250000e-01 : f32
    %1 = vector.broadcast %cst : f32 to vector<1x128xf32>
    %2 = arith.mulf %0, %1 : vector<1x128xf32>
    %c0_1 = arith.constant 0 : index
    %c0_2 = arith.constant 0 : index
    %3 = vector.load %arg4[%c0_1, %c0_2] : memref<1x128xf32, #tpu.memory_space<vmem>>, vector<1x128xf32>
    %cst_3 = arith.constant 1.250000e-01 : f32
    %4 = vector.broadcast %cst_3 : f32 to vector<1x128xf32>
    %5 = arith.mulf %3, %4 : vector<1x128xf32>
    %6 = arith.mulf %2, %2 : vector<1x128xf32>
    %7 = arith.subf %5, %6 : vector<1x128xf32>
    %cst_4 = arith.constant 0.000000e+00 : f32
    %8 = vector.broadcast %cst_4 : f32 to vector<1x128xf32>
    %9 = arith.maximumf %7, %8 : vector<1x128xf32>
    %cst_5 = arith.constant 9.99999974E-6 : f32
    %10 = vector.broadcast %cst_5 : f32 to vector<1x128xf32>
    %11 = arith.addf %9, %10 : vector<1x128xf32>
    %12 = math.rsqrt %11 : vector<1x128xf32>
    %c0_6 = arith.constant 0 : index
    %c0_7 = arith.constant 0 : index
    %13 = vector.load %arg5[%c0_6, %c0_7] : memref<1x128xf32, #tpu.memory_space<vmem>>, vector<1x128xf32>
    %14 = arith.mulf %12, %13 : vector<1x128xf32>
    %c0_8 = arith.constant 0 : index
    %c0_9 = arith.constant 0 : index
    %15 = vector.load %arg2[%c0_8, %c0_9] : memref<8x128xf32, #tpu.memory_space<vmem>>, vector<8x128xf32>
    %16 = vector.broadcast %2 : vector<1x128xf32> to vector<8x128xf32>
    %17 = arith.subf %15, %16 : vector<8x128xf32>
    %18 = vector.broadcast %14 : vector<1x128xf32> to vector<8x128xf32>
    %19 = arith.mulf %17, %18 : vector<8x128xf32>
    %c0_10 = arith.constant 0 : index
    %c0_11 = arith.constant 0 : index
    %20 = vector.load %arg6[%c0_10, %c0_11] : memref<1x128xf32, #tpu.memory_space<vmem>>, vector<1x128xf32>
    %21 = vector.broadcast %20 : vector<1x128xf32> to vector<8x128xf32>
    %22 = arith.addf %19, %21 : vector<8x128xf32>
    %cst_12 = arith.constant 0.000000e+00 : f32
    %23 = vector.broadcast %cst_12 : f32 to vector<8x128xf32>
    %24 = arith.maximumf %22, %23 : vector<8x128xf32>
    %25 = arith.truncf %24 : vector<8x128xf32> to vector<8x128xbf16>
    %c0_13 = arith.constant 0 : index
    %c0_14 = arith.constant 0 : index
    %26 = vector.load %arg7[%c0_13, %c0_14] : memref<8x128xbf16, #tpu.memory_space<vmem>>, vector<8x128xbf16>
    tpu.vector_store %arg7[%c0_13, %c0_14], %25 {strides = array<i32>} : memref<8x128xbf16, #tpu.memory_space<vmem>>, vector<8x128xbf16>,
    return
  }
  func.func @transform_0(%arg0: i32, %arg1: i32) -> (i32, i32) {
    %c0_i32 = arith.constant 0 : i32
    return %arg0, %arg1 : i32, i32
  }
  func.func @transform_1(%arg0: i32, %arg1: i32) -> (i32, i32) {
    %c0_i32 = arith.constant 0 : i32
    %c0_i32_0 = arith.constant 0 : i32
    return %c0_i32, %arg1 : i32, i32
  }
  func.func @transform_2(%arg0: i32, %arg1: i32) -> (i32, i32) {
    %c0_i32 = arith.constant 0 : i32
    %c0_i32_0 = arith.constant 0 : i32
    return %c0_i32, %arg1 : i32, i32
  }
  func.func @transform_3(%arg0: i32, %arg1: i32) -> (i32, i32) {
    %c0_i32 = arith.constant 0 : i32
    %c0_i32_0 = arith.constant 0 : i32
    return %c0_i32, %arg1 : i32, i32
  }
  func.func @transform_4(%arg0: i32, %arg1: i32) -> (i32, i32) {
    %c0_i32 = arith.constant 0 : i32
    %c0_i32_0 = arith.constant 0 : i32
    return %c0_i32, %arg1 : i32, i32
  }
  func.func @transform_5(%arg0: i32, %arg1: i32) -> (i32, i32) {
    %c0_i32 = arith.constant 0 : i32
    return %arg0, %arg1 : i32, i32
  }
}

module attributes {stable_mosaic.version = 11 : i64} {
  func.func @_bn_act_res_kernel(%arg0: i32, %arg1: i32, %arg2: memref<8x128xf32, #tpu.memory_space<vmem>>, %arg3: memref<1x128xf32, #tpu.memory_space<vmem>>, %arg4: memref<1x128xf32, #tpu.memory_space<vmem>>, %arg5: memref<1x128xf32, #tpu.memory_space<vmem>>, %arg6: memref<1x128xf32, #tpu.memory_space<vmem>>, %arg7: memref<8x128xbf16, #tpu.memory_space<vmem>>, %arg8: memref<8x128xbf16, #tpu.memory_space<vmem>>) attributes {dimension_semantics = [#tpu.dimension_semantics<parallel>, #tpu.dimension_semantics<parallel>], iteration_bounds = array<i64: 1, 1>, scalar_prefetch = 0 : i64, scratch_operands = 0 : i64, tpu.core_type = #tpu.core_type<tc>, window_params = [{transform_indices = @transform_0, window_bounds = array<i64: 8, 128>}, {transform_indices = @transform_1, window_bounds = array<i64: 1, 128>}, {transform_indices = @transform_2, window_bounds = array<i64: 1, 128>}, {transform_indices = @transform_3, window_bounds = array<i64: 1, 128>}, {transform_indices = @transform_4, window_bounds = array<i64: 1, 128>}, {transform_indices = @transform_5, window_bounds = array<i64: 8, 128>}, {transform_indices = @transform_6, window_bounds = array<i64: 8, 128>}]} {
    %c0 = arith.constant 0 : index
    %c0_0 = arith.constant 0 : index
    %0 = vector.load %arg3[%c0, %c0_0] : memref<1x128xf32, #tpu.memory_space<vmem>>, vector<1x128xf32>
    %cst = arith.constant 1.250000e-01 : f32
    %1 = vector.broadcast %cst : f32 to vector<1x128xf32>
    %2 = arith.mulf %0, %1 : vector<1x128xf32>
    %c0_1 = arith.constant 0 : index
    %c0_2 = arith.constant 0 : index
    %3 = vector.load %arg4[%c0_1, %c0_2] : memref<1x128xf32, #tpu.memory_space<vmem>>, vector<1x128xf32>
    %cst_3 = arith.constant 1.250000e-01 : f32
    %4 = vector.broadcast %cst_3 : f32 to vector<1x128xf32>
    %5 = arith.mulf %3, %4 : vector<1x128xf32>
    %6 = arith.mulf %2, %2 : vector<1x128xf32>
    %7 = arith.subf %5, %6 : vector<1x128xf32>
    %cst_4 = arith.constant 0.000000e+00 : f32
    %8 = vector.broadcast %cst_4 : f32 to vector<1x128xf32>
    %9 = arith.maximumf %7, %8 : vector<1x128xf32>
    %cst_5 = arith.constant 9.99999974E-6 : f32
    %10 = vector.broadcast %cst_5 : f32 to vector<1x128xf32>
    %11 = arith.addf %9, %10 : vector<1x128xf32>
    %12 = math.rsqrt %11 : vector<1x128xf32>
    %c0_6 = arith.constant 0 : index
    %c0_7 = arith.constant 0 : index
    %13 = vector.load %arg5[%c0_6, %c0_7] : memref<1x128xf32, #tpu.memory_space<vmem>>, vector<1x128xf32>
    %14 = arith.mulf %12, %13 : vector<1x128xf32>
    %c0_8 = arith.constant 0 : index
    %c0_9 = arith.constant 0 : index
    %15 = vector.load %arg2[%c0_8, %c0_9] : memref<8x128xf32, #tpu.memory_space<vmem>>, vector<8x128xf32>
    %16 = vector.broadcast %2 : vector<1x128xf32> to vector<8x128xf32>
    %17 = arith.subf %15, %16 : vector<8x128xf32>
    %18 = vector.broadcast %14 : vector<1x128xf32> to vector<8x128xf32>
    %19 = arith.mulf %17, %18 : vector<8x128xf32>
    %c0_10 = arith.constant 0 : index
    %c0_11 = arith.constant 0 : index
    %20 = vector.load %arg6[%c0_10, %c0_11] : memref<1x128xf32, #tpu.memory_space<vmem>>, vector<1x128xf32>
    %21 = vector.broadcast %20 : vector<1x128xf32> to vector<8x128xf32>
    %22 = arith.addf %19, %21 : vector<8x128xf32>
    %c0_12 = arith.constant 0 : index
    %c0_13 = arith.constant 0 : index
    %23 = vector.load %arg7[%c0_12, %c0_13] : memref<8x128xbf16, #tpu.memory_space<vmem>>, vector<8x128xbf16>
    %24 = arith.extf %23 : vector<8x128xbf16> to vector<8x128xf32>
    %25 = arith.addf %22, %24 : vector<8x128xf32>
    %cst_14 = arith.constant 0.000000e+00 : f32
    %26 = vector.broadcast %cst_14 : f32 to vector<8x128xf32>
    %27 = arith.maximumf %25, %26 : vector<8x128xf32>
    %28 = arith.truncf %27 : vector<8x128xf32> to vector<8x128xbf16>
    %c0_15 = arith.constant 0 : index
    %c0_16 = arith.constant 0 : index
    %29 = vector.load %arg8[%c0_15, %c0_16] : memref<8x128xbf16, #tpu.memory_space<vmem>>, vector<8x128xbf16>
    tpu.vector_store %arg8[%c0_15, %c0_16], %28 {strides = array<i32>} : memref<8x128xbf16, #tpu.memory_space<vmem>>, vector<8x128xbf16>,
    return
  }
  func.func @transform_0(%arg0: i32, %arg1: i32) -> (i32, i32) {
    %c0_i32 = arith.constant 0 : i32
    return %arg0, %arg1 : i32, i32
  }
  func.func @transform_1(%arg0: i32, %arg1: i32) -> (i32, i32) {
    %c0_i32 = arith.constant 0 : i32
    %c0_i32_0 = arith.constant 0 : i32
    return %c0_i32, %arg1 : i32, i32
  }
  func.func @transform_2(%arg0: i32, %arg1: i32) -> (i32, i32) {
    %c0_i32 = arith.constant 0 : i32
    %c0_i32_0 = arith.constant 0 : i32
    return %c0_i32, %arg1 : i32, i32
  }
  func.func @transform_3(%arg0: i32, %arg1: i32) -> (i32, i32) {
    %c0_i32 = arith.constant 0 : i32
    %c0_i32_0 = arith.constant 0 : i32
    return %c0_i32, %arg1 : i32, i32
  }
  func.func @transform_4(%arg0: i32, %arg1: i32) -> (i32, i32) {
    %c0_i32 = arith.constant 0 : i32
    %c0_i32_0 = arith.constant 0 : i32
    return %c0_i32, %arg1 : i32, i32
  }
  func.func @transform_5(%arg0: i32, %arg1: i32) -> (i32, i32) {
    %c0_i32 = arith.constant 0 : i32
    return %arg0, %arg1 : i32, i32
  }
  func.func @transform_6(%arg0: i32, %arg1: i32) -> (i32, i32) {
    %c0_i32 = arith.constant 0 : i32
    return %arg0, %arg1 : i32, i32
  }
}

module attributes {stable_mosaic.version = 11 : i64} {
  func.func @_gemm_stats_kernel(%arg0: i32, %arg1: i32, %arg2: i32, %arg3: memref<8x128xbf16, #tpu.memory_space<vmem>>, %arg4: memref<128x256xbf16, #tpu.memory_space<vmem>>, %arg5: memref<8x256xf32, #tpu.memory_space<vmem>>, %arg6: memref<1x256xf32, #tpu.memory_space<vmem>>, %arg7: memref<1x256xf32, #tpu.memory_space<vmem>>, %arg8: memref<8x256xf32, #tpu.memory_space<vmem>>) attributes {dimension_semantics = [#tpu.dimension_semantics<parallel>, #tpu.dimension_semantics<arbitrary>, #tpu.dimension_semantics<arbitrary>], iteration_bounds = array<i64: 1, 1, 1>, scalar_prefetch = 0 : i64, scratch_operands = 1 : i64, tpu.core_type = #tpu.core_type<tc>, window_params = [{transform_indices = @transform_0, window_bounds = array<i64: 8, 128>}, {transform_indices = @transform_1, window_bounds = array<i64: 128, 256>}, {transform_indices = @transform_2, window_bounds = array<i64: 8, 256>}, {transform_indices = @transform_3, window_bounds = array<i64: 1, 256>}, {transform_indices = @transform_4, window_bounds = array<i64: 1, 256>}]} {
    %c0_i32 = arith.constant 0 : i32
    %0 = arith.cmpi eq, %arg2, %c0_i32 : i32
    %1 = arith.extui %0 : i1 to i32
    %c0_i32_0 = arith.constant 0 : i32
    %2 = arith.cmpi ne, %1, %c0_i32_0 : i32
    scf.if %2 {
      %cst_13 = arith.constant 0.000000e+00 : f32
      %17 = vector.broadcast %cst_13 : f32 to vector<8x256xf32>
      %c0_14 = arith.constant 0 : index
      %c0_15 = arith.constant 0 : index
      %18 = vector.load %arg8[%c0_14, %c0_15] : memref<8x256xf32, #tpu.memory_space<vmem>>, vector<8x256xf32>
      tpu.vector_store %arg8[%c0_14, %c0_15], %17 {strides = array<i32>} : memref<8x256xf32, #tpu.memory_space<vmem>>, vector<8x256xf32>,
    } else {
    }
    %c0_i32_1 = arith.constant 0 : i32
    %3 = arith.cmpi eq, %arg2, %c0_i32_1 : i32
    %c0_i32_2 = arith.constant 0 : i32
    %4 = arith.cmpi eq, %arg1, %c0_i32_2 : i32
    %5 = arith.andi %3, %4 : i1
    %6 = arith.extui %5 : i1 to i32
    %c0_i32_3 = arith.constant 0 : i32
    %7 = arith.cmpi ne, %6, %c0_i32_3 : i32
    scf.if %7 {
      %cst_13 = arith.constant 0.000000e+00 : f32
      %17 = vector.broadcast %cst_13 : f32 to vector<1x256xf32>
      %c0_14 = arith.constant 0 : index
      %c0_15 = arith.constant 0 : index
      %18 = vector.load %arg6[%c0_14, %c0_15] : memref<1x256xf32, #tpu.memory_space<vmem>>, vector<1x256xf32>
      tpu.vector_store %arg6[%c0_14, %c0_15], %17 {strides = array<i32>} : memref<1x256xf32, #tpu.memory_space<vmem>>, vector<1x256xf32>,
      %cst_16 = arith.constant 0.000000e+00 : f32
      %19 = vector.broadcast %cst_16 : f32 to vector<1x256xf32>
      %c0_17 = arith.constant 0 : index
      %c0_18 = arith.constant 0 : index
      %20 = vector.load %arg7[%c0_17, %c0_18] : memref<1x256xf32, #tpu.memory_space<vmem>>, vector<1x256xf32>
      tpu.vector_store %arg7[%c0_17, %c0_18], %19 {strides = array<i32>} : memref<1x256xf32, #tpu.memory_space<vmem>>, vector<1x256xf32>,
    } else {
    }
    %c0 = arith.constant 0 : index
    %c0_4 = arith.constant 0 : index
    %8 = vector.load %arg8[%c0, %c0_4] : memref<8x256xf32, #tpu.memory_space<vmem>>, vector<8x256xf32>
    %c0_5 = arith.constant 0 : index
    %c0_6 = arith.constant 0 : index
    %9 = vector.load %arg3[%c0_5, %c0_6] : memref<8x128xbf16, #tpu.memory_space<vmem>>, vector<8x128xbf16>
    %c0_7 = arith.constant 0 : index
    %c0_8 = arith.constant 0 : index
    %10 = vector.load %arg4[%c0_7, %c0_8] : memref<128x256xbf16, #tpu.memory_space<vmem>>, vector<128x256xbf16>
    %cst = arith.constant dense<0.000000e+00> : vector<8x256xf32>
    %11 = tpu.matmul %9, %10, %cst {dimension_numbers = #tpu.dot_dimension_numbers<[1], [0], [0], [1], [0, 0, 1, 1], [], []>} : vector<8x128xbf16>, vector<128x256xbf16>, vector<8x256xf32> -> vector<8x256xf32>
    %12 = arith.addf %8, %11 : vector<8x256xf32>
    %c0_9 = arith.constant 0 : index
    %c0_10 = arith.constant 0 : index
    %13 = vector.load %arg8[%c0_9, %c0_10] : memref<8x256xf32, #tpu.memory_space<vmem>>, vector<8x256xf32>
    tpu.vector_store %arg8[%c0_9, %c0_10], %12 {strides = array<i32>} : memref<8x256xf32, #tpu.memory_space<vmem>>, vector<8x256xf32>,
    %c0_i32_11 = arith.constant 0 : i32
    %14 = arith.cmpi eq, %arg2, %c0_i32_11 : i32
    %15 = arith.extui %14 : i1 to i32
    %c0_i32_12 = arith.constant 0 : i32
    %16 = arith.cmpi ne, %15, %c0_i32_12 : i32
    scf.if %16 {
      %c0_13 = arith.constant 0 : index
      %c0_14 = arith.constant 0 : index
      %17 = vector.load %arg8[%c0_13, %c0_14] : memref<8x256xf32, #tpu.memory_space<vmem>>, vector<8x256xf32>
      %c0_15 = arith.constant 0 : index
      %c0_16 = arith.constant 0 : index
      %18 = vector.load %arg5[%c0_15, %c0_16] : memref<8x256xf32, #tpu.memory_space<vmem>>, vector<8x256xf32>
      tpu.vector_store %arg5[%c0_15, %c0_16], %17 {strides = array<i32>} : memref<8x256xf32, #tpu.memory_space<vmem>>, vector<8x256xf32>,
      %c0_17 = arith.constant 0 : index
      %c0_18 = arith.constant 0 : index
      %19 = vector.load %arg6[%c0_17, %c0_18] : memref<1x256xf32, #tpu.memory_space<vmem>>, vector<1x256xf32>
      %cst_19 = arith.constant dense<0.000000e+00> : vector<256xf32>
      %20 = vector.multi_reduction <add>, %17, %cst_19 [0] : vector<8x256xf32> to vector<256xf32>
      %21 = vector.shape_cast %20 : vector<256xf32> to vector<1x256xf32>
      %22 = arith.addf %19, %21 : vector<1x256xf32>
      %c0_20 = arith.constant 0 : index
      %c0_21 = arith.constant 0 : index
      %23 = vector.load %arg6[%c0_20, %c0_21] : memref<1x256xf32, #tpu.memory_space<vmem>>, vector<1x256xf32>
      tpu.vector_store %arg6[%c0_20, %c0_21], %22 {strides = array<i32>} : memref<1x256xf32, #tpu.memory_space<vmem>>, vector<1x256xf32>,
      %c0_22 = arith.constant 0 : index
      %c0_23 = arith.constant 0 : index
      %24 = vector.load %arg7[%c0_22, %c0_23] : memref<1x256xf32, #tpu.memory_space<vmem>>, vector<1x256xf32>
      %25 = arith.mulf %17, %17 : vector<8x256xf32>
      %cst_24 = arith.constant dense<0.000000e+00> : vector<256xf32>
      %26 = vector.multi_reduction <add>, %25, %cst_24 [0] : vector<8x256xf32> to vector<256xf32>
      %27 = vector.shape_cast %26 : vector<256xf32> to vector<1x256xf32>
      %28 = arith.addf %24, %27 : vector<1x256xf32>
      %c0_25 = arith.constant 0 : index
      %c0_26 = arith.constant 0 : index
      %29 = vector.load %arg7[%c0_25, %c0_26] : memref<1x256xf32, #tpu.memory_space<vmem>>, vector<1x256xf32>
      tpu.vector_store %arg7[%c0_25, %c0_26], %28 {strides = array<i32>} : memref<1x256xf32, #tpu.memory_space<vmem>>, vector<1x256xf32>,
    } else {
    }
    return
  }
  func.func @transform_0(%arg0: i32, %arg1: i32, %arg2: i32) -> (i32, i32) {
    %c0_i32 = arith.constant 0 : i32
    return %arg1, %arg2 : i32, i32
  }
  func.func @transform_1(%arg0: i32, %arg1: i32, %arg2: i32) -> (i32, i32) {
    %c0_i32 = arith.constant 0 : i32
    return %arg2, %arg0 : i32, i32
  }
  func.func @transform_2(%arg0: i32, %arg1: i32, %arg2: i32) -> (i32, i32) {
    %c0_i32 = arith.constant 0 : i32
    return %arg1, %arg0 : i32, i32
  }
  func.func @transform_3(%arg0: i32, %arg1: i32, %arg2: i32) -> (i32, i32) {
    %c0_i32 = arith.constant 0 : i32
    %c0_i32_0 = arith.constant 0 : i32
    return %c0_i32, %arg0 : i32, i32
  }
  func.func @transform_4(%arg0: i32, %arg1: i32, %arg2: i32) -> (i32, i32) {
    %c0_i32 = arith.constant 0 : i32
    %c0_i32_0 = arith.constant 0 : i32
    return %c0_i32, %arg0 : i32, i32
  }
}

module attributes {stable_mosaic.version = 11 : i64} {
  func.func @_bn_act_kernel(%arg0: i32, %arg1: i32, %arg2: memref<8x256xf32, #tpu.memory_space<vmem>>, %arg3: memref<1x256xf32, #tpu.memory_space<vmem>>, %arg4: memref<1x256xf32, #tpu.memory_space<vmem>>, %arg5: memref<1x256xf32, #tpu.memory_space<vmem>>, %arg6: memref<1x256xf32, #tpu.memory_space<vmem>>, %arg7: memref<8x256xbf16, #tpu.memory_space<vmem>>) attributes {dimension_semantics = [#tpu.dimension_semantics<parallel>, #tpu.dimension_semantics<parallel>], iteration_bounds = array<i64: 1, 1>, scalar_prefetch = 0 : i64, scratch_operands = 0 : i64, tpu.core_type = #tpu.core_type<tc>, window_params = [{transform_indices = @transform_0, window_bounds = array<i64: 8, 256>}, {transform_indices = @transform_1, window_bounds = array<i64: 1, 256>}, {transform_indices = @transform_2, window_bounds = array<i64: 1, 256>}, {transform_indices = @transform_3, window_bounds = array<i64: 1, 256>}, {transform_indices = @transform_4, window_bounds = array<i64: 1, 256>}, {transform_indices = @transform_5, window_bounds = array<i64: 8, 256>}]} {
    %c0 = arith.constant 0 : index
    %c0_0 = arith.constant 0 : index
    %0 = vector.load %arg3[%c0, %c0_0] : memref<1x256xf32, #tpu.memory_space<vmem>>, vector<1x256xf32>
    %cst = arith.constant 5.000000e-01 : f32
    %1 = vector.broadcast %cst : f32 to vector<1x256xf32>
    %2 = arith.mulf %0, %1 : vector<1x256xf32>
    %c0_1 = arith.constant 0 : index
    %c0_2 = arith.constant 0 : index
    %3 = vector.load %arg4[%c0_1, %c0_2] : memref<1x256xf32, #tpu.memory_space<vmem>>, vector<1x256xf32>
    %cst_3 = arith.constant 5.000000e-01 : f32
    %4 = vector.broadcast %cst_3 : f32 to vector<1x256xf32>
    %5 = arith.mulf %3, %4 : vector<1x256xf32>
    %6 = arith.mulf %2, %2 : vector<1x256xf32>
    %7 = arith.subf %5, %6 : vector<1x256xf32>
    %cst_4 = arith.constant 0.000000e+00 : f32
    %8 = vector.broadcast %cst_4 : f32 to vector<1x256xf32>
    %9 = arith.maximumf %7, %8 : vector<1x256xf32>
    %cst_5 = arith.constant 9.99999974E-6 : f32
    %10 = vector.broadcast %cst_5 : f32 to vector<1x256xf32>
    %11 = arith.addf %9, %10 : vector<1x256xf32>
    %12 = math.rsqrt %11 : vector<1x256xf32>
    %c0_6 = arith.constant 0 : index
    %c0_7 = arith.constant 0 : index
    %13 = vector.load %arg5[%c0_6, %c0_7] : memref<1x256xf32, #tpu.memory_space<vmem>>, vector<1x256xf32>
    %14 = arith.mulf %12, %13 : vector<1x256xf32>
    %c0_8 = arith.constant 0 : index
    %c0_9 = arith.constant 0 : index
    %15 = vector.load %arg2[%c0_8, %c0_9] : memref<8x256xf32, #tpu.memory_space<vmem>>, vector<8x256xf32>
    %16 = vector.broadcast %2 : vector<1x256xf32> to vector<8x256xf32>
    %17 = arith.subf %15, %16 : vector<8x256xf32>
    %18 = vector.broadcast %14 : vector<1x256xf32> to vector<8x256xf32>
    %19 = arith.mulf %17, %18 : vector<8x256xf32>
    %c0_10 = arith.constant 0 : index
    %c0_11 = arith.constant 0 : index
    %20 = vector.load %arg6[%c0_10, %c0_11] : memref<1x256xf32, #tpu.memory_space<vmem>>, vector<1x256xf32>
    %21 = vector.broadcast %20 : vector<1x256xf32> to vector<8x256xf32>
    %22 = arith.addf %19, %21 : vector<8x256xf32>
    %23 = arith.truncf %22 : vector<8x256xf32> to vector<8x256xbf16>
    %c0_12 = arith.constant 0 : index
    %c0_13 = arith.constant 0 : index
    %24 = vector.load %arg7[%c0_12, %c0_13] : memref<8x256xbf16, #tpu.memory_space<vmem>>, vector<8x256xbf16>
    tpu.vector_store %arg7[%c0_12, %c0_13], %23 {strides = array<i32>} : memref<8x256xbf16, #tpu.memory_space<vmem>>, vector<8x256xbf16>,
    return
  }
  func.func @transform_0(%arg0: i32, %arg1: i32) -> (i32, i32) {
    %c0_i32 = arith.constant 0 : i32
    return %arg0, %arg1 : i32, i32
  }
  func.func @transform_1(%arg0: i32, %arg1: i32) -> (i32, i32) {
    %c0_i32 = arith.constant 0 : i32
    %c0_i32_0 = arith.constant 0 : i32
    return %c0_i32, %arg1 : i32, i32
  }
  func.func @transform_2(%arg0: i32, %arg1: i32) -> (i32, i32) {
    %c0_i32 = arith.constant 0 : i32
    %c0_i32_0 = arith.constant 0 : i32
    return %c0_i32, %arg1 : i32, i32
  }
  func.func @transform_3(%arg0: i32, %arg1: i32) -> (i32, i32) {
    %c0_i32 = arith.constant 0 : i32
    %c0_i32_0 = arith.constant 0 : i32
    return %c0_i32, %arg1 : i32, i32
  }
  func.func @transform_4(%arg0: i32, %arg1: i32) -> (i32, i32) {
    %c0_i32 = arith.constant 0 : i32
    %c0_i32_0 = arith.constant 0 : i32
    return %c0_i32, %arg1 : i32, i32
  }
  func.func @transform_5(%arg0: i32, %arg1: i32) -> (i32, i32) {
    %c0_i32 = arith.constant 0 : i32
    return %arg0, %arg1 : i32, i32
  }
}

module attributes {stable_mosaic.version = 11 : i64} {
  func.func @_bn_act_kernel(%arg0: i32, %arg1: i32, %arg2: memref<8x256xf32, #tpu.memory_space<vmem>>, %arg3: memref<1x256xf32, #tpu.memory_space<vmem>>, %arg4: memref<1x256xf32, #tpu.memory_space<vmem>>, %arg5: memref<1x256xf32, #tpu.memory_space<vmem>>, %arg6: memref<1x256xf32, #tpu.memory_space<vmem>>, %arg7: memref<8x256xbf16, #tpu.memory_space<vmem>>) attributes {dimension_semantics = [#tpu.dimension_semantics<parallel>, #tpu.dimension_semantics<parallel>], iteration_bounds = array<i64: 1, 1>, scalar_prefetch = 0 : i64, scratch_operands = 0 : i64, tpu.core_type = #tpu.core_type<tc>, window_params = [{transform_indices = @transform_0, window_bounds = array<i64: 8, 256>}, {transform_indices = @transform_1, window_bounds = array<i64: 1, 256>}, {transform_indices = @transform_2, window_bounds = array<i64: 1, 256>}, {transform_indices = @transform_3, window_bounds = array<i64: 1, 256>}, {transform_indices = @transform_4, window_bounds = array<i64: 1, 256>}, {transform_indices = @transform_5, window_bounds = array<i64: 8, 256>}]} {
    %c0 = arith.constant 0 : index
    %c0_0 = arith.constant 0 : index
    %0 = vector.load %arg3[%c0, %c0_0] : memref<1x256xf32, #tpu.memory_space<vmem>>, vector<1x256xf32>
    %cst = arith.constant 5.000000e-01 : f32
    %1 = vector.broadcast %cst : f32 to vector<1x256xf32>
    %2 = arith.mulf %0, %1 : vector<1x256xf32>
    %c0_1 = arith.constant 0 : index
    %c0_2 = arith.constant 0 : index
    %3 = vector.load %arg4[%c0_1, %c0_2] : memref<1x256xf32, #tpu.memory_space<vmem>>, vector<1x256xf32>
    %cst_3 = arith.constant 5.000000e-01 : f32
    %4 = vector.broadcast %cst_3 : f32 to vector<1x256xf32>
    %5 = arith.mulf %3, %4 : vector<1x256xf32>
    %6 = arith.mulf %2, %2 : vector<1x256xf32>
    %7 = arith.subf %5, %6 : vector<1x256xf32>
    %cst_4 = arith.constant 0.000000e+00 : f32
    %8 = vector.broadcast %cst_4 : f32 to vector<1x256xf32>
    %9 = arith.maximumf %7, %8 : vector<1x256xf32>
    %cst_5 = arith.constant 9.99999974E-6 : f32
    %10 = vector.broadcast %cst_5 : f32 to vector<1x256xf32>
    %11 = arith.addf %9, %10 : vector<1x256xf32>
    %12 = math.rsqrt %11 : vector<1x256xf32>
    %c0_6 = arith.constant 0 : index
    %c0_7 = arith.constant 0 : index
    %13 = vector.load %arg5[%c0_6, %c0_7] : memref<1x256xf32, #tpu.memory_space<vmem>>, vector<1x256xf32>
    %14 = arith.mulf %12, %13 : vector<1x256xf32>
    %c0_8 = arith.constant 0 : index
    %c0_9 = arith.constant 0 : index
    %15 = vector.load %arg2[%c0_8, %c0_9] : memref<8x256xf32, #tpu.memory_space<vmem>>, vector<8x256xf32>
    %16 = vector.broadcast %2 : vector<1x256xf32> to vector<8x256xf32>
    %17 = arith.subf %15, %16 : vector<8x256xf32>
    %18 = vector.broadcast %14 : vector<1x256xf32> to vector<8x256xf32>
    %19 = arith.mulf %17, %18 : vector<8x256xf32>
    %c0_10 = arith.constant 0 : index
    %c0_11 = arith.constant 0 : index
    %20 = vector.load %arg6[%c0_10, %c0_11] : memref<1x256xf32, #tpu.memory_space<vmem>>, vector<1x256xf32>
    %21 = vector.broadcast %20 : vector<1x256xf32> to vector<8x256xf32>
    %22 = arith.addf %19, %21 : vector<8x256xf32>
    %cst_12 = arith.constant 0.000000e+00 : f32
    %23 = vector.broadcast %cst_12 : f32 to vector<8x256xf32>
    %24 = arith.maximumf %22, %23 : vector<8x256xf32>
    %25 = arith.truncf %24 : vector<8x256xf32> to vector<8x256xbf16>
    %c0_13 = arith.constant 0 : index
    %c0_14 = arith.constant 0 : index
    %26 = vector.load %arg7[%c0_13, %c0_14] : memref<8x256xbf16, #tpu.memory_space<vmem>>, vector<8x256xbf16>
    tpu.vector_store %arg7[%c0_13, %c0_14], %25 {strides = array<i32>} : memref<8x256xbf16, #tpu.memory_space<vmem>>, vector<8x256xbf16>,
    return
  }
  func.func @transform_0(%arg0: i32, %arg1: i32) -> (i32, i32) {
    %c0_i32 = arith.constant 0 : i32
    return %arg0, %arg1 : i32, i32
  }
  func.func @transform_1(%arg0: i32, %arg1: i32) -> (i32, i32) {
    %c0_i32 = arith.constant 0 : i32
    %c0_i32_0 = arith.constant 0 : i32
    return %c0_i32, %arg1 : i32, i32
  }
  func.func @transform_2(%arg0: i32, %arg1: i32) -> (i32, i32) {
    %c0_i32 = arith.constant 0 : i32
    %c0_i32_0 = arith.constant 0 : i32
    return %c0_i32, %arg1 : i32, i32
  }
  func.func @transform_3(%arg0: i32, %arg1: i32) -> (i32, i32) {
    %c0_i32 = arith.constant 0 : i32
    %c0_i32_0 = arith.constant 0 : i32
    return %c0_i32, %arg1 : i32, i32
  }
  func.func @transform_4(%arg0: i32, %arg1: i32) -> (i32, i32) {
    %c0_i32 = arith.constant 0 : i32
    %c0_i32_0 = arith.constant 0 : i32
    return %c0_i32, %arg1 : i32, i32
  }
  func.func @transform_5(%arg0: i32, %arg1: i32) -> (i32, i32) {
    %c0_i32 = arith.constant 0 : i32
    return %arg0, %arg1 : i32, i32
  }
}

module attributes {stable_mosaic.version = 11 : i64} {
  func.func @_gemm_stats_kernel(%arg0: i32, %arg1: i32, %arg2: i32, %arg3: memref<8x384xbf16, #tpu.memory_space<vmem>>, %arg4: memref<384x256xbf16, #tpu.memory_space<vmem>>, %arg5: memref<8x256xf32, #tpu.memory_space<vmem>>, %arg6: memref<1x256xf32, #tpu.memory_space<vmem>>, %arg7: memref<1x256xf32, #tpu.memory_space<vmem>>, %arg8: memref<8x256xf32, #tpu.memory_space<vmem>>) attributes {dimension_semantics = [#tpu.dimension_semantics<parallel>, #tpu.dimension_semantics<arbitrary>, #tpu.dimension_semantics<arbitrary>], iteration_bounds = array<i64: 1, 1, 3>, scalar_prefetch = 0 : i64, scratch_operands = 1 : i64, tpu.core_type = #tpu.core_type<tc>, window_params = [{transform_indices = @transform_0, window_bounds = array<i64: 8, 384>}, {transform_indices = @transform_1, window_bounds = array<i64: 384, 256>}, {transform_indices = @transform_2, window_bounds = array<i64: 8, 256>}, {transform_indices = @transform_3, window_bounds = array<i64: 1, 256>}, {transform_indices = @transform_4, window_bounds = array<i64: 1, 256>}]} {
    %c0_i32 = arith.constant 0 : i32
    %0 = arith.cmpi eq, %arg2, %c0_i32 : i32
    %1 = arith.extui %0 : i1 to i32
    %c0_i32_0 = arith.constant 0 : i32
    %2 = arith.cmpi ne, %1, %c0_i32_0 : i32
    scf.if %2 {
      %cst_12 = arith.constant 0.000000e+00 : f32
      %17 = vector.broadcast %cst_12 : f32 to vector<8x256xf32>
      %c0_13 = arith.constant 0 : index
      %c0_14 = arith.constant 0 : index
      %18 = vector.load %arg8[%c0_13, %c0_14] : memref<8x256xf32, #tpu.memory_space<vmem>>, vector<8x256xf32>
      tpu.vector_store %arg8[%c0_13, %c0_14], %17 {strides = array<i32>} : memref<8x256xf32, #tpu.memory_space<vmem>>, vector<8x256xf32>,
    } else {
    }
    %c0_i32_1 = arith.constant 0 : i32
    %3 = arith.cmpi eq, %arg2, %c0_i32_1 : i32
    %c0_i32_2 = arith.constant 0 : i32
    %4 = arith.cmpi eq, %arg1, %c0_i32_2 : i32
    %5 = arith.andi %3, %4 : i1
    %6 = arith.extui %5 : i1 to i32
    %c0_i32_3 = arith.constant 0 : i32
    %7 = arith.cmpi ne, %6, %c0_i32_3 : i32
    scf.if %7 {
      %cst_12 = arith.constant 0.000000e+00 : f32
      %17 = vector.broadcast %cst_12 : f32 to vector<1x256xf32>
      %c0_13 = arith.constant 0 : index
      %c0_14 = arith.constant 0 : index
      %18 = vector.load %arg6[%c0_13, %c0_14] : memref<1x256xf32, #tpu.memory_space<vmem>>, vector<1x256xf32>
      tpu.vector_store %arg6[%c0_13, %c0_14], %17 {strides = array<i32>} : memref<1x256xf32, #tpu.memory_space<vmem>>, vector<1x256xf32>,
      %cst_15 = arith.constant 0.000000e+00 : f32
      %19 = vector.broadcast %cst_15 : f32 to vector<1x256xf32>
      %c0_16 = arith.constant 0 : index
      %c0_17 = arith.constant 0 : index
      %20 = vector.load %arg7[%c0_16, %c0_17] : memref<1x256xf32, #tpu.memory_space<vmem>>, vector<1x256xf32>
      tpu.vector_store %arg7[%c0_16, %c0_17], %19 {strides = array<i32>} : memref<1x256xf32, #tpu.memory_space<vmem>>, vector<1x256xf32>,
    } else {
    }
    %c0 = arith.constant 0 : index
    %c0_4 = arith.constant 0 : index
    %8 = vector.load %arg8[%c0, %c0_4] : memref<8x256xf32, #tpu.memory_space<vmem>>, vector<8x256xf32>
    %c0_5 = arith.constant 0 : index
    %c0_6 = arith.constant 0 : index
    %9 = vector.load %arg3[%c0_5, %c0_6] : memref<8x384xbf16, #tpu.memory_space<vmem>>, vector<8x384xbf16>
    %c0_7 = arith.constant 0 : index
    %c0_8 = arith.constant 0 : index
    %10 = vector.load %arg4[%c0_7, %c0_8] : memref<384x256xbf16, #tpu.memory_space<vmem>>, vector<384x256xbf16>
    %cst = arith.constant dense<0.000000e+00> : vector<8x256xf32>
    %11 = tpu.matmul %9, %10, %cst {dimension_numbers = #tpu.dot_dimension_numbers<[1], [0], [0], [1], [0, 0, 1, 1], [], []>} : vector<8x384xbf16>, vector<384x256xbf16>, vector<8x256xf32> -> vector<8x256xf32>
    %12 = arith.addf %8, %11 : vector<8x256xf32>
    %c0_9 = arith.constant 0 : index
    %c0_10 = arith.constant 0 : index
    %13 = vector.load %arg8[%c0_9, %c0_10] : memref<8x256xf32, #tpu.memory_space<vmem>>, vector<8x256xf32>
    tpu.vector_store %arg8[%c0_9, %c0_10], %12 {strides = array<i32>} : memref<8x256xf32, #tpu.memory_space<vmem>>, vector<8x256xf32>,
    %c2_i32 = arith.constant 2 : i32
    %14 = arith.cmpi eq, %arg2, %c2_i32 : i32
    %15 = arith.extui %14 : i1 to i32
    %c0_i32_11 = arith.constant 0 : i32
    %16 = arith.cmpi ne, %15, %c0_i32_11 : i32
    scf.if %16 {
      %c0_12 = arith.constant 0 : index
      %c0_13 = arith.constant 0 : index
      %17 = vector.load %arg8[%c0_12, %c0_13] : memref<8x256xf32, #tpu.memory_space<vmem>>, vector<8x256xf32>
      %c0_14 = arith.constant 0 : index
      %c0_15 = arith.constant 0 : index
      %18 = vector.load %arg5[%c0_14, %c0_15] : memref<8x256xf32, #tpu.memory_space<vmem>>, vector<8x256xf32>
      tpu.vector_store %arg5[%c0_14, %c0_15], %17 {strides = array<i32>} : memref<8x256xf32, #tpu.memory_space<vmem>>, vector<8x256xf32>,
      %c0_16 = arith.constant 0 : index
      %c0_17 = arith.constant 0 : index
      %19 = vector.load %arg6[%c0_16, %c0_17] : memref<1x256xf32, #tpu.memory_space<vmem>>, vector<1x256xf32>
      %cst_18 = arith.constant dense<0.000000e+00> : vector<256xf32>
      %20 = vector.multi_reduction <add>, %17, %cst_18 [0] : vector<8x256xf32> to vector<256xf32>
      %21 = vector.shape_cast %20 : vector<256xf32> to vector<1x256xf32>
      %22 = arith.addf %19, %21 : vector<1x256xf32>
      %c0_19 = arith.constant 0 : index
      %c0_20 = arith.constant 0 : index
      %23 = vector.load %arg6[%c0_19, %c0_20] : memref<1x256xf32, #tpu.memory_space<vmem>>, vector<1x256xf32>
      tpu.vector_store %arg6[%c0_19, %c0_20], %22 {strides = array<i32>} : memref<1x256xf32, #tpu.memory_space<vmem>>, vector<1x256xf32>,
      %c0_21 = arith.constant 0 : index
      %c0_22 = arith.constant 0 : index
      %24 = vector.load %arg7[%c0_21, %c0_22] : memref<1x256xf32, #tpu.memory_space<vmem>>, vector<1x256xf32>
      %25 = arith.mulf %17, %17 : vector<8x256xf32>
      %cst_23 = arith.constant dense<0.000000e+00> : vector<256xf32>
      %26 = vector.multi_reduction <add>, %25, %cst_23 [0] : vector<8x256xf32> to vector<256xf32>
      %27 = vector.shape_cast %26 : vector<256xf32> to vector<1x256xf32>
      %28 = arith.addf %24, %27 : vector<1x256xf32>
      %c0_24 = arith.constant 0 : index
      %c0_25 = arith.constant 0 : index
      %29 = vector.load %arg7[%c0_24, %c0_25] : memref<1x256xf32, #tpu.memory_space<vmem>>, vector<1x256xf32>
      tpu.vector_store %arg7[%c0_24, %c0_25], %28 {strides = array<i32>} : memref<1x256xf32, #tpu.memory_space<vmem>>, vector<1x256xf32>,
    } else {
    }
    return
  }
  func.func @transform_0(%arg0: i32, %arg1: i32, %arg2: i32) -> (i32, i32) {
    %c0_i32 = arith.constant 0 : i32
    return %arg1, %arg2 : i32, i32
  }
  func.func @transform_1(%arg0: i32, %arg1: i32, %arg2: i32) -> (i32, i32) {
    %c0_i32 = arith.constant 0 : i32
    return %arg2, %arg0 : i32, i32
  }
  func.func @transform_2(%arg0: i32, %arg1: i32, %arg2: i32) -> (i32, i32) {
    %c0_i32 = arith.constant 0 : i32
    return %arg1, %arg0 : i32, i32
  }
  func.func @transform_3(%arg0: i32, %arg1: i32, %arg2: i32) -> (i32, i32) {
    %c0_i32 = arith.constant 0 : i32
    %c0_i32_0 = arith.constant 0 : i32
    return %c0_i32, %arg0 : i32, i32
  }
  func.func @transform_4(%arg0: i32, %arg1: i32, %arg2: i32) -> (i32, i32) {
    %c0_i32 = arith.constant 0 : i32
    %c0_i32_0 = arith.constant 0 : i32
    return %c0_i32, %arg0 : i32, i32
  }
}

module attributes {stable_mosaic.version = 11 : i64} {
  func.func @_bn_act_res_kernel(%arg0: i32, %arg1: i32, %arg2: memref<8x256xf32, #tpu.memory_space<vmem>>, %arg3: memref<1x256xf32, #tpu.memory_space<vmem>>, %arg4: memref<1x256xf32, #tpu.memory_space<vmem>>, %arg5: memref<1x256xf32, #tpu.memory_space<vmem>>, %arg6: memref<1x256xf32, #tpu.memory_space<vmem>>, %arg7: memref<8x256xbf16, #tpu.memory_space<vmem>>, %arg8: memref<8x256xbf16, #tpu.memory_space<vmem>>) attributes {dimension_semantics = [#tpu.dimension_semantics<parallel>, #tpu.dimension_semantics<parallel>], iteration_bounds = array<i64: 1, 1>, scalar_prefetch = 0 : i64, scratch_operands = 0 : i64, tpu.core_type = #tpu.core_type<tc>, window_params = [{transform_indices = @transform_0, window_bounds = array<i64: 8, 256>}, {transform_indices = @transform_1, window_bounds = array<i64: 1, 256>}, {transform_indices = @transform_2, window_bounds = array<i64: 1, 256>}, {transform_indices = @transform_3, window_bounds = array<i64: 1, 256>}, {transform_indices = @transform_4, window_bounds = array<i64: 1, 256>}, {transform_indices = @transform_5, window_bounds = array<i64: 8, 256>}, {transform_indices = @transform_6, window_bounds = array<i64: 8, 256>}]} {
    %c0 = arith.constant 0 : index
    %c0_0 = arith.constant 0 : index
    %0 = vector.load %arg3[%c0, %c0_0] : memref<1x256xf32, #tpu.memory_space<vmem>>, vector<1x256xf32>
    %cst = arith.constant 5.000000e-01 : f32
    %1 = vector.broadcast %cst : f32 to vector<1x256xf32>
    %2 = arith.mulf %0, %1 : vector<1x256xf32>
    %c0_1 = arith.constant 0 : index
    %c0_2 = arith.constant 0 : index
    %3 = vector.load %arg4[%c0_1, %c0_2] : memref<1x256xf32, #tpu.memory_space<vmem>>, vector<1x256xf32>
    %cst_3 = arith.constant 5.000000e-01 : f32
    %4 = vector.broadcast %cst_3 : f32 to vector<1x256xf32>
    %5 = arith.mulf %3, %4 : vector<1x256xf32>
    %6 = arith.mulf %2, %2 : vector<1x256xf32>
    %7 = arith.subf %5, %6 : vector<1x256xf32>
    %cst_4 = arith.constant 0.000000e+00 : f32
    %8 = vector.broadcast %cst_4 : f32 to vector<1x256xf32>
    %9 = arith.maximumf %7, %8 : vector<1x256xf32>
    %cst_5 = arith.constant 9.99999974E-6 : f32
    %10 = vector.broadcast %cst_5 : f32 to vector<1x256xf32>
    %11 = arith.addf %9, %10 : vector<1x256xf32>
    %12 = math.rsqrt %11 : vector<1x256xf32>
    %c0_6 = arith.constant 0 : index
    %c0_7 = arith.constant 0 : index
    %13 = vector.load %arg5[%c0_6, %c0_7] : memref<1x256xf32, #tpu.memory_space<vmem>>, vector<1x256xf32>
    %14 = arith.mulf %12, %13 : vector<1x256xf32>
    %c0_8 = arith.constant 0 : index
    %c0_9 = arith.constant 0 : index
    %15 = vector.load %arg2[%c0_8, %c0_9] : memref<8x256xf32, #tpu.memory_space<vmem>>, vector<8x256xf32>
    %16 = vector.broadcast %2 : vector<1x256xf32> to vector<8x256xf32>
    %17 = arith.subf %15, %16 : vector<8x256xf32>
    %18 = vector.broadcast %14 : vector<1x256xf32> to vector<8x256xf32>
    %19 = arith.mulf %17, %18 : vector<8x256xf32>
    %c0_10 = arith.constant 0 : index
    %c0_11 = arith.constant 0 : index
    %20 = vector.load %arg6[%c0_10, %c0_11] : memref<1x256xf32, #tpu.memory_space<vmem>>, vector<1x256xf32>
    %21 = vector.broadcast %20 : vector<1x256xf32> to vector<8x256xf32>
    %22 = arith.addf %19, %21 : vector<8x256xf32>
    %c0_12 = arith.constant 0 : index
    %c0_13 = arith.constant 0 : index
    %23 = vector.load %arg7[%c0_12, %c0_13] : memref<8x256xbf16, #tpu.memory_space<vmem>>, vector<8x256xbf16>
    %24 = arith.extf %23 : vector<8x256xbf16> to vector<8x256xf32>
    %25 = arith.addf %22, %24 : vector<8x256xf32>
    %cst_14 = arith.constant 0.000000e+00 : f32
    %26 = vector.broadcast %cst_14 : f32 to vector<8x256xf32>
    %27 = arith.maximumf %25, %26 : vector<8x256xf32>
    %28 = arith.truncf %27 : vector<8x256xf32> to vector<8x256xbf16>
    %c0_15 = arith.constant 0 : index
    %c0_16 = arith.constant 0 : index
    %29 = vector.load %arg8[%c0_15, %c0_16] : memref<8x256xbf16, #tpu.memory_space<vmem>>, vector<8x256xbf16>
    tpu.vector_store %arg8[%c0_15, %c0_16], %28 {strides = array<i32>} : memref<8x256xbf16, #tpu.memory_space<vmem>>, vector<8x256xbf16>,
    return
  }
  func.func @transform_0(%arg0: i32, %arg1: i32) -> (i32, i32) {
    %c0_i32 = arith.constant 0 : i32
    return %arg0, %arg1 : i32, i32
  }
  func.func @transform_1(%arg0: i32, %arg1: i32) -> (i32, i32) {
    %c0_i32 = arith.constant 0 : i32
    %c0_i32_0 = arith.constant 0 : i32
    return %c0_i32, %arg1 : i32, i32
  }
  func.func @transform_2(%arg0: i32, %arg1: i32) -> (i32, i32) {
    %c0_i32 = arith.constant 0 : i32
    %c0_i32_0 = arith.constant 0 : i32
    return %c0_i32, %arg1 : i32, i32
  }
  func.func @transform_3(%arg0: i32, %arg1: i32) -> (i32, i32) {
    %c0_i32 = arith.constant 0 : i32
    %c0_i32_0 = arith.constant 0 : i32
    return %c0_i32, %arg1 : i32, i32
  }
  func.func @transform_4(%arg0: i32, %arg1: i32) -> (i32, i32) {
    %c0_i32 = arith.constant 0 : i32
    %c0_i32_0 = arith.constant 0 : i32
    return %c0_i32, %arg1 : i32, i32
  }
  func.func @transform_5(%arg0: i32, %arg1: i32) -> (i32, i32) {
    %c0_i32 = arith.constant 0 : i32
    return %arg0, %arg1 : i32, i32
  }
  func.func @transform_6(%arg0: i32, %arg1: i32) -> (i32, i32) {
    %c0_i32 = arith.constant 0 : i32
    return %arg0, %arg1 : i32, i32
  }
}

module attributes {stable_mosaic.version = 11 : i64} {
  func.func @_gemm_stats_kernel(%arg0: i32, %arg1: i32, %arg2: i32, %arg3: memref<8x384xbf16, #tpu.memory_space<vmem>>, %arg4: memref<384x256xbf16, #tpu.memory_space<vmem>>, %arg5: memref<8x256xf32, #tpu.memory_space<vmem>>, %arg6: memref<1x256xf32, #tpu.memory_space<vmem>>, %arg7: memref<1x256xf32, #tpu.memory_space<vmem>>, %arg8: memref<8x256xf32, #tpu.memory_space<vmem>>) attributes {dimension_semantics = [#tpu.dimension_semantics<parallel>, #tpu.dimension_semantics<arbitrary>, #tpu.dimension_semantics<arbitrary>], iteration_bounds = array<i64: 1, 1, 6>, scalar_prefetch = 0 : i64, scratch_operands = 1 : i64, tpu.core_type = #tpu.core_type<tc>, window_params = [{transform_indices = @transform_0, window_bounds = array<i64: 8, 384>}, {transform_indices = @transform_1, window_bounds = array<i64: 384, 256>}, {transform_indices = @transform_2, window_bounds = array<i64: 8, 256>}, {transform_indices = @transform_3, window_bounds = array<i64: 1, 256>}, {transform_indices = @transform_4, window_bounds = array<i64: 1, 256>}]} {
    %c0_i32 = arith.constant 0 : i32
    %0 = arith.cmpi eq, %arg2, %c0_i32 : i32
    %1 = arith.extui %0 : i1 to i32
    %c0_i32_0 = arith.constant 0 : i32
    %2 = arith.cmpi ne, %1, %c0_i32_0 : i32
    scf.if %2 {
      %cst_12 = arith.constant 0.000000e+00 : f32
      %17 = vector.broadcast %cst_12 : f32 to vector<8x256xf32>
      %c0_13 = arith.constant 0 : index
      %c0_14 = arith.constant 0 : index
      %18 = vector.load %arg8[%c0_13, %c0_14] : memref<8x256xf32, #tpu.memory_space<vmem>>, vector<8x256xf32>
      tpu.vector_store %arg8[%c0_13, %c0_14], %17 {strides = array<i32>} : memref<8x256xf32, #tpu.memory_space<vmem>>, vector<8x256xf32>,
    } else {
    }
    %c0_i32_1 = arith.constant 0 : i32
    %3 = arith.cmpi eq, %arg2, %c0_i32_1 : i32
    %c0_i32_2 = arith.constant 0 : i32
    %4 = arith.cmpi eq, %arg1, %c0_i32_2 : i32
    %5 = arith.andi %3, %4 : i1
    %6 = arith.extui %5 : i1 to i32
    %c0_i32_3 = arith.constant 0 : i32
    %7 = arith.cmpi ne, %6, %c0_i32_3 : i32
    scf.if %7 {
      %cst_12 = arith.constant 0.000000e+00 : f32
      %17 = vector.broadcast %cst_12 : f32 to vector<1x256xf32>
      %c0_13 = arith.constant 0 : index
      %c0_14 = arith.constant 0 : index
      %18 = vector.load %arg6[%c0_13, %c0_14] : memref<1x256xf32, #tpu.memory_space<vmem>>, vector<1x256xf32>
      tpu.vector_store %arg6[%c0_13, %c0_14], %17 {strides = array<i32>} : memref<1x256xf32, #tpu.memory_space<vmem>>, vector<1x256xf32>,
      %cst_15 = arith.constant 0.000000e+00 : f32
      %19 = vector.broadcast %cst_15 : f32 to vector<1x256xf32>
      %c0_16 = arith.constant 0 : index
      %c0_17 = arith.constant 0 : index
      %20 = vector.load %arg7[%c0_16, %c0_17] : memref<1x256xf32, #tpu.memory_space<vmem>>, vector<1x256xf32>
      tpu.vector_store %arg7[%c0_16, %c0_17], %19 {strides = array<i32>} : memref<1x256xf32, #tpu.memory_space<vmem>>, vector<1x256xf32>,
    } else {
    }
    %c0 = arith.constant 0 : index
    %c0_4 = arith.constant 0 : index
    %8 = vector.load %arg8[%c0, %c0_4] : memref<8x256xf32, #tpu.memory_space<vmem>>, vector<8x256xf32>
    %c0_5 = arith.constant 0 : index
    %c0_6 = arith.constant 0 : index
    %9 = vector.load %arg3[%c0_5, %c0_6] : memref<8x384xbf16, #tpu.memory_space<vmem>>, vector<8x384xbf16>
    %c0_7 = arith.constant 0 : index
    %c0_8 = arith.constant 0 : index
    %10 = vector.load %arg4[%c0_7, %c0_8] : memref<384x256xbf16, #tpu.memory_space<vmem>>, vector<384x256xbf16>
    %cst = arith.constant dense<0.000000e+00> : vector<8x256xf32>
    %11 = tpu.matmul %9, %10, %cst {dimension_numbers = #tpu.dot_dimension_numbers<[1], [0], [0], [1], [0, 0, 1, 1], [], []>} : vector<8x384xbf16>, vector<384x256xbf16>, vector<8x256xf32> -> vector<8x256xf32>
    %12 = arith.addf %8, %11 : vector<8x256xf32>
    %c0_9 = arith.constant 0 : index
    %c0_10 = arith.constant 0 : index
    %13 = vector.load %arg8[%c0_9, %c0_10] : memref<8x256xf32, #tpu.memory_space<vmem>>, vector<8x256xf32>
    tpu.vector_store %arg8[%c0_9, %c0_10], %12 {strides = array<i32>} : memref<8x256xf32, #tpu.memory_space<vmem>>, vector<8x256xf32>,
    %c5_i32 = arith.constant 5 : i32
    %14 = arith.cmpi eq, %arg2, %c5_i32 : i32
    %15 = arith.extui %14 : i1 to i32
    %c0_i32_11 = arith.constant 0 : i32
    %16 = arith.cmpi ne, %15, %c0_i32_11 : i32
    scf.if %16 {
      %c0_12 = arith.constant 0 : index
      %c0_13 = arith.constant 0 : index
      %17 = vector.load %arg8[%c0_12, %c0_13] : memref<8x256xf32, #tpu.memory_space<vmem>>, vector<8x256xf32>
      %c0_14 = arith.constant 0 : index
      %c0_15 = arith.constant 0 : index
      %18 = vector.load %arg5[%c0_14, %c0_15] : memref<8x256xf32, #tpu.memory_space<vmem>>, vector<8x256xf32>
      tpu.vector_store %arg5[%c0_14, %c0_15], %17 {strides = array<i32>} : memref<8x256xf32, #tpu.memory_space<vmem>>, vector<8x256xf32>,
      %c0_16 = arith.constant 0 : index
      %c0_17 = arith.constant 0 : index
      %19 = vector.load %arg6[%c0_16, %c0_17] : memref<1x256xf32, #tpu.memory_space<vmem>>, vector<1x256xf32>
      %cst_18 = arith.constant dense<0.000000e+00> : vector<256xf32>
      %20 = vector.multi_reduction <add>, %17, %cst_18 [0] : vector<8x256xf32> to vector<256xf32>
      %21 = vector.shape_cast %20 : vector<256xf32> to vector<1x256xf32>
      %22 = arith.addf %19, %21 : vector<1x256xf32>
      %c0_19 = arith.constant 0 : index
      %c0_20 = arith.constant 0 : index
      %23 = vector.load %arg6[%c0_19, %c0_20] : memref<1x256xf32, #tpu.memory_space<vmem>>, vector<1x256xf32>
      tpu.vector_store %arg6[%c0_19, %c0_20], %22 {strides = array<i32>} : memref<1x256xf32, #tpu.memory_space<vmem>>, vector<1x256xf32>,
      %c0_21 = arith.constant 0 : index
      %c0_22 = arith.constant 0 : index
      %24 = vector.load %arg7[%c0_21, %c0_22] : memref<1x256xf32, #tpu.memory_space<vmem>>, vector<1x256xf32>
      %25 = arith.mulf %17, %17 : vector<8x256xf32>
      %cst_23 = arith.constant dense<0.000000e+00> : vector<256xf32>
      %26 = vector.multi_reduction <add>, %25, %cst_23 [0] : vector<8x256xf32> to vector<256xf32>
      %27 = vector.shape_cast %26 : vector<256xf32> to vector<1x256xf32>
      %28 = arith.addf %24, %27 : vector<1x256xf32>
      %c0_24 = arith.constant 0 : index
      %c0_25 = arith.constant 0 : index
      %29 = vector.load %arg7[%c0_24, %c0_25] : memref<1x256xf32, #tpu.memory_space<vmem>>, vector<1x256xf32>
      tpu.vector_store %arg7[%c0_24, %c0_25], %28 {strides = array<i32>} : memref<1x256xf32, #tpu.memory_space<vmem>>, vector<1x256xf32>,
    } else {
    }
    return
  }
  func.func @transform_0(%arg0: i32, %arg1: i32, %arg2: i32) -> (i32, i32) {
    %c0_i32 = arith.constant 0 : i32
    return %arg1, %arg2 : i32, i32
  }
  func.func @transform_1(%arg0: i32, %arg1: i32, %arg2: i32) -> (i32, i32) {
    %c0_i32 = arith.constant 0 : i32
    return %arg2, %arg0 : i32, i32
  }
  func.func @transform_2(%arg0: i32, %arg1: i32, %arg2: i32) -> (i32, i32) {
    %c0_i32 = arith.constant 0 : i32
    return %arg1, %arg0 : i32, i32
  }
  func.func @transform_3(%arg0: i32, %arg1: i32, %arg2: i32) -> (i32, i32) {
    %c0_i32 = arith.constant 0 : i32
    %c0_i32_0 = arith.constant 0 : i32
    return %c0_i32, %arg0 : i32, i32
  }
  func.func @transform_4(%arg0: i32, %arg1: i32, %arg2: i32) -> (i32, i32) {
    %c0_i32 = arith.constant 0 : i32
    %c0_i32_0 = arith.constant 0 : i32
    return %c0_i32, %arg0 : i32, i32
  }
}

module attributes {stable_mosaic.version = 11 : i64} {
  func.func @_gemm_stats_kernel(%arg0: i32, %arg1: i32, %arg2: i32, %arg3: memref<8x256xbf16, #tpu.memory_space<vmem>>, %arg4: memref<256x256xbf16, #tpu.memory_space<vmem>>, %arg5: memref<8x256xf32, #tpu.memory_space<vmem>>, %arg6: memref<1x256xf32, #tpu.memory_space<vmem>>, %arg7: memref<1x256xf32, #tpu.memory_space<vmem>>, %arg8: memref<8x256xf32, #tpu.memory_space<vmem>>) attributes {dimension_semantics = [#tpu.dimension_semantics<parallel>, #tpu.dimension_semantics<arbitrary>, #tpu.dimension_semantics<arbitrary>], iteration_bounds = array<i64: 2, 1, 1>, scalar_prefetch = 0 : i64, scratch_operands = 1 : i64, tpu.core_type = #tpu.core_type<tc>, window_params = [{transform_indices = @transform_0, window_bounds = array<i64: 8, 256>}, {transform_indices = @transform_1, window_bounds = array<i64: 256, 256>}, {transform_indices = @transform_2, window_bounds = array<i64: 8, 256>}, {transform_indices = @transform_3, window_bounds = array<i64: 1, 256>}, {transform_indices = @transform_4, window_bounds = array<i64: 1, 256>}]} {
    %c0_i32 = arith.constant 0 : i32
    %0 = arith.cmpi eq, %arg2, %c0_i32 : i32
    %1 = arith.extui %0 : i1 to i32
    %c0_i32_0 = arith.constant 0 : i32
    %2 = arith.cmpi ne, %1, %c0_i32_0 : i32
    scf.if %2 {
      %cst_13 = arith.constant 0.000000e+00 : f32
      %17 = vector.broadcast %cst_13 : f32 to vector<8x256xf32>
      %c0_14 = arith.constant 0 : index
      %c0_15 = arith.constant 0 : index
      %18 = vector.load %arg8[%c0_14, %c0_15] : memref<8x256xf32, #tpu.memory_space<vmem>>, vector<8x256xf32>
      tpu.vector_store %arg8[%c0_14, %c0_15], %17 {strides = array<i32>} : memref<8x256xf32, #tpu.memory_space<vmem>>, vector<8x256xf32>,
    } else {
    }
    %c0_i32_1 = arith.constant 0 : i32
    %3 = arith.cmpi eq, %arg2, %c0_i32_1 : i32
    %c0_i32_2 = arith.constant 0 : i32
    %4 = arith.cmpi eq, %arg1, %c0_i32_2 : i32
    %5 = arith.andi %3, %4 : i1
    %6 = arith.extui %5 : i1 to i32
    %c0_i32_3 = arith.constant 0 : i32
    %7 = arith.cmpi ne, %6, %c0_i32_3 : i32
    scf.if %7 {
      %cst_13 = arith.constant 0.000000e+00 : f32
      %17 = vector.broadcast %cst_13 : f32 to vector<1x256xf32>
      %c0_14 = arith.constant 0 : index
      %c0_15 = arith.constant 0 : index
      %18 = vector.load %arg6[%c0_14, %c0_15] : memref<1x256xf32, #tpu.memory_space<vmem>>, vector<1x256xf32>
      tpu.vector_store %arg6[%c0_14, %c0_15], %17 {strides = array<i32>} : memref<1x256xf32, #tpu.memory_space<vmem>>, vector<1x256xf32>,
      %cst_16 = arith.constant 0.000000e+00 : f32
      %19 = vector.broadcast %cst_16 : f32 to vector<1x256xf32>
      %c0_17 = arith.constant 0 : index
      %c0_18 = arith.constant 0 : index
      %20 = vector.load %arg7[%c0_17, %c0_18] : memref<1x256xf32, #tpu.memory_space<vmem>>, vector<1x256xf32>
      tpu.vector_store %arg7[%c0_17, %c0_18], %19 {strides = array<i32>} : memref<1x256xf32, #tpu.memory_space<vmem>>, vector<1x256xf32>,
    } else {
    }
    %c0 = arith.constant 0 : index
    %c0_4 = arith.constant 0 : index
    %8 = vector.load %arg8[%c0, %c0_4] : memref<8x256xf32, #tpu.memory_space<vmem>>, vector<8x256xf32>
    %c0_5 = arith.constant 0 : index
    %c0_6 = arith.constant 0 : index
    %9 = vector.load %arg3[%c0_5, %c0_6] : memref<8x256xbf16, #tpu.memory_space<vmem>>, vector<8x256xbf16>
    %c0_7 = arith.constant 0 : index
    %c0_8 = arith.constant 0 : index
    %10 = vector.load %arg4[%c0_7, %c0_8] : memref<256x256xbf16, #tpu.memory_space<vmem>>, vector<256x256xbf16>
    %cst = arith.constant dense<0.000000e+00> : vector<8x256xf32>
    %11 = tpu.matmul %9, %10, %cst {dimension_numbers = #tpu.dot_dimension_numbers<[1], [0], [0], [1], [0, 0, 1, 1], [], []>} : vector<8x256xbf16>, vector<256x256xbf16>, vector<8x256xf32> -> vector<8x256xf32>
    %12 = arith.addf %8, %11 : vector<8x256xf32>
    %c0_9 = arith.constant 0 : index
    %c0_10 = arith.constant 0 : index
    %13 = vector.load %arg8[%c0_9, %c0_10] : memref<8x256xf32, #tpu.memory_space<vmem>>, vector<8x256xf32>
    tpu.vector_store %arg8[%c0_9, %c0_10], %12 {strides = array<i32>} : memref<8x256xf32, #tpu.memory_space<vmem>>, vector<8x256xf32>,
    %c0_i32_11 = arith.constant 0 : i32
    %14 = arith.cmpi eq, %arg2, %c0_i32_11 : i32
    %15 = arith.extui %14 : i1 to i32
    %c0_i32_12 = arith.constant 0 : i32
    %16 = arith.cmpi ne, %15, %c0_i32_12 : i32
    scf.if %16 {
      %c0_13 = arith.constant 0 : index
      %c0_14 = arith.constant 0 : index
      %17 = vector.load %arg8[%c0_13, %c0_14] : memref<8x256xf32, #tpu.memory_space<vmem>>, vector<8x256xf32>
      %c0_15 = arith.constant 0 : index
      %c0_16 = arith.constant 0 : index
      %18 = vector.load %arg5[%c0_15, %c0_16] : memref<8x256xf32, #tpu.memory_space<vmem>>, vector<8x256xf32>
      tpu.vector_store %arg5[%c0_15, %c0_16], %17 {strides = array<i32>} : memref<8x256xf32, #tpu.memory_space<vmem>>, vector<8x256xf32>,
      %c0_17 = arith.constant 0 : index
      %c0_18 = arith.constant 0 : index
      %19 = vector.load %arg6[%c0_17, %c0_18] : memref<1x256xf32, #tpu.memory_space<vmem>>, vector<1x256xf32>
      %cst_19 = arith.constant dense<0.000000e+00> : vector<256xf32>
      %20 = vector.multi_reduction <add>, %17, %cst_19 [0] : vector<8x256xf32> to vector<256xf32>
      %21 = vector.shape_cast %20 : vector<256xf32> to vector<1x256xf32>
      %22 = arith.addf %19, %21 : vector<1x256xf32>
      %c0_20 = arith.constant 0 : index
      %c0_21 = arith.constant 0 : index
      %23 = vector.load %arg6[%c0_20, %c0_21] : memref<1x256xf32, #tpu.memory_space<vmem>>, vector<1x256xf32>
      tpu.vector_store %arg6[%c0_20, %c0_21], %22 {strides = array<i32>} : memref<1x256xf32, #tpu.memory_space<vmem>>, vector<1x256xf32>,
      %c0_22 = arith.constant 0 : index
      %c0_23 = arith.constant 0 : index
      %24 = vector.load %arg7[%c0_22, %c0_23] : memref<1x256xf32, #tpu.memory_space<vmem>>, vector<1x256xf32>
      %25 = arith.mulf %17, %17 : vector<8x256xf32>
      %cst_24 = arith.constant dense<0.000000e+00> : vector<256xf32>
      %26 = vector.multi_reduction <add>, %25, %cst_24 [0] : vector<8x256xf32> to vector<256xf32>
      %27 = vector.shape_cast %26 : vector<256xf32> to vector<1x256xf32>
      %28 = arith.addf %24, %27 : vector<1x256xf32>
      %c0_25 = arith.constant 0 : index
      %c0_26 = arith.constant 0 : index
      %29 = vector.load %arg7[%c0_25, %c0_26] : memref<1x256xf32, #tpu.memory_space<vmem>>, vector<1x256xf32>
      tpu.vector_store %arg7[%c0_25, %c0_26], %28 {strides = array<i32>} : memref<1x256xf32, #tpu.memory_space<vmem>>, vector<1x256xf32>,
    } else {
    }
    return
  }
  func.func @transform_0(%arg0: i32, %arg1: i32, %arg2: i32) -> (i32, i32) {
    %c0_i32 = arith.constant 0 : i32
    return %arg1, %arg2 : i32, i32
  }
  func.func @transform_1(%arg0: i32, %arg1: i32, %arg2: i32) -> (i32, i32) {
    %c0_i32 = arith.constant 0 : i32
    return %arg2, %arg0 : i32, i32
  }
  func.func @transform_2(%arg0: i32, %arg1: i32, %arg2: i32) -> (i32, i32) {
    %c0_i32 = arith.constant 0 : i32
    return %arg1, %arg0 : i32, i32
  }
  func.func @transform_3(%arg0: i32, %arg1: i32, %arg2: i32) -> (i32, i32) {
    %c0_i32 = arith.constant 0 : i32
    %c0_i32_0 = arith.constant 0 : i32
    return %c0_i32, %arg0 : i32, i32
  }
  func.func @transform_4(%arg0: i32, %arg1: i32, %arg2: i32) -> (i32, i32) {
    %c0_i32 = arith.constant 0 : i32
    %c0_i32_0 = arith.constant 0 : i32
    return %c0_i32, %arg0 : i32, i32
  }
}

module attributes {stable_mosaic.version = 11 : i64} {
  func.func @_bn_act_kernel(%arg0: i32, %arg1: i32, %arg2: memref<8x256xf32, #tpu.memory_space<vmem>>, %arg3: memref<1x256xf32, #tpu.memory_space<vmem>>, %arg4: memref<1x256xf32, #tpu.memory_space<vmem>>, %arg5: memref<1x256xf32, #tpu.memory_space<vmem>>, %arg6: memref<1x256xf32, #tpu.memory_space<vmem>>, %arg7: memref<8x256xbf16, #tpu.memory_space<vmem>>) attributes {dimension_semantics = [#tpu.dimension_semantics<parallel>, #tpu.dimension_semantics<parallel>], iteration_bounds = array<i64: 1, 2>, scalar_prefetch = 0 : i64, scratch_operands = 0 : i64, tpu.core_type = #tpu.core_type<tc>, window_params = [{transform_indices = @transform_0, window_bounds = array<i64: 8, 256>}, {transform_indices = @transform_1, window_bounds = array<i64: 1, 256>}, {transform_indices = @transform_2, window_bounds = array<i64: 1, 256>}, {transform_indices = @transform_3, window_bounds = array<i64: 1, 256>}, {transform_indices = @transform_4, window_bounds = array<i64: 1, 256>}, {transform_indices = @transform_5, window_bounds = array<i64: 8, 256>}]} {
    %c0 = arith.constant 0 : index
    %c0_0 = arith.constant 0 : index
    %0 = vector.load %arg3[%c0, %c0_0] : memref<1x256xf32, #tpu.memory_space<vmem>>, vector<1x256xf32>
    %cst = arith.constant 5.000000e-01 : f32
    %1 = vector.broadcast %cst : f32 to vector<1x256xf32>
    %2 = arith.mulf %0, %1 : vector<1x256xf32>
    %c0_1 = arith.constant 0 : index
    %c0_2 = arith.constant 0 : index
    %3 = vector.load %arg4[%c0_1, %c0_2] : memref<1x256xf32, #tpu.memory_space<vmem>>, vector<1x256xf32>
    %cst_3 = arith.constant 5.000000e-01 : f32
    %4 = vector.broadcast %cst_3 : f32 to vector<1x256xf32>
    %5 = arith.mulf %3, %4 : vector<1x256xf32>
    %6 = arith.mulf %2, %2 : vector<1x256xf32>
    %7 = arith.subf %5, %6 : vector<1x256xf32>
    %cst_4 = arith.constant 0.000000e+00 : f32
    %8 = vector.broadcast %cst_4 : f32 to vector<1x256xf32>
    %9 = arith.maximumf %7, %8 : vector<1x256xf32>
    %cst_5 = arith.constant 9.99999974E-6 : f32
    %10 = vector.broadcast %cst_5 : f32 to vector<1x256xf32>
    %11 = arith.addf %9, %10 : vector<1x256xf32>
    %12 = math.rsqrt %11 : vector<1x256xf32>
    %c0_6 = arith.constant 0 : index
    %c0_7 = arith.constant 0 : index
    %13 = vector.load %arg5[%c0_6, %c0_7] : memref<1x256xf32, #tpu.memory_space<vmem>>, vector<1x256xf32>
    %14 = arith.mulf %12, %13 : vector<1x256xf32>
    %c0_8 = arith.constant 0 : index
    %c0_9 = arith.constant 0 : index
    %15 = vector.load %arg2[%c0_8, %c0_9] : memref<8x256xf32, #tpu.memory_space<vmem>>, vector<8x256xf32>
    %16 = vector.broadcast %2 : vector<1x256xf32> to vector<8x256xf32>
    %17 = arith.subf %15, %16 : vector<8x256xf32>
    %18 = vector.broadcast %14 : vector<1x256xf32> to vector<8x256xf32>
    %19 = arith.mulf %17, %18 : vector<8x256xf32>
    %c0_10 = arith.constant 0 : index
    %c0_11 = arith.constant 0 : index
    %20 = vector.load %arg6[%c0_10, %c0_11] : memref<1x256xf32, #tpu.memory_space<vmem>>, vector<1x256xf32>
    %21 = vector.broadcast %20 : vector<1x256xf32> to vector<8x256xf32>
    %22 = arith.addf %19, %21 : vector<8x256xf32>
    %23 = arith.truncf %22 : vector<8x256xf32> to vector<8x256xbf16>
    %c0_12 = arith.constant 0 : index
    %c0_13 = arith.constant 0 : index
    %24 = vector.load %arg7[%c0_12, %c0_13] : memref<8x256xbf16, #tpu.memory_space<vmem>>, vector<8x256xbf16>
    tpu.vector_store %arg7[%c0_12, %c0_13], %23 {strides = array<i32>} : memref<8x256xbf16, #tpu.memory_space<vmem>>, vector<8x256xbf16>,
    return
  }
  func.func @transform_0(%arg0: i32, %arg1: i32) -> (i32, i32) {
    %c0_i32 = arith.constant 0 : i32
    return %arg0, %arg1 : i32, i32
  }
  func.func @transform_1(%arg0: i32, %arg1: i32) -> (i32, i32) {
    %c0_i32 = arith.constant 0 : i32
    %c0_i32_0 = arith.constant 0 : i32
    return %c0_i32, %arg1 : i32, i32
  }
  func.func @transform_2(%arg0: i32, %arg1: i32) -> (i32, i32) {
    %c0_i32 = arith.constant 0 : i32
    %c0_i32_0 = arith.constant 0 : i32
    return %c0_i32, %arg1 : i32, i32
  }
  func.func @transform_3(%arg0: i32, %arg1: i32) -> (i32, i32) {
    %c0_i32 = arith.constant 0 : i32
    %c0_i32_0 = arith.constant 0 : i32
    return %c0_i32, %arg1 : i32, i32
  }
  func.func @transform_4(%arg0: i32, %arg1: i32) -> (i32, i32) {
    %c0_i32 = arith.constant 0 : i32
    %c0_i32_0 = arith.constant 0 : i32
    return %c0_i32, %arg1 : i32, i32
  }
  func.func @transform_5(%arg0: i32, %arg1: i32) -> (i32, i32) {
    %c0_i32 = arith.constant 0 : i32
    return %arg0, %arg1 : i32, i32
  }
}

module attributes {stable_mosaic.version = 11 : i64} {
  func.func @_gemm_stats_kernel(%arg0: i32, %arg1: i32, %arg2: i32, %arg3: memref<8x384xbf16, #tpu.memory_space<vmem>>, %arg4: memref<384x256xbf16, #tpu.memory_space<vmem>>, %arg5: memref<8x256xf32, #tpu.memory_space<vmem>>, %arg6: memref<1x256xf32, #tpu.memory_space<vmem>>, %arg7: memref<1x256xf32, #tpu.memory_space<vmem>>, %arg8: memref<8x256xf32, #tpu.memory_space<vmem>>) attributes {dimension_semantics = [#tpu.dimension_semantics<parallel>, #tpu.dimension_semantics<arbitrary>, #tpu.dimension_semantics<arbitrary>], iteration_bounds = array<i64: 2, 1, 6>, scalar_prefetch = 0 : i64, scratch_operands = 1 : i64, tpu.core_type = #tpu.core_type<tc>, window_params = [{transform_indices = @transform_0, window_bounds = array<i64: 8, 384>}, {transform_indices = @transform_1, window_bounds = array<i64: 384, 256>}, {transform_indices = @transform_2, window_bounds = array<i64: 8, 256>}, {transform_indices = @transform_3, window_bounds = array<i64: 1, 256>}, {transform_indices = @transform_4, window_bounds = array<i64: 1, 256>}]} {
    %c0_i32 = arith.constant 0 : i32
    %0 = arith.cmpi eq, %arg2, %c0_i32 : i32
    %1 = arith.extui %0 : i1 to i32
    %c0_i32_0 = arith.constant 0 : i32
    %2 = arith.cmpi ne, %1, %c0_i32_0 : i32
    scf.if %2 {
      %cst_12 = arith.constant 0.000000e+00 : f32
      %17 = vector.broadcast %cst_12 : f32 to vector<8x256xf32>
      %c0_13 = arith.constant 0 : index
      %c0_14 = arith.constant 0 : index
      %18 = vector.load %arg8[%c0_13, %c0_14] : memref<8x256xf32, #tpu.memory_space<vmem>>, vector<8x256xf32>
      tpu.vector_store %arg8[%c0_13, %c0_14], %17 {strides = array<i32>} : memref<8x256xf32, #tpu.memory_space<vmem>>, vector<8x256xf32>,
    } else {
    }
    %c0_i32_1 = arith.constant 0 : i32
    %3 = arith.cmpi eq, %arg2, %c0_i32_1 : i32
    %c0_i32_2 = arith.constant 0 : i32
    %4 = arith.cmpi eq, %arg1, %c0_i32_2 : i32
    %5 = arith.andi %3, %4 : i1
    %6 = arith.extui %5 : i1 to i32
    %c0_i32_3 = arith.constant 0 : i32
    %7 = arith.cmpi ne, %6, %c0_i32_3 : i32
    scf.if %7 {
      %cst_12 = arith.constant 0.000000e+00 : f32
      %17 = vector.broadcast %cst_12 : f32 to vector<1x256xf32>
      %c0_13 = arith.constant 0 : index
      %c0_14 = arith.constant 0 : index
      %18 = vector.load %arg6[%c0_13, %c0_14] : memref<1x256xf32, #tpu.memory_space<vmem>>, vector<1x256xf32>
      tpu.vector_store %arg6[%c0_13, %c0_14], %17 {strides = array<i32>} : memref<1x256xf32, #tpu.memory_space<vmem>>, vector<1x256xf32>,
      %cst_15 = arith.constant 0.000000e+00 : f32
      %19 = vector.broadcast %cst_15 : f32 to vector<1x256xf32>
      %c0_16 = arith.constant 0 : index
      %c0_17 = arith.constant 0 : index
      %20 = vector.load %arg7[%c0_16, %c0_17] : memref<1x256xf32, #tpu.memory_space<vmem>>, vector<1x256xf32>
      tpu.vector_store %arg7[%c0_16, %c0_17], %19 {strides = array<i32>} : memref<1x256xf32, #tpu.memory_space<vmem>>, vector<1x256xf32>,
    } else {
    }
    %c0 = arith.constant 0 : index
    %c0_4 = arith.constant 0 : index
    %8 = vector.load %arg8[%c0, %c0_4] : memref<8x256xf32, #tpu.memory_space<vmem>>, vector<8x256xf32>
    %c0_5 = arith.constant 0 : index
    %c0_6 = arith.constant 0 : index
    %9 = vector.load %arg3[%c0_5, %c0_6] : memref<8x384xbf16, #tpu.memory_space<vmem>>, vector<8x384xbf16>
    %c0_7 = arith.constant 0 : index
    %c0_8 = arith.constant 0 : index
    %10 = vector.load %arg4[%c0_7, %c0_8] : memref<384x256xbf16, #tpu.memory_space<vmem>>, vector<384x256xbf16>
    %cst = arith.constant dense<0.000000e+00> : vector<8x256xf32>
    %11 = tpu.matmul %9, %10, %cst {dimension_numbers = #tpu.dot_dimension_numbers<[1], [0], [0], [1], [0, 0, 1, 1], [], []>} : vector<8x384xbf16>, vector<384x256xbf16>, vector<8x256xf32> -> vector<8x256xf32>
    %12 = arith.addf %8, %11 : vector<8x256xf32>
    %c0_9 = arith.constant 0 : index
    %c0_10 = arith.constant 0 : index
    %13 = vector.load %arg8[%c0_9, %c0_10] : memref<8x256xf32, #tpu.memory_space<vmem>>, vector<8x256xf32>
    tpu.vector_store %arg8[%c0_9, %c0_10], %12 {strides = array<i32>} : memref<8x256xf32, #tpu.memory_space<vmem>>, vector<8x256xf32>,
    %c5_i32 = arith.constant 5 : i32
    %14 = arith.cmpi eq, %arg2, %c5_i32 : i32
    %15 = arith.extui %14 : i1 to i32
    %c0_i32_11 = arith.constant 0 : i32
    %16 = arith.cmpi ne, %15, %c0_i32_11 : i32
    scf.if %16 {
      %c0_12 = arith.constant 0 : index
      %c0_13 = arith.constant 0 : index
      %17 = vector.load %arg8[%c0_12, %c0_13] : memref<8x256xf32, #tpu.memory_space<vmem>>, vector<8x256xf32>
      %c0_14 = arith.constant 0 : index
      %c0_15 = arith.constant 0 : index
      %18 = vector.load %arg5[%c0_14, %c0_15] : memref<8x256xf32, #tpu.memory_space<vmem>>, vector<8x256xf32>
      tpu.vector_store %arg5[%c0_14, %c0_15], %17 {strides = array<i32>} : memref<8x256xf32, #tpu.memory_space<vmem>>, vector<8x256xf32>,
      %c0_16 = arith.constant 0 : index
      %c0_17 = arith.constant 0 : index
      %19 = vector.load %arg6[%c0_16, %c0_17] : memref<1x256xf32, #tpu.memory_space<vmem>>, vector<1x256xf32>
      %cst_18 = arith.constant dense<0.000000e+00> : vector<256xf32>
      %20 = vector.multi_reduction <add>, %17, %cst_18 [0] : vector<8x256xf32> to vector<256xf32>
      %21 = vector.shape_cast %20 : vector<256xf32> to vector<1x256xf32>
      %22 = arith.addf %19, %21 : vector<1x256xf32>
      %c0_19 = arith.constant 0 : index
      %c0_20 = arith.constant 0 : index
      %23 = vector.load %arg6[%c0_19, %c0_20] : memref<1x256xf32, #tpu.memory_space<vmem>>, vector<1x256xf32>
      tpu.vector_store %arg6[%c0_19, %c0_20], %22 {strides = array<i32>} : memref<1x256xf32, #tpu.memory_space<vmem>>, vector<1x256xf32>,
      %c0_21 = arith.constant 0 : index
      %c0_22 = arith.constant 0 : index
      %24 = vector.load %arg7[%c0_21, %c0_22] : memref<1x256xf32, #tpu.memory_space<vmem>>, vector<1x256xf32>
      %25 = arith.mulf %17, %17 : vector<8x256xf32>
      %cst_23 = arith.constant dense<0.000000e+00> : vector<256xf32>
      %26 = vector.multi_reduction <add>, %25, %cst_23 [0] : vector<8x256xf32> to vector<256xf32>
      %27 = vector.shape_cast %26 : vector<256xf32> to vector<1x256xf32>
      %28 = arith.addf %24, %27 : vector<1x256xf32>
      %c0_24 = arith.constant 0 : index
      %c0_25 = arith.constant 0 : index
      %29 = vector.load %arg7[%c0_24, %c0_25] : memref<1x256xf32, #tpu.memory_space<vmem>>, vector<1x256xf32>
      tpu.vector_store %arg7[%c0_24, %c0_25], %28 {strides = array<i32>} : memref<1x256xf32, #tpu.memory_space<vmem>>, vector<1x256xf32>,
    } else {
    }
    return
  }
  func.func @transform_0(%arg0: i32, %arg1: i32, %arg2: i32) -> (i32, i32) {
    %c0_i32 = arith.constant 0 : i32
    return %arg1, %arg2 : i32, i32
  }
  func.func @transform_1(%arg0: i32, %arg1: i32, %arg2: i32) -> (i32, i32) {
    %c0_i32 = arith.constant 0 : i32
    return %arg2, %arg0 : i32, i32
  }
  func.func @transform_2(%arg0: i32, %arg1: i32, %arg2: i32) -> (i32, i32) {
    %c0_i32 = arith.constant 0 : i32
    return %arg1, %arg0 : i32, i32
  }
  func.func @transform_3(%arg0: i32, %arg1: i32, %arg2: i32) -> (i32, i32) {
    %c0_i32 = arith.constant 0 : i32
    %c0_i32_0 = arith.constant 0 : i32
    return %c0_i32, %arg0 : i32, i32
  }
  func.func @transform_4(%arg0: i32, %arg1: i32, %arg2: i32) -> (i32, i32) {
    %c0_i32 = arith.constant 0 : i32
    %c0_i32_0 = arith.constant 0 : i32
    return %c0_i32, %arg0 : i32, i32
  }
}

module attributes {stable_mosaic.version = 11 : i64} {
  func.func @_bn_act_kernel(%arg0: i32, %arg1: i32, %arg2: memref<8x256xf32, #tpu.memory_space<vmem>>, %arg3: memref<1x256xf32, #tpu.memory_space<vmem>>, %arg4: memref<1x256xf32, #tpu.memory_space<vmem>>, %arg5: memref<1x256xf32, #tpu.memory_space<vmem>>, %arg6: memref<1x256xf32, #tpu.memory_space<vmem>>, %arg7: memref<8x256xbf16, #tpu.memory_space<vmem>>) attributes {dimension_semantics = [#tpu.dimension_semantics<parallel>, #tpu.dimension_semantics<parallel>], iteration_bounds = array<i64: 1, 2>, scalar_prefetch = 0 : i64, scratch_operands = 0 : i64, tpu.core_type = #tpu.core_type<tc>, window_params = [{transform_indices = @transform_0, window_bounds = array<i64: 8, 256>}, {transform_indices = @transform_1, window_bounds = array<i64: 1, 256>}, {transform_indices = @transform_2, window_bounds = array<i64: 1, 256>}, {transform_indices = @transform_3, window_bounds = array<i64: 1, 256>}, {transform_indices = @transform_4, window_bounds = array<i64: 1, 256>}, {transform_indices = @transform_5, window_bounds = array<i64: 8, 256>}]} {
    %c0 = arith.constant 0 : index
    %c0_0 = arith.constant 0 : index
    %0 = vector.load %arg3[%c0, %c0_0] : memref<1x256xf32, #tpu.memory_space<vmem>>, vector<1x256xf32>
    %cst = arith.constant 5.000000e-01 : f32
    %1 = vector.broadcast %cst : f32 to vector<1x256xf32>
    %2 = arith.mulf %0, %1 : vector<1x256xf32>
    %c0_1 = arith.constant 0 : index
    %c0_2 = arith.constant 0 : index
    %3 = vector.load %arg4[%c0_1, %c0_2] : memref<1x256xf32, #tpu.memory_space<vmem>>, vector<1x256xf32>
    %cst_3 = arith.constant 5.000000e-01 : f32
    %4 = vector.broadcast %cst_3 : f32 to vector<1x256xf32>
    %5 = arith.mulf %3, %4 : vector<1x256xf32>
    %6 = arith.mulf %2, %2 : vector<1x256xf32>
    %7 = arith.subf %5, %6 : vector<1x256xf32>
    %cst_4 = arith.constant 0.000000e+00 : f32
    %8 = vector.broadcast %cst_4 : f32 to vector<1x256xf32>
    %9 = arith.maximumf %7, %8 : vector<1x256xf32>
    %cst_5 = arith.constant 9.99999974E-6 : f32
    %10 = vector.broadcast %cst_5 : f32 to vector<1x256xf32>
    %11 = arith.addf %9, %10 : vector<1x256xf32>
    %12 = math.rsqrt %11 : vector<1x256xf32>
    %c0_6 = arith.constant 0 : index
    %c0_7 = arith.constant 0 : index
    %13 = vector.load %arg5[%c0_6, %c0_7] : memref<1x256xf32, #tpu.memory_space<vmem>>, vector<1x256xf32>
    %14 = arith.mulf %12, %13 : vector<1x256xf32>
    %c0_8 = arith.constant 0 : index
    %c0_9 = arith.constant 0 : index
    %15 = vector.load %arg2[%c0_8, %c0_9] : memref<8x256xf32, #tpu.memory_space<vmem>>, vector<8x256xf32>
    %16 = vector.broadcast %2 : vector<1x256xf32> to vector<8x256xf32>
    %17 = arith.subf %15, %16 : vector<8x256xf32>
    %18 = vector.broadcast %14 : vector<1x256xf32> to vector<8x256xf32>
    %19 = arith.mulf %17, %18 : vector<8x256xf32>
    %c0_10 = arith.constant 0 : index
    %c0_11 = arith.constant 0 : index
    %20 = vector.load %arg6[%c0_10, %c0_11] : memref<1x256xf32, #tpu.memory_space<vmem>>, vector<1x256xf32>
    %21 = vector.broadcast %20 : vector<1x256xf32> to vector<8x256xf32>
    %22 = arith.addf %19, %21 : vector<8x256xf32>
    %cst_12 = arith.constant 0.000000e+00 : f32
    %23 = vector.broadcast %cst_12 : f32 to vector<8x256xf32>
    %24 = arith.maximumf %22, %23 : vector<8x256xf32>
    %25 = arith.truncf %24 : vector<8x256xf32> to vector<8x256xbf16>
    %c0_13 = arith.constant 0 : index
    %c0_14 = arith.constant 0 : index
    %26 = vector.load %arg7[%c0_13, %c0_14] : memref<8x256xbf16, #tpu.memory_space<vmem>>, vector<8x256xbf16>
    tpu.vector_store %arg7[%c0_13, %c0_14], %25 {strides = array<i32>} : memref<8x256xbf16, #tpu.memory_space<vmem>>, vector<8x256xbf16>,
    return
  }
  func.func @transform_0(%arg0: i32, %arg1: i32) -> (i32, i32) {
    %c0_i32 = arith.constant 0 : i32
    return %arg0, %arg1 : i32, i32
  }
  func.func @transform_1(%arg0: i32, %arg1: i32) -> (i32, i32) {
    %c0_i32 = arith.constant 0 : i32
    %c0_i32_0 = arith.constant 0 : i32
    return %c0_i32, %arg1 : i32, i32
  }
  func.func @transform_2(%arg0: i32, %arg1: i32) -> (i32, i32) {
    %c0_i32 = arith.constant 0 : i32
    %c0_i32_0 = arith.constant 0 : i32
    return %c0_i32, %arg1 : i32, i32
  }
  func.func @transform_3(%arg0: i32, %arg1: i32) -> (i32, i32) {
    %c0_i32 = arith.constant 0 : i32
    %c0_i32_0 = arith.constant 0 : i32
    return %c0_i32, %arg1 : i32, i32
  }
  func.func @transform_4(%arg0: i32, %arg1: i32) -> (i32, i32) {
    %c0_i32 = arith.constant 0 : i32
    %c0_i32_0 = arith.constant 0 : i32
    return %c0_i32, %arg1 : i32, i32
  }
  func.func @transform_5(%arg0: i32, %arg1: i32) -> (i32, i32) {
    %c0_i32 = arith.constant 0 : i32
    return %arg0, %arg1 : i32, i32
  }
}

module attributes {stable_mosaic.version = 11 : i64} {
  func.func @_gemm_stats_kernel(%arg0: i32, %arg1: i32, %arg2: i32, %arg3: memref<8x512xbf16, #tpu.memory_space<vmem>>, %arg4: memref<512x256xbf16, #tpu.memory_space<vmem>>, %arg5: memref<8x256xf32, #tpu.memory_space<vmem>>, %arg6: memref<1x256xf32, #tpu.memory_space<vmem>>, %arg7: memref<1x256xf32, #tpu.memory_space<vmem>>, %arg8: memref<8x256xf32, #tpu.memory_space<vmem>>) attributes {dimension_semantics = [#tpu.dimension_semantics<parallel>, #tpu.dimension_semantics<arbitrary>, #tpu.dimension_semantics<arbitrary>], iteration_bounds = array<i64: 2, 1, 9>, scalar_prefetch = 0 : i64, scratch_operands = 1 : i64, tpu.core_type = #tpu.core_type<tc>, window_params = [{transform_indices = @transform_0, window_bounds = array<i64: 8, 512>}, {transform_indices = @transform_1, window_bounds = array<i64: 512, 256>}, {transform_indices = @transform_2, window_bounds = array<i64: 8, 256>}, {transform_indices = @transform_3, window_bounds = array<i64: 1, 256>}, {transform_indices = @transform_4, window_bounds = array<i64: 1, 256>}]} {
    %c0_i32 = arith.constant 0 : i32
    %0 = arith.cmpi eq, %arg2, %c0_i32 : i32
    %1 = arith.extui %0 : i1 to i32
    %c0_i32_0 = arith.constant 0 : i32
    %2 = arith.cmpi ne, %1, %c0_i32_0 : i32
    scf.if %2 {
      %cst_12 = arith.constant 0.000000e+00 : f32
      %17 = vector.broadcast %cst_12 : f32 to vector<8x256xf32>
      %c0_13 = arith.constant 0 : index
      %c0_14 = arith.constant 0 : index
      %18 = vector.load %arg8[%c0_13, %c0_14] : memref<8x256xf32, #tpu.memory_space<vmem>>, vector<8x256xf32>
      tpu.vector_store %arg8[%c0_13, %c0_14], %17 {strides = array<i32>} : memref<8x256xf32, #tpu.memory_space<vmem>>, vector<8x256xf32>,
    } else {
    }
    %c0_i32_1 = arith.constant 0 : i32
    %3 = arith.cmpi eq, %arg2, %c0_i32_1 : i32
    %c0_i32_2 = arith.constant 0 : i32
    %4 = arith.cmpi eq, %arg1, %c0_i32_2 : i32
    %5 = arith.andi %3, %4 : i1
    %6 = arith.extui %5 : i1 to i32
    %c0_i32_3 = arith.constant 0 : i32
    %7 = arith.cmpi ne, %6, %c0_i32_3 : i32
    scf.if %7 {
      %cst_12 = arith.constant 0.000000e+00 : f32
      %17 = vector.broadcast %cst_12 : f32 to vector<1x256xf32>
      %c0_13 = arith.constant 0 : index
      %c0_14 = arith.constant 0 : index
      %18 = vector.load %arg6[%c0_13, %c0_14] : memref<1x256xf32, #tpu.memory_space<vmem>>, vector<1x256xf32>
      tpu.vector_store %arg6[%c0_13, %c0_14], %17 {strides = array<i32>} : memref<1x256xf32, #tpu.memory_space<vmem>>, vector<1x256xf32>,
      %cst_15 = arith.constant 0.000000e+00 : f32
      %19 = vector.broadcast %cst_15 : f32 to vector<1x256xf32>
      %c0_16 = arith.constant 0 : index
      %c0_17 = arith.constant 0 : index
      %20 = vector.load %arg7[%c0_16, %c0_17] : memref<1x256xf32, #tpu.memory_space<vmem>>, vector<1x256xf32>
      tpu.vector_store %arg7[%c0_16, %c0_17], %19 {strides = array<i32>} : memref<1x256xf32, #tpu.memory_space<vmem>>, vector<1x256xf32>,
    } else {
    }
    %c0 = arith.constant 0 : index
    %c0_4 = arith.constant 0 : index
    %8 = vector.load %arg8[%c0, %c0_4] : memref<8x256xf32, #tpu.memory_space<vmem>>, vector<8x256xf32>
    %c0_5 = arith.constant 0 : index
    %c0_6 = arith.constant 0 : index
    %9 = vector.load %arg3[%c0_5, %c0_6] : memref<8x512xbf16, #tpu.memory_space<vmem>>, vector<8x512xbf16>
    %c0_7 = arith.constant 0 : index
    %c0_8 = arith.constant 0 : index
    %10 = vector.load %arg4[%c0_7, %c0_8] : memref<512x256xbf16, #tpu.memory_space<vmem>>, vector<512x256xbf16>
    %cst = arith.constant dense<0.000000e+00> : vector<8x256xf32>
    %11 = tpu.matmul %9, %10, %cst {dimension_numbers = #tpu.dot_dimension_numbers<[1], [0], [0], [1], [0, 0, 1, 1], [], []>} : vector<8x512xbf16>, vector<512x256xbf16>, vector<8x256xf32> -> vector<8x256xf32>
    %12 = arith.addf %8, %11 : vector<8x256xf32>
    %c0_9 = arith.constant 0 : index
    %c0_10 = arith.constant 0 : index
    %13 = vector.load %arg8[%c0_9, %c0_10] : memref<8x256xf32, #tpu.memory_space<vmem>>, vector<8x256xf32>
    tpu.vector_store %arg8[%c0_9, %c0_10], %12 {strides = array<i32>} : memref<8x256xf32, #tpu.memory_space<vmem>>, vector<8x256xf32>,
    %c8_i32 = arith.constant 8 : i32
    %14 = arith.cmpi eq, %arg2, %c8_i32 : i32
    %15 = arith.extui %14 : i1 to i32
    %c0_i32_11 = arith.constant 0 : i32
    %16 = arith.cmpi ne, %15, %c0_i32_11 : i32
    scf.if %16 {
      %c0_12 = arith.constant 0 : index
      %c0_13 = arith.constant 0 : index
      %17 = vector.load %arg8[%c0_12, %c0_13] : memref<8x256xf32, #tpu.memory_space<vmem>>, vector<8x256xf32>
      %c0_14 = arith.constant 0 : index
      %c0_15 = arith.constant 0 : index
      %18 = vector.load %arg5[%c0_14, %c0_15] : memref<8x256xf32, #tpu.memory_space<vmem>>, vector<8x256xf32>
      tpu.vector_store %arg5[%c0_14, %c0_15], %17 {strides = array<i32>} : memref<8x256xf32, #tpu.memory_space<vmem>>, vector<8x256xf32>,
      %c0_16 = arith.constant 0 : index
      %c0_17 = arith.constant 0 : index
      %19 = vector.load %arg6[%c0_16, %c0_17] : memref<1x256xf32, #tpu.memory_space<vmem>>, vector<1x256xf32>
      %cst_18 = arith.constant dense<0.000000e+00> : vector<256xf32>
      %20 = vector.multi_reduction <add>, %17, %cst_18 [0] : vector<8x256xf32> to vector<256xf32>
      %21 = vector.shape_cast %20 : vector<256xf32> to vector<1x256xf32>
      %22 = arith.addf %19, %21 : vector<1x256xf32>
      %c0_19 = arith.constant 0 : index
      %c0_20 = arith.constant 0 : index
      %23 = vector.load %arg6[%c0_19, %c0_20] : memref<1x256xf32, #tpu.memory_space<vmem>>, vector<1x256xf32>
      tpu.vector_store %arg6[%c0_19, %c0_20], %22 {strides = array<i32>} : memref<1x256xf32, #tpu.memory_space<vmem>>, vector<1x256xf32>,
      %c0_21 = arith.constant 0 : index
      %c0_22 = arith.constant 0 : index
      %24 = vector.load %arg7[%c0_21, %c0_22] : memref<1x256xf32, #tpu.memory_space<vmem>>, vector<1x256xf32>
      %25 = arith.mulf %17, %17 : vector<8x256xf32>
      %cst_23 = arith.constant dense<0.000000e+00> : vector<256xf32>
      %26 = vector.multi_reduction <add>, %25, %cst_23 [0] : vector<8x256xf32> to vector<256xf32>
      %27 = vector.shape_cast %26 : vector<256xf32> to vector<1x256xf32>
      %28 = arith.addf %24, %27 : vector<1x256xf32>
      %c0_24 = arith.constant 0 : index
      %c0_25 = arith.constant 0 : index
      %29 = vector.load %arg7[%c0_24, %c0_25] : memref<1x256xf32, #tpu.memory_space<vmem>>, vector<1x256xf32>
      tpu.vector_store %arg7[%c0_24, %c0_25], %28 {strides = array<i32>} : memref<1x256xf32, #tpu.memory_space<vmem>>, vector<1x256xf32>,
    } else {
    }
    return
  }
  func.func @transform_0(%arg0: i32, %arg1: i32, %arg2: i32) -> (i32, i32) {
    %c0_i32 = arith.constant 0 : i32
    return %arg1, %arg2 : i32, i32
  }
  func.func @transform_1(%arg0: i32, %arg1: i32, %arg2: i32) -> (i32, i32) {
    %c0_i32 = arith.constant 0 : i32
    return %arg2, %arg0 : i32, i32
  }
  func.func @transform_2(%arg0: i32, %arg1: i32, %arg2: i32) -> (i32, i32) {
    %c0_i32 = arith.constant 0 : i32
    return %arg1, %arg0 : i32, i32
  }
  func.func @transform_3(%arg0: i32, %arg1: i32, %arg2: i32) -> (i32, i32) {
    %c0_i32 = arith.constant 0 : i32
    %c0_i32_0 = arith.constant 0 : i32
    return %c0_i32, %arg0 : i32, i32
  }
  func.func @transform_4(%arg0: i32, %arg1: i32, %arg2: i32) -> (i32, i32) {
    %c0_i32 = arith.constant 0 : i32
    %c0_i32_0 = arith.constant 0 : i32
    return %c0_i32, %arg0 : i32, i32
  }
}

module attributes {stable_mosaic.version = 11 : i64} {
  func.func @_bn_act_res_kernel(%arg0: i32, %arg1: i32, %arg2: memref<8x256xf32, #tpu.memory_space<vmem>>, %arg3: memref<1x256xf32, #tpu.memory_space<vmem>>, %arg4: memref<1x256xf32, #tpu.memory_space<vmem>>, %arg5: memref<1x256xf32, #tpu.memory_space<vmem>>, %arg6: memref<1x256xf32, #tpu.memory_space<vmem>>, %arg7: memref<8x256xbf16, #tpu.memory_space<vmem>>, %arg8: memref<8x256xbf16, #tpu.memory_space<vmem>>) attributes {dimension_semantics = [#tpu.dimension_semantics<parallel>, #tpu.dimension_semantics<parallel>], iteration_bounds = array<i64: 1, 2>, scalar_prefetch = 0 : i64, scratch_operands = 0 : i64, tpu.core_type = #tpu.core_type<tc>, window_params = [{transform_indices = @transform_0, window_bounds = array<i64: 8, 256>}, {transform_indices = @transform_1, window_bounds = array<i64: 1, 256>}, {transform_indices = @transform_2, window_bounds = array<i64: 1, 256>}, {transform_indices = @transform_3, window_bounds = array<i64: 1, 256>}, {transform_indices = @transform_4, window_bounds = array<i64: 1, 256>}, {transform_indices = @transform_5, window_bounds = array<i64: 8, 256>}, {transform_indices = @transform_6, window_bounds = array<i64: 8, 256>}]} {
    %c0 = arith.constant 0 : index
    %c0_0 = arith.constant 0 : index
    %0 = vector.load %arg3[%c0, %c0_0] : memref<1x256xf32, #tpu.memory_space<vmem>>, vector<1x256xf32>
    %cst = arith.constant 5.000000e-01 : f32
    %1 = vector.broadcast %cst : f32 to vector<1x256xf32>
    %2 = arith.mulf %0, %1 : vector<1x256xf32>
    %c0_1 = arith.constant 0 : index
    %c0_2 = arith.constant 0 : index
    %3 = vector.load %arg4[%c0_1, %c0_2] : memref<1x256xf32, #tpu.memory_space<vmem>>, vector<1x256xf32>
    %cst_3 = arith.constant 5.000000e-01 : f32
    %4 = vector.broadcast %cst_3 : f32 to vector<1x256xf32>
    %5 = arith.mulf %3, %4 : vector<1x256xf32>
    %6 = arith.mulf %2, %2 : vector<1x256xf32>
    %7 = arith.subf %5, %6 : vector<1x256xf32>
    %cst_4 = arith.constant 0.000000e+00 : f32
    %8 = vector.broadcast %cst_4 : f32 to vector<1x256xf32>
    %9 = arith.maximumf %7, %8 : vector<1x256xf32>
    %cst_5 = arith.constant 9.99999974E-6 : f32
    %10 = vector.broadcast %cst_5 : f32 to vector<1x256xf32>
    %11 = arith.addf %9, %10 : vector<1x256xf32>
    %12 = math.rsqrt %11 : vector<1x256xf32>
    %c0_6 = arith.constant 0 : index
    %c0_7 = arith.constant 0 : index
    %13 = vector.load %arg5[%c0_6, %c0_7] : memref<1x256xf32, #tpu.memory_space<vmem>>, vector<1x256xf32>
    %14 = arith.mulf %12, %13 : vector<1x256xf32>
    %c0_8 = arith.constant 0 : index
    %c0_9 = arith.constant 0 : index
    %15 = vector.load %arg2[%c0_8, %c0_9] : memref<8x256xf32, #tpu.memory_space<vmem>>, vector<8x256xf32>
    %16 = vector.broadcast %2 : vector<1x256xf32> to vector<8x256xf32>
    %17 = arith.subf %15, %16 : vector<8x256xf32>
    %18 = vector.broadcast %14 : vector<1x256xf32> to vector<8x256xf32>
    %19 = arith.mulf %17, %18 : vector<8x256xf32>
    %c0_10 = arith.constant 0 : index
    %c0_11 = arith.constant 0 : index
    %20 = vector.load %arg6[%c0_10, %c0_11] : memref<1x256xf32, #tpu.memory_space<vmem>>, vector<1x256xf32>
    %21 = vector.broadcast %20 : vector<1x256xf32> to vector<8x256xf32>
    %22 = arith.addf %19, %21 : vector<8x256xf32>
    %c0_12 = arith.constant 0 : index
    %c0_13 = arith.constant 0 : index
    %23 = vector.load %arg7[%c0_12, %c0_13] : memref<8x256xbf16, #tpu.memory_space<vmem>>, vector<8x256xbf16>
    %24 = arith.extf %23 : vector<8x256xbf16> to vector<8x256xf32>
    %25 = arith.addf %22, %24 : vector<8x256xf32>
    %cst_14 = arith.constant 0.000000e+00 : f32
    %26 = vector.broadcast %cst_14 : f32 to vector<8x256xf32>
    %27 = arith.maximumf %25, %26 : vector<8x256xf32>
    %28 = arith.truncf %27 : vector<8x256xf32> to vector<8x256xbf16>
    %c0_15 = arith.constant 0 : index
    %c0_16 = arith.constant 0 : index
    %29 = vector.load %arg8[%c0_15, %c0_16] : memref<8x256xbf16, #tpu.memory_space<vmem>>, vector<8x256xbf16>
    tpu.vector_store %arg8[%c0_15, %c0_16], %28 {strides = array<i32>} : memref<8x256xbf16, #tpu.memory_space<vmem>>, vector<8x256xbf16>,
    return
  }
  func.func @transform_0(%arg0: i32, %arg1: i32) -> (i32, i32) {
    %c0_i32 = arith.constant 0 : i32
    return %arg0, %arg1 : i32, i32
  }
  func.func @transform_1(%arg0: i32, %arg1: i32) -> (i32, i32) {
    %c0_i32 = arith.constant 0 : i32
    %c0_i32_0 = arith.constant 0 : i32
    return %c0_i32, %arg1 : i32, i32
  }
  func.func @transform_2(%arg0: i32, %arg1: i32) -> (i32, i32) {
    %c0_i32 = arith.constant 0 : i32
    %c0_i32_0 = arith.constant 0 : i32
    return %c0_i32, %arg1 : i32, i32
  }
  func.func @transform_3(%arg0: i32, %arg1: i32) -> (i32, i32) {
    %c0_i32 = arith.constant 0 : i32
    %c0_i32_0 = arith.constant 0 : i32
    return %c0_i32, %arg1 : i32, i32
  }
  func.func @transform_4(%arg0: i32, %arg1: i32) -> (i32, i32) {
    %c0_i32 = arith.constant 0 : i32
    %c0_i32_0 = arith.constant 0 : i32
    return %c0_i32, %arg1 : i32, i32
  }
  func.func @transform_5(%arg0: i32, %arg1: i32) -> (i32, i32) {
    %c0_i32 = arith.constant 0 : i32
    return %arg0, %arg1 : i32, i32
  }
  func.func @transform_6(%arg0: i32, %arg1: i32) -> (i32, i32) {
    %c0_i32 = arith.constant 0 : i32
    return %arg0, %arg1 : i32, i32
  }
}

module attributes {stable_mosaic.version = 11 : i64} {
  func.func @_avgpool_fc_kernel(%arg0: memref<2x1x512xbf16, #tpu.memory_space<vmem>>, %arg1: memref<512x512xbf16, #tpu.memory_space<vmem>>, %arg2: memref<1x512xf32, #tpu.memory_space<vmem>>, %arg3: memref<2x512xf32, #tpu.memory_space<vmem>>) attributes {dimension_semantics = [], scalar_prefetch = 0 : i64, scratch_operands = 0 : i64, tpu.core_type = #tpu.core_type<tc>} {
    %c0 = arith.constant 0 : index
    %c0_0 = arith.constant 0 : index
    %c0_1 = arith.constant 0 : index
    %0 = vector.load %arg0[%c0, %c0_0, %c0_1] : memref<2x1x512xbf16, #tpu.memory_space<vmem>>, vector<2x1x512xbf16>
    %1 = arith.extf %0 : vector<2x1x512xbf16> to vector<2x1x512xf32>
    %cst = arith.constant dense<0.000000e+00> : vector<2x512xf32>
    %2 = vector.multi_reduction <add>, %1, %cst [1] : vector<2x1x512xf32> to vector<2x512xf32>
    %cst_2 = arith.constant 1.000000e+00 : f32
    %3 = vector.broadcast %cst_2 : f32 to vector<2x512xf32>
    %4 = arith.divf %2, %3 : vector<2x512xf32>
    %5 = arith.truncf %4 : vector<2x512xf32> to vector<2x512xbf16>
    %c0_3 = arith.constant 0 : index
    %c0_4 = arith.constant 0 : index
    %6 = vector.load %arg1[%c0_3, %c0_4] : memref<512x512xbf16, #tpu.memory_space<vmem>>, vector<512x512xbf16>
    %cst_5 = arith.constant dense<0.000000e+00> : vector<2x512xf32>
    %7 = tpu.matmul %5, %6, %cst_5 {dimension_numbers = #tpu.dot_dimension_numbers<[1], [0], [0], [1], [0, 0, 1, 1], [], []>} : vector<2x512xbf16>, vector<512x512xbf16>, vector<2x512xf32> -> vector<2x512xf32>
    %c0_6 = arith.constant 0 : index
    %c0_7 = arith.constant 0 : index
    %8 = vector.load %arg2[%c0_6, %c0_7] : memref<1x512xf32, #tpu.memory_space<vmem>>, vector<1x512xf32>
    %9 = vector.broadcast %8 : vector<1x512xf32> to vector<2x512xf32>
    %10 = arith.addf %7, %9 : vector<2x512xf32>
    %c0_8 = arith.constant 0 : index
    %c0_9 = arith.constant 0 : index
    %11 = vector.load %arg3[%c0_8, %c0_9] : memref<2x512xf32, #tpu.memory_space<vmem>>, vector<2x512xf32>
    tpu.vector_store %arg3[%c0_8, %c0_9], %10 {strides = array<i32>} : memref<2x512xf32, #tpu.memory_space<vmem>>, vector<2x512xf32>,
    return
  }
}

</mosaic_0001>

<bundles_post_ra>
// kernel: resnet_ultra_forward.43
= control target key start
LH: loop header
LB: loop body
LE: loop exit
PB: predicated region body
PF: predicated region fallthrough
CT: control target
= control target key end

     0   :  { %10 = vsyncpa [#allocation3], 0  ;;  %s524_s0 = inlined_call_operand.vmem [shape: f32[128,128], index: 0, kind: input, shape index: {}]   ;;  %s525_s1 = inlined_call_operand.vmem [shape: f32[1,128], index: 1, kind: input, shape index: {}]   ;;  %s526_s2 = inlined_call_operand.vmem [shape: f32[1,128], index: 2, kind: input, shape index: {}]   ;;  %s527_s3 = inlined_call_operand.hbm [shape: f32[1,128], index: 3, kind: input, shape index: {}]   ;;  %s528_s4 = inlined_call_operand.hbm [shape: f32[1,128], index: 4, kind: input, shape index: {}]   ;;  %s529_s5 = inlined_call_operand.vmem [shape: bf16[128,128], index: 5, kind: output, shape index: {}]  }
   0x1   :  { %11 = vsyncpa [#allocation5], 0  ;;  %s372_s18 = smov [#allocation2]   ;;  %s373_s20 = smov [#allocation4]  }
   0x2   :  { %s24_s19 = sshll.u32 %s372_s18, 4  ;;  %s34_s21 = sshll.u32 %s373_s20, 4  ;;  %s25_s19 = int_to_ptr.vmem [resolvable:$true] %s24_s19  ;;  %s35_s21 = int_to_ptr.vmem [resolvable:$true] %s34_s21 }
   0x3   :  { %s324_s24 = scalar_lea.hbm %s527_s3, 16 }
   0x4   :  { %p325_p0 = scmp.ne.s32.totalorder %s527_s3, %s324_s24  ;;  %p328_p1 = scmp.lt.u32.totalorder %s324_s24, %s527_s3 }
   0x6   :  { %p330_p2 = pnand %p328_p1, %p325_p0 }
   0x8   :  { %333 = shalt.err (!%p330_p2)
}
   0x9   :  { %s334_s29 = scalar_lea.vmem %s25_s19, 16  ;;  %s338_s30 = scalar_lea.vmem %s25_s19, 32 }
   0xa   :  { %p335_p3 = scmp.ne.s32.totalorder %s25_s19, %s334_s29  ;;  %p339_p4 = scmp.lt.s32.totalorder %s25_s19, %s25_s19 }
   0xb   :  { %p340_p5 = scmp.lt.s32.totalorder %s338_s30, %s334_s29 }
   0xd   :  { %p341_p6 = por %p340_p5, %p339_p4 }
   0xf   :  { %p342_p7 = pnand %p341_p6, %p335_p3 }
  0x11   :  { %345 = shalt.err (!%p342_p7)
}
  0x12   :  { %27 = dma.hbm_to_vmem [thread:$0]  %s527_s3, 16, %s25_s19, [#allocation3]  }
  0x13   :  { %s346_s10 = scalar_lea.hbm %s528_s4, 16 }
  0x14   :  { %p347_p8 = scmp.ne.s32.totalorder %s528_s4, %s346_s10  ;;  %p350_p9 = scmp.lt.u32.totalorder %s346_s10, %s528_s4 }
  0x16   :  { %p352_p10 = pnand %p350_p9, %p347_p8 }
  0x18   :  { %355 = shalt.err (!%p352_p10)
}
  0x19   :  { %s356_s15 = scalar_lea.vmem %s35_s21, 16  ;;  %s360_s16 = scalar_lea.vmem %s35_s21, 32 }
  0x1a   :  { %p357_p11 = scmp.ne.s32.totalorder %s35_s21, %s356_s15  ;;  %p361_p12 = scmp.lt.s32.totalorder %s35_s21, %s35_s21 }
  0x1b   :  { %p362_p13 = scmp.lt.s32.totalorder %s360_s16, %s356_s15 }
  0x1d   :  { %p363_p0 = por %p362_p13, %p361_p12 }
  0x1f   :  { %p364_p1 = pnand %p363_p0, %p357_p11 }
  0x21   :  { %367 = shalt.err (!%p364_p1)
}
  0x22   :  { %37 = dma.hbm_to_vmem [thread:$0]  %s528_s4, 16, %s35_s21, [#allocation5]  }
  0x23   :  { %368 = dma.done.wait [#allocation3], 16  }
  0x24   :  { %369 = vsyncadd [#allocation3], 4294967280 }
  0x25   :  { %370 = dma.done.wait [#allocation5], 16  }
  0x26   :  { %371 = vsyncadd [#allocation5], 4294967280  ;;  %v44_v0 = vld [vmem:[%s525_s1] sm:$0x1]  ;;  %v72_v6 = vlaneseq  ;;  %v56_v14 = vld [vmem:[%s524_s0 + $0x8] sm:$0xff] }
  0x27   :  { %v46_v1 = vld [vmem:[%s526_s2] sm:$0x1]  ;;  %v45_v2 = vmul.f32 0.0078125, %v44_v0  ;;  %v57_v15 = vld [vmem:[%s524_s0 + $0x10] sm:$0xff]  ;;  %v58_v16 = vld [vmem:[%s524_s0 + $0x18] sm:$0xff] }
  0x28   :  { %v47_v3 = vmul.f32 0.0078125, %v46_v1  ;;  %v73_v9 = vshrl.u32 %v72_v6, 7  ;;  %v53_v11 = vld [vmem:[#allocation2] sm:$0x1]  ;;  %v60_v18 = vld [vmem:[%s524_s0 + $0x28] sm:$0xff]  ;;  %v61_v19 = vld [vmem:[%s524_s0 + $0x30] sm:$0xff] }
  0x29   :  { %v48_v4 = vmul.f32 %v45_v2, %v45_v2  ;;  %v55_v12 = vld [vmem:[%s524_s0] sm:$0xff]  ;;  %v62_v20 = vld [vmem:[%s524_s0 + $0x38] sm:$0xff]  ;;  %v64_v22 = vld [vmem:[%s524_s0 + $0x48] sm:$0xff] }
  0x2a   :  { %v74_v10 = vsub.s32 0, %v73_v9  ;;  %v59_v17 = vld [vmem:[%s524_s0 + $0x20] sm:$0xff]  ;;  %v65_v26 = vld [vmem:[%s524_s0 + $0x50] sm:$0xff]  ;;  %v66_v27 = vld [vmem:[%s524_s0 + $0x58] sm:$0xff] }
  0x2b   :  { %v49_v5 = vsub.f32 %v47_v3, %v48_v4  ;;  %v63_v21 = vld [vmem:[%s524_s0 + $0x40] sm:$0xff]  ;;  %v68_v33 = vld [vmem:[%s524_s0 + $0x68] sm:$0xff]  ;;  %v69_v34 = vld [vmem:[%s524_s0 + $0x70] sm:$0xff] }
  0x2c   :  { %v437_v13 = vrot.slane %v45_v2, %v74_v10  ;;  %v67_v28 = vld [vmem:[%s524_s0 + $0x60] sm:$0xff]  ;;  %v70_v35 = vld [vmem:[%s524_s0 + $0x78] sm:$0xff] }
  0x2d   :  { %v50_v7 = vmax.f32 %v49_v5, 0.0  ;;  %v240_v44 = vld [vmem:[#allocation4] ss:$0 sm:$0xff] }
  0x2e   :  { %v77_v24 = vsub.f32 %v55_v12, %v437_v13  ;;  %v78_v25 = vsub.f32 %v56_v14, %v437_v13  ;;  %v79_v30 = vsub.f32 %v57_v15, %v437_v13  ;;  %v80_v31 = vsub.f32 %v58_v16, %v437_v13 }
  0x2f   :  { %v51_v8 = vadd.f32 1e-05, %v50_v7  ;;  %v81_v32 = vsub.f32 %v59_v17, %v437_v13  ;;  %v82_v36 = vsub.f32 %v60_v18, %v437_v13  ;;  %v83_v37 = vsub.f32 %v61_v19, %v437_v13 }
  0x30   :  { %v84_v38 = vsub.f32 %v62_v20, %v437_v13  ;;  %v85_v39 = vsub.f32 %v63_v21, %v437_v13  ;;  %v86_v41 = vsub.f32 %v64_v22, %v437_v13  ;;  %v87_v42 = vsub.f32 %v65_v26, %v437_v13 }
  0x31   :  { %322 = vrsqrt.f32 %v51_v8  ;;  %v88_v43 = vsub.f32 %v66_v27, %v437_v13  ;;  %v89_v45 = vsub.f32 %v67_v28, %v437_v13  ;;  %v90_v46 = vsub.f32 %v68_v33, %v437_v13 }
  0x32   :  { %v91_v47 = vsub.f32 %v69_v34, %v437_v13  ;;  %v92_v48 = vsub.f32 %v70_v35, %v437_v13 }
  0x3b   :  { %v323_v23 = vpop.eup %322 }
  0x3c   :  { %v54_v29 = vmul.f32 %v323_v23, %v53_v11 }
  0x3e   :  { %v97_v40 = vrot.slane %v54_v29, %v74_v10 }
  0x40   :  { %v99_v49 = vmul.f32 %v97_v40, %v77_v24  ;;  %v100_v50 = vmul.f32 %v97_v40, %v78_v25  ;;  %v101_v51 = vmul.f32 %v97_v40, %v79_v30  ;;  %v102_v52 = vmul.f32 %v97_v40, %v80_v31 }
  0x41   :  { %v103_v53 = vmul.f32 %v97_v40, %v81_v32  ;;  %v104_v54 = vmul.f32 %v97_v40, %v82_v36  ;;  %v105_v55 = vmul.f32 %v97_v40, %v83_v37  ;;  %v106_v56 = vmul.f32 %v97_v40, %v84_v38 }
  0x42   :  { %v122_v57 = vadd.f32 %v240_v44, %v99_v49  ;;  %v123_v58 = vadd.f32 %v240_v44, %v100_v50  ;;  %v124_v59 = vadd.f32 %v240_v44, %v101_v51  ;;  %v125_v60 = vadd.f32 %v240_v44, %v102_v52 }
  0x43   :  { %v126_v61 = vadd.f32 %v240_v44, %v103_v53  ;;  %v127_v62 = vadd.f32 %v240_v44, %v104_v54  ;;  %v128_v63 = vadd.f32 %v240_v44, %v105_v55  ;;  %v129_v0 = vadd.f32 %v240_v44, %v106_v56 }
  0x44   :  { %v138_v1 = vmax.f32 %v122_v57, 0.0  ;;  %v139_v2 = vmax.f32 %v123_v58, 0.0  ;;  %v140_v3 = vmax.f32 %v124_v59, 0.0  ;;  %v141_v4 = vmax.f32 %v125_v60, 0.0 }
  0x45   :  { %v142_v5 = vmax.f32 %v126_v61, 0.0  ;;  %v143_v6 = vmax.f32 %v127_v62, 0.0  ;;  %v144_v7 = vmax.f32 %v128_v63, 0.0  ;;  %v145_v8 = vmax.f32 %v129_v0, 0.0 }
  0x46   :  { %v276_v9 = vpack.c.bf16 %v139_v2, %v138_v1  ;;  %v281_v10 = vpack.c.bf16 %v141_v4, %v140_v3  ;;  %v107_v11 = vmul.f32 %v97_v40, %v85_v39  ;;  %v108_v12 = vmul.f32 %v97_v40, %v86_v41 }
  0x47   :  { %v286_v13 = vpack.c.bf16 %v143_v6, %v142_v5  ;;  %v291_v14 = vpack.c.bf16 %v145_v8, %v144_v7  ;;  %v109_v15 = vmul.f32 %v97_v40, %v87_v42  ;;  %v110_v16 = vmul.f32 %v97_v40, %v88_v43 }
  0x48   :  { %277 = vst [vmem:[%s529_s5] sm:$0xff] %v276_v9   ;;  %313 = vst [vmem:[%s529_s5 + $0x8] sm:$0xff] %v281_v10   ;;  %v130_v17 = vadd.f32 %v240_v44, %v107_v11  ;;  %v131_v18 = vadd.f32 %v240_v44, %v108_v12  ;;  %v111_v19 = vmul.f32 %v97_v40, %v89_v45 }
  0x49   :  { %v112_v20 = vmul.f32 %v97_v40, %v90_v46  ;;  %314 = vst [vmem:[%s529_s5 + $0x10] sm:$0xff] %v286_v13   ;;  %315 = vst [vmem:[%s529_s5 + $0x18] sm:$0xff] %v291_v14   ;;  %v132_v21 = vadd.f32 %v240_v44, %v109_v15  ;;  %v133_v22 = vadd.f32 %v240_v44, %v110_v16 }
  0x4a   :  { %v113_v23 = vmul.f32 %v97_v40, %v91_v47  ;;  %v114_v24 = vmul.f32 %v97_v40, %v92_v48  ;;  %v146_v25 = vmax.f32 %v130_v17, 0.0  ;;  %v147_v26 = vmax.f32 %v131_v18, 0.0 }
  0x4b   :  { %v134_v27 = vadd.f32 %v240_v44, %v111_v19  ;;  %v135_v28 = vadd.f32 %v240_v44, %v112_v20  ;;  %v148_v29 = vmax.f32 %v132_v21, 0.0  ;;  %v149_v30 = vmax.f32 %v133_v22, 0.0 }
  0x4c   :  { %v136_v31 = vadd.f32 %v240_v44, %v113_v23  ;;  %v137_v32 = vadd.f32 %v240_v44, %v114_v24  ;;  %v296_v33 = vpack.c.bf16 %v147_v26, %v146_v25 }
  0x4d   :  { %v150_v34 = vmax.f32 %v134_v27, 0.0  ;;  %v151_v35 = vmax.f32 %v135_v28, 0.0  ;;  %v301_v36 = vpack.c.bf16 %v149_v30, %v148_v29 }
  0x4e   :  { %v152_v37 = vmax.f32 %v136_v31, 0.0  ;;  %v153_v38 = vmax.f32 %v137_v32, 0.0  ;;  %316 = vst [vmem:[%s529_s5 + $0x20] sm:$0xff] %v296_v33  }
  0x4f   :  { %v306_v39 = vpack.c.bf16 %v151_v35, %v150_v34  ;;  %317 = vst [vmem:[%s529_s5 + $0x28] sm:$0xff] %v301_v36  }
  0x50   :  { %v311_v40 = vpack.c.bf16 %v153_v38, %v152_v37 }
  0x51   :  { %318 = vst [vmem:[%s529_s5 + $0x30] sm:$0xff] %v306_v39  }
  0x52   :  { %319 = vst [vmem:[%s529_s5 + $0x38] sm:$0xff] %v311_v40  }
  0x53   :  { %238 = vsyncpa [#allocation3], 1 }
  0x54   :  { %239 = vsyncpa [#allocation5], 1 }

// kernel: resnet_ultra_forward.42
= control target key start
LH: loop header
LB: loop body
LE: loop exit
PB: predicated region body
PF: predicated region fallthrough
CT: control target
= control target key end

     0   :  { %10 = vsyncpa [#allocation4], 0  ;;  %s565_s15 = smov [#allocation3]   ;;  %s696_s0 = inlined_call_operand.vmem [shape: bf16[128,128], index: 0, kind: input, shape index: {}]   ;;  %s697_s1 = inlined_call_operand.hbm [shape: bf16[128,128], index: 1, kind: input, shape index: {}]   ;;  %s698_s2 = inlined_call_operand.vmem [shape: f32[128,128], index: 2, kind: output, shape index: {0}]   ;;  %s699_s3 = inlined_call_operand.vmem [shape: f32[1,128], index: 3, kind: output, shape index: {1}]   ;;  %s700_s4 = inlined_call_operand.vmem [shape: f32[1,128], index: 4, kind: output, shape index: {2}]  }
   0x1   :  { %s18_s16 = sshll.u32 %s565_s15, 4  ;;  %s541_s19 = scalar_lea.hbm %s697_s1, 1024  ;;  %s19_s16 = int_to_ptr.vmem [resolvable:$true] %s18_s16 }
   0x2   :  { %p542_p0 = scmp.ne.s32.totalorder %s697_s1, %s541_s19  ;;  %p545_p1 = scmp.lt.u32.totalorder %s541_s19, %s697_s1 }
   0x4   :  { %p547_p2 = pnand %p545_p1, %p542_p0 }
   0x6   :  { %550 = shalt.err (!%p547_p2)
}
   0x7   :  { %s551_s24 = scalar_lea.vmem %s19_s16, 1024  ;;  %p556_p4 = scmp.lt.s32.totalorder %s19_s16, %s19_s16 }
   0x8   :  { %p552_p3 = scmp.ne.s32.totalorder %s19_s16, %s551_s24  ;;  %p557_p5 = scmp.lt.s32.totalorder %s551_s24, %s551_s24 }
   0xa   :  { %p558_p6 = por %p557_p5, %p556_p4 }
   0xc   :  { %p559_p7 = pnand %p558_p6, %p552_p3 }
   0xe   :  { %562 = shalt.err (!%p559_p7)
}
   0xf   :  { %s566_s25 = smov 64   ;;  %s567_s26 = smov 4  }
  0x10   :  { %24 = dma.hbm_to_vmem [thread:$0]  %s697_s1, 1024, %s19_s16, [#allocation4], %s566_s25, %s566_s25, %s567_s26  }
  0x11   :  { %563 = dma.done.wait [#allocation4], 1024  }
  0x12   :  { %564 = vsyncadd [#allocation4], 4294966272  ;;  %v525_v0 = vld [vmem:[#allocation3] sm:$0xff]   ;;  %v526_v1 = vld [vmem:[#allocation3 + $0x8] sm:$0xff]   ;;  %v568_v16 = vmov 0.0  }
  0x13   :  { %473 = vmatprep.subr.bf16.mxu0 %v525_v0  ;;  %505 = vmatprep.subr.bf16.mxu1 %v525_v0  ;;  %v527_v2 = vld [vmem:[#allocation3 + $0x10] sm:$0xff]   ;;  %v528_v3 = vld [vmem:[#allocation3 + $0x18] sm:$0xff]   ;;  %v533_v4 = vld [vmem:[%s696_s0] sm:$0xff]   ;;  %54 = vst [vmem:[%s699_s3] sm:$0x1] %v568_v16 }
  0x14   :  { %474 = vmatpush3.bf16.msra.mxu0 %v525_v0  ;;  %513 = vmatpush3.bf16.msra.mxu1 %v525_v0  ;;  %v529_v5 = vld [vmem:[#allocation3 + $0x20] sm:$0xff]   ;;  %v530_v7 = vld [vmem:[#allocation3 + $0x28] sm:$0xff]   ;;  %v531_v8 = vld [vmem:[#allocation3 + $0x30] sm:$0xff]   ;;  %55 = vst [vmem:[%s700_s4] sm:$0x1] %v568_v16 }
  0x15   :  { %475 = vmatprep.subr.bf16.mxu0 %v526_v1  ;;  %506 = vmatprep.subr.bf16.mxu1 %v526_v1  ;;  %v537_v6 = vld [vmem:[%s696_s0 + $0x20] sm:$0xff]   ;;  %v532_v9 = vld [vmem:[#allocation3 + $0x38] sm:$0xff]   ;;  %v534_v10 = vld [vmem:[%s696_s0 + $0x8] sm:$0xff]  }
  0x16   :  { %489 = vmatprep.mubr.bf16.mxu0 %v533_v4  ;;  %497 = vmatprep.mubr.bf16.mxu1 %v537_v6  ;;  %v538_v11 = vld [vmem:[%s696_s0 + $0x28] sm:$0xff]   ;;  %v535_v12 = vld [vmem:[%s696_s0 + $0x10] sm:$0xff]   ;;  %v536_v14 = vld [vmem:[%s696_s0 + $0x18] sm:$0xff]  }
  0x17   :  { %v539_v13 = vld [vmem:[%s696_s0 + $0x30] sm:$0xff]   ;;  %v540_v15 = vld [vmem:[%s696_s0 + $0x38] sm:$0xff]  }
  0x18   :  { %476 = vmatpush3.bf16.msra.mxu0 %v526_v1  ;;  %514 = vmatpush3.bf16.msra.mxu1 %v526_v1 }
  0x19   :  { %477 = vmatprep.subr.bf16.mxu0 %v527_v2  ;;  %507 = vmatprep.subr.bf16.mxu1 %v527_v2 }
  0x1c   :  { %478 = vmatpush3.bf16.msra.mxu0 %v527_v2  ;;  %515 = vmatpush3.bf16.msra.mxu1 %v527_v2 }
  0x1d   :  { %479 = vmatprep.subr.bf16.mxu0 %v528_v3  ;;  %508 = vmatprep.subr.bf16.mxu1 %v528_v3 }
  0x20   :  { %480 = vmatpush3.bf16.msra.mxu0 %v528_v3  ;;  %516 = vmatpush3.bf16.msra.mxu1 %v528_v3 }
  0x21   :  { %481 = vmatprep.subr.bf16.mxu0 %v529_v5  ;;  %509 = vmatprep.subr.bf16.mxu1 %v529_v5 }
  0x24   :  { %482 = vmatpush3.bf16.msra.mxu0 %v529_v5  ;;  %517 = vmatpush3.bf16.msra.mxu1 %v529_v5 }
  0x25   :  { %483 = vmatprep.subr.bf16.mxu0 %v530_v7  ;;  %510 = vmatprep.subr.bf16.mxu1 %v530_v7 }
  0x28   :  { %484 = vmatpush3.bf16.msra.mxu0 %v530_v7  ;;  %518 = vmatpush3.bf16.msra.mxu1 %v530_v7 }
  0x29   :  { %485 = vmatprep.subr.bf16.mxu0 %v531_v8  ;;  %511 = vmatprep.subr.bf16.mxu1 %v531_v8 }
  0x2c   :  { %486 = vmatpush3.bf16.msra.mxu0 %v531_v8  ;;  %519 = vmatpush3.bf16.msra.mxu1 %v531_v8 }
  0x2d   :  { %487 = vmatprep.subr.bf16.mxu0 %v532_v9  ;;  %512 = vmatprep.subr.bf16.mxu1 %v532_v9 }
  0x30   :  { %488 = vmatpush3.bf16.msra.mxu0 %v532_v9  ;;  %520 = vmatpush3.bf16.msra.mxu1 %v532_v9 }
  0x33   :  { %490 = vmatmul.mubr.bf16.vlgmr.msra.gmra.mrb[0].mxu0 %v534_v10  ;;  %498 = vmatmul.mubr.bf16.vlgmr.msra.gmra.mrb[0].mxu1 %v538_v11 }
  0x34   :  { %493 = vmatprep.mubr.bf16.mxu0 %v535_v12  ;;  %501 = vmatprep.mubr.bf16.mxu1 %v539_v13 }
  0x3b   :  { %494 = vmatmul.mubr.bf16.gmra.mrb[4].mxu0 %v536_v14  ;;  %502 = vmatmul.mubr.bf16.gmra.mrb[4].mxu1 %v540_v15 }
 0x106   :  { %v491_v17 = vpop.f32.mrb[0].mxu0  ;;  %v499_v18 = vpop.f32.mrb[0].mxu1 }
 0x107   :  { %350 = vst [vmem:[%s698_s2 + $0x10] sm:$0xff] %v491_v17  ;;  %v234_v19 = vpop.f32.mrb[1].mxu0  ;;  %358 = vst [vmem:[%s698_s2 + $0x50] sm:$0xff] %v499_v18  ;;  %v266_v20 = vpop.f32.mrb[1].mxu1  ;;  %v391_v28 = vmul.f32 %v491_v17, %v491_v17  ;;  %v399_v60 = vmul.f32 %v499_v18, %v499_v18 }
 0x108   :  { %348 = vst [vmem:[%s698_s2] sm:$0xff] %v234_v19  ;;  %v492_v21 = vpop.f32.mrb[2].mxu0  ;;  %356 = vst [vmem:[%s698_s2 + $0x40] sm:$0xff] %v266_v20  ;;  %v500_v22 = vpop.f32.mrb[2].mxu1  ;;  %v389_v25 = vmul.f32 %v234_v19, %v234_v19  ;;  %v397_v54 = vmul.f32 %v266_v20, %v266_v20 }
 0x109   :  { %351 = vst [vmem:[%s698_s2 + $0x18] sm:$0xff] %v492_v21  ;;  %v237_v23 = vpop.f32.mrb[3].mxu0  ;;  %359 = vst [vmem:[%s698_s2 + $0x58] sm:$0xff] %v500_v22  ;;  %v269_v24 = vpop.f32.mrb[3].mxu1  ;;  %v392_v31 = vmul.f32 %v492_v21, %v492_v21  ;;  %v400_v63 = vmul.f32 %v500_v22, %v500_v22 }
 0x10a   :  { %349 = vst [vmem:[%s698_s2 + $0x8] sm:$0xff] %v237_v23  ;;  %v365_v26 = vadd.f32 %v237_v23, %v234_v19  ;;  %v390_v27 = vmul.f32 %v237_v23, %v237_v23  ;;  %357 = vst [vmem:[%s698_s2 + $0x48] sm:$0xff] %v269_v24  ;;  %v398_v59 = vmul.f32 %v269_v24, %v269_v24 }
 0x10c   :  { %v366_v29 = vadd.f32 %v491_v17, %v365_v26  ;;  %v405_v30 = vadd.f32 %v390_v27, %v389_v25  ;;  %v388_v27 = vld [vmem:[%s700_s4] sm:$0x1] }
 0x10e   :  { %v406_v32 = vadd.f32 %v405_v30, %v391_v28  ;;  %v495_v33 = vpop.f32.mrb[4].mxu0  ;;  %v367_v34 = vadd.f32 %v492_v21, %v366_v29  ;;  %v503_v35 = vpop.f32.mrb[4].mxu1 }
 0x10f   :  { %354 = vst [vmem:[%s698_s2 + $0x30] sm:$0xff] %v495_v33  ;;  %v250_v36 = vpop.f32.mrb[5].mxu0  ;;  %362 = vst [vmem:[%s698_s2 + $0x70] sm:$0xff] %v503_v35  ;;  %v282_v37 = vpop.f32.mrb[5].mxu1  ;;  %v395_v48 = vmul.f32 %v495_v33, %v495_v33  ;;  %v403_v8 = vmul.f32 %v503_v35, %v503_v35 }
 0x110   :  { %352 = vst [vmem:[%s698_s2 + $0x20] sm:$0xff] %v250_v36  ;;  %v368_v38 = vadd.f32 %v367_v34, %v250_v36  ;;  %v393_v39 = vmul.f32 %v250_v36, %v250_v36  ;;  %v407_v40 = vadd.f32 %v406_v32, %v392_v31  ;;  %v496_v41 = vpop.f32.mrb[6].mxu0  ;;  %360 = vst [vmem:[%s698_s2 + $0x60] sm:$0xff] %v282_v37  ;;  %v504_v42 = vpop.f32.mrb[6].mxu1 }
 0x111   :  { %355 = vst [vmem:[%s698_s2 + $0x38] sm:$0xff] %v496_v41  ;;  %v253_v43 = vpop.f32.mrb[7].mxu0  ;;  %363 = vst [vmem:[%s698_s2 + $0x78] sm:$0xff] %v504_v42  ;;  %v285_v44 = vpop.f32.mrb[7].mxu1  ;;  %v396_v51 = vmul.f32 %v496_v41, %v496_v41  ;;  %v401_v2 = vmul.f32 %v282_v37, %v282_v37  ;;  %v404_v11 = vmul.f32 %v504_v42, %v504_v42 }
 0x112   :  { %v408_v45 = vadd.f32 %v407_v40, %v393_v39  ;;  %353 = vst [vmem:[%s698_s2 + $0x28] sm:$0xff] %v253_v43  ;;  %v369_v46 = vadd.f32 %v368_v38, %v253_v43  ;;  %v394_v47 = vmul.f32 %v253_v43, %v253_v43  ;;  %361 = vst [vmem:[%s698_s2 + $0x68] sm:$0xff] %v285_v44 }
 0x113   :  { %v402_v7 = vmul.f32 %v285_v44, %v285_v44 }
 0x114   :  { %v370_v49 = vadd.f32 %v495_v33, %v369_v46  ;;  %v409_v50 = vadd.f32 %v408_v45, %v394_v47 }
 0x116   :  { %v410_v52 = vadd.f32 %v409_v50, %v395_v48  ;;  %v371_v53 = vadd.f32 %v496_v41, %v370_v49 }
 0x118   :  { %v372_v55 = vadd.f32 %v371_v53, %v266_v20  ;;  %v411_v56 = vadd.f32 %v410_v52, %v396_v51 }
 0x11a   :  { %v412_v57 = vadd.f32 %v411_v56, %v397_v54  ;;  %v373_v58 = vadd.f32 %v372_v55, %v269_v24  ;;  %v364_v24 = vld [vmem:[%s699_s3] sm:$0x1] }
 0x11c   :  { %v374_v61 = vadd.f32 %v499_v18, %v373_v58  ;;  %v413_v62 = vadd.f32 %v412_v57, %v398_v59 }
 0x11e   :  { %v414_v0 = vadd.f32 %v413_v62, %v399_v60  ;;  %v375_v1 = vadd.f32 %v500_v22, %v374_v61 }
 0x120   :  { %v376_v3 = vadd.f32 %v375_v1, %v282_v37  ;;  %v415_v4 = vadd.f32 %v414_v0, %v400_v63 }
 0x122   :  { %v416_v5 = vadd.f32 %v415_v4, %v401_v2  ;;  %v377_v6 = vadd.f32 %v376_v3, %v285_v44 }
 0x124   :  { %v378_v9 = vadd.f32 %v503_v35, %v377_v6  ;;  %v417_v10 = vadd.f32 %v416_v5, %v402_v7 }
 0x126   :  { %v379_v12 = vadd.f32 %v504_v42, %v378_v9  ;;  %v418_v13 = vadd.f32 %v417_v10, %v403_v8 }
 0x128   :  { %v380_v14 = vrot.slane %v379_v12, 4  ;;  %v419_v15 = vadd.f32 %v418_v13, %v404_v11 }
 0x12a   :  { %v381_v16 = vadd.f32 %v380_v14, %v379_v12  ;;  %v420_v17 = vrot.slane %v419_v15, 4 }
 0x12c   :  { %v382_v18 = vrot.slane %v381_v16, 2  ;;  %v421_v19 = vadd.f32 %v420_v17, %v419_v15 }
 0x12e   :  { %v383_v20 = vadd.f32 %v382_v18, %v381_v16  ;;  %v422_v21 = vrot.slane %v421_v19, 2 }
 0x130   :  { %v384_v22 = vrot.slane %v383_v20, 1  ;;  %v423_v23 = vadd.f32 %v422_v21, %v421_v19 }
 0x132   :  { %v385_v25 = vadd.f32 %v384_v22, %v383_v20  ;;  %v424_v26 = vrot.slane %v423_v23, 1 }
 0x134   :  { %v386_v28 = vadd.f32 %v385_v25, %v364_v24  ;;  %v425_v29 = vadd.f32 %v424_v26, %v423_v23 }
 0x136   :  { %387 = vst [vmem:[%s699_s3] sm:$0x1] %v386_v28  ;;  %v426_v30 = vadd.f32 %v425_v29, %v388_v27 }
 0x138   :  { %427 = vst [vmem:[%s700_s4] sm:$0x1] %v426_v30 }
 0x139   :  { %440 = vsyncpa [#allocation4], 1 }

// kernel: resnet_ultra_forward.44
= control target key start
LH: loop header
LB: loop body
LE: loop exit
PB: predicated region body
PF: predicated region fallthrough
CT: control target
= control target key end

     0   :  { %s561_s15 = smov 0   ;;  %s652_s0 = inlined_call_operand.vmem [shape: bf16[2,5,5,128], index: 0, kind: input, shape index: {}]   ;;  %s653_s1 = inlined_call_operand.vmem [shape: bf16[2,5,4,128], index: 1, kind: input, shape index: {}]   ;;  %s654_s2 = inlined_call_operand.vmem [shape: bf16[2,4,5,128], index: 2, kind: input, shape index: {}]   ;;  %s655_s3 = inlined_call_operand.vmem [shape: bf16[2,4,4,128], index: 3, kind: input, shape index: {}]   ;;  %s656_s4 = inlined_call_operand.vmem [shape: bf16[2,4,4,128], index: 4, kind: output, shape index: {}]  }
   0x1 LB: > { %s491_s16 = sadd.s32 4294967295, %s534_s15   ;;  %p495_p0 = scmp.ge.s32.totalorder %s534_s15, 1  ;;  %s534_s15 = sphi %s561_s15, %s14_s15  }
   0x2   : > { %p192_p1 = scmp.lt.s32.totalorder %s534_s15, 3 }
   0x4   : > { %p193_p2 = pnand %p495_p0, %p192_p1 }
   0x5   : > { %p233_p3 = scmp.lt.s32.totalorder (!%p193_p2), %s491_s16, 1  ;;  %vm306_vm0 = vcmask (!%p193_p2), 1042432   ;;  %vm307_vm1 = vcmask (!%p193_p2), 1046532  }
   0x6   : > { %196 = sbr.rel (%p193_p2) target bundleno = 49 (0x31), region = 36  ;;  %vm608_vm2 = vmor (!%p193_p2), %vm306_vm0, %vm307_vm1 }
   0xd   : > { %s660_s16 = smov (!%p233_p3, %s491_s16), 1 }
   0xe   : > { %s518_s17 = smul.u32 20, %s660_s16  ;;  %s515_s18 = sshll.u32 %s660_s16, 4 }
   0xf   : > { %s519_s19 = smul.u32 10, %s660_s16  ;;  %s577_s22 = scalar_lea.vmem %s654_s2, %s515_s18 }
  0x10   : > { %s582_s25 = scalar_lea.vmem %s652_s0, %s518_s17  ;;  %s516_s26 = sshll.u32 %s660_s16, 3  ;;  %v278_v0 = vld [vmem:[%s577_s22] sm:$0x7]  ;;  %v279_v1 = vld [vmem:[%s577_s22 + $0x4] sm:$0x7] }
  0x11   : > { %s590_s29 = scalar_lea.vmem %s653_s1, %s519_s19  ;;  %s252_s6 = scalar_lea.vmem %s655_s3, %s516_s26  ;;  %v258_v2 = vld [vmem:[%s582_s25] sm:$0x7]  ;;  %v259_v3 = vld [vmem:[%s582_s25 + $0x4] sm:$0x7]  ;;  %v260_v4 = vld [vmem:[%s582_s25 + $0x8] sm:$0x7]  ;;  %v600_v5 = vunpack.c.l.bf16 %v278_v0  ;;  %v603_v13 = vunpack.c.l.bf16 %v279_v1 }
  0x12   : > { %v261_v6 = vld [vmem:[%s582_s25 + $0xc] sm:$0x7]  ;;  %v263_v7 = vunpack.c.l.bf16 %v258_v2  ;;  %v264_v8 = vunpack.c.l.bf16 %v259_v3  ;;  %v265_v9 = vunpack.c.l.bf16 %v260_v4  ;;  %v286_v10 = vld [vmem:[%s252_s6] sm:$0x3]  ;;  %v287_v11 = vld [vmem:[%s252_s6 + $0x2] sm:$0x3]  ;;  %s257_s9 = scalar_lea.vmem %s656_s4, %s516_s26 }
  0x13   : > { %v288_v12 = vld [vmem:[%s252_s6 + $0x4] sm:$0x3]  ;;  %v268_v14 = vld [vmem:[%s590_s29] sm:$0x3]  ;;  %v269_v15 = vld [vmem:[%s590_s29 + $0x2] sm:$0x3]  ;;  %v290_v17 = vunpack.c.l.bf16 %v286_v10  ;;  %v291_v18 = vunpack.c.l.bf16 %v287_v11  ;;  %v364_v25 = vcombine.high %v600_v5, %v600_v5  ;;  %v266_v30 = vunpack.c.l.bf16 %v261_v6 }
  0x14   : > { %v289_v16 = vld [vmem:[%s252_s6 + $0x6] sm:$0x3]  ;;  %v292_v19 = vunpack.c.l.bf16 %v288_v12  ;;  %v302_v20 = vcombine.high %v263_v7, %v263_v7  ;;  %v303_v21 = vcombine.high %v264_v8, %v264_v8  ;;  %v504_v23 = vrot.slane %v263_v7, 9  ;;  %v270_v36 = vld [vmem:[%s590_s29 + $0x4] sm:$0x3] }
  0x15   : > { %v505_v24 = vrot.slane %v264_v8, 9  ;;  %v293_v26 = vunpack.c.l.bf16 %v289_v16  ;;  %v294_v27 = vmax.f32 %v290_v17, %v263_v7  ;;  %v295_v28 = vmax.f32 %v291_v18, %v264_v8  ;;  %v280_v39 = vld [vmem:[%s577_s22 + $0x8] sm:$0x7]  ;;  %v262_v44 = vld [vmem:[%s582_s25 + $0x10] sm:$0x7] }
  0x16   : > { %v311_v29 = vrot.slane %v302_v20, 5  ;;  %v273_v31 = vunpack.c.l.bf16 %v268_v14  ;;  %v274_v32 = vunpack.c.l.bf16 %v269_v15  ;;  %v315_v33 = vrot.slane %v303_v21, 5  ;;  %v281_v57 = vld [vmem:[%s577_s22 + $0xc] sm:$0x7]  ;;  %v272_v18 = vld [vmem:[%s590_s29 + $0x8] sm:$0x3] }
  0x17   : > { %v296_v34 = vmax.f32 %v292_v19, %v265_v9  ;;  %v304_v37 = vcombine.high %v265_v9, %v265_v9  ;;  %v506_v38 = vrot.slane %v265_v9, 9  ;;  %v509_v42 = vrot.slane %v600_v5, 9 }
  0x18   : > { %v312_v35 = vsel %vm608_vm2, %v504_v23, %v311_v29  ;;  %v316_v40 = vsel %vm608_vm2, %v505_v24, %v315_v33  ;;  %v370_v43 = vrot.slane %v364_v25, 5  ;;  %v297_v45 = vmax.f32 %v293_v26, %v266_v30 }
  0x19   : > { %v329_v41 = vmax.f32 %v294_v27, %v312_v35  ;;  %v330_v46 = vmax.f32 %v295_v28, %v316_v40  ;;  %v319_v47 = vrot.slane %v304_v37, 5  ;;  %v365_v48 = vcombine.high %v603_v13, %v603_v13 }
  0x1a   : > { %v275_v50 = vunpack.c.l.bf16 %v270_v36  ;;  %v284_v51 = vunpack.c.l.bf16 %v280_v39  ;;  %v305_v52 = vcombine.high %v266_v30, %v266_v30  ;;  %v507_v55 = vrot.slane %v266_v30, 9 }
  0x1b   : > { %v333_v49 = vmax.f32 %v329_v41, %v264_v8  ;;  %v320_v53 = vsel %vm608_vm2, %v506_v38, %v319_v47  ;;  %v334_v54 = vmax.f32 %v330_v46, %v265_v9  ;;  %v267_v56 = vunpack.c.l.bf16 %v262_v44  ;;  %v271_v8 = vld [vmem:[%s590_s29 + $0x6] sm:$0x3] }
  0x1c   : > { %v371_v59 = vsel %vm608_vm2, %v509_v42, %v370_v43  ;;  %v331_v60 = vmax.f32 %v296_v34, %v320_v53  ;;  %v323_v61 = vrot.slane %v305_v52, 5  ;;  %v510_v63 = vrot.slane %v603_v13, 9 }
  0x1d   : > { %v344_v58 = vmax.f32 %v333_v49, %v316_v40  ;;  %v345_v62 = vmax.f32 %v334_v54, %v320_v53  ;;  %v374_v0 = vrot.slane %v365_v48, 5  ;;  %v366_v1 = vcombine.high %v284_v51, %v284_v51 }
  0x1e   : > { %v324_v3 = vsel %vm608_vm2, %v507_v55, %v323_v61  ;;  %v335_v4 = vmax.f32 %v331_v60, %v266_v30  ;;  %v285_v6 = vunpack.c.l.bf16 %v281_v57  ;;  %v511_v10 = vrot.slane %v284_v51, 9 }
  0x1f   : > { %v348_v2 = vmax.f32 %v344_v58, %v273_v31  ;;  %v349_v7 = vmax.f32 %v345_v62, %v274_v32  ;;  %v332_v9 = vmax.f32 %v297_v45, %v324_v3  ;;  %v338_v11 = vcombine.high %v267_v56, %v267_v56 }
  0x20   : > { %v346_v14 = vmax.f32 %v335_v4, %v324_v3  ;;  %v378_v15 = vrot.slane %v366_v1, 5  ;;  %v508_v16 = vrot.slane %v267_v56, 9  ;;  %v367_v21 = vcombine.high %v285_v6, %v285_v6 }
  0x21   : > { %v352_v12 = vmax.f32 %v348_v2, %v274_v32  ;;  %v353_v17 = vmax.f32 %v349_v7, %v275_v50  ;;  %v336_v19 = vmax.f32 %v332_v9, %v267_v56  ;;  %v341_v20 = vrot.slane %v338_v11, 5 }
  0x22   : > { %v375_v24 = vsel %vm608_vm2, %v510_v63, %v374_v0  ;;  %v276_v25 = vunpack.c.l.bf16 %v271_v8  ;;  %v350_v26 = vmax.f32 %v346_v14, %v275_v50  ;;  %v277_v31 = vunpack.c.l.bf16 %v272_v18 }
  0x23   : > { %v356_v23 = vmax.f32 %v352_v12, %v600_v5  ;;  %v357_v27 = vmax.f32 %v353_v17, %v603_v13  ;;  %v342_v28 = vsel %vm608_vm2, %v508_v16, %v341_v20  ;;  %v379_v33 = vsel %vm608_vm2, %v511_v10, %v378_v15 }
  0x24   : > { %v354_v30 = vmax.f32 %v350_v26, %v276_v25  ;;  %v347_v32 = vmax.f32 %v336_v19, %v342_v28  ;;  %v512_v34 = vrot.slane %v285_v6, 9  ;;  %v382_v35 = vrot.slane %v367_v21, 5 }
  0x25   : > { %v388_v29 = vmax.f32 %v356_v23, %v371_v59  ;;  %v389_v5 = vmax.f32 %v357_v27, %v375_v24 }
  0x26   : > { %v358_v13 = vmax.f32 %v354_v30, %v284_v51  ;;  %v351_v37 = vmax.f32 %v347_v32, %v276_v25  ;;  %v383_v41 = vsel %vm608_vm2, %v512_v34, %v382_v35 }
  0x27   : > { %v392_v36 = vpack.c.bf16 %v388_v29, %v388_v29  ;;  %v393_v38 = vpack.c.bf16 %v389_v5, %v389_v5 }
  0x28   : > { %v390_v39 = vmax.f32 %v358_v13, %v379_v33  ;;  %v355_v40 = vmax.f32 %v351_v37, %v277_v31 }
  0x29   : > { %396 = vst [vmem:[%s257_s9] sm:$0x3] %v392_v36  ;;  %397 = vst [vmem:[%s257_s9 + $0x2] sm:$0x3] %v393_v38 }
  0x2a   : > { %v394_v42 = vpack.c.bf16 %v390_v39, %v390_v39  ;;  %v359_v43 = vmax.f32 %v355_v40, %v285_v6 }
  0x2c   : > { %398 = vst [vmem:[%s257_s9 + $0x4] sm:$0x3] %v394_v42  ;;  %v391_v44 = vmax.f32 %v359_v43, %v383_v41 }
  0x2e   : > { %v395_v45 = vpack.c.bf16 %v391_v44, %v391_v44 }
  0x30   : > { %399 = vst [vmem:[%s257_s9 + $0x6] sm:$0x3] %v395_v45 }
  0x31 PF: > { %s14_s15 = sadd.s32 1, %s534_s15  }
  0x32   : > { %p11_p4 = scmp.ge.s32.totalorder %s14_s15, 4  }
  0x34   :  { %13 = sbr.rel (!%p11_p4) target bundleno = 1 (0x1), region = 75 }

// kernel: resnet_ultra_forward.46
= control target key start
LH: loop header
LB: loop body
LE: loop exit
PB: predicated region body
PF: predicated region fallthrough
CT: control target
= control target key end

     0   :  { %v36_v6 = vlaneseq  ;;  %s176_s1 = inlined_call_operand.vmem [shape: f32[1,128], index: 1, kind: input, shape index: {}]   ;;  %s177_s2 = inlined_call_operand.vmem [shape: f32[1,128], index: 2, kind: input, shape index: {}]   ;;  %s178_s0 = inlined_call_operand.vmem [shape: f32[32,128], index: 0, kind: input, shape index: {}]   ;;  %s179_s3 = inlined_call_operand.vmem [shape: f32[1,128], index: 3, kind: input, shape index: {}]   ;;  %s180_s4 = inlined_call_operand.vmem [shape: f32[1,128], index: 4, kind: input, shape index: {}]   ;;  %s181_s5 = inlined_call_operand.vmem [shape: bf16[32,128], index: 5, kind: output, shape index: {}]  }
   0x1   :  { %v20_v0 = vld [vmem:[%s176_s1] sm:$0x1]  ;;  %v32_v14 = vld [vmem:[%s178_s0 + $0x8] sm:$0xff]  ;;  %v33_v15 = vld [vmem:[%s178_s0 + $0x10] sm:$0xff] }
   0x2   :  { %v22_v1 = vld [vmem:[%s177_s2] sm:$0x1]  ;;  %v21_v2 = vmul.f32 0.03125, %v20_v0  ;;  %v37_v9 = vshrl.u32 %v36_v6, 7  ;;  %v34_v16 = vld [vmem:[%s178_s0 + $0x18] sm:$0xff] }
   0x3   :  { %v23_v3 = vmul.f32 0.03125, %v22_v1  ;;  %v29_v12 = vld [vmem:[%s179_s3] sm:$0x1] }
   0x4   :  { %v24_v4 = vmul.f32 %v21_v2, %v21_v2  ;;  %v38_v10 = vsub.s32 0, %v37_v9  ;;  %v31_v13 = vld [vmem:[%s178_s0] sm:$0xff] }
   0x5   :  { %v94_v24 = vld [vmem:[%s180_s4] ss:$0 sm:$0xff] }
   0x6   :  { %v25_v5 = vsub.f32 %v23_v3, %v24_v4  ;;  %v39_v11 = vrot.slane %v21_v2, %v38_v10 }
   0x8   :  { %v26_v7 = vmax.f32 %v25_v5, 0.0  ;;  %v41_v18 = vsub.f32 %v31_v13, %v39_v11  ;;  %v42_v20 = vsub.f32 %v32_v14, %v39_v11  ;;  %v43_v21 = vsub.f32 %v33_v15, %v39_v11 }
   0x9   :  { %v44_v22 = vsub.f32 %v34_v16, %v39_v11 }
   0xa   :  { %v27_v8 = vadd.f32 1e-05, %v26_v7 }
   0xc   :  { %114 = vrsqrt.f32 %v27_v8 }
  0x16   :  { %v115_v17 = vpop.eup %114 }
  0x17   :  { %v30_v19 = vmul.f32 %v115_v17, %v29_v12 }
  0x19   :  { %v49_v23 = vrot.slane %v30_v19, %v38_v10 }
  0x1b   :  { %v51_v25 = vmul.f32 %v49_v23, %v41_v18  ;;  %v52_v26 = vmul.f32 %v49_v23, %v42_v20  ;;  %v53_v27 = vmul.f32 %v49_v23, %v43_v21  ;;  %v54_v28 = vmul.f32 %v49_v23, %v44_v22 }
  0x1d   :  { %v62_v29 = vadd.f32 %v94_v24, %v51_v25  ;;  %v63_v30 = vadd.f32 %v94_v24, %v52_v26  ;;  %v64_v31 = vadd.f32 %v94_v24, %v53_v27  ;;  %v65_v32 = vadd.f32 %v94_v24, %v54_v28 }
  0x1f   :  { %v66_v33 = vmax.f32 %v62_v29, 0.0  ;;  %v67_v34 = vmax.f32 %v63_v30, 0.0  ;;  %v68_v35 = vmax.f32 %v64_v31, 0.0  ;;  %v69_v36 = vmax.f32 %v65_v32, 0.0 }
  0x21   :  { %v106_v37 = vpack.c.bf16 %v67_v34, %v66_v33  ;;  %v111_v38 = vpack.c.bf16 %v69_v36, %v68_v35 }
  0x23   :  { %107 = vst [vmem:[%s181_s5] sm:$0xff] %v106_v37   ;;  %113 = vst [vmem:[%s181_s5 + $0x8] sm:$0xff] %v111_v38  }

// kernel: resnet_ultra_forward.48
= control target key start
LH: loop header
LB: loop body
LE: loop exit
PB: predicated region body
PF: predicated region fallthrough
CT: control target
= control target key end

     0   :  { %v39_v6 = vlaneseq  ;;  %s211_s1 = inlined_call_operand.vmem [shape: f32[1,128], index: 1, kind: input, shape index: {}]   ;;  %s212_s2 = inlined_call_operand.vmem [shape: f32[1,128], index: 2, kind: input, shape index: {}]   ;;  %s213_s0 = inlined_call_operand.vmem [shape: f32[32,128], index: 0, kind: input, shape index: {}]   ;;  %s214_s3 = inlined_call_operand.vmem [shape: f32[1,128], index: 3, kind: input, shape index: {}]   ;;  %s215_s5 = inlined_call_operand.vmem [shape: bf16[32,128], index: 5, kind: input, shape index: {}]   ;;  %s216_s4 = inlined_call_operand.vmem [shape: f32[1,128], index: 4, kind: input, shape index: {}]   ;;  %s217_s6 = inlined_call_operand.vmem [shape: bf16[32,128], index: 6, kind: output, shape index: {}]  }
   0x1   :  { %v23_v0 = vld [vmem:[%s211_s1] sm:$0x1]  ;;  %v35_v14 = vld [vmem:[%s213_s0 + $0x8] sm:$0xff]  ;;  %v36_v15 = vld [vmem:[%s213_s0 + $0x10] sm:$0xff] }
   0x2   :  { %v25_v1 = vld [vmem:[%s212_s2] sm:$0x1]  ;;  %v24_v2 = vmul.f32 0.03125, %v23_v0  ;;  %v40_v9 = vshrl.u32 %v39_v6, 7  ;;  %v37_v16 = vld [vmem:[%s213_s0 + $0x18] sm:$0xff]  ;;  %v136_v24 = vld [vmem:[%s215_s5 + $0x8] sm:$0xff]  }
   0x3   :  { %v26_v3 = vmul.f32 0.03125, %v25_v1  ;;  %v32_v12 = vld [vmem:[%s214_s3] sm:$0x1]  ;;  %v124_v29 = vunpack.c.l.bf16 %v136_v24  ;;  %v125_v30 = vunpack.c.h.bf16 %v136_v24 }
   0x4   :  { %v27_v4 = vmul.f32 %v24_v2, %v24_v2  ;;  %v41_v10 = vsub.s32 0, %v40_v9  ;;  %v34_v13 = vld [vmem:[%s213_s0] sm:$0xff] }
   0x5   :  { %v119_v21 = vld [vmem:[%s215_s5] sm:$0xff]  }
   0x6   :  { %v28_v5 = vsub.f32 %v26_v3, %v27_v4  ;;  %v42_v11 = vrot.slane %v24_v2, %v41_v10  ;;  %v109_v26 = vld [vmem:[%s216_s4] ss:$0 sm:$0xff]  ;;  %v120_v27 = vunpack.c.l.bf16 %v119_v21  ;;  %v121_v28 = vunpack.c.h.bf16 %v119_v21 }
   0x8   :  { %v29_v7 = vmax.f32 %v28_v5, 0.0  ;;  %v44_v18 = vsub.f32 %v34_v13, %v42_v11  ;;  %v45_v20 = vsub.f32 %v35_v14, %v42_v11  ;;  %v46_v22 = vsub.f32 %v36_v15, %v42_v11 }
   0x9   :  { %v47_v23 = vsub.f32 %v37_v16, %v42_v11 }
   0xa   :  { %v30_v8 = vadd.f32 1e-05, %v29_v7 }
   0xc   :  { %138 = vrsqrt.f32 %v30_v8 }
  0x16   :  { %v139_v17 = vpop.eup %138 }
  0x17   :  { %v33_v19 = vmul.f32 %v139_v17, %v32_v12 }
  0x19   :  { %v52_v25 = vrot.slane %v33_v19, %v41_v10 }
  0x1b   :  { %v54_v31 = vmul.f32 %v52_v25, %v44_v18  ;;  %v55_v32 = vmul.f32 %v52_v25, %v45_v20  ;;  %v56_v33 = vmul.f32 %v52_v25, %v46_v22  ;;  %v57_v34 = vmul.f32 %v52_v25, %v47_v23 }
  0x1d   :  { %v65_v35 = vadd.f32 %v109_v26, %v54_v31  ;;  %v66_v36 = vadd.f32 %v109_v26, %v55_v32  ;;  %v67_v37 = vadd.f32 %v109_v26, %v56_v33  ;;  %v68_v38 = vadd.f32 %v109_v26, %v57_v34 }
  0x1f   :  { %v77_v39 = vadd.f32 %v120_v27, %v65_v35  ;;  %v78_v40 = vadd.f32 %v121_v28, %v66_v36  ;;  %v79_v41 = vadd.f32 %v124_v29, %v67_v37  ;;  %v80_v42 = vadd.f32 %v125_v30, %v68_v38 }
  0x21   :  { %v81_v43 = vmax.f32 %v77_v39, 0.0  ;;  %v82_v44 = vmax.f32 %v78_v40, 0.0  ;;  %v83_v45 = vmax.f32 %v79_v41, 0.0  ;;  %v84_v46 = vmax.f32 %v80_v42, 0.0 }
  0x23   :  { %v129_v47 = vpack.c.bf16 %v82_v44, %v81_v43  ;;  %v134_v48 = vpack.c.bf16 %v84_v46, %v83_v45 }
  0x25   :  { %130 = vst [vmem:[%s217_s6] sm:$0xff] %v129_v47   ;;  %137 = vst [vmem:[%s217_s6 + $0x8] sm:$0xff] %v134_v48  }

// kernel: resnet_ultra_forward.47
= control target key start
LH: loop header
LB: loop body
LE: loop exit
PB: predicated region body
PF: predicated region fallthrough
CT: control target
= control target key end

     0   :  { %s1127_s15 = smov 0   ;;  %s1129_s16 = smov 0   ;;  %s1261_s0 = inlined_call_operand.vmem [shape: bf16[32,1152], index: 0, kind: input, shape index: {}]   ;;  %s1262_s1 = inlined_call_operand.vmem [shape: bf16[1152,128], index: 1, kind: input, shape index: {}]   ;;  %s1263_s2 = inlined_call_operand.vmem [shape: f32[32,128], index: 2, kind: output, shape index: {0}]   ;;  %s1264_s3 = inlined_call_operand.vmem [shape: f32[1,128], index: 3, kind: output, shape index: {1}]   ;;  %s1265_s4 = inlined_call_operand.vmem [shape: f32[1,128], index: 4, kind: output, shape index: {2}]  }
   0x1   :  { %s1131_s17 = smov 0   ;;  %s1133_s18 = smov 0  }
   0x2   :  { %s1135_s19 = smov 0  }
   0x3 LB: > { %s27_s20 = sadd.s32 1, %s1094_s18  ;;  %p50_p1 = scmp.ne.s32.totalorder %s1086_s16, %s1082_s15  ;;  %s1098_s19 = sphi %s1135_s19, %s15_s19   ;;  %s1094_s18 = sphi %s1133_s18, %s1269_s18   ;;  %s1090_s17 = sphi %s1131_s17, %s1268_s17   ;;  %s1086_s16 = sphi %s1129_s16, %s1267_s16   ;;  %s1082_s15 = sphi %s1127_s15, %s1266_s15  }
   0x4   : > { %p28_p0 = scmp.ge.s32.totalorder %s27_s20, 3  ;;  %p51_p2 = scmp.eq.s32.totalorder %s1098_s19, 0 }
   0x5   : > { %s43_s22 = sadd.s32 1, %s1086_s16  ;;  %p873_p5 = scmp.ge.s32.totalorder %s1098_s19, 3 }
   0x6   : > { %s1271_s20 = smov (%p28_p0, %s27_s20), 0  ;;  %p52_p3 = por %p51_p2, %p50_p1 }
   0x7   : > { %s39_s21 = ssub.s32 %s1094_s18, %s1271_s20  ;;  %184 = sbr.rel (%p873_p5) target bundleno = 23 (0x17), region = 16 }
   0x8   : > { %p41_p4 = scmp.eq.s32.totalorder %s39_s21, 0 }
   0xa   : > { %s1162_s23 = scalar_select %p41_p4, %s1086_s16, %s43_s22  }
   0xe   : > { %187 = sbr.rel (!%p52_p3) target bundleno = 23 (0x17), region = 20  ;;  %s189_s24 = sand.u32 (%p52_p3), 1, %s1086_s16  }
   0xf   : > { %s924_s25 = smul.u32 (%p52_p3), 12, %s1094_s18 }
  0x10   : > { %s984_s26 = smul.u32 (%p52_p3), 48, %s189_s24 }
  0x11   : > { %s197_s29 = scalar_lea.vmem (%p52_p3), %s1261_s0, %s924_s25 }
  0x12   : > { %v212_v0 = vld [vmem:[%s197_s29] sm:$0xff] (%p52_p3)  ;;  %v216_v2 = vld [vmem:[%s197_s29 + $0x48] sm:$0xff] (%p52_p3)  ;;  %s191_s30 = scalar_lea.vmem (%p52_p3), [#allocation3], %s984_s26  ;;  %v879_v6 = vld [vmem:[%s197_s29 + $0x50] sm:$0xf] (%p52_p3) }
  0x13   : > { %v214_v1 = vld [vmem:[%s197_s29 + $0x24] sm:$0xff] (%p52_p3)  ;;  %213 = vst [vmem:[%s191_s30] sm:$0xff] (%p52_p3), %v212_v0  ;;  %217 = vst [vmem:[%s191_s30 + $0x18] sm:$0xff] (%p52_p3), %v216_v2  ;;  %v218_v3 = vld [vmem:[%s197_s29 + $0x6c] sm:$0xff] (%p52_p3) }
  0x14   : > { %215 = vst [vmem:[%s191_s30 + $0xc] sm:$0xff] (%p52_p3), %v214_v1  ;;  %v875_v4 = vld [vmem:[%s197_s29 + $0x8] sm:$0xf] (%p52_p3)  ;;  %v877_v5 = vld [vmem:[%s197_s29 + $0x2c] sm:$0xf] (%p52_p3)  ;;  %219 = vst [vmem:[%s191_s30 + $0x24] sm:$0xff] (%p52_p3), %v218_v3 }
  0x15   : > { %876 = vst [vmem:[%s191_s30 + $0x8] sm:$0xf] %v875_v4  ;;  %878 = vst [vmem:[%s191_s30 + $0x14] sm:$0xf] %v877_v5  ;;  %v881_v7 = vld [vmem:[%s197_s29 + $0x74] sm:$0xf] }
  0x16   : > { %880 = vst [vmem:[%s191_s30 + $0x20] sm:$0xf] %v879_v6  ;;  %882 = vst [vmem:[%s191_s30 + $0x2c] sm:$0xf] %v881_v7 }
  0x17 PF: > { %p883_p6 = scmp.ge.s32.totalorder %s1098_s19, 1  ;;  %p251_p7 = scmp.lt.s32.totalorder %s1098_s19, 4 }
  0x19   : > { %p252_p8 = pnand %p883_p6, %p251_p7 }
  0x1a   : > { %s258_s5 = sand.u32 (!%p252_p8), 1, %s1082_s15   ;;  %s302_s6 = smul.u32 (!%p252_p8), 48, %s1090_s17 }
  0x1b   : > { %255 = sbr.rel (%p252_p8) target bundleno = 337 (0x151), region = 50  ;;  %p327_p9 = scmp.eq.s32.totalorder (!%p252_p8), %s1090_s17, 0 }
  0x1c   : > { %s985_s7 = smul.u32 (!%p252_p8), 48, %s258_s5  ;;  %p303_p10 = scmp.lt.s32.totalorder (!%p252_p8), %s302_s6, 143 }
  0x1d   : > { %p885_p11 = scmp.ne.s32.totalorder (!%p252_p8), %s1090_s17, 0 }
  0x1e   : > { %s1180_s12 = scalar_lea.vmem (!%p252_p8), [#allocation3], %s985_s7 }
  0x22   : > { %s1273_s6 = smov (!%p303_p10, %s302_s6), 143  ;;  %330 = sbr.rel (%p885_p11) target bundleno = 41 (0x29), region = 58 }
  0x23   : > { %s884_s8 = sshll.u32 %s1273_s6, 2  ;;  %v1100_v8 = vmov (!%p885_p11), 0.0  }
  0x24   : > { %s1178_s11 = scalar_lea.vmem %s1262_s1, %s884_s8  ;;  %331 = vst [vmem:[#allocation2] sm:$0xff] (!%p885_p11), %v1100_v8  ;;  %332 = vst [vmem:[#allocation2 + $0x8] sm:$0xff] (!%p885_p11), %v1100_v8 }
  0x25   : > { %333 = vst [vmem:[#allocation2 + $0x10] sm:$0xff] (!%p885_p11), %v1100_v8  ;;  %334 = vst [vmem:[#allocation2 + $0x18] sm:$0xff] (!%p885_p11), %v1100_v8 }
  0x29 PF: > { %339 = sbr.rel (!%p327_p9) target bundleno = 48 (0x30), region = 62  ;;  %v1101_v9 = vmov (%p327_p9), 0.0  }
  0x2a   : > { %340 = vst [vmem:[%s1264_s3] sm:$0x1] (%p327_p9), %v1101_v9  ;;  %341 = vst [vmem:[%s1265_s4] sm:$0x1] (%p327_p9), %v1101_v9 }
  0x30 PF: > { %v1028_v10 = vld [vmem:[%s1178_s11 + $0x40] sm:$0xff]   ;;  %v1031_v13 = vld [vmem:[%s1178_s11 + $0x48] sm:$0xff]   ;;  %v1034_v16 = vld [vmem:[%s1178_s11 + $0x50] sm:$0xff]   ;;  %p917_p12 = scmp.ne.s32.totalorder %s1090_s17, 2 }
  0x31   : > { %v1029_v11 = vld [vmem:[%s1178_s11] sm:$0xff]   ;;  %926 = vmatprep.subr.bf16.mxu0 %v1028_v10  ;;  %v1032_v14 = vld [vmem:[%s1178_s11 + $0x8] sm:$0xff]   ;;  %v1035_v17 = vld [vmem:[%s1178_s11 + $0x10] sm:$0xff]  }
  0x32   : > { %v1030_v12 = vld [vmem:[%s1178_s11 + $0x80] sm:$0xff]   ;;  %927 = vmatpush3.bf16.msra.mxu0 %v1029_v11  ;;  %v1033_v15 = vld [vmem:[%s1178_s11 + $0x88] sm:$0xff]   ;;  %v1036_v18 = vld [vmem:[%s1178_s11 + $0x90] sm:$0xff]  }
  0x33   : > { %964 = vmatprep.subr.bf16.mxu1 %v1030_v12  ;;  %928 = vmatprep.subr.bf16.mxu0 %v1031_v13  ;;  %v1037_v19 = vld [vmem:[%s1178_s11 + $0x58] sm:$0xff]   ;;  %v1040_v22 = vld [vmem:[%s1178_s11 + $0x60] sm:$0xff]   ;;  %v1043_v25 = vld [vmem:[%s1178_s11 + $0x68] sm:$0xff]  }
  0x34   : > { %965 = vmatpush3.bf16.msra.mxu1 %v1030_v12  ;;  %v1038_v20 = vld [vmem:[%s1178_s11 + $0x18] sm:$0xff]   ;;  %v1042_v23 = vld [vmem:[%s1178_s11 + $0xa0] sm:$0xff]   ;;  %v1045_v26 = vld [vmem:[%s1178_s11 + $0xa8] sm:$0xff]  }
  0x35   : > { %966 = vmatprep.subr.bf16.mxu1 %v1033_v15  ;;  %v1039_v21 = vld [vmem:[%s1178_s11 + $0x98] sm:$0xff]   ;;  %v1041_v24 = vld [vmem:[%s1178_s11 + $0x20] sm:$0xff]   ;;  %v1044_v27 = vld [vmem:[%s1178_s11 + $0x28] sm:$0xff]  }
  0x36   : > { %929 = vmatpush3.bf16.msra.mxu0 %v1032_v14  ;;  %v1046_v28 = vld [vmem:[%s1178_s11 + $0x70] sm:$0xff]   ;;  %v1049_v31 = vld [vmem:[%s1178_s11 + $0x78] sm:$0xff]   ;;  %v342_v46 = vld [vmem:[#allocation2] sm:$0xff] }
  0x37   : > { %930 = vmatprep.subr.bf16.mxu0 %v1034_v16  ;;  %v1047_v29 = vld [vmem:[%s1178_s11 + $0x30] sm:$0xff]   ;;  %v1051_v32 = vld [vmem:[%s1178_s11 + $0xb8] sm:$0xff]   ;;  %v343_v51 = vld [vmem:[#allocation2 + $0x8] sm:$0xff] }
  0x38   : > { %967 = vmatpush3.bf16.msra.mxu1 %v1033_v15  ;;  %v1048_v30 = vld [vmem:[%s1178_s11 + $0xb0] sm:$0xff]   ;;  %v1050_v35 = vld [vmem:[%s1178_s11 + $0x38] sm:$0xff]  }
  0x39   : > { %968 = vmatprep.subr.bf16.mxu1 %v1036_v18  ;;  %v1054_v33 = vld [vmem:[%s1180_s12 + $0x4] ss:$12 sps:$4 sm:$0xff]   ;;  %v1055_v34 = vld [vmem:[%s1180_s12 + $0x8] ss:$12 sps:$4 sm:$0xff]   ;;  %v1052_v36 = vld [vmem:[%s1180_s12] ss:$12 sps:$4 sm:$0xff]  }
  0x3a   : > { %931 = vmatpush3.bf16.msra.mxu0 %v1035_v17  ;;  %610 = vmatprep.mubr.bf16.mxu0 %v1054_v33  ;;  %v1057_v37 = vld [vmem:[%s1180_s12 + $0x1c] ss:$12 sps:$4 sm:$0xff]   ;;  %v1056_v38 = vld [vmem:[%s1180_s12 + $0x20] ss:$12 sps:$4 sm:$0xff]   ;;  %v1059_v39 = vld [vmem:[%s1180_s12 + $0x18] ss:$12 sps:$4 sm:$0xff]  }
  0x3b   : > { %932 = vmatprep.subr.bf16.mxu0 %v1037_v19  ;;  %980 = vmatprep.mubr.bf16.mxu1 %v1055_v34  ;;  %v344_v60 = vld [vmem:[#allocation2 + $0x10] sm:$0xff]  ;;  %v345_v0 = vld [vmem:[#allocation2 + $0x18] sm:$0xff] }
  0x3c   : > { %969 = vmatpush3.bf16.msra.mxu1 %v1036_v18 }
  0x3d   : > { %970 = vmatprep.subr.bf16.mxu1 %v1039_v21 }
  0x3e   : > { %933 = vmatpush3.bf16.msra.mxu0 %v1038_v20 }
  0x3f   : > { %934 = vmatprep.subr.bf16.mxu0 %v1040_v22 }
  0x40   : > { %971 = vmatpush3.bf16.msra.mxu1 %v1039_v21 }
  0x41   : > { %972 = vmatprep.subr.bf16.mxu1 %v1042_v23 }
  0x42   : > { %935 = vmatpush3.bf16.msra.mxu0 %v1041_v24 }
  0x43   : > { %936 = vmatprep.subr.bf16.mxu0 %v1043_v25 }
  0x44   : > { %973 = vmatpush3.bf16.msra.mxu1 %v1042_v23 }
  0x45   : > { %974 = vmatprep.subr.bf16.mxu1 %v1045_v26 }
  0x46   : > { %937 = vmatpush3.bf16.msra.mxu0 %v1044_v27  ;;  %v696_v27 = vld [vmem:[%s1264_s3] sm:$0x1] (!%p917_p12) }
  0x47   : > { %938 = vmatprep.subr.bf16.mxu0 %v1046_v28 }
  0x48   : > { %975 = vmatpush3.bf16.msra.mxu1 %v1045_v26 }
  0x49   : > { %976 = vmatprep.subr.bf16.mxu1 %v1048_v30 }
  0x4a   : > { %939 = vmatpush3.bf16.msra.mxu0 %v1047_v29 }
  0x4b   : > { %940 = vmatprep.subr.bf16.mxu0 %v1049_v31 }
  0x4c   : > { %977 = vmatpush3.bf16.msra.mxu1 %v1048_v30  ;;  %v708_v30 = vld [vmem:[%s1265_s4] sm:$0x1] (!%p917_p12) }
  0x4d   : > { %978 = vmatprep.subr.bf16.mxu1 %v1051_v32 }
  0x4e   : > { %941 = vmatpush3.bf16.msra.mxu0 %v1050_v35 }
  0x50   : > { %979 = vmatpush3.bf16.msra.mxu1 %v1051_v32 }
  0x51   : > { %611 = vmatmul.mubr.bf16.vlgmr.msra.gmra.mrb[0].mxu0 %v1052_v36 }
  0x52   : > { %618 = vmatprep.mubr.bf16.mxu0 %v1057_v37 }
  0x53   : > { %981 = vmatmul.mubr.bf16.vlgmr.msra.gmra.mrb[0].mxu1 %v1056_v38 }
  0x59   : > { %619 = vmatmul.mubr.bf16.gmra.mrb[4].mxu0 %v1059_v39 }
 0x124   : > { %v942_v40 = vpop.f32.mrb[0].mxu0 }
 0x125   : > { %v943_v41 = vpop.f32.mrb[1].mxu0 }
 0x126   : > { %v944_v42 = vadd.f32 %v943_v41, %v942_v40  ;;  %v945_v43 = vpop.f32.mrb[2].mxu0  ;;  %v982_v44 = vpop.f32.mrb[0].mxu1 }
 0x127   : > { %v946_v45 = vpop.f32.mrb[3].mxu0  ;;  %v661_v47 = vpop.f32.mrb[1].mxu1 }
 0x128   : > { %v947_v48 = vadd.f32 %v946_v45, %v945_v43  ;;  %v662_v49 = vadd.f32 %v944_v42, %v661_v47  ;;  %v983_v50 = vpop.f32.mrb[2].mxu1 }
 0x129   : > { %v664_v52 = vpop.f32.mrb[3].mxu1 }
 0x12a   : > { %v676_v53 = vadd.f32 %v662_v49, %v342_v46  ;;  %v665_v54 = vadd.f32 %v947_v48, %v664_v52 }
 0x12c   : > { %680 = vst [vmem:[#allocation2] sm:$0xff] %v676_v53  ;;  %v677_v55 = vadd.f32 %v665_v54, %v343_v51  ;;  %v948_v56 = vpop.f32.mrb[4].mxu0 }
 0x12d   : > { %v949_v57 = vpop.f32.mrb[5].mxu0 }
 0x12e   : > { %681 = vst [vmem:[#allocation2 + $0x8] sm:$0xff] %v677_v55  ;;  %v950_v58 = vadd.f32 %v949_v57, %v948_v56  ;;  %v951_v59 = vpop.f32.mrb[6].mxu0 }
 0x12f   : > { %v952_v61 = vpop.f32.mrb[7].mxu0 }
 0x130   : > { %v670_v62 = vadd.f32 %v982_v44, %v950_v58  ;;  %v953_v63 = vadd.f32 %v952_v61, %v951_v59  ;;  %687 = sbr.rel (%p917_p12) target bundleno = 337 (0x151), region = 66 }
 0x132   : > { %v678_v1 = vadd.f32 %v670_v62, %v344_v60  ;;  %v673_v2 = vadd.f32 %v983_v50, %v953_v63 }
 0x133   : > { %v688_v4 = vld [vmem:[#allocation2] sm:$0xff] (!%p917_p12) }
 0x134   : > { %682 = vst [vmem:[#allocation2 + $0x10] sm:$0xff] %v678_v1  ;;  %v679_v3 = vadd.f32 %v673_v2, %v345_v0  ;;  %692 = vst [vmem:[%s1263_s2] sm:$0xff] (!%p917_p12), %v688_v4  ;;  %v709_v7 = vmul.f32 (!%p917_p12), %v688_v4, %v688_v4 }
 0x135   : > { %v689_v5 = vld [vmem:[#allocation2 + $0x8] sm:$0xff] (!%p917_p12) }
 0x136   : > { %683 = vst [vmem:[#allocation2 + $0x18] sm:$0xff] %v679_v3  ;;  %693 = vst [vmem:[%s1263_s2 + $0x8] sm:$0xff] (!%p917_p12), %v689_v5  ;;  %v697_v8 = vadd.f32 (!%p917_p12), %v689_v5, %v688_v4  ;;  %v710_v9 = vmul.f32 (!%p917_p12), %v689_v5, %v689_v5 }
 0x138   : > { %v713_v12 = vadd.f32 %v710_v9, %v709_v7 }
 0x13b   : > { %v690_v6 = vld [vmem:[#allocation2 + $0x10] sm:$0xff] }
 0x13c   : > { %694 = vst [vmem:[%s1263_s2 + $0x10] sm:$0xff] %v690_v6  ;;  %v711_v10 = vmul.f32 %v690_v6, %v690_v6  ;;  %v698_v13 = vadd.f32 %v697_v8, %v690_v6 }
 0x13d   : > { %v691_v11 = vld [vmem:[#allocation2 + $0x18] sm:$0xff] }
 0x13e   : > { %695 = vst [vmem:[%s1263_s2 + $0x18] sm:$0xff] %v691_v11  ;;  %v712_v14 = vmul.f32 %v691_v11, %v691_v11  ;;  %v714_v15 = vadd.f32 %v713_v12, %v711_v10  ;;  %v699_v16 = vadd.f32 %v698_v13, %v691_v11 }
 0x140   : > { %v700_v17 = vrot.slane %v699_v16, 4  ;;  %v715_v18 = vadd.f32 %v714_v15, %v712_v14 }
 0x142   : > { %v701_v19 = vadd.f32 %v700_v17, %v699_v16  ;;  %v716_v20 = vrot.slane %v715_v18, 4 }
 0x144   : > { %v702_v21 = vrot.slane %v701_v19, 2  ;;  %v717_v22 = vadd.f32 %v716_v20, %v715_v18 }
 0x146   : > { %v703_v23 = vadd.f32 %v702_v21, %v701_v19  ;;  %v718_v24 = vrot.slane %v717_v22, 2 }
 0x148   : > { %v704_v25 = vrot.slane %v703_v23, 1  ;;  %v719_v26 = vadd.f32 %v718_v24, %v717_v22 }
 0x14a   : > { %v705_v28 = vadd.f32 %v704_v25, %v703_v23  ;;  %v720_v29 = vrot.slane %v719_v26, 1 }
 0x14c   : > { %v706_v31 = vadd.f32 %v705_v28, %v696_v27  ;;  %v721_v32 = vadd.f32 %v720_v29, %v719_v26 }
 0x14e   : > { %707 = vst [vmem:[%s1264_s3] sm:$0x1] %v706_v31  ;;  %v722_v33 = vadd.f32 %v721_v32, %v708_v30 }
 0x150   : > { %723 = vst [vmem:[%s1265_s4] sm:$0x1] %v722_v33 }
 0x151 PF: > { %s15_s19 = sadd.s32 1, %s1098_s19   ;;  %s1266_s15 = smov %s1086_s16 }
 0x152   : > { %p12_p13 = scmp.ge.s32.totalorder %s15_s19, 5   ;;  %s1267_s16 = smov %s1162_s23 }
 0x153   : > { %s1268_s17 = smov %s1094_s18  ;;  %s1269_s18 = smov %s1271_s20 }
 0x154   :  { %14 = sbr.rel (!%p12_p13) target bundleno = 3 (0x3), region = 134 }

// kernel: resnet_ultra_forward.45
= control target key start
LH: loop header
LB: loop body
LE: loop exit
PB: predicated region body
PF: predicated region fallthrough
CT: control target
= control target key end

     0   :  { %10 = vsyncpa [#allocation5], 0  ;;  %s1389_s0 = inlined_call_operand.vmem [shape: bf16[32,1152], index: 0, kind: input, shape index: {}]   ;;  %s1390_s1 = inlined_call_operand.hbm [shape: bf16[1152,128], index: 1, kind: input, shape index: {}]   ;;  %s1391_s2 = inlined_call_operand.vmem [shape: f32[32,128], index: 2, kind: output, shape index: {0}]   ;;  %s1392_s3 = inlined_call_operand.vmem [shape: f32[1,128], index: 3, kind: output, shape index: {1}]   ;;  %s1393_s4 = inlined_call_operand.vmem [shape: f32[1,128], index: 4, kind: output, shape index: {2}]  }
   0x1   :  { %12 = vsyncpa [#allocation5 + $0x1], 0  ;;  %s1206_s15 = smov 0   ;;  %s1208_s16 = smov 0  }
   0x2   :  { %s1210_s17 = smov 0   ;;  %s1212_s18 = smov 0  }
   0x3   :  { %s1214_s19 = smov 0   ;;  %s1216_s20 = smov 0  }
   0x4 LB: > { %s892_s21 = sadd.s32 4294967295, %s1174_s20   ;;  %s30_s22 = sadd.s32 1, %s1170_s19  ;;  %s1174_s20 = sphi %s1216_s20, %s18_s20   ;;  %s1170_s19 = sphi %s1214_s19, %s1400_s19   ;;  %s1166_s18 = sphi %s1212_s18, %s1399_s18   ;;  %s1162_s17 = sphi %s1210_s17, %s1398_s17   ;;  %s1158_s16 = sphi %s1208_s16, %s1397_s16   ;;  %s1154_s15 = sphi %s1206_s15, %s1396_s15  }
   0x5   : > { %p31_p0 = scmp.ge.s32.totalorder %s30_s22, 3  ;;  %s46_s23 = sadd.s32 1, %s1162_s17 }
   0x6   : > { %p53_p1 = scmp.ne.s32.totalorder %s1162_s17, %s1158_s16  ;;  %p54_p2 = scmp.eq.s32.totalorder %s1174_s20, 0 }
   0x7   : > { %s1402_s22 = smov (%p31_p0, %s30_s22), 0  ;;  %p87_p4 = scmp.ne.s32.totalorder %s1158_s16, %s1154_s15 }
   0x8   : > { %p1242_p3 = por %p54_p2, %p53_p1  ;;  %s42_s25 = ssub.s32 %s1170_s19, %s1402_s22 }
   0x9   : > { %p88_p5 = scmp.eq.s32.totalorder %s892_s21, 0  ;;  %p44_p6 = scmp.eq.s32.totalorder %s42_s25, 0 }
   0xa   : > { %p894_p8 = scmp.ge.s32.totalorder %s1174_s20, 3 }
   0xb   : > { %p1249_p7 = por %p88_p5, %p87_p4 }
   0xc   : > { %s1254_s27 = scalar_select %p44_p6, %s1162_s17, %s46_s23  }
   0xd   : > { %187 = sbr.rel (%p894_p8) target bundleno = 55 (0x37), region = 16 }
  0x14   : > { %190 = sbr.rel (!%p1242_p3) target bundleno = 29 (0x1d), region = 20  ;;  %s192_s28 = sand.u32 (%p1242_p3), 1, %s1162_s17  }
  0x15   : > { %s945_s29 = smul.u32 (%p1242_p3), 12, %s1170_s19 }
  0x16   : > { %s1006_s30 = smul.u32 (%p1242_p3), 48, %s192_s28 }
  0x17   : > { %s200_s7 = scalar_lea.vmem (%p1242_p3), %s1389_s0, %s945_s29 }
  0x18   : > { %v215_v0 = vld [vmem:[%s200_s7] sm:$0xff] (%p1242_p3)  ;;  %v219_v2 = vld [vmem:[%s200_s7 + $0x48] sm:$0xff] (%p1242_p3)  ;;  %s194_s8 = scalar_lea.vmem (%p1242_p3), [#allocation3], %s1006_s30  ;;  %v900_v6 = vld [vmem:[%s200_s7 + $0x50] sm:$0xf] (%p1242_p3) }
  0x19   : > { %v217_v1 = vld [vmem:[%s200_s7 + $0x24] sm:$0xff] (%p1242_p3)  ;;  %216 = vst [vmem:[%s194_s8] sm:$0xff] (%p1242_p3), %v215_v0  ;;  %220 = vst [vmem:[%s194_s8 + $0x18] sm:$0xff] (%p1242_p3), %v219_v2  ;;  %v221_v3 = vld [vmem:[%s200_s7 + $0x6c] sm:$0xff] (%p1242_p3) }
  0x1a   : > { %218 = vst [vmem:[%s194_s8 + $0xc] sm:$0xff] (%p1242_p3), %v217_v1  ;;  %v896_v4 = vld [vmem:[%s200_s7 + $0x8] sm:$0xf] (%p1242_p3)  ;;  %v898_v5 = vld [vmem:[%s200_s7 + $0x2c] sm:$0xf] (%p1242_p3)  ;;  %222 = vst [vmem:[%s194_s8 + $0x24] sm:$0xff] (%p1242_p3), %v221_v3 }
  0x1b   : > { %897 = vst [vmem:[%s194_s8 + $0x8] sm:$0xf] %v896_v4  ;;  %899 = vst [vmem:[%s194_s8 + $0x14] sm:$0xf] %v898_v5  ;;  %v902_v7 = vld [vmem:[%s200_s7 + $0x74] sm:$0xf] }
  0x1c   : > { %901 = vst [vmem:[%s194_s8 + $0x20] sm:$0xf] %v900_v6  ;;  %903 = vst [vmem:[%s194_s8 + $0x2c] sm:$0xf] %v902_v7 }
  0x1d PF: > { %s244_s9 = sand.u32 1, %s1162_s17   ;;  %s946_s10 = smul.u32 3072, %s1170_s19 }
  0x1e   : > { %s1007_s11 = smul.u32 192, %s244_s9  ;;  %s1273_s23 = scalar_lea.sflag [#allocation5], %s244_s9 }
  0x1f   : > { %s1269_s14 = scalar_lea.hbm %s1390_s1, %s946_s10  ;;  %s1100_s30 = scalar_lea.hbm %s1390_s1, 9216 }
  0x20   : > { %s248_s15 = scalar_lea.vmem [#allocation4], %s1007_s11  ;;  %s1096_s25 = scalar_lea.hbm %s1269_s14, 3072 }
  0x21   : > { %s256_s21 = sshll.u32 %s248_s15, 4  ;;  %p1097_p9 = scmp.ne.s32.totalorder %s1269_s14, %s1096_s25  ;;  %s1271_s21 = int_to_ptr.vmem [resolvable:$true] %s256_s21 }
  0x22   : > { %p1101_p12 = scmp.lt.u32.totalorder %s1269_s14, %s1390_s1  ;;  %p1102_p13 = scmp.lt.u32.totalorder %s1100_s30, %s1096_s25 }
  0x23   : > { %p1098_p10 = pnand %p1097_p9, %p1242_p3  ;;  %p1104_p1 = scmp.lt.u32.totalorder %s1096_s25, %s1269_s14 }
  0x24   : > { %p1103_p0 = por %p1102_p13, %p1101_p12 }
  0x25   : > { %p1099_p11 = pneg %p1098_p10 }
  0x26   : > { %p1105_p2 = por %p1104_p1, %p1103_p0 }
  0x28   : > { %p1106_p4 = pnand %p1105_p2, %p1099_p11 }
  0x2a   : > { %1109 = shalt.err (!%p1106_p4)
}
  0x2b   : > { %s1110_s7 = scalar_lea.vmem %s1271_s21, 3072  ;;  %s1176_s8 = smov [#allocation4]  }
  0x2c   : > { %p1111_p5 = scmp.ne.s32.totalorder %s1271_s21, %s1110_s7  ;;  %s1114_s9 = sshll.u32 %s1176_s8, 4  ;;  %s1115_s9 = int_to_ptr.vmem [resolvable:$false] %s1114_s9 }
  0x2d   : > { %s1116_s10 = scalar_lea.vmem %s1115_s9, 6144  ;;  %p1117_p9 = scmp.lt.s32.totalorder %s1271_s21, %s1115_s9 }
  0x2e   : > { %p1112_p6 = pnand %p1111_p5, %p1242_p3  ;;  %p1118_p10 = scmp.lt.s32.totalorder %s1116_s10, %s1110_s7 }
  0x30   : > { %p1113_p8 = pneg %p1112_p6  ;;  %p1119_p12 = por %p1118_p10, %p1117_p9 }
  0x32   : > { %p1120_p13 = pnand %p1119_p12, %p1113_p8 }
  0x34   : > { %1123 = shalt.err (!%p1120_p13)
}
  0x35   : > { %s1177_s11 = smov 64   ;;  %s1178_s12 = smov 4  }
  0x36   : > { %1010 = dma.hbm_to_vmem [thread:$0]  (%p1242_p3), %s1269_s14, 3072, %s1271_s21, %s1273_s23, %s1177_s11, %s1177_s11, %s1178_s12  }
  0x37 PF: > { %p905_p11 = scmp.ge.s32.totalorder %s1174_s20, 1  ;;  %p264_p0 = scmp.lt.s32.totalorder %s1174_s20, 4 }
  0x39   : > { %p265_p1 = pnand %p905_p11, %p264_p0 }
  0x3a   : > { %s271_s13 = sand.u32 (!%p265_p1), 1, %s1158_s16  }
  0x3b   : > { %268 = sbr.rel (%p265_p1) target bundleno = 372 (0x174), region = 50  ;;  %s278_s29 = scalar_lea.sflag (!%p265_p1), [#allocation5], %s271_s13 }
  0x3c   : > { %s1008_s15 = smul.u32 (!%p265_p1), 48, %s271_s13 }
  0x3d   : > { %s1009_s25 = smul.u32 (!%p265_p1), 192, %s271_s13 }
  0x3e   : > { %s1300_s28 = scalar_lea.vmem (!%p265_p1), [#allocation3], %s1008_s15 }
  0x3f   : > { %s1302_s30 = scalar_lea.vmem (!%p265_p1), [#allocation4], %s1009_s25 }
  0x42   : > { %1149 = dma.done.wait (%p1249_p7), %s278_s29, 3072  }
  0x43   : > { %1151 = vsyncadd (%p1249_p7), %s278_s29, 4294964224  ;;  %p338_p3 = scmp.eq.s32.totalorder %s1166_s18, 0  ;;  %p906_p2 = scmp.ne.s32.totalorder %s1166_s18, 0 }
  0x44   : > { %v1179_v8 = vmov (!%p906_p2), 0.0  }
  0x45   : > { %341 = sbr.rel (%p906_p2) target bundleno = 76 (0x4c), region = 62  ;;  %342 = vst [vmem:[#allocation2] sm:$0xff] (!%p906_p2), %v1179_v8  ;;  %343 = vst [vmem:[#allocation2 + $0x8] sm:$0xff] (!%p906_p2), %v1179_v8 }
  0x46   : > { %344 = vst [vmem:[#allocation2 + $0x10] sm:$0xff] (!%p906_p2), %v1179_v8  ;;  %345 = vst [vmem:[#allocation2 + $0x18] sm:$0xff] (!%p906_p2), %v1179_v8 }
  0x4c PF: > { %350 = sbr.rel (!%p338_p3) target bundleno = 83 (0x53), region = 66  ;;  %v1180_v9 = vmov (%p338_p3), 0.0  }
  0x4d   : > { %351 = vst [vmem:[%s1392_s3] sm:$0x1] (%p338_p3), %v1180_v9  ;;  %352 = vst [vmem:[%s1393_s4] sm:$0x1] (%p338_p3), %v1180_v9 }
  0x53 PF: > { %v1064_v10 = vld [vmem:[%s1302_s30 + $0x40] sm:$0xff]   ;;  %v1067_v13 = vld [vmem:[%s1302_s30 + $0x48] sm:$0xff]   ;;  %v1070_v16 = vld [vmem:[%s1302_s30 + $0x50] sm:$0xff]   ;;  %p938_p7 = scmp.ne.s32.totalorder %s1166_s18, 2 }
  0x54   : > { %v1065_v11 = vld [vmem:[%s1302_s30] sm:$0xff]   ;;  %948 = vmatprep.subr.bf16.mxu0 %v1064_v10  ;;  %v1068_v14 = vld [vmem:[%s1302_s30 + $0x8] sm:$0xff]   ;;  %v1071_v17 = vld [vmem:[%s1302_s30 + $0x10] sm:$0xff]  }
  0x55   : > { %v1066_v12 = vld [vmem:[%s1302_s30 + $0x80] sm:$0xff]   ;;  %949 = vmatpush3.bf16.msra.mxu0 %v1065_v11  ;;  %v1069_v15 = vld [vmem:[%s1302_s30 + $0x88] sm:$0xff]   ;;  %v1072_v18 = vld [vmem:[%s1302_s30 + $0x90] sm:$0xff]  }
  0x56   : > { %986 = vmatprep.subr.bf16.mxu1 %v1066_v12  ;;  %950 = vmatprep.subr.bf16.mxu0 %v1067_v13  ;;  %v1073_v19 = vld [vmem:[%s1302_s30 + $0x58] sm:$0xff]   ;;  %v1076_v22 = vld [vmem:[%s1302_s30 + $0x60] sm:$0xff]   ;;  %v1079_v25 = vld [vmem:[%s1302_s30 + $0x68] sm:$0xff]  }
  0x57   : > { %987 = vmatpush3.bf16.msra.mxu1 %v1066_v12  ;;  %v1074_v20 = vld [vmem:[%s1302_s30 + $0x18] sm:$0xff]   ;;  %v1078_v23 = vld [vmem:[%s1302_s30 + $0xa0] sm:$0xff]   ;;  %v1081_v26 = vld [vmem:[%s1302_s30 + $0xa8] sm:$0xff]  }
  0x58   : > { %988 = vmatprep.subr.bf16.mxu1 %v1069_v15  ;;  %v1075_v21 = vld [vmem:[%s1302_s30 + $0x98] sm:$0xff]   ;;  %v1077_v24 = vld [vmem:[%s1302_s30 + $0x20] sm:$0xff]   ;;  %v1080_v27 = vld [vmem:[%s1302_s30 + $0x28] sm:$0xff]  }
  0x59   : > { %951 = vmatpush3.bf16.msra.mxu0 %v1068_v14  ;;  %v1082_v28 = vld [vmem:[%s1302_s30 + $0x70] sm:$0xff]   ;;  %v1085_v31 = vld [vmem:[%s1302_s30 + $0x78] sm:$0xff]   ;;  %v353_v46 = vld [vmem:[#allocation2] sm:$0xff] }
  0x5a   : > { %952 = vmatprep.subr.bf16.mxu0 %v1070_v16  ;;  %v1083_v29 = vld [vmem:[%s1302_s30 + $0x30] sm:$0xff]   ;;  %v1087_v32 = vld [vmem:[%s1302_s30 + $0xb8] sm:$0xff]   ;;  %v354_v51 = vld [vmem:[#allocation2 + $0x8] sm:$0xff] }
  0x5b   : > { %989 = vmatpush3.bf16.msra.mxu1 %v1069_v15  ;;  %v1084_v30 = vld [vmem:[%s1302_s30 + $0xb0] sm:$0xff]   ;;  %v1086_v35 = vld [vmem:[%s1302_s30 + $0x38] sm:$0xff]  }
  0x5c   : > { %990 = vmatprep.subr.bf16.mxu1 %v1072_v18  ;;  %v1090_v33 = vld [vmem:[%s1300_s28 + $0x4] ss:$12 sps:$4 sm:$0xff]   ;;  %v1091_v34 = vld [vmem:[%s1300_s28 + $0x8] ss:$12 sps:$4 sm:$0xff]   ;;  %v1088_v36 = vld [vmem:[%s1300_s28] ss:$12 sps:$4 sm:$0xff]  }
  0x5d   : > { %953 = vmatpush3.bf16.msra.mxu0 %v1071_v17  ;;  %621 = vmatprep.mubr.bf16.mxu0 %v1090_v33  ;;  %v1093_v37 = vld [vmem:[%s1300_s28 + $0x1c] ss:$12 sps:$4 sm:$0xff]   ;;  %v1092_v38 = vld [vmem:[%s1300_s28 + $0x20] ss:$12 sps:$4 sm:$0xff]   ;;  %v1095_v39 = vld [vmem:[%s1300_s28 + $0x18] ss:$12 sps:$4 sm:$0xff]  }
  0x5e   : > { %954 = vmatprep.subr.bf16.mxu0 %v1073_v19  ;;  %1002 = vmatprep.mubr.bf16.mxu1 %v1091_v34  ;;  %v355_v60 = vld [vmem:[#allocation2 + $0x10] sm:$0xff]  ;;  %v356_v0 = vld [vmem:[#allocation2 + $0x18] sm:$0xff] }
  0x5f   : > { %991 = vmatpush3.bf16.msra.mxu1 %v1072_v18 }
  0x60   : > { %992 = vmatprep.subr.bf16.mxu1 %v1075_v21 }
  0x61   : > { %955 = vmatpush3.bf16.msra.mxu0 %v1074_v20 }
  0x62   : > { %956 = vmatprep.subr.bf16.mxu0 %v1076_v22 }
  0x63   : > { %993 = vmatpush3.bf16.msra.mxu1 %v1075_v21 }
  0x64   : > { %994 = vmatprep.subr.bf16.mxu1 %v1078_v23 }
  0x65   : > { %957 = vmatpush3.bf16.msra.mxu0 %v1077_v24 }
  0x66   : > { %958 = vmatprep.subr.bf16.mxu0 %v1079_v25 }
  0x67   : > { %995 = vmatpush3.bf16.msra.mxu1 %v1078_v23 }
  0x68   : > { %996 = vmatprep.subr.bf16.mxu1 %v1081_v26 }
  0x69   : > { %959 = vmatpush3.bf16.msra.mxu0 %v1080_v27  ;;  %v707_v27 = vld [vmem:[%s1392_s3] sm:$0x1] (!%p938_p7) }
  0x6a   : > { %960 = vmatprep.subr.bf16.mxu0 %v1082_v28 }
  0x6b   : > { %997 = vmatpush3.bf16.msra.mxu1 %v1081_v26 }
  0x6c   : > { %998 = vmatprep.subr.bf16.mxu1 %v1084_v30 }
  0x6d   : > { %961 = vmatpush3.bf16.msra.mxu0 %v1083_v29 }
  0x6e   : > { %962 = vmatprep.subr.bf16.mxu0 %v1085_v31 }
  0x6f   : > { %999 = vmatpush3.bf16.msra.mxu1 %v1084_v30  ;;  %v719_v30 = vld [vmem:[%s1393_s4] sm:$0x1] (!%p938_p7) }
  0x70   : > { %1000 = vmatprep.subr.bf16.mxu1 %v1087_v32 }
  0x71   : > { %963 = vmatpush3.bf16.msra.mxu0 %v1086_v35 }
  0x73   : > { %1001 = vmatpush3.bf16.msra.mxu1 %v1087_v32 }
  0x74   : > { %622 = vmatmul.mubr.bf16.vlgmr.msra.gmra.mrb[0].mxu0 %v1088_v36 }
  0x75   : > { %629 = vmatprep.mubr.bf16.mxu0 %v1093_v37 }
  0x76   : > { %1003 = vmatmul.mubr.bf16.vlgmr.msra.gmra.mrb[0].mxu1 %v1092_v38 }
  0x7c   : > { %630 = vmatmul.mubr.bf16.gmra.mrb[4].mxu0 %v1095_v39 }
 0x147   : > { %v964_v40 = vpop.f32.mrb[0].mxu0 }
 0x148   : > { %v965_v41 = vpop.f32.mrb[1].mxu0 }
 0x149   : > { %v966_v42 = vadd.f32 %v965_v41, %v964_v40  ;;  %v967_v43 = vpop.f32.mrb[2].mxu0  ;;  %v1004_v44 = vpop.f32.mrb[0].mxu1 }
 0x14a   : > { %v968_v45 = vpop.f32.mrb[3].mxu0  ;;  %v672_v47 = vpop.f32.mrb[1].mxu1 }
 0x14b   : > { %v969_v48 = vadd.f32 %v968_v45, %v967_v43  ;;  %v673_v49 = vadd.f32 %v966_v42, %v672_v47  ;;  %v1005_v50 = vpop.f32.mrb[2].mxu1 }
 0x14c   : > { %v675_v52 = vpop.f32.mrb[3].mxu1 }
 0x14d   : > { %v687_v53 = vadd.f32 %v673_v49, %v353_v46  ;;  %v676_v54 = vadd.f32 %v969_v48, %v675_v52 }
 0x14f   : > { %691 = vst [vmem:[#allocation2] sm:$0xff] %v687_v53  ;;  %v688_v55 = vadd.f32 %v676_v54, %v354_v51  ;;  %v970_v56 = vpop.f32.mrb[4].mxu0 }
 0x150   : > { %v971_v57 = vpop.f32.mrb[5].mxu0 }
 0x151   : > { %692 = vst [vmem:[#allocation2 + $0x8] sm:$0xff] %v688_v55  ;;  %v972_v58 = vadd.f32 %v971_v57, %v970_v56  ;;  %v973_v59 = vpop.f32.mrb[6].mxu0 }
 0x152   : > { %v974_v61 = vpop.f32.mrb[7].mxu0 }
 0x153   : > { %v681_v62 = vadd.f32 %v1004_v44, %v972_v58  ;;  %v975_v63 = vadd.f32 %v974_v61, %v973_v59  ;;  %698 = sbr.rel (%p938_p7) target bundleno = 372 (0x174), region = 70 }
 0x155   : > { %v689_v1 = vadd.f32 %v681_v62, %v355_v60  ;;  %v684_v2 = vadd.f32 %v1005_v50, %v975_v63 }
 0x156   : > { %v699_v4 = vld [vmem:[#allocation2] sm:$0xff] (!%p938_p7) }
 0x157   : > { %693 = vst [vmem:[#allocation2 + $0x10] sm:$0xff] %v689_v1  ;;  %v690_v3 = vadd.f32 %v684_v2, %v356_v0  ;;  %703 = vst [vmem:[%s1391_s2] sm:$0xff] (!%p938_p7), %v699_v4  ;;  %v720_v7 = vmul.f32 (!%p938_p7), %v699_v4, %v699_v4 }
 0x158   : > { %v700_v5 = vld [vmem:[#allocation2 + $0x8] sm:$0xff] (!%p938_p7) }
 0x159   : > { %694 = vst [vmem:[#allocation2 + $0x18] sm:$0xff] %v690_v3  ;;  %704 = vst [vmem:[%s1391_s2 + $0x8] sm:$0xff] (!%p938_p7), %v700_v5  ;;  %v708_v8 = vadd.f32 (!%p938_p7), %v700_v5, %v699_v4  ;;  %v721_v9 = vmul.f32 (!%p938_p7), %v700_v5, %v700_v5 }
 0x15b   : > { %v724_v12 = vadd.f32 %v721_v9, %v720_v7 }
 0x15e   : > { %v701_v6 = vld [vmem:[#allocation2 + $0x10] sm:$0xff] }
 0x15f   : > { %705 = vst [vmem:[%s1391_s2 + $0x10] sm:$0xff] %v701_v6  ;;  %v722_v10 = vmul.f32 %v701_v6, %v701_v6  ;;  %v709_v13 = vadd.f32 %v708_v8, %v701_v6 }
 0x160   : > { %v702_v11 = vld [vmem:[#allocation2 + $0x18] sm:$0xff] }
 0x161   : > { %706 = vst [vmem:[%s1391_s2 + $0x18] sm:$0xff] %v702_v11  ;;  %v723_v14 = vmul.f32 %v702_v11, %v702_v11  ;;  %v725_v15 = vadd.f32 %v724_v12, %v722_v10  ;;  %v710_v16 = vadd.f32 %v709_v13, %v702_v11 }
 0x163   : > { %v711_v17 = vrot.slane %v710_v16, 4  ;;  %v726_v18 = vadd.f32 %v725_v15, %v723_v14 }
 0x165   : > { %v712_v19 = vadd.f32 %v711_v17, %v710_v16  ;;  %v727_v20 = vrot.slane %v726_v18, 4 }
 0x167   : > { %v713_v21 = vrot.slane %v712_v19, 2  ;;  %v728_v22 = vadd.f32 %v727_v20, %v726_v18 }
 0x169   : > { %v714_v23 = vadd.f32 %v713_v21, %v712_v19  ;;  %v729_v24 = vrot.slane %v728_v22, 2 }
 0x16b   : > { %v715_v25 = vrot.slane %v714_v23, 1  ;;  %v730_v26 = vadd.f32 %v729_v24, %v728_v22 }
 0x16d   : > { %v716_v28 = vadd.f32 %v715_v25, %v714_v23  ;;  %v731_v29 = vrot.slane %v730_v26, 1 }
 0x16f   : > { %v717_v31 = vadd.f32 %v716_v28, %v707_v27  ;;  %v732_v32 = vadd.f32 %v731_v29, %v730_v26 }
 0x171   : > { %718 = vst [vmem:[%s1392_s3] sm:$0x1] %v717_v31  ;;  %v733_v33 = vadd.f32 %v732_v32, %v719_v30 }
 0x173   : > { %734 = vst [vmem:[%s1393_s4] sm:$0x1] %v733_v33 }
 0x174 PF: > { %s18_s20 = sadd.s32 1, %s1174_s20   ;;  %s1396_s15 = smov %s1158_s16 }
 0x175   : > { %p15_p4 = scmp.ge.s32.totalorder %s18_s20, 5   ;;  %s1397_s16 = smov %s1162_s17 }
 0x176   : > { %s1398_s17 = smov %s1254_s27  ;;  %s1399_s18 = smov %s1170_s19 }
 0x177   : > { %s1400_s19 = smov %s1402_s22  ;;  %17 = sbr.rel (!%p15_p4) target bundleno = 4 (0x4), region = 144 }
 0x17e   :  { %787 = vsyncpa [#allocation5], 1 }
 0x17f   :  { %789 = vsyncpa [#allocation5 + $0x1], 1 }

// kernel: resnet_ultra_forward.55
= control target key start
LH: loop header
LB: loop body
LE: loop exit
PB: predicated region body
PF: predicated region fallthrough
CT: control target
= control target key end

     0   :  { %v218_v0 = vmov 0.0   ;;  %vm219_vm0 = vmmov 0   ;;  %s293_s1 = inlined_call_operand.vmem [shape: bf16[128,128], index: 1, kind: input, shape index: {}]   ;;  %s294_s3 = inlined_call_operand.vmem [shape: f32[1,128], index: 3, kind: output, shape index: {1}]   ;;  %s295_s4 = inlined_call_operand.vmem [shape: f32[1,128], index: 4, kind: output, shape index: {2}]   ;;  %s296_s0 = inlined_call_operand.vmem [shape: bf16[8,128], index: 0, kind: input, shape index: {}]   ;;  %s297_s2 = inlined_call_operand.vmem [shape: f32[8,128], index: 2, kind: output, shape index: {0}]  }
   0x1   :  { %188 = vmatprep.subr.bf16.mxu0 %v218_v0  ;;  %v210_v1 = vld [vmem:[%s293_s1] sm:$0xff]   ;;  %204 = vmatprep.mubr.msk.bf16.mxu0 %vm219_vm0, %v218_v0  ;;  %25 = vst [vmem:[%s294_s3] sm:$0x1] %v218_v0  ;;  %26 = vst [vmem:[%s295_s4] sm:$0x1] %v218_v0  ;;  %v211_v2 = vld [vmem:[%s293_s1 + $0x8] sm:$0xff]  }
   0x2   :  { %189 = vmatpush3.bf16.msra.mxu0 %v210_v1  ;;  %v212_v3 = vld [vmem:[%s293_s1 + $0x10] sm:$0xff]   ;;  %v213_v4 = vld [vmem:[%s293_s1 + $0x18] sm:$0xff]   ;;  %v214_v5 = vld [vmem:[%s293_s1 + $0x20] sm:$0xff]  }
   0x3   :  { %190 = vmatprep.subr.bf16.mxu0 %v218_v0  ;;  %v215_v6 = vld [vmem:[%s293_s1 + $0x28] sm:$0xff]   ;;  %v216_v7 = vld [vmem:[%s293_s1 + $0x30] sm:$0xff]   ;;  %v217_v8 = vld [vmem:[%s293_s1 + $0x38] sm:$0xff]  }
   0x4   :  { %v28_v9 = vld [vmem:[%s296_s0] sm:$0xf] }
   0x6   :  { %191 = vmatpush3.bf16.msra.mxu0 %v211_v2 }
   0x7   :  { %192 = vmatprep.subr.bf16.mxu0 %v218_v0 }
   0x8   :  { %v140_v24 = vld [vmem:[%s294_s3] sm:$0x1] }
   0x9   :  { %v149_v27 = vld [vmem:[%s295_s4] sm:$0x1] }
   0xa   :  { %193 = vmatpush3.bf16.msra.mxu0 %v212_v3 }
   0xb   :  { %194 = vmatprep.subr.bf16.mxu0 %v218_v0 }
   0xe   :  { %195 = vmatpush3.bf16.msra.mxu0 %v213_v4 }
   0xf   :  { %196 = vmatprep.subr.bf16.mxu0 %v218_v0 }
  0x12   :  { %197 = vmatpush3.bf16.msra.mxu0 %v214_v5 }
  0x13   :  { %198 = vmatprep.subr.bf16.mxu0 %v218_v0 }
  0x16   :  { %199 = vmatpush3.bf16.msra.mxu0 %v215_v6 }
  0x17   :  { %200 = vmatprep.subr.bf16.mxu0 %v218_v0 }
  0x1a   :  { %201 = vmatpush3.bf16.msra.mxu0 %v216_v7 }
  0x1b   :  { %202 = vmatprep.subr.bf16.mxu0 %v218_v0 }
  0x1e   :  { %203 = vmatpush3.bf16.msra.mxu0 %v217_v8 }
  0x21   :  { %205 = vmatmul.mubr.bf16.vlgmr.msra.gmra.mrb[0].mxu0 %v28_v9 }
  0xf4   :  { %v127_v10 = vpop.f32.mrb[0].mxu0 }
  0xf5   :  { %139 = vst [vmem:[%s297_s2] sm:$0xff] %v127_v10  ;;  %v141_v11 = vrot.slane %v127_v10, 4  ;;  %v150_v12 = vmul.f32 %v127_v10, %v127_v10  ;;  %v206_v13 = vpop.f32.mrb[1].mxu0 }
  0xf6   :  { %v130_v14 = vpop.f32.mrb[2].mxu0 }
  0xf7   :  { %v142_v15 = vadd.f32 %v141_v11, %v127_v10  ;;  %v151_v16 = vrot.slane %v150_v12, 4  ;;  %v207_v17 = vpop.f32.mrb[3].mxu0 }
  0xf9   :  { %v143_v18 = vrot.slane %v142_v15, 2  ;;  %v152_v19 = vadd.f32 %v151_v16, %v150_v12 }
  0xfb   :  { %v144_v20 = vadd.f32 %v143_v18, %v142_v15  ;;  %v153_v21 = vrot.slane %v152_v19, 2 }
  0xfd   :  { %v145_v22 = vrot.slane %v144_v20, 1  ;;  %v154_v23 = vadd.f32 %v153_v21, %v152_v19 }
  0xff   :  { %v146_v25 = vadd.f32 %v145_v22, %v144_v20  ;;  %v155_v26 = vrot.slane %v154_v23, 1 }
 0x101   :  { %v147_v28 = vadd.f32 %v146_v25, %v140_v24  ;;  %v156_v29 = vadd.f32 %v155_v26, %v154_v23 }
 0x103   :  { %148 = vst [vmem:[%s294_s3] sm:$0x1] %v147_v28  ;;  %v157_v30 = vadd.f32 %v156_v29, %v149_v27 }
 0x105   :  { %158 = vst [vmem:[%s295_s4] sm:$0x1] %v157_v30 }

// kernel: resnet_ultra_forward.56
= control target key start
LH: loop header
LB: loop body
LE: loop exit
PB: predicated region body
PF: predicated region fallthrough
CT: control target
= control target key end

     0   :  { %v33_v6 = vlaneseq  ;;  %s111_s1 = inlined_call_operand.vmem [shape: f32[1,128], index: 1, kind: input, shape index: {}]   ;;  %s112_s2 = inlined_call_operand.vmem [shape: f32[1,128], index: 2, kind: input, shape index: {}]   ;;  %s113_s0 = inlined_call_operand.vmem [shape: f32[8,128], index: 0, kind: input, shape index: {}]   ;;  %s114_s3 = inlined_call_operand.vmem [shape: f32[1,128], index: 3, kind: input, shape index: {}]   ;;  %s115_s4 = inlined_call_operand.vmem [shape: f32[1,128], index: 4, kind: input, shape index: {}]   ;;  %s116_s5 = inlined_call_operand.vmem [shape: bf16[8,128], index: 5, kind: output, shape index: {}]  }
   0x1   :  { %v20_v0 = vld [vmem:[%s111_s1] sm:$0x1] }
   0x2   :  { %v22_v1 = vld [vmem:[%s112_s2] sm:$0x1]  ;;  %v21_v2 = vmul.f32 0.125, %v20_v0  ;;  %v34_v9 = vshrl.u32 %v33_v6, 7 }
   0x3   :  { %v23_v3 = vmul.f32 0.125, %v22_v1  ;;  %v29_v12 = vld [vmem:[%s114_s3] sm:$0x1] }
   0x4   :  { %v24_v4 = vmul.f32 %v21_v2, %v21_v2  ;;  %v35_v10 = vsub.s32 0, %v34_v9  ;;  %v31_v13 = vld [vmem:[%s113_s0] sm:$0xff] }
   0x5   :  { %v60_v18 = vld [vmem:[%s115_s4] ss:$0 sm:$0xff] }
   0x6   :  { %v25_v5 = vsub.f32 %v23_v3, %v24_v4  ;;  %v36_v11 = vrot.slane %v21_v2, %v35_v10 }
   0x8   :  { %v26_v7 = vmax.f32 %v25_v5, 0.0  ;;  %v38_v16 = vsub.f32 %v31_v13, %v36_v11 }
   0xa   :  { %v27_v8 = vadd.f32 1e-05, %v26_v7 }
   0xc   :  { %61 = vrsqrt.f32 %v27_v8 }
  0x16   :  { %v62_v14 = vpop.eup %61 }
  0x17   :  { %v30_v15 = vmul.f32 %v62_v14, %v29_v12 }
  0x19   :  { %v43_v17 = vrot.slane %v30_v15, %v35_v10 }
  0x1b   :  { %v45_v19 = vmul.f32 %v43_v17, %v38_v16 }
  0x1d   :  { %v53_v20 = vadd.f32 %v60_v18, %v45_v19 }
  0x1f   :  { %v54_v21 = vpack.c.bf16 %v53_v20, %v53_v20 }
  0x21   :  { %55 = vst [vmem:[%s116_s5] sm:$0xf] %v54_v21 }

// kernel: resnet_ultra_forward.54
= control target key start
LH: loop header
LB: loop body
LE: loop exit
PB: predicated region body
PF: predicated region fallthrough
CT: control target
= control target key end

     0   :  { %v33_v6 = vlaneseq  ;;  %s112_s1 = inlined_call_operand.vmem [shape: f32[1,128], index: 1, kind: input, shape index: {}]   ;;  %s113_s2 = inlined_call_operand.vmem [shape: f32[1,128], index: 2, kind: input, shape index: {}]   ;;  %s114_s0 = inlined_call_operand.vmem [shape: f32[8,128], index: 0, kind: input, shape index: {}]   ;;  %s115_s3 = inlined_call_operand.vmem [shape: f32[1,128], index: 3, kind: input, shape index: {}]   ;;  %s116_s4 = inlined_call_operand.vmem [shape: f32[1,128], index: 4, kind: input, shape index: {}]   ;;  %s117_s5 = inlined_call_operand.vmem [shape: bf16[8,128], index: 5, kind: output, shape index: {}]  }
   0x1   :  { %v20_v0 = vld [vmem:[%s112_s1] sm:$0x1] }
   0x2   :  { %v22_v1 = vld [vmem:[%s113_s2] sm:$0x1]  ;;  %v21_v2 = vmul.f32 0.125, %v20_v0  ;;  %v34_v9 = vshrl.u32 %v33_v6, 7 }
   0x3   :  { %v23_v3 = vmul.f32 0.125, %v22_v1  ;;  %v29_v12 = vld [vmem:[%s115_s3] sm:$0x1] }
   0x4   :  { %v24_v4 = vmul.f32 %v21_v2, %v21_v2  ;;  %v35_v10 = vsub.s32 0, %v34_v9  ;;  %v31_v13 = vld [vmem:[%s114_s0] sm:$0xff] }
   0x5   :  { %v61_v18 = vld [vmem:[%s116_s4] ss:$0 sm:$0xff] }
   0x6   :  { %v25_v5 = vsub.f32 %v23_v3, %v24_v4  ;;  %v36_v11 = vrot.slane %v21_v2, %v35_v10 }
   0x8   :  { %v26_v7 = vmax.f32 %v25_v5, 0.0  ;;  %v38_v16 = vsub.f32 %v31_v13, %v36_v11 }
   0xa   :  { %v27_v8 = vadd.f32 1e-05, %v26_v7 }
   0xc   :  { %62 = vrsqrt.f32 %v27_v8 }
  0x16   :  { %v63_v14 = vpop.eup %62 }
  0x17   :  { %v30_v15 = vmul.f32 %v63_v14, %v29_v12 }
  0x19   :  { %v43_v17 = vrot.slane %v30_v15, %v35_v10 }
  0x1b   :  { %v45_v19 = vmul.f32 %v43_v17, %v38_v16 }
  0x1d   :  { %v53_v20 = vadd.f32 %v61_v18, %v45_v19 }
  0x1f   :  { %v54_v21 = vmax.f32 %v53_v20, 0.0 }
  0x21   :  { %v55_v22 = vpack.c.bf16 %v54_v21, %v54_v21 }
  0x23   :  { %56 = vst [vmem:[%s117_s5] sm:$0xf] %v55_v22 }

// kernel: resnet_ultra_forward.53
= control target key start
LH: loop header
LB: loop body
LE: loop exit
PB: predicated region body
PF: predicated region fallthrough
CT: control target
= control target key end

     0   :  { %s953_s15 = smov 0   ;;  %s955_s16 = smov 0   ;;  %s1046_s0 = inlined_call_operand.vmem [shape: bf16[8,1152], index: 0, kind: input, shape index: {}]   ;;  %s1047_s1 = inlined_call_operand.vmem [shape: bf16[1152,128], index: 1, kind: input, shape index: {}]   ;;  %s1048_s2 = inlined_call_operand.vmem [shape: f32[8,128], index: 2, kind: output, shape index: {0}]   ;;  %s1049_s3 = inlined_call_operand.vmem [shape: f32[1,128], index: 3, kind: output, shape index: {1}]   ;;  %s1050_s4 = inlined_call_operand.vmem [shape: f32[1,128], index: 4, kind: output, shape index: {2}]  }
   0x1   :  { %s957_s17 = smov 0  }
   0x2 LB: > { %s27_s18 = sadd.s32 1, %s918_s16  ;;  %p755_p0 = scmp.ge.s32.totalorder %s922_s17, 1  ;;  %s922_s17 = sphi %s957_s17, %s15_s17   ;;  %s918_s16 = sphi %s955_s16, %s1052_s16   ;;  %s914_s15 = sphi %s953_s15, %s1051_s15  }
   0x3   : > { %p28_p1 = scmp.ge.s32.totalorder %s27_s18, 3  ;;  %p211_p2 = scmp.lt.s32.totalorder %s922_s17, 4 }
   0x5   : > { %s1054_s18 = smov (%p28_p1, %s27_s18), 0  ;;  %p212_p3 = pnand %p755_p0, %p211_p2 }
   0x6   : > { %s257_s19 = smul.u32 (!%p212_p3), 3, %s914_s15  ;;  %p290_p4 = scmp.eq.s32.totalorder (!%p212_p3), %s914_s15, 0 }
   0x7   : > { %215 = sbr.rel (%p212_p3) target bundleno = 308 (0x134), region = 28  ;;  %p758_p7 = scmp.ne.s32.totalorder (!%p212_p3), %s914_s15, 0 }
   0x8   : > { %s267_s20 = smul.u32 (!%p212_p3), 48, %s914_s15  ;;  %p260_p5 = scmp.lt.s32.totalorder (!%p212_p3), %s257_s19, 8 }
   0xa   : > { %p268_p6 = scmp.lt.s32.totalorder (!%p212_p3), %s267_s20, 143 }
   0xe   : > { %s1056_s19 = smov (!%p260_p5, %s257_s19), 8  ;;  %s1058_s20 = smov (!%p268_p6, %s267_s20), 143 }
   0xf   : > { %s756_s21 = sshll.u32 %s1056_s19, 2  ;;  %s757_s25 = sshll.u32 %s1058_s20, 2  ;;  %v924_v0 = vmov (!%p758_p7), 0.0  }
  0x10   : > { %s979_s24 = scalar_lea.vmem %s1046_s0, %s756_s21  ;;  %s984_s28 = scalar_lea.vmem %s1047_s1, %s757_s25  ;;  %294 = vst [vmem:[#allocation2] sm:$0xff] (!%p758_p7), %v924_v0 }
  0x11   : > { %293 = sbr.rel (%p758_p7) target bundleno = 24 (0x18), region = 32 }
  0x18 PF: > { %299 = sbr.rel (!%p290_p4) target bundleno = 31 (0x1f), region = 36  ;;  %v925_v1 = vmov (%p290_p4), 0.0  }
  0x19   : > { %300 = vst [vmem:[%s1049_s3] sm:$0x1] (%p290_p4), %v925_v1  ;;  %301 = vst [vmem:[%s1050_s4] sm:$0x1] (%p290_p4), %v925_v1 }
  0x1f PF: > { %v873_v2 = vld [vmem:[%s984_s28 + $0x40] sm:$0xff]   ;;  %v926_v3 = vmov 0.0   ;;  %vm927_vm0 = vmmov 0   ;;  %v876_v6 = vld [vmem:[%s984_s28 + $0x48] sm:$0xff]   ;;  %v879_v9 = vld [vmem:[%s984_s28 + $0x50] sm:$0xff]   ;;  %p787_p8 = scmp.ne.s32.totalorder %s914_s15, 2 }
  0x20   : > { %825 = vmatprep.subr.bf16.mxu1 %v926_v3  ;;  %v874_v4 = vld [vmem:[%s984_s28] sm:$0xff]   ;;  %794 = vmatprep.subr.bf16.mxu0 %v873_v2  ;;  %v877_v7 = vld [vmem:[%s984_s28 + $0x8] sm:$0xff]   ;;  %v880_v10 = vld [vmem:[%s984_s28 + $0x10] sm:$0xff]  }
  0x21   : > { %v875_v5 = vld [vmem:[%s984_s28 + $0x80] sm:$0xff]   ;;  %841 = vmatprep.mubr.msk.bf16.mxu1 %vm927_vm0, %v926_v3  ;;  %795 = vmatpush3.bf16.msra.mxu0 %v874_v4  ;;  %v878_v8 = vld [vmem:[%s984_s28 + $0x88] sm:$0xff]   ;;  %v881_v11 = vld [vmem:[%s984_s28 + $0x90] sm:$0xff]  }
  0x22   : > { %826 = vmatpush3.bf16.msra.mxu1 %v875_v5  ;;  %796 = vmatprep.subr.bf16.mxu0 %v876_v6  ;;  %v882_v12 = vld [vmem:[%s984_s28 + $0x58] sm:$0xff]   ;;  %v885_v15 = vld [vmem:[%s984_s28 + $0x60] sm:$0xff]   ;;  %v888_v18 = vld [vmem:[%s984_s28 + $0x68] sm:$0xff]  }
  0x23   : > { %827 = vmatprep.subr.bf16.mxu1 %v926_v3  ;;  %v883_v13 = vld [vmem:[%s984_s28 + $0x18] sm:$0xff]   ;;  %v886_v16 = vld [vmem:[%s984_s28 + $0x20] sm:$0xff]   ;;  %v889_v19 = vld [vmem:[%s984_s28 + $0x28] sm:$0xff]  }
  0x24   : > { %v884_v14 = vld [vmem:[%s984_s28 + $0x98] sm:$0xff]   ;;  %v887_v17 = vld [vmem:[%s984_s28 + $0xa0] sm:$0xff]   ;;  %v890_v20 = vld [vmem:[%s984_s28 + $0xa8] sm:$0xff]  }
  0x25   : > { %797 = vmatpush3.bf16.msra.mxu0 %v877_v7  ;;  %v891_v21 = vld [vmem:[%s984_s28 + $0x70] sm:$0xff]   ;;  %v894_v24 = vld [vmem:[%s984_s28 + $0x78] sm:$0xff]   ;;  %v303_v25 = vld [vmem:[%s979_s24] sm:$0xff] }
  0x26   : > { %828 = vmatpush3.bf16.msra.mxu1 %v878_v8  ;;  %798 = vmatprep.subr.bf16.mxu0 %v879_v9  ;;  %v892_v22 = vld [vmem:[%s984_s28 + $0x30] sm:$0xff]   ;;  %v761_v26 = vcombine.high %v303_v25, %v303_v25  ;;  %v895_v27 = vld [vmem:[%s984_s28 + $0x38] sm:$0xff]   ;;  %v760_v29 = vcombine.low %v303_v25, %v303_v25  ;;  %v899_v30 = vld [vmem:[%s979_s24 + $0x8] ss:$0 sps:$4 sm:$0xff]  }
  0x27   : > { %829 = vmatprep.subr.bf16.mxu1 %v926_v3  ;;  %v893_v23 = vld [vmem:[%s984_s28 + $0xb0] sm:$0xff]   ;;  %v896_v28 = vld [vmem:[%s984_s28 + $0xb8] sm:$0xff]   ;;  %v302_v37 = vld [vmem:[#allocation2] sm:$0xff] }
  0x28   : > { %540 = vmatprep.mubr.bf16.mxu0 %v761_v26  ;;  %v596_v54 = vld [vmem:[%s1049_s3] sm:$0x1] (!%p787_p8) }
  0x29   : > { %799 = vmatpush3.bf16.msra.mxu0 %v880_v10  ;;  %v605_v57 = vld [vmem:[%s1050_s4] sm:$0x1] (!%p787_p8) }
  0x2a   : > { %830 = vmatpush3.bf16.msra.mxu1 %v881_v11  ;;  %800 = vmatprep.subr.bf16.mxu0 %v882_v12 }
  0x2b   : > { %831 = vmatprep.subr.bf16.mxu1 %v926_v3 }
  0x2d   : > { %801 = vmatpush3.bf16.msra.mxu0 %v883_v13 }
  0x2e   : > { %832 = vmatpush3.bf16.msra.mxu1 %v884_v14  ;;  %802 = vmatprep.subr.bf16.mxu0 %v885_v15 }
  0x2f   : > { %833 = vmatprep.subr.bf16.mxu1 %v926_v3 }
  0x31   : > { %803 = vmatpush3.bf16.msra.mxu0 %v886_v16 }
  0x32   : > { %834 = vmatpush3.bf16.msra.mxu1 %v887_v17  ;;  %804 = vmatprep.subr.bf16.mxu0 %v888_v18 }
  0x33   : > { %835 = vmatprep.subr.bf16.mxu1 %v926_v3 }
  0x35   : > { %805 = vmatpush3.bf16.msra.mxu0 %v889_v19 }
  0x36   : > { %836 = vmatpush3.bf16.msra.mxu1 %v890_v20  ;;  %806 = vmatprep.subr.bf16.mxu0 %v891_v21 }
  0x37   : > { %837 = vmatprep.subr.bf16.mxu1 %v926_v3 }
  0x39   : > { %807 = vmatpush3.bf16.msra.mxu0 %v892_v22 }
  0x3a   : > { %838 = vmatpush3.bf16.msra.mxu1 %v893_v23  ;;  %808 = vmatprep.subr.bf16.mxu0 %v894_v24 }
  0x3b   : > { %839 = vmatprep.subr.bf16.mxu1 %v926_v3 }
  0x3d   : > { %809 = vmatpush3.bf16.msra.mxu0 %v895_v27 }
  0x3e   : > { %840 = vmatpush3.bf16.msra.mxu1 %v896_v28 }
  0x40   : > { %541 = vmatmul.mubr.bf16.vlgmr.msra.gmra.mrb[0].mxu0 %v760_v29 }
  0x41   : > { %842 = vmatmul.mubr.bf16.vlgmr.msra.gmra.mrb[0].mxu1 %v899_v30 }
 0x113   : > { %v810_v31 = vpop.f32.mrb[0].mxu0 }
 0x114   : > { %v582_v32 = vpop.f32.mrb[0].mxu1  ;;  %v811_v33 = vpop.f32.mrb[1].mxu0 }
 0x115   : > { %v812_v34 = vadd.f32 %v811_v33, %v810_v31  ;;  %v843_v35 = vpop.f32.mrb[1].mxu1  ;;  %v813_v36 = vpop.f32.mrb[2].mxu0  ;;  %593 = sbr.rel (%p787_p8) target bundleno = 308 (0x134), region = 40 }
 0x116   : > { %v585_v38 = vpop.f32.mrb[2].mxu1  ;;  %v814_v39 = vpop.f32.mrb[3].mxu0 }
 0x117   : > { %v583_v40 = vadd.f32 %v812_v34, %v582_v32  ;;  %v844_v41 = vpop.f32.mrb[3].mxu1 }
 0x119   : > { %v588_v42 = vadd.f32 %v583_v40, %v302_v37 }
 0x11b   : > { %589 = vst [vmem:[#allocation2] sm:$0xff] %v588_v42 }
 0x122   : > { %v594_v43 = vld [vmem:[#allocation2] sm:$0xff] }
 0x123   : > { %595 = vst [vmem:[%s1048_s2] sm:$0xff] %v594_v43  ;;  %v597_v44 = vrot.slane %v594_v43, 4  ;;  %v606_v45 = vmul.f32 %v594_v43, %v594_v43 }
 0x125   : > { %v598_v46 = vadd.f32 %v597_v44, %v594_v43  ;;  %v607_v47 = vrot.slane %v606_v45, 4 }
 0x127   : > { %v599_v48 = vrot.slane %v598_v46, 2  ;;  %v608_v49 = vadd.f32 %v607_v47, %v606_v45 }
 0x129   : > { %v600_v50 = vadd.f32 %v599_v48, %v598_v46  ;;  %v609_v51 = vrot.slane %v608_v49, 2 }
 0x12b   : > { %v601_v52 = vrot.slane %v600_v50, 1  ;;  %v610_v53 = vadd.f32 %v609_v51, %v608_v49 }
 0x12d   : > { %v602_v55 = vadd.f32 %v601_v52, %v600_v50  ;;  %v611_v56 = vrot.slane %v610_v53, 1 }
 0x12f   : > { %v603_v58 = vadd.f32 %v602_v55, %v596_v54  ;;  %v612_v59 = vadd.f32 %v611_v56, %v610_v53 }
 0x131   : > { %604 = vst [vmem:[%s1049_s3] sm:$0x1] %v603_v58  ;;  %v613_v60 = vadd.f32 %v612_v59, %v605_v57 }
 0x133   : > { %614 = vst [vmem:[%s1050_s4] sm:$0x1] %v613_v60 }
 0x134 PF: > { %s15_s17 = sadd.s32 1, %s922_s17   ;;  %s1051_s15 = smov %s918_s16 }
 0x135   : > { %p12_p9 = scmp.ge.s32.totalorder %s15_s17, 5   ;;  %s1052_s16 = smov %s1054_s18 }
 0x137   :  { %14 = sbr.rel (!%p12_p9) target bundleno = 2 (0x2), region = 97 }

// kernel: resnet_ultra_forward.58
= control target key start
LH: loop header
LB: loop body
LE: loop exit
PB: predicated region body
PF: predicated region fallthrough
CT: control target
= control target key end

     0   :  { %v36_v6 = vlaneseq  ;;  %s126_s1 = inlined_call_operand.vmem [shape: f32[1,128], index: 1, kind: input, shape index: {}]   ;;  %s127_s2 = inlined_call_operand.vmem [shape: f32[1,128], index: 2, kind: input, shape index: {}]   ;;  %s128_s0 = inlined_call_operand.vmem [shape: f32[8,128], index: 0, kind: input, shape index: {}]   ;;  %s129_s3 = inlined_call_operand.vmem [shape: f32[1,128], index: 3, kind: input, shape index: {}]   ;;  %s130_s5 = inlined_call_operand.vmem [shape: bf16[8,128], index: 5, kind: input, shape index: {}]   ;;  %s131_s4 = inlined_call_operand.vmem [shape: f32[1,128], index: 4, kind: input, shape index: {}]   ;;  %s132_s6 = inlined_call_operand.vmem [shape: bf16[8,128], index: 6, kind: output, shape index: {}]  }
   0x1   :  { %v23_v0 = vld [vmem:[%s126_s1] sm:$0x1] }
   0x2   :  { %v25_v1 = vld [vmem:[%s127_s2] sm:$0x1]  ;;  %v24_v2 = vmul.f32 0.125, %v23_v0  ;;  %v37_v9 = vshrl.u32 %v36_v6, 7 }
   0x3   :  { %v26_v3 = vmul.f32 0.125, %v25_v1  ;;  %v32_v12 = vld [vmem:[%s129_s3] sm:$0x1] }
   0x4   :  { %v27_v4 = vmul.f32 %v24_v2, %v24_v2  ;;  %v38_v10 = vsub.s32 0, %v37_v9  ;;  %v34_v13 = vld [vmem:[%s128_s0] sm:$0xff] }
   0x5   :  { %v57_v17 = vld [vmem:[%s130_s5] sm:$0xf] }
   0x6   :  { %v28_v5 = vsub.f32 %v26_v3, %v27_v4  ;;  %v39_v11 = vrot.slane %v24_v2, %v38_v10  ;;  %v67_v19 = vld [vmem:[%s131_s4] ss:$0 sm:$0xff]  ;;  %v58_v21 = vunpack.c.l.bf16 %v57_v17 }
   0x8   :  { %v29_v7 = vmax.f32 %v28_v5, 0.0  ;;  %v41_v16 = vsub.f32 %v34_v13, %v39_v11 }
   0xa   :  { %v30_v8 = vadd.f32 1e-05, %v29_v7 }
   0xc   :  { %68 = vrsqrt.f32 %v30_v8 }
  0x16   :  { %v69_v14 = vpop.eup %68 }
  0x17   :  { %v33_v15 = vmul.f32 %v69_v14, %v32_v12 }
  0x19   :  { %v46_v18 = vrot.slane %v33_v15, %v38_v10 }
  0x1b   :  { %v48_v20 = vmul.f32 %v46_v18, %v41_v16 }
  0x1d   :  { %v56_v22 = vadd.f32 %v67_v19, %v48_v20 }
  0x1f   :  { %v59_v23 = vadd.f32 %v58_v21, %v56_v22 }
  0x21   :  { %v60_v24 = vmax.f32 %v59_v23, 0.0 }
  0x23   :  { %v61_v25 = vpack.c.bf16 %v60_v24, %v60_v24 }
  0x25   :  { %62 = vst [vmem:[%s132_s6] sm:$0xf] %v61_v25 }

// kernel: resnet_ultra_forward.65
= control target key start
LH: loop header
LB: loop body
LE: loop exit
PB: predicated region body
PF: predicated region fallthrough
CT: control target
= control target key end

     0   :  { %v310_v1 = vmov 0   ;;  %v26_v18 = vlaneseq  ;;  %v311_v20 = vmov 0.0   ;;  %v312_v32 = vmov 1966171168   ;;  %s425_s1 = inlined_call_operand.vmem [shape: bf16[128,256], index: 1, kind: input, shape index: {}]   ;;  %s426_s0 = inlined_call_operand.vmem [shape: bf16[8,128], index: 0, kind: input, shape index: {}]   ;;  %s427_s3 = inlined_call_operand.vmem [shape: f32[1,256], index: 3, kind: output, shape index: {1}]   ;;  %s428_s4 = inlined_call_operand.vmem [shape: f32[1,256], index: 4, kind: output, shape index: {2}]   ;;  %s429_s2 = inlined_call_operand.vmem [shape: f32[8,256], index: 2, kind: output, shape index: {0}]  }
   0x1   :  { %v286_v0 = vld [vmem:[%s425_s1 + $0x4] ss:$8 sps:$4 sm:$0xff]   ;;  %163 = vmatprep.mubr.bf16.mxu0 %v310_v1  ;;  %v288_v2 = vld [vmem:[%s425_s1] ss:$8 sps:$4 sm:$0xff]   ;;  %v289_v3 = vld [vmem:[%s425_s1 + $0x14] ss:$8 sps:$4 sm:$0xff]   ;;  %v200_v33 = vunpack.c.l.s4 %v312_v32 }
   0x2   :  { %131 = vmatprep.subr.bf16.mxu0 %v286_v0  ;;  %v291_v4 = vld [vmem:[%s425_s1 + $0x10] ss:$8 sps:$4 sm:$0xff]   ;;  %v292_v5 = vld [vmem:[%s425_s1 + $0x24] ss:$8 sps:$4 sm:$0xff]   ;;  %v294_v6 = vld [vmem:[%s425_s1 + $0x20] ss:$8 sps:$4 sm:$0xff]  }
   0x3   :  { %132 = vmatpush1.bf16.msra.mxu0 %v288_v2  ;;  %v295_v7 = vld [vmem:[%s425_s1 + $0x34] ss:$8 sps:$4 sm:$0xff]   ;;  %v297_v8 = vld [vmem:[%s425_s1 + $0x30] ss:$8 sps:$4 sm:$0xff]   ;;  %v298_v9 = vld [vmem:[%s425_s1 + $0x44] ss:$8 sps:$4 sm:$0xff]   ;;  %v201_v42 = vunpack.c.0.s8 %v200_v33 }
   0x4   :  { %133 = vmatprep.subr.bf16.mxu0 %v289_v3  ;;  %v300_v10 = vld [vmem:[%s425_s1 + $0x40] ss:$8 sps:$4 sm:$0xff]   ;;  %v301_v11 = vld [vmem:[%s425_s1 + $0x54] ss:$8 sps:$4 sm:$0xff]   ;;  %v303_v12 = vld [vmem:[%s425_s1 + $0x50] ss:$8 sps:$4 sm:$0xff]  }
   0x5   :  { %v304_v13 = vld [vmem:[%s425_s1 + $0x64] ss:$8 sps:$4 sm:$0xff]   ;;  %v306_v14 = vld [vmem:[%s425_s1 + $0x60] ss:$8 sps:$4 sm:$0xff]   ;;  %v307_v15 = vld [vmem:[%s425_s1 + $0x74] ss:$8 sps:$4 sm:$0xff]  }
   0x6   :  { %v309_v16 = vld [vmem:[%s425_s1 + $0x70] ss:$8 sps:$4 sm:$0xff]   ;;  %v34_v17 = vld [vmem:[%s426_s0] sm:$0xf]  ;;  %vm389_vm0 = vcmp.lt.s32.totalorder %v26_v18, 256  ;;  %v203_v43 = vshrl.u32 %v26_v18, 7 }
   0x7   :  { %134 = vmatpush1.bf16.msra.mxu0 %v291_v4  ;;  %30 = vst.msk [vmem:[%s427_s3] sm:$0x3] %vm389_vm0, %v311_v20  ;;  %31 = vst.msk [vmem:[%s428_s4] sm:$0x3] %vm389_vm0, %v311_v20 }
   0x8   :  { %135 = vmatprep.subr.bf16.mxu0 %v292_v5  ;;  %v204_v52 = vsub.s32 %v201_v42, %v203_v43 }
   0xb   :  { %136 = vmatpush1.bf16.msra.mxu0 %v294_v6 }
   0xc   :  { %137 = vmatprep.subr.bf16.mxu0 %v295_v7 }
   0xe   :  { %v183_v59 = vld [vmem:[%s427_s3] sm:$0x3] }
   0xf   :  { %138 = vmatpush1.bf16.msra.mxu0 %v297_v8  ;;  %v220_v62 = vld [vmem:[%s428_s4] sm:$0x3] }
  0x10   :  { %139 = vmatprep.subr.bf16.mxu0 %v298_v9 }
  0x13   :  { %140 = vmatpush1.bf16.msra.mxu0 %v300_v10 }
  0x14   :  { %141 = vmatprep.subr.bf16.mxu0 %v301_v11 }
  0x17   :  { %142 = vmatpush1.bf16.msra.mxu0 %v303_v12 }
  0x18   :  { %143 = vmatprep.subr.bf16.mxu0 %v304_v13 }
  0x1b   :  { %144 = vmatpush1.bf16.msra.mxu0 %v306_v14 }
  0x1c   :  { %145 = vmatprep.subr.bf16.mxu0 %v307_v15 }
  0x1f   :  { %146 = vmatpush1.bf16.msra.mxu0 %v309_v16 }
  0x22   :  { %164 = vmatmul.mubr.bf16.vlgmr.msra.gmra.mrb[0].mxu0 %v34_v17 }
  0xf5   :  { %v165_v21 = vpop.f32.mrb[0].mxu0 }
  0xf6   :  { %181 = vst [vmem:[%s429_s2] sm:$0xff] %v165_v21  ;;  %v184_v22 = vrot.slane %v165_v21, 4  ;;  %v221_v23 = vmul.f32 %v165_v21, %v165_v21  ;;  %v167_v24 = vpop.f32.mrb[1].mxu0 }
  0xf7   :  { %182 = vst [vmem:[%s429_s2 + $0x8] sm:$0xff] %v167_v24  ;;  %v190_v25 = vrot.slane %v167_v24, 4  ;;  %v222_v26 = vmul.f32 %v167_v24, %v167_v24  ;;  %v169_v27 = vpop.f32.mrb[2].mxu0 }
  0xf8   :  { %v185_v28 = vadd.f32 %v184_v22, %v165_v21  ;;  %v223_v29 = vrot.slane %v221_v23, 4  ;;  %v170_v30 = vpop.f32.mrb[3].mxu0 }
  0xf9   :  { %v191_v31 = vadd.f32 %v190_v25, %v167_v24  ;;  %v229_v34 = vrot.slane %v222_v26, 4 }
  0xfa   :  { %v186_v35 = vrot.slane %v185_v28, 2  ;;  %v224_v36 = vadd.f32 %v223_v29, %v221_v23 }
  0xfb   :  { %v192_v37 = vrot.slane %v191_v31, 2  ;;  %v230_v38 = vadd.f32 %v229_v34, %v222_v26 }
  0xfc   :  { %v187_v39 = vadd.f32 %v186_v35, %v185_v28  ;;  %v225_v40 = vrot.slane %v224_v36, 2 }
  0xfd   :  { %v193_v41 = vadd.f32 %v192_v37, %v191_v31  ;;  %v231_v44 = vrot.slane %v230_v38, 2 }
  0xfe   :  { %v188_v45 = vrot.slane %v187_v39, 1  ;;  %v226_v46 = vadd.f32 %v225_v40, %v224_v36 }
  0xff   :  { %v194_v47 = vrot.slane %v193_v41, 1  ;;  %v232_v48 = vadd.f32 %v231_v44, %v230_v38 }
 0x100   :  { %v189_v49 = vadd.f32 %v188_v45, %v187_v39  ;;  %v227_v50 = vrot.slane %v226_v46, 1 }
 0x101   :  { %v195_v51 = vadd.f32 %v194_v47, %v193_v41  ;;  %v233_v53 = vrot.slane %v232_v48, 1 }
 0x102   :  { %v228_v54 = vadd.f32 %v227_v50, %v226_v46 }
 0x103   :  { %v198_v55 = vcombine.low %v189_v49, %v195_v51  ;;  %v234_v56 = vadd.f32 %v233_v53, %v232_v48 }
 0x105   :  { %v205_v57 = vrot.slane %v198_v55, %v204_v52  ;;  %v237_v58 = vcombine.low %v228_v54, %v234_v56 }
 0x107   :  { %v212_v60 = vrot.slane %v205_v57, %v204_v52  ;;  %v244_v61 = vrot.slane %v237_v58, %v204_v52 }
 0x109   :  { %v214_v63 = vadd.f32 %v212_v60, %v183_v59  ;;  %v251_v0 = vrot.slane %v244_v61, %v204_v52 }
 0x10b   :  { %219 = vst.msk [vmem:[%s427_s3] sm:$0x3] %vm389_vm0, %v214_v63  ;;  %v253_v1 = vadd.f32 %v251_v0, %v220_v62 }
 0x10d   :  { %254 = vst.msk [vmem:[%s428_s4] sm:$0x3] %vm389_vm0, %v253_v1 }

// kernel: resnet_ultra_forward.66
= control target key start
LH: loop header
LB: loop body
LE: loop exit
PB: predicated region body
PF: predicated region fallthrough
CT: control target
= control target key end

     0   :  { %v34_v6 = vlaneseq  ;;  %s141_s1 = inlined_call_operand.vmem [shape: f32[1,256], index: 1, kind: input, shape index: {}]   ;;  %s142_s2 = inlined_call_operand.vmem [shape: f32[1,256], index: 2, kind: input, shape index: {}]   ;;  %s143_s0 = inlined_call_operand.vmem [shape: f32[8,256], index: 0, kind: input, shape index: {}]   ;;  %s144_s3 = inlined_call_operand.vmem [shape: f32[1,256], index: 3, kind: input, shape index: {}]   ;;  %s145_s4 = inlined_call_operand.vmem [shape: f32[1,256], index: 4, kind: input, shape index: {}]   ;;  %s146_s5 = inlined_call_operand.vmem [shape: bf16[8,256], index: 5, kind: output, shape index: {}]  }
   0x1   :  { %v20_v0 = vld [vmem:[%s141_s1] sm:$0x3]  ;;  %v32_v16 = vld [vmem:[%s143_s0 + $0x8] sm:$0xff] }
   0x2   :  { %v22_v1 = vld [vmem:[%s142_s2] sm:$0x3]  ;;  %v21_v2 = vmul.f32 0.5, %v20_v0  ;;  %v35_v9 = vshrl.u32 %v34_v6, 7 }
   0x3   :  { %v23_v3 = vmul.f32 0.5, %v22_v1  ;;  %v29_v14 = vld [vmem:[%s144_s3] sm:$0x3] }
   0x4   :  { %v24_v4 = vmul.f32 %v21_v2, %v21_v2  ;;  %v36_v10 = vsub.s32 0, %v35_v9  ;;  %v40_v11 = vsub.s32 1, %v35_v9  ;;  %v31_v15 = vld [vmem:[%s143_s0] sm:$0xff] }
   0x5   :  { %v59_v18 = vld [vmem:[%s145_s4] sm:$0x3] }
   0x6   :  { %v25_v5 = vsub.f32 %v23_v3, %v24_v4  ;;  %v37_v12 = vrot.slane %v21_v2, %v36_v10  ;;  %v41_v13 = vrot.slane %v21_v2, %v40_v11  ;;  %v64_v24 = vrot.slane %v59_v18, %v36_v10 }
   0x7   :  { %v68_v25 = vrot.slane %v59_v18, %v40_v11 }
   0x8   :  { %v26_v7 = vmax.f32 %v25_v5, 0.0  ;;  %v44_v20 = vsub.f32 %v31_v15, %v37_v12  ;;  %v45_v21 = vsub.f32 %v32_v16, %v41_v13 }
   0xa   :  { %v27_v8 = vadd.f32 1e-05, %v26_v7 }
   0xc   :  { %88 = vrsqrt.f32 %v27_v8 }
  0x16   :  { %v89_v17 = vpop.eup %88 }
  0x17   :  { %v30_v19 = vmul.f32 %v89_v17, %v29_v14 }
  0x19   :  { %v50_v22 = vrot.slane %v30_v19, %v36_v10  ;;  %v54_v23 = vrot.slane %v30_v19, %v40_v11 }
  0x1b   :  { %v57_v26 = vmul.f32 %v50_v22, %v44_v20  ;;  %v58_v27 = vmul.f32 %v54_v23, %v45_v21 }
  0x1d   :  { %v71_v28 = vadd.f32 %v64_v24, %v57_v26  ;;  %v72_v29 = vadd.f32 %v68_v25, %v58_v27 }
  0x1f   :  { %v87_v30 = vpack.c.bf16 %v72_v29, %v71_v28 }
  0x21   :  { %81 = vst [vmem:[%s146_s5] sm:$0xff] %v87_v30 }

// kernel: resnet_ultra_forward.64
= control target key start
LH: loop header
LB: loop body
LE: loop exit
PB: predicated region body
PF: predicated region fallthrough
CT: control target
= control target key end

     0   :  { %v34_v6 = vlaneseq  ;;  %s143_s1 = inlined_call_operand.vmem [shape: f32[1,256], index: 1, kind: input, shape index: {}]   ;;  %s144_s2 = inlined_call_operand.vmem [shape: f32[1,256], index: 2, kind: input, shape index: {}]   ;;  %s145_s0 = inlined_call_operand.vmem [shape: f32[8,256], index: 0, kind: input, shape index: {}]   ;;  %s146_s3 = inlined_call_operand.vmem [shape: f32[1,256], index: 3, kind: input, shape index: {}]   ;;  %s147_s4 = inlined_call_operand.vmem [shape: f32[1,256], index: 4, kind: input, shape index: {}]   ;;  %s148_s5 = inlined_call_operand.vmem [shape: bf16[8,256], index: 5, kind: output, shape index: {}]  }
   0x1   :  { %v20_v0 = vld [vmem:[%s143_s1] sm:$0x3]  ;;  %v32_v16 = vld [vmem:[%s145_s0 + $0x8] sm:$0xff] }
   0x2   :  { %v22_v1 = vld [vmem:[%s144_s2] sm:$0x3]  ;;  %v21_v2 = vmul.f32 0.5, %v20_v0  ;;  %v35_v9 = vshrl.u32 %v34_v6, 7 }
   0x3   :  { %v23_v3 = vmul.f32 0.5, %v22_v1  ;;  %v29_v14 = vld [vmem:[%s146_s3] sm:$0x3] }
   0x4   :  { %v24_v4 = vmul.f32 %v21_v2, %v21_v2  ;;  %v36_v10 = vsub.s32 0, %v35_v9  ;;  %v40_v11 = vsub.s32 1, %v35_v9  ;;  %v31_v15 = vld [vmem:[%s145_s0] sm:$0xff] }
   0x5   :  { %v59_v18 = vld [vmem:[%s147_s4] sm:$0x3] }
   0x6   :  { %v25_v5 = vsub.f32 %v23_v3, %v24_v4  ;;  %v37_v12 = vrot.slane %v21_v2, %v36_v10  ;;  %v41_v13 = vrot.slane %v21_v2, %v40_v11  ;;  %v64_v24 = vrot.slane %v59_v18, %v36_v10 }
   0x7   :  { %v68_v25 = vrot.slane %v59_v18, %v40_v11 }
   0x8   :  { %v26_v7 = vmax.f32 %v25_v5, 0.0  ;;  %v44_v20 = vsub.f32 %v31_v15, %v37_v12  ;;  %v45_v21 = vsub.f32 %v32_v16, %v41_v13 }
   0xa   :  { %v27_v8 = vadd.f32 1e-05, %v26_v7 }
   0xc   :  { %90 = vrsqrt.f32 %v27_v8 }
  0x16   :  { %v91_v17 = vpop.eup %90 }
  0x17   :  { %v30_v19 = vmul.f32 %v91_v17, %v29_v14 }
  0x19   :  { %v50_v22 = vrot.slane %v30_v19, %v36_v10  ;;  %v54_v23 = vrot.slane %v30_v19, %v40_v11 }
  0x1b   :  { %v57_v26 = vmul.f32 %v50_v22, %v44_v20  ;;  %v58_v27 = vmul.f32 %v54_v23, %v45_v21 }
  0x1d   :  { %v71_v28 = vadd.f32 %v64_v24, %v57_v26  ;;  %v72_v29 = vadd.f32 %v68_v25, %v58_v27 }
  0x1f   :  { %v73_v30 = vmax.f32 %v71_v28, 0.0  ;;  %v74_v31 = vmax.f32 %v72_v29, 0.0 }
  0x21   :  { %v89_v32 = vpack.c.bf16 %v74_v31, %v73_v30 }
  0x23   :  { %83 = vst [vmem:[%s148_s5] sm:$0xff] %v89_v32 }

// kernel: resnet_ultra_forward.63
= control target key start
LH: loop header
LB: loop body
LE: loop exit
PB: predicated region body
PF: predicated region fallthrough
CT: control target
= control target key end

     0   :  { %s1177_s15 = smov 0   ;;  %s1179_s16 = smov 0   ;;  %s1297_s0 = inlined_call_operand.vmem [shape: bf16[8,1152], index: 0, kind: input, shape index: {}]   ;;  %s1298_s1 = inlined_call_operand.vmem [shape: bf16[1152,256], index: 1, kind: input, shape index: {}]   ;;  %s1299_s2 = inlined_call_operand.vmem [shape: f32[8,256], index: 2, kind: output, shape index: {0}]   ;;  %s1300_s3 = inlined_call_operand.vmem [shape: f32[1,256], index: 3, kind: output, shape index: {1}]   ;;  %s1301_s4 = inlined_call_operand.vmem [shape: f32[1,256], index: 4, kind: output, shape index: {2}]  }
   0x1   :  { %s1181_s17 = smov 0  }
   0x2 LB: > { %s27_s18 = sadd.s32 1, %s1142_s16  ;;  %p953_p0 = scmp.ge.s32.totalorder %s1146_s17, 1  ;;  %s1146_s17 = sphi %s1181_s17, %s15_s17   ;;  %s1142_s16 = sphi %s1179_s16, %s1303_s16   ;;  %s1138_s15 = sphi %s1177_s15, %s1302_s15  }
   0x3   : > { %p28_p1 = scmp.ge.s32.totalorder %s27_s18, 3  ;;  %p214_p2 = scmp.lt.s32.totalorder %s1146_s17, 4 }
   0x5   : > { %s1305_s18 = smov (%p28_p1, %s27_s18), 0  ;;  %p215_p3 = pnand %p953_p0, %p214_p2 }
   0x6   : > { %s266_s19 = smul.u32 (!%p215_p3), 3, %s1138_s15  ;;  %p309_p4 = scmp.eq.s32.totalorder (!%p215_p3), %s1138_s15, 0 }
   0x7   : > { %218 = sbr.rel (%p215_p3) target bundleno = 344 (0x158), region = 28  ;;  %p957_p7 = scmp.ne.s32.totalorder (!%p215_p3), %s1138_s15, 0 }
   0x8   : > { %s276_s20 = smul.u32 (!%p215_p3), 48, %s1138_s15  ;;  %p269_p5 = scmp.lt.s32.totalorder (!%p215_p3), %s266_s19, 8 }
   0xa   : > { %p278_p6 = scmp.lt.s32.totalorder (!%p215_p3), %s276_s20, 143 }
   0xe   : > { %s1307_s19 = smov (!%p269_p5, %s266_s19), 8  ;;  %s1309_s20 = smov (!%p278_p6, %s276_s20), 143 }
   0xf   : > { %s954_s21 = sshll.u32 %s1307_s19, 2  ;;  %s1019_s25 = sshll.u32 %s1309_s20, 3  ;;  %v1148_v0 = vmov (!%p957_p7), 0.0  }
  0x10   : > { %s1203_s24 = scalar_lea.vmem %s1297_s0, %s954_s21  ;;  %s1208_s28 = scalar_lea.vmem %s1298_s1, %s1019_s25  ;;  %313 = vst [vmem:[#allocation2] sm:$0xff] (!%p957_p7), %v1148_v0  ;;  %314 = vst [vmem:[#allocation2 + $0x8] sm:$0xff] (!%p957_p7), %v1148_v0 }
  0x11   : > { %312 = sbr.rel (%p957_p7) target bundleno = 24 (0x18), region = 32 }
  0x18 PF: > { %319 = sbr.rel (!%p309_p4) target bundleno = 31 (0x1f), region = 36  ;;  %v320_v1 = vlaneseq (%p309_p4)  ;;  %v1149_v2 = vmov (%p309_p4), 0.0  }
  0x1a   : > { %vm322_vm0 = vcmp.lt.s32.totalorder (%p309_p4), %v320_v1, 256 }
  0x1b   : > { %324 = vst.msk [vmem:[%s1300_s3] sm:$0x3] (%p309_p4), %vm322_vm0, %v1149_v2  ;;  %325 = vst.msk [vmem:[%s1301_s4] sm:$0x3] (%p309_p4), %vm322_vm0, %v1149_v2 }
  0x1f PF: > { %v1049_v3 = vld [vmem:[%s1208_s28 + $0x4] ss:$8 sps:$4 sm:$0xff]   ;;  %v1051_v4 = vld [vmem:[%s1208_s28] ss:$8 sps:$4 sm:$0xff]   ;;  %v1150_v5 = vmov 0   ;;  %p1010_p8 = scmp.ne.s32.totalorder %s1138_s15, 2 }
  0x20   : > { %702 = vmatprep.mubr.bf16.mxu1 %v1150_v5  ;;  %629 = vmatprep.subr.bf16.mxu0 %v1049_v3  ;;  %v1052_v6 = vld [vmem:[%s1208_s28 + $0x14] ss:$8 sps:$4 sm:$0xff]   ;;  %v1054_v7 = vld [vmem:[%s1208_s28 + $0x10] ss:$8 sps:$4 sm:$0xff]   ;;  %v1055_v8 = vld [vmem:[%s1208_s28 + $0x24] ss:$8 sps:$4 sm:$0xff]  }
  0x21   : > { %630 = vmatpush1.bf16.msra.mxu0 %v1051_v4  ;;  %v1057_v9 = vld [vmem:[%s1208_s28 + $0x20] ss:$8 sps:$4 sm:$0xff]   ;;  %v1058_v10 = vld [vmem:[%s1208_s28 + $0x34] ss:$8 sps:$4 sm:$0xff]   ;;  %v1060_v11 = vld [vmem:[%s1208_s28 + $0x30] ss:$8 sps:$4 sm:$0xff]  }
  0x22   : > { %631 = vmatprep.subr.bf16.mxu0 %v1052_v6  ;;  %v1073_v12 = vld [vmem:[%s1208_s28 + $0x104] ss:$8 sps:$4 sm:$0xff]   ;;  %v1075_v13 = vld [vmem:[%s1208_s28 + $0x100] ss:$8 sps:$4 sm:$0xff]   ;;  %v1079_v15 = vld [vmem:[%s1208_s28 + $0x114] ss:$8 sps:$4 sm:$0xff]  }
  0x23   : > { %v1061_v14 = vld [vmem:[%s1208_s28 + $0x44] ss:$8 sps:$4 sm:$0xff]   ;;  %670 = vmatprep.subr.bf16.mxu1 %v1073_v12  ;;  %v1081_v16 = vld [vmem:[%s1208_s28 + $0x110] ss:$8 sps:$4 sm:$0xff]   ;;  %v1063_v17 = vld [vmem:[%s1208_s28 + $0x40] ss:$8 sps:$4 sm:$0xff]  }
  0x24   : > { %671 = vmatpush1.bf16.msra.mxu1 %v1075_v13  ;;  %v1064_v18 = vld [vmem:[%s1208_s28 + $0x54] ss:$8 sps:$4 sm:$0xff]   ;;  %v1085_v19 = vld [vmem:[%s1208_s28 + $0x124] ss:$8 sps:$4 sm:$0xff]   ;;  %v1087_v20 = vld [vmem:[%s1208_s28 + $0x120] ss:$8 sps:$4 sm:$0xff]  }
  0x25   : > { %632 = vmatpush1.bf16.msra.mxu0 %v1054_v7  ;;  %672 = vmatprep.subr.bf16.mxu1 %v1079_v15  ;;  %v1066_v21 = vld [vmem:[%s1208_s28 + $0x50] ss:$8 sps:$4 sm:$0xff]   ;;  %v1091_v22 = vld [vmem:[%s1208_s28 + $0x134] ss:$8 sps:$4 sm:$0xff]   ;;  %v1067_v23 = vld [vmem:[%s1208_s28 + $0x64] ss:$8 sps:$4 sm:$0xff]  }
  0x26   : > { %633 = vmatprep.subr.bf16.mxu0 %v1055_v8  ;;  %v1093_v24 = vld [vmem:[%s1208_s28 + $0x130] ss:$8 sps:$4 sm:$0xff]   ;;  %v1069_v25 = vld [vmem:[%s1208_s28 + $0x60] ss:$8 sps:$4 sm:$0xff]   ;;  %v1097_v26 = vld [vmem:[%s1208_s28 + $0x144] ss:$8 sps:$4 sm:$0xff]  }
  0x27   : > { %v1070_v27 = vld [vmem:[%s1208_s28 + $0x74] ss:$8 sps:$4 sm:$0xff]   ;;  %v1099_v28 = vld [vmem:[%s1208_s28 + $0x140] ss:$8 sps:$4 sm:$0xff]   ;;  %v1072_v29 = vld [vmem:[%s1208_s28 + $0x70] ss:$8 sps:$4 sm:$0xff]  }
  0x28   : > { %673 = vmatpush1.bf16.msra.mxu1 %v1081_v16  ;;  %v1103_v30 = vld [vmem:[%s1208_s28 + $0x154] ss:$8 sps:$4 sm:$0xff]   ;;  %v1076_v31 = vld [vmem:[%s1208_s28 + $0x84] ss:$8 sps:$4 sm:$0xff]   ;;  %v1105_v32 = vld [vmem:[%s1208_s28 + $0x150] ss:$8 sps:$4 sm:$0xff]  }
  0x29   : > { %634 = vmatpush1.bf16.msra.mxu0 %v1057_v9  ;;  %674 = vmatprep.subr.bf16.mxu1 %v1085_v19  ;;  %v1078_v33 = vld [vmem:[%s1208_s28 + $0x80] ss:$8 sps:$4 sm:$0xff]   ;;  %v1109_v34 = vld [vmem:[%s1208_s28 + $0x164] ss:$8 sps:$4 sm:$0xff]   ;;  %v1082_v35 = vld [vmem:[%s1208_s28 + $0x94] ss:$8 sps:$4 sm:$0xff]  }
  0x2a   : > { %635 = vmatprep.subr.bf16.mxu0 %v1058_v10  ;;  %v328_v36 = vld [vmem:[%s1203_s24] sm:$0xff]  ;;  %v1084_v39 = vld [vmem:[%s1208_s28 + $0x90] ss:$8 sps:$4 sm:$0xff]   ;;  %v1115_v40 = vld [vmem:[%s1208_s28 + $0x174] ss:$8 sps:$4 sm:$0xff]  }
  0x2b   : > { %v960_v37 = vcombine.high %v328_v36, %v328_v36  ;;  %v1111_v38 = vld [vmem:[%s1208_s28 + $0x160] ss:$8 sps:$4 sm:$0xff]   ;;  %v1088_v41 = vld [vmem:[%s1208_s28 + $0xa4] ss:$8 sps:$4 sm:$0xff]   ;;  %v1117_v42 = vld [vmem:[%s1208_s28 + $0x170] ss:$8 sps:$4 sm:$0xff]   ;;  %v959_v55 = vcombine.low %v328_v36, %v328_v36 }
  0x2c   : > { %675 = vmatpush1.bf16.msra.mxu1 %v1087_v20  ;;  %v1090_v43 = vld [vmem:[%s1208_s28 + $0xa0] ss:$8 sps:$4 sm:$0xff]   ;;  %v1094_v44 = vld [vmem:[%s1208_s28 + $0xb4] ss:$8 sps:$4 sm:$0xff]   ;;  %v1096_v46 = vld [vmem:[%s1208_s28 + $0xb0] ss:$8 sps:$4 sm:$0xff]  }
  0x2d   : > { %636 = vmatpush1.bf16.msra.mxu0 %v1060_v11  ;;  %676 = vmatprep.subr.bf16.mxu1 %v1091_v22  ;;  %v1121_v45 = vld [vmem:[%s1203_s24 + $0x8] ss:$0 sps:$4 sm:$0xff]   ;;  %v1100_v47 = vld [vmem:[%s1208_s28 + $0xc4] ss:$8 sps:$4 sm:$0xff]   ;;  %v1106_v49 = vld [vmem:[%s1208_s28 + $0xd4] ss:$8 sps:$4 sm:$0xff]  }
  0x2e   : > { %637 = vmatprep.subr.bf16.mxu0 %v1061_v14  ;;  %661 = vmatprep.mubr.bf16.mxu0 %v960_v37  ;;  %v1102_v48 = vld [vmem:[%s1208_s28 + $0xc0] ss:$8 sps:$4 sm:$0xff]   ;;  %v1108_v50 = vld [vmem:[%s1208_s28 + $0xd0] ss:$8 sps:$4 sm:$0xff]   ;;  %v1112_v51 = vld [vmem:[%s1208_s28 + $0xe4] ss:$8 sps:$4 sm:$0xff]   ;;  %v742_v14 = vlaneseq (!%p1010_p8) }
  0x2f   : > { %v1114_v52 = vld [vmem:[%s1208_s28 + $0xe0] ss:$8 sps:$4 sm:$0xff]   ;;  %v1118_v53 = vld [vmem:[%s1208_s28 + $0xf4] ss:$8 sps:$4 sm:$0xff]   ;;  %v1120_v54 = vld [vmem:[%s1208_s28 + $0xf0] ss:$8 sps:$4 sm:$0xff]  }
  0x30   : > { %677 = vmatpush1.bf16.msra.mxu1 %v1093_v24  ;;  %v326_v60 = vld [vmem:[#allocation2] sm:$0xff]  ;;  %v327_v63 = vld [vmem:[#allocation2 + $0x8] sm:$0xff]  ;;  %v1151_v12 = vmov (!%p1010_p8), 1966171168   ;;  %v743_v24 = vshrl.u32 (!%p1010_p8), %v742_v14, 7  ;;  %vm757_vm1 = vcmp.lt.s32.totalorder (!%p1010_p8), %v742_v14, 256 }
  0x31   : > { %638 = vmatpush1.bf16.msra.mxu0 %v1063_v17  ;;  %678 = vmatprep.subr.bf16.mxu1 %v1097_v26  ;;  %v740_v13 = vunpack.c.l.s4 (!%p1010_p8), %v1151_v12 }
  0x32   : > { %639 = vmatprep.subr.bf16.mxu0 %v1064_v18 }
  0x34   : > { %679 = vmatpush1.bf16.msra.mxu1 %v1099_v28 }
  0x35   : > { %640 = vmatpush1.bf16.msra.mxu0 %v1066_v21  ;;  %680 = vmatprep.subr.bf16.mxu1 %v1103_v30 }
  0x36   : > { %641 = vmatprep.subr.bf16.mxu0 %v1067_v23  ;;  %v741_v23 = vunpack.c.0.s8 (!%p1010_p8), %v740_v13 }
  0x38   : > { %681 = vmatpush1.bf16.msra.mxu1 %v1105_v32 }
  0x39   : > { %642 = vmatpush1.bf16.msra.mxu0 %v1069_v25  ;;  %682 = vmatprep.subr.bf16.mxu1 %v1109_v34 }
  0x3a   : > { %643 = vmatprep.subr.bf16.mxu0 %v1070_v27 }
  0x3c   : > { %683 = vmatpush1.bf16.msra.mxu1 %v1111_v38 }
  0x3d   : > { %644 = vmatpush1.bf16.msra.mxu0 %v1072_v29  ;;  %684 = vmatprep.subr.bf16.mxu1 %v1115_v40 }
  0x3e   : > { %645 = vmatprep.subr.bf16.mxu0 %v1076_v31 }
  0x40   : > { %685 = vmatpush1.bf16.msra.mxu1 %v1117_v42 }
  0x41   : > { %646 = vmatpush1.bf16.msra.mxu0 %v1078_v33  ;;  %v744_v33 = vsub.s32 (!%p1010_p8), %v741_v23, %v743_v24 }
  0x42   : > { %647 = vmatprep.subr.bf16.mxu0 %v1082_v35 }
  0x43   : > { %703 = vmatmul.mubr.bf16.vlgmr.msra.gmra.mrb[0].mxu1 %v1121_v45 }
  0x45   : > { %648 = vmatpush1.bf16.msra.mxu0 %v1084_v39 }
  0x46   : > { %649 = vmatprep.subr.bf16.mxu0 %v1088_v41 }
  0x49   : > { %650 = vmatpush1.bf16.msra.mxu0 %v1090_v43  ;;  %v723_v43 = vld [vmem:[%s1300_s3] sm:$0x3] (!%p1010_p8) }
  0x4a   : > { %651 = vmatprep.subr.bf16.mxu0 %v1094_v44 }
  0x4d   : > { %652 = vmatpush1.bf16.msra.mxu0 %v1096_v46  ;;  %v760_v46 = vld [vmem:[%s1301_s4] sm:$0x3] (!%p1010_p8) }
  0x4e   : > { %653 = vmatprep.subr.bf16.mxu0 %v1100_v47 }
  0x51   : > { %654 = vmatpush1.bf16.msra.mxu0 %v1102_v48 }
  0x52   : > { %655 = vmatprep.subr.bf16.mxu0 %v1106_v49 }
  0x55   : > { %656 = vmatpush1.bf16.msra.mxu0 %v1108_v50 }
  0x56   : > { %657 = vmatprep.subr.bf16.mxu0 %v1112_v51 }
  0x59   : > { %658 = vmatpush1.bf16.msra.mxu0 %v1114_v52 }
  0x5a   : > { %659 = vmatprep.subr.bf16.mxu0 %v1118_v53 }
  0x5d   : > { %660 = vmatpush1.bf16.msra.mxu0 %v1120_v54 }
  0x60   : > { %662 = vmatmul.mubr.bf16.vlgmr.msra.gmra.mrb[0].mxu0 %v959_v55 }
 0x116   : > { %v704_v56 = vpop.f32.mrb[0].mxu1 }
 0x117   : > { %v706_v57 = vpop.f32.mrb[1].mxu1 }
 0x118   : > { %v708_v58 = vpop.f32.mrb[2].mxu1 }
 0x119   : > { %v709_v59 = vpop.f32.mrb[3].mxu1 }
 0x133   : > { %v663_v61 = vpop.f32.mrb[0].mxu0  ;;  %718 = sbr.rel (%p1010_p8) target bundleno = 344 (0x158), region = 40 }
 0x134   : > { %v705_v62 = vadd.f32 %v704_v56, %v663_v61  ;;  %v665_v0 = vpop.f32.mrb[1].mxu0 }
 0x135   : > { %v707_v1 = vadd.f32 %v706_v57, %v665_v0  ;;  %v667_v2 = vpop.f32.mrb[2].mxu0 }
 0x136   : > { %v711_v3 = vadd.f32 %v705_v62, %v326_v60  ;;  %v668_v4 = vpop.f32.mrb[3].mxu0 }
 0x137   : > { %v712_v5 = vadd.f32 %v707_v1, %v327_v63 }
 0x138   : > { %713 = vst [vmem:[#allocation2] sm:$0xff] %v711_v3 }
 0x139   : > { %714 = vst [vmem:[#allocation2 + $0x8] sm:$0xff] %v712_v5 }
 0x13f   : > { %v719_v6 = vld [vmem:[#allocation2] sm:$0xff] }
 0x140   : > { %v720_v7 = vld [vmem:[#allocation2 + $0x8] sm:$0xff]  ;;  %721 = vst [vmem:[%s1299_s2] sm:$0xff] %v719_v6  ;;  %v724_v8 = vrot.slane %v719_v6, 4  ;;  %v761_v9 = vmul.f32 %v719_v6, %v719_v6 }
 0x141   : > { %722 = vst [vmem:[%s1299_s2 + $0x8] sm:$0xff] %v720_v7  ;;  %v730_v10 = vrot.slane %v720_v7, 4  ;;  %v762_v11 = vmul.f32 %v720_v7, %v720_v7 }
 0x142   : > { %v725_v15 = vadd.f32 %v724_v8, %v719_v6  ;;  %v763_v16 = vrot.slane %v761_v9, 4 }
 0x143   : > { %v731_v17 = vadd.f32 %v730_v10, %v720_v7  ;;  %v769_v18 = vrot.slane %v762_v11, 4 }
 0x144   : > { %v726_v19 = vrot.slane %v725_v15, 2  ;;  %v764_v20 = vadd.f32 %v763_v16, %v761_v9 }
 0x145   : > { %v732_v21 = vrot.slane %v731_v17, 2  ;;  %v770_v22 = vadd.f32 %v769_v18, %v762_v11 }
 0x146   : > { %v727_v25 = vadd.f32 %v726_v19, %v725_v15  ;;  %v765_v26 = vrot.slane %v764_v20, 2 }
 0x147   : > { %v733_v27 = vadd.f32 %v732_v21, %v731_v17  ;;  %v771_v28 = vrot.slane %v770_v22, 2 }
 0x148   : > { %v728_v29 = vrot.slane %v727_v25, 1  ;;  %v766_v30 = vadd.f32 %v765_v26, %v764_v20 }
 0x149   : > { %v734_v31 = vrot.slane %v733_v27, 1  ;;  %v772_v32 = vadd.f32 %v771_v28, %v770_v22 }
 0x14a   : > { %v729_v34 = vadd.f32 %v728_v29, %v727_v25  ;;  %v767_v36 = vrot.slane %v766_v30, 1 }
 0x14b   : > { %v735_v35 = vadd.f32 %v734_v31, %v733_v27  ;;  %v773_v37 = vrot.slane %v772_v32, 1 }
 0x14c   : > { %v768_v39 = vadd.f32 %v767_v36, %v766_v30 }
 0x14d   : > { %v738_v38 = vcombine.low %v729_v34, %v735_v35  ;;  %v774_v40 = vadd.f32 %v773_v37, %v772_v32 }
 0x14f   : > { %v745_v41 = vrot.slane %v738_v38, %v744_v33  ;;  %v777_v42 = vcombine.low %v768_v39, %v774_v40 }
 0x151   : > { %v752_v44 = vrot.slane %v745_v41, %v744_v33  ;;  %v784_v45 = vrot.slane %v777_v42, %v744_v33 }
 0x153   : > { %v754_v47 = vadd.f32 %v752_v44, %v723_v43  ;;  %v791_v48 = vrot.slane %v784_v45, %v744_v33 }
 0x155   : > { %759 = vst.msk [vmem:[%s1300_s3] sm:$0x3] %vm757_vm1, %v754_v47  ;;  %v793_v49 = vadd.f32 %v791_v48, %v760_v46 }
 0x157   : > { %794 = vst.msk [vmem:[%s1301_s4] sm:$0x3] %vm757_vm1, %v793_v49 }
 0x158 PF: > { %s15_s17 = sadd.s32 1, %s1146_s17   ;;  %s1302_s15 = smov %s1142_s16 }
 0x159   : > { %p12_p9 = scmp.ge.s32.totalorder %s15_s17, 5   ;;  %s1303_s16 = smov %s1305_s18 }
 0x15b   :  { %14 = sbr.rel (!%p12_p9) target bundleno = 2 (0x2), region = 97 }

// kernel: resnet_ultra_forward.68
= control target key start
LH: loop header
LB: loop body
LE: loop exit
PB: predicated region body
PF: predicated region fallthrough
CT: control target
= control target key end

     0   :  { %v37_v6 = vlaneseq  ;;  %s159_s1 = inlined_call_operand.vmem [shape: f32[1,256], index: 1, kind: input, shape index: {}]   ;;  %s160_s2 = inlined_call_operand.vmem [shape: f32[1,256], index: 2, kind: input, shape index: {}]   ;;  %s161_s0 = inlined_call_operand.vmem [shape: f32[8,256], index: 0, kind: input, shape index: {}]   ;;  %s162_s3 = inlined_call_operand.vmem [shape: f32[1,256], index: 3, kind: input, shape index: {}]   ;;  %s163_s4 = inlined_call_operand.vmem [shape: f32[1,256], index: 4, kind: input, shape index: {}]   ;;  %s164_s5 = inlined_call_operand.vmem [shape: bf16[8,256], index: 5, kind: input, shape index: {}]   ;;  %s165_s6 = inlined_call_operand.vmem [shape: bf16[8,256], index: 6, kind: output, shape index: {}]  }
   0x1   :  { %v23_v0 = vld [vmem:[%s159_s1] sm:$0x3]  ;;  %v35_v16 = vld [vmem:[%s161_s0 + $0x8] sm:$0xff] }
   0x2   :  { %v25_v1 = vld [vmem:[%s160_s2] sm:$0x3]  ;;  %v24_v2 = vmul.f32 0.5, %v23_v0  ;;  %v38_v9 = vshrl.u32 %v37_v6, 7 }
   0x3   :  { %v26_v3 = vmul.f32 0.5, %v25_v1  ;;  %v32_v14 = vld [vmem:[%s162_s3] sm:$0x3] }
   0x4   :  { %v27_v4 = vmul.f32 %v24_v2, %v24_v2  ;;  %v39_v10 = vsub.s32 0, %v38_v9  ;;  %v43_v11 = vsub.s32 1, %v38_v9  ;;  %v34_v15 = vld [vmem:[%s161_s0] sm:$0xff] }
   0x5   :  { %v62_v18 = vld [vmem:[%s163_s4] sm:$0x3] }
   0x6   :  { %v28_v5 = vsub.f32 %v26_v3, %v27_v4  ;;  %v40_v12 = vrot.slane %v24_v2, %v39_v10  ;;  %v44_v13 = vrot.slane %v24_v2, %v43_v11  ;;  %v76_v22 = vld [vmem:[%s164_s5] sm:$0xff]  ;;  %v67_v25 = vrot.slane %v62_v18, %v39_v10 }
   0x7   :  { %v71_v26 = vrot.slane %v62_v18, %v43_v11  ;;  %v77_v29 = vunpack.c.l.bf16 %v76_v22  ;;  %v78_v30 = vunpack.c.h.bf16 %v76_v22 }
   0x8   :  { %v29_v7 = vmax.f32 %v28_v5, 0.0  ;;  %v47_v20 = vsub.f32 %v34_v15, %v40_v12  ;;  %v48_v21 = vsub.f32 %v35_v16, %v44_v13 }
   0xa   :  { %v30_v8 = vadd.f32 1e-05, %v29_v7 }
   0xc   :  { %98 = vrsqrt.f32 %v30_v8 }
  0x16   :  { %v99_v17 = vpop.eup %98 }
  0x17   :  { %v33_v19 = vmul.f32 %v99_v17, %v32_v14 }
  0x19   :  { %v53_v23 = vrot.slane %v33_v19, %v39_v10  ;;  %v57_v24 = vrot.slane %v33_v19, %v43_v11 }
  0x1b   :  { %v60_v27 = vmul.f32 %v53_v23, %v47_v20  ;;  %v61_v28 = vmul.f32 %v57_v24, %v48_v21 }
  0x1d   :  { %v74_v31 = vadd.f32 %v67_v25, %v60_v27  ;;  %v75_v32 = vadd.f32 %v71_v26, %v61_v28 }
  0x1f   :  { %v79_v33 = vadd.f32 %v77_v29, %v74_v31  ;;  %v80_v34 = vadd.f32 %v78_v30, %v75_v32 }
  0x21   :  { %v81_v35 = vmax.f32 %v79_v33, 0.0  ;;  %v82_v36 = vmax.f32 %v80_v34, 0.0 }
  0x23   :  { %v97_v37 = vpack.c.bf16 %v82_v36, %v81_v35 }
  0x25   :  { %91 = vst [vmem:[%s165_s6] sm:$0xff] %v97_v37 }

// kernel: resnet_ultra_forward.67
= control target key start
LH: loop header
LB: loop body
LE: loop exit
PB: predicated region body
PF: predicated region fallthrough
CT: control target
= control target key end

     0   :  { %s1177_s15 = smov 0   ;;  %s1179_s16 = smov 0   ;;  %s1297_s0 = inlined_call_operand.vmem [shape: bf16[8,2304], index: 0, kind: input, shape index: {}]   ;;  %s1298_s1 = inlined_call_operand.vmem [shape: bf16[2304,256], index: 1, kind: input, shape index: {}]   ;;  %s1299_s2 = inlined_call_operand.vmem [shape: f32[8,256], index: 2, kind: output, shape index: {0}]   ;;  %s1300_s3 = inlined_call_operand.vmem [shape: f32[1,256], index: 3, kind: output, shape index: {1}]   ;;  %s1301_s4 = inlined_call_operand.vmem [shape: f32[1,256], index: 4, kind: output, shape index: {2}]  }
   0x1   :  { %s1181_s17 = smov 0  }
   0x2 LB: > { %s27_s18 = sadd.s32 1, %s1142_s16  ;;  %p953_p0 = scmp.ge.s32.totalorder %s1146_s17, 1  ;;  %s1146_s17 = sphi %s1181_s17, %s15_s17   ;;  %s1142_s16 = sphi %s1179_s16, %s1303_s16   ;;  %s1138_s15 = sphi %s1177_s15, %s1302_s15  }
   0x3   : > { %p28_p1 = scmp.ge.s32.totalorder %s27_s18, 6  ;;  %p214_p2 = scmp.lt.s32.totalorder %s1146_s17, 7 }
   0x5   : > { %s1305_s18 = smov (%p28_p1, %s27_s18), 0  ;;  %p215_p3 = pnand %p953_p0, %p214_p2 }
   0x6   : > { %s266_s19 = smul.u32 (!%p215_p3), 3, %s1138_s15  ;;  %p309_p4 = scmp.eq.s32.totalorder (!%p215_p3), %s1138_s15, 0 }
   0x7   : > { %218 = sbr.rel (%p215_p3) target bundleno = 344 (0x158), region = 28  ;;  %p957_p7 = scmp.ne.s32.totalorder (!%p215_p3), %s1138_s15, 0 }
   0x8   : > { %s276_s20 = smul.u32 (!%p215_p3), 48, %s1138_s15  ;;  %p269_p5 = scmp.lt.s32.totalorder (!%p215_p3), %s266_s19, 17 }
   0xa   : > { %p278_p6 = scmp.lt.s32.totalorder (!%p215_p3), %s276_s20, 287 }
   0xe   : > { %s1307_s19 = smov (!%p269_p5, %s266_s19), 17  ;;  %s1309_s20 = smov (!%p278_p6, %s276_s20), 287 }
   0xf   : > { %s954_s21 = sshll.u32 %s1307_s19, 2  ;;  %s1019_s25 = sshll.u32 %s1309_s20, 3  ;;  %v1148_v0 = vmov (!%p957_p7), 0.0  }
  0x10   : > { %s1203_s24 = scalar_lea.vmem %s1297_s0, %s954_s21  ;;  %s1208_s28 = scalar_lea.vmem %s1298_s1, %s1019_s25  ;;  %313 = vst [vmem:[#allocation2] sm:$0xff] (!%p957_p7), %v1148_v0  ;;  %314 = vst [vmem:[#allocation2 + $0x8] sm:$0xff] (!%p957_p7), %v1148_v0 }
  0x11   : > { %312 = sbr.rel (%p957_p7) target bundleno = 24 (0x18), region = 32 }
  0x18 PF: > { %319 = sbr.rel (!%p309_p4) target bundleno = 31 (0x1f), region = 36  ;;  %v320_v1 = vlaneseq (%p309_p4)  ;;  %v1149_v2 = vmov (%p309_p4), 0.0  }
  0x1a   : > { %vm322_vm0 = vcmp.lt.s32.totalorder (%p309_p4), %v320_v1, 256 }
  0x1b   : > { %324 = vst.msk [vmem:[%s1300_s3] sm:$0x3] (%p309_p4), %vm322_vm0, %v1149_v2  ;;  %325 = vst.msk [vmem:[%s1301_s4] sm:$0x3] (%p309_p4), %vm322_vm0, %v1149_v2 }
  0x1f PF: > { %v1049_v3 = vld [vmem:[%s1208_s28 + $0x4] ss:$8 sps:$4 sm:$0xff]   ;;  %v1051_v4 = vld [vmem:[%s1208_s28] ss:$8 sps:$4 sm:$0xff]   ;;  %v1150_v5 = vmov 0   ;;  %p1010_p8 = scmp.ne.s32.totalorder %s1138_s15, 5 }
  0x20   : > { %702 = vmatprep.mubr.bf16.mxu1 %v1150_v5  ;;  %629 = vmatprep.subr.bf16.mxu0 %v1049_v3  ;;  %v1052_v6 = vld [vmem:[%s1208_s28 + $0x14] ss:$8 sps:$4 sm:$0xff]   ;;  %v1054_v7 = vld [vmem:[%s1208_s28 + $0x10] ss:$8 sps:$4 sm:$0xff]   ;;  %v1055_v8 = vld [vmem:[%s1208_s28 + $0x24] ss:$8 sps:$4 sm:$0xff]  }
  0x21   : > { %630 = vmatpush1.bf16.msra.mxu0 %v1051_v4  ;;  %v1057_v9 = vld [vmem:[%s1208_s28 + $0x20] ss:$8 sps:$4 sm:$0xff]   ;;  %v1058_v10 = vld [vmem:[%s1208_s28 + $0x34] ss:$8 sps:$4 sm:$0xff]   ;;  %v1060_v11 = vld [vmem:[%s1208_s28 + $0x30] ss:$8 sps:$4 sm:$0xff]  }
  0x22   : > { %631 = vmatprep.subr.bf16.mxu0 %v1052_v6  ;;  %v1073_v12 = vld [vmem:[%s1208_s28 + $0x104] ss:$8 sps:$4 sm:$0xff]   ;;  %v1075_v13 = vld [vmem:[%s1208_s28 + $0x100] ss:$8 sps:$4 sm:$0xff]   ;;  %v1079_v15 = vld [vmem:[%s1208_s28 + $0x114] ss:$8 sps:$4 sm:$0xff]  }
  0x23   : > { %v1061_v14 = vld [vmem:[%s1208_s28 + $0x44] ss:$8 sps:$4 sm:$0xff]   ;;  %670 = vmatprep.subr.bf16.mxu1 %v1073_v12  ;;  %v1081_v16 = vld [vmem:[%s1208_s28 + $0x110] ss:$8 sps:$4 sm:$0xff]   ;;  %v1063_v17 = vld [vmem:[%s1208_s28 + $0x40] ss:$8 sps:$4 sm:$0xff]  }
  0x24   : > { %671 = vmatpush1.bf16.msra.mxu1 %v1075_v13  ;;  %v1064_v18 = vld [vmem:[%s1208_s28 + $0x54] ss:$8 sps:$4 sm:$0xff]   ;;  %v1085_v19 = vld [vmem:[%s1208_s28 + $0x124] ss:$8 sps:$4 sm:$0xff]   ;;  %v1087_v20 = vld [vmem:[%s1208_s28 + $0x120] ss:$8 sps:$4 sm:$0xff]  }
  0x25   : > { %632 = vmatpush1.bf16.msra.mxu0 %v1054_v7  ;;  %672 = vmatprep.subr.bf16.mxu1 %v1079_v15  ;;  %v1066_v21 = vld [vmem:[%s1208_s28 + $0x50] ss:$8 sps:$4 sm:$0xff]   ;;  %v1091_v22 = vld [vmem:[%s1208_s28 + $0x134] ss:$8 sps:$4 sm:$0xff]   ;;  %v1067_v23 = vld [vmem:[%s1208_s28 + $0x64] ss:$8 sps:$4 sm:$0xff]  }
  0x26   : > { %633 = vmatprep.subr.bf16.mxu0 %v1055_v8  ;;  %v1093_v24 = vld [vmem:[%s1208_s28 + $0x130] ss:$8 sps:$4 sm:$0xff]   ;;  %v1069_v25 = vld [vmem:[%s1208_s28 + $0x60] ss:$8 sps:$4 sm:$0xff]   ;;  %v1097_v26 = vld [vmem:[%s1208_s28 + $0x144] ss:$8 sps:$4 sm:$0xff]  }
  0x27   : > { %v1070_v27 = vld [vmem:[%s1208_s28 + $0x74] ss:$8 sps:$4 sm:$0xff]   ;;  %v1099_v28 = vld [vmem:[%s1208_s28 + $0x140] ss:$8 sps:$4 sm:$0xff]   ;;  %v1072_v29 = vld [vmem:[%s1208_s28 + $0x70] ss:$8 sps:$4 sm:$0xff]  }
  0x28   : > { %673 = vmatpush1.bf16.msra.mxu1 %v1081_v16  ;;  %v1103_v30 = vld [vmem:[%s1208_s28 + $0x154] ss:$8 sps:$4 sm:$0xff]   ;;  %v1076_v31 = vld [vmem:[%s1208_s28 + $0x84] ss:$8 sps:$4 sm:$0xff]   ;;  %v1105_v32 = vld [vmem:[%s1208_s28 + $0x150] ss:$8 sps:$4 sm:$0xff]  }
  0x29   : > { %634 = vmatpush1.bf16.msra.mxu0 %v1057_v9  ;;  %674 = vmatprep.subr.bf16.mxu1 %v1085_v19  ;;  %v1078_v33 = vld [vmem:[%s1208_s28 + $0x80] ss:$8 sps:$4 sm:$0xff]   ;;  %v1109_v34 = vld [vmem:[%s1208_s28 + $0x164] ss:$8 sps:$4 sm:$0xff]   ;;  %v1082_v35 = vld [vmem:[%s1208_s28 + $0x94] ss:$8 sps:$4 sm:$0xff]  }
  0x2a   : > { %635 = vmatprep.subr.bf16.mxu0 %v1058_v10  ;;  %v328_v36 = vld [vmem:[%s1203_s24] sm:$0xff]  ;;  %v1084_v39 = vld [vmem:[%s1208_s28 + $0x90] ss:$8 sps:$4 sm:$0xff]   ;;  %v1115_v40 = vld [vmem:[%s1208_s28 + $0x174] ss:$8 sps:$4 sm:$0xff]  }
  0x2b   : > { %v960_v37 = vcombine.high %v328_v36, %v328_v36  ;;  %v1111_v38 = vld [vmem:[%s1208_s28 + $0x160] ss:$8 sps:$4 sm:$0xff]   ;;  %v1088_v41 = vld [vmem:[%s1208_s28 + $0xa4] ss:$8 sps:$4 sm:$0xff]   ;;  %v1117_v42 = vld [vmem:[%s1208_s28 + $0x170] ss:$8 sps:$4 sm:$0xff]   ;;  %v959_v55 = vcombine.low %v328_v36, %v328_v36 }
  0x2c   : > { %675 = vmatpush1.bf16.msra.mxu1 %v1087_v20  ;;  %v1090_v43 = vld [vmem:[%s1208_s28 + $0xa0] ss:$8 sps:$4 sm:$0xff]   ;;  %v1094_v44 = vld [vmem:[%s1208_s28 + $0xb4] ss:$8 sps:$4 sm:$0xff]   ;;  %v1096_v46 = vld [vmem:[%s1208_s28 + $0xb0] ss:$8 sps:$4 sm:$0xff]  }
  0x2d   : > { %636 = vmatpush1.bf16.msra.mxu0 %v1060_v11  ;;  %676 = vmatprep.subr.bf16.mxu1 %v1091_v22  ;;  %v1121_v45 = vld [vmem:[%s1203_s24 + $0x8] ss:$0 sps:$4 sm:$0xff]   ;;  %v1100_v47 = vld [vmem:[%s1208_s28 + $0xc4] ss:$8 sps:$4 sm:$0xff]   ;;  %v1106_v49 = vld [vmem:[%s1208_s28 + $0xd4] ss:$8 sps:$4 sm:$0xff]  }
  0x2e   : > { %637 = vmatprep.subr.bf16.mxu0 %v1061_v14  ;;  %661 = vmatprep.mubr.bf16.mxu0 %v960_v37  ;;  %v1102_v48 = vld [vmem:[%s1208_s28 + $0xc0] ss:$8 sps:$4 sm:$0xff]   ;;  %v1108_v50 = vld [vmem:[%s1208_s28 + $0xd0] ss:$8 sps:$4 sm:$0xff]   ;;  %v1112_v51 = vld [vmem:[%s1208_s28 + $0xe4] ss:$8 sps:$4 sm:$0xff]   ;;  %v742_v14 = vlaneseq (!%p1010_p8) }
  0x2f   : > { %v1114_v52 = vld [vmem:[%s1208_s28 + $0xe0] ss:$8 sps:$4 sm:$0xff]   ;;  %v1118_v53 = vld [vmem:[%s1208_s28 + $0xf4] ss:$8 sps:$4 sm:$0xff]   ;;  %v1120_v54 = vld [vmem:[%s1208_s28 + $0xf0] ss:$8 sps:$4 sm:$0xff]  }
  0x30   : > { %677 = vmatpush1.bf16.msra.mxu1 %v1093_v24  ;;  %v326_v60 = vld [vmem:[#allocation2] sm:$0xff]  ;;  %v327_v63 = vld [vmem:[#allocation2 + $0x8] sm:$0xff]  ;;  %v1151_v12 = vmov (!%p1010_p8), 1966171168   ;;  %v743_v24 = vshrl.u32 (!%p1010_p8), %v742_v14, 7  ;;  %vm757_vm1 = vcmp.lt.s32.totalorder (!%p1010_p8), %v742_v14, 256 }
  0x31   : > { %638 = vmatpush1.bf16.msra.mxu0 %v1063_v17  ;;  %678 = vmatprep.subr.bf16.mxu1 %v1097_v26  ;;  %v740_v13 = vunpack.c.l.s4 (!%p1010_p8), %v1151_v12 }
  0x32   : > { %639 = vmatprep.subr.bf16.mxu0 %v1064_v18 }
  0x34   : > { %679 = vmatpush1.bf16.msra.mxu1 %v1099_v28 }
  0x35   : > { %640 = vmatpush1.bf16.msra.mxu0 %v1066_v21  ;;  %680 = vmatprep.subr.bf16.mxu1 %v1103_v30 }
  0x36   : > { %641 = vmatprep.subr.bf16.mxu0 %v1067_v23  ;;  %v741_v23 = vunpack.c.0.s8 (!%p1010_p8), %v740_v13 }
  0x38   : > { %681 = vmatpush1.bf16.msra.mxu1 %v1105_v32 }
  0x39   : > { %642 = vmatpush1.bf16.msra.mxu0 %v1069_v25  ;;  %682 = vmatprep.subr.bf16.mxu1 %v1109_v34 }
  0x3a   : > { %643 = vmatprep.subr.bf16.mxu0 %v1070_v27 }
  0x3c   : > { %683 = vmatpush1.bf16.msra.mxu1 %v1111_v38 }
  0x3d   : > { %644 = vmatpush1.bf16.msra.mxu0 %v1072_v29  ;;  %684 = vmatprep.subr.bf16.mxu1 %v1115_v40 }
  0x3e   : > { %645 = vmatprep.subr.bf16.mxu0 %v1076_v31 }
  0x40   : > { %685 = vmatpush1.bf16.msra.mxu1 %v1117_v42 }
  0x41   : > { %646 = vmatpush1.bf16.msra.mxu0 %v1078_v33  ;;  %v744_v33 = vsub.s32 (!%p1010_p8), %v741_v23, %v743_v24 }
  0x42   : > { %647 = vmatprep.subr.bf16.mxu0 %v1082_v35 }
  0x43   : > { %703 = vmatmul.mubr.bf16.vlgmr.msra.gmra.mrb[0].mxu1 %v1121_v45 }
  0x45   : > { %648 = vmatpush1.bf16.msra.mxu0 %v1084_v39 }
  0x46   : > { %649 = vmatprep.subr.bf16.mxu0 %v1088_v41 }
  0x49   : > { %650 = vmatpush1.bf16.msra.mxu0 %v1090_v43  ;;  %v723_v43 = vld [vmem:[%s1300_s3] sm:$0x3] (!%p1010_p8) }
  0x4a   : > { %651 = vmatprep.subr.bf16.mxu0 %v1094_v44 }
  0x4d   : > { %652 = vmatpush1.bf16.msra.mxu0 %v1096_v46  ;;  %v760_v46 = vld [vmem:[%s1301_s4] sm:$0x3] (!%p1010_p8) }
  0x4e   : > { %653 = vmatprep.subr.bf16.mxu0 %v1100_v47 }
  0x51   : > { %654 = vmatpush1.bf16.msra.mxu0 %v1102_v48 }
  0x52   : > { %655 = vmatprep.subr.bf16.mxu0 %v1106_v49 }
  0x55   : > { %656 = vmatpush1.bf16.msra.mxu0 %v1108_v50 }
  0x56   : > { %657 = vmatprep.subr.bf16.mxu0 %v1112_v51 }
  0x59   : > { %658 = vmatpush1.bf16.msra.mxu0 %v1114_v52 }
  0x5a   : > { %659 = vmatprep.subr.bf16.mxu0 %v1118_v53 }
  0x5d   : > { %660 = vmatpush1.bf16.msra.mxu0 %v1120_v54 }
  0x60   : > { %662 = vmatmul.mubr.bf16.vlgmr.msra.gmra.mrb[0].mxu0 %v959_v55 }
 0x116   : > { %v704_v56 = vpop.f32.mrb[0].mxu1 }
 0x117   : > { %v706_v57 = vpop.f32.mrb[1].mxu1 }
 0x118   : > { %v708_v58 = vpop.f32.mrb[2].mxu1 }
 0x119   : > { %v709_v59 = vpop.f32.mrb[3].mxu1 }
 0x133   : > { %v663_v61 = vpop.f32.mrb[0].mxu0  ;;  %718 = sbr.rel (%p1010_p8) target bundleno = 344 (0x158), region = 40 }
 0x134   : > { %v705_v62 = vadd.f32 %v704_v56, %v663_v61  ;;  %v665_v0 = vpop.f32.mrb[1].mxu0 }
 0x135   : > { %v707_v1 = vadd.f32 %v706_v57, %v665_v0  ;;  %v667_v2 = vpop.f32.mrb[2].mxu0 }
 0x136   : > { %v711_v3 = vadd.f32 %v705_v62, %v326_v60  ;;  %v668_v4 = vpop.f32.mrb[3].mxu0 }
 0x137   : > { %v712_v5 = vadd.f32 %v707_v1, %v327_v63 }
 0x138   : > { %713 = vst [vmem:[#allocation2] sm:$0xff] %v711_v3 }
 0x139   : > { %714 = vst [vmem:[#allocation2 + $0x8] sm:$0xff] %v712_v5 }
 0x13f   : > { %v719_v6 = vld [vmem:[#allocation2] sm:$0xff] }
 0x140   : > { %v720_v7 = vld [vmem:[#allocation2 + $0x8] sm:$0xff]  ;;  %721 = vst [vmem:[%s1299_s2] sm:$0xff] %v719_v6  ;;  %v724_v8 = vrot.slane %v719_v6, 4  ;;  %v761_v9 = vmul.f32 %v719_v6, %v719_v6 }
 0x141   : > { %722 = vst [vmem:[%s1299_s2 + $0x8] sm:$0xff] %v720_v7  ;;  %v730_v10 = vrot.slane %v720_v7, 4  ;;  %v762_v11 = vmul.f32 %v720_v7, %v720_v7 }
 0x142   : > { %v725_v15 = vadd.f32 %v724_v8, %v719_v6  ;;  %v763_v16 = vrot.slane %v761_v9, 4 }
 0x143   : > { %v731_v17 = vadd.f32 %v730_v10, %v720_v7  ;;  %v769_v18 = vrot.slane %v762_v11, 4 }
 0x144   : > { %v726_v19 = vrot.slane %v725_v15, 2  ;;  %v764_v20 = vadd.f32 %v763_v16, %v761_v9 }
 0x145   : > { %v732_v21 = vrot.slane %v731_v17, 2  ;;  %v770_v22 = vadd.f32 %v769_v18, %v762_v11 }
 0x146   : > { %v727_v25 = vadd.f32 %v726_v19, %v725_v15  ;;  %v765_v26 = vrot.slane %v764_v20, 2 }
 0x147   : > { %v733_v27 = vadd.f32 %v732_v21, %v731_v17  ;;  %v771_v28 = vrot.slane %v770_v22, 2 }
 0x148   : > { %v728_v29 = vrot.slane %v727_v25, 1  ;;  %v766_v30 = vadd.f32 %v765_v26, %v764_v20 }
 0x149   : > { %v734_v31 = vrot.slane %v733_v27, 1  ;;  %v772_v32 = vadd.f32 %v771_v28, %v770_v22 }
 0x14a   : > { %v729_v34 = vadd.f32 %v728_v29, %v727_v25  ;;  %v767_v36 = vrot.slane %v766_v30, 1 }
 0x14b   : > { %v735_v35 = vadd.f32 %v734_v31, %v733_v27  ;;  %v773_v37 = vrot.slane %v772_v32, 1 }
 0x14c   : > { %v768_v39 = vadd.f32 %v767_v36, %v766_v30 }
 0x14d   : > { %v738_v38 = vcombine.low %v729_v34, %v735_v35  ;;  %v774_v40 = vadd.f32 %v773_v37, %v772_v32 }
 0x14f   : > { %v745_v41 = vrot.slane %v738_v38, %v744_v33  ;;  %v777_v42 = vcombine.low %v768_v39, %v774_v40 }
 0x151   : > { %v752_v44 = vrot.slane %v745_v41, %v744_v33  ;;  %v784_v45 = vrot.slane %v777_v42, %v744_v33 }
 0x153   : > { %v754_v47 = vadd.f32 %v752_v44, %v723_v43  ;;  %v791_v48 = vrot.slane %v784_v45, %v744_v33 }
 0x155   : > { %759 = vst.msk [vmem:[%s1300_s3] sm:$0x3] %vm757_vm1, %v754_v47  ;;  %v793_v49 = vadd.f32 %v791_v48, %v760_v46 }
 0x157   : > { %794 = vst.msk [vmem:[%s1301_s4] sm:$0x3] %vm757_vm1, %v793_v49 }
 0x158 PF: > { %s15_s17 = sadd.s32 1, %s1146_s17   ;;  %s1302_s15 = smov %s1142_s16 }
 0x159   : > { %p12_p9 = scmp.ge.s32.totalorder %s15_s17, 8   ;;  %s1303_s16 = smov %s1305_s18 }
 0x15b   :  { %14 = sbr.rel (!%p12_p9) target bundleno = 2 (0x2), region = 97 }

// kernel: resnet_ultra_forward.75
= control target key start
LH: loop header
LB: loop body
LE: loop exit
PB: predicated region body
PF: predicated region fallthrough
CT: control target
= control target key end

     0   :  { %s1176_s15 = smov 0   ;;  %s1178_s16 = smov 0   ;;  %s1387_s0 = inlined_call_operand.vmem [shape: bf16[8,256], index: 0, kind: input, shape index: {}]   ;;  %s1388_s1 = inlined_call_operand.vmem [shape: bf16[256,512], index: 1, kind: input, shape index: {}]   ;;  %s1389_s2 = inlined_call_operand.vmem [shape: f32[8,512], index: 2, kind: output, shape index: {0}]   ;;  %s1390_s3 = inlined_call_operand.vmem [shape: f32[1,512], index: 3, kind: output, shape index: {1}]   ;;  %s1391_s4 = inlined_call_operand.vmem [shape: f32[1,512], index: 4, kind: output, shape index: {2}]  }
   0x1   :  { %s1180_s17 = smov 0   ;;  %s1182_s18 = smov 0  }
   0x2   :  { %s1184_s19 = smov 0  }
   0x3 LB: > { %s34_s20 = sadd.s32 1, %s1143_s18  ;;  %p78_p1 = scmp.ne.s32.totalorder %s1135_s16, %s1131_s15  ;;  %s1147_s19 = sphi %s1184_s19, %s15_s19   ;;  %s1143_s18 = sphi %s1182_s18, %s1397_s18   ;;  %s1139_s17 = sphi %s1180_s17, %s1396_s17   ;;  %s1135_s16 = sphi %s1178_s16, %s1395_s16   ;;  %s1131_s15 = sphi %s1176_s15, %s1394_s15  }
   0x4   : > { %p36_p0 = scmp.ge.s32.totalorder %s34_s20, 2  ;;  %p79_p2 = scmp.eq.s32.totalorder %s1147_s19, 0 }
   0x5   : > { %s71_s22 = sadd.s32 1, %s1135_s16  ;;  %p970_p5 = scmp.ge.s32.totalorder %s1147_s19, 2 }
   0x6   : > { %s1399_s20 = smov (%p36_p0, %s34_s20), 0  ;;  %p80_p3 = por %p79_p2, %p78_p1 }
   0x7   : > { %s67_s21 = ssub.s32 %s1143_s18, %s1399_s20  ;;  %197 = sbr.rel (%p970_p5) target bundleno = 34 (0x22), region = 20 }
   0x8   : > { %p69_p4 = scmp.eq.s32.totalorder %s67_s21, 0 }
   0xa   : > { %s1211_s23 = scalar_select %p69_p4, %s1135_s16, %s71_s22  }
   0xe   : > { %200 = sbr.rel (!%p80_p3) target bundleno = 34 (0x22), region = 24  ;;  %s202_s24 = sand.u32 (%p80_p3), 1, %s1135_s16  }
   0xf   : > { %s1016_s25 = sshll.u32 (%p80_p3), %s1143_s18, 3  ;;  %s971_s26 = sshll.u32 (%p80_p3), %s202_s24, 8 }
  0x10   : > { %s1219_s29 = scalar_lea.vmem (%p80_p3), %s1388_s1, %s1016_s25  ;;  %s1224_s30 = scalar_lea.vmem (%p80_p3), [#allocation3], %s971_s26 }
  0x11   : > { %v300_v0 = vld [vmem:[%s1219_s29] sm:$0xff] (%p80_p3)  ;;  %v302_v1 = vld [vmem:[%s1219_s29 + $0x10] sm:$0xff] (%p80_p3) }
  0x12   : > { %v304_v2 = vld [vmem:[%s1219_s29 + $0x20] sm:$0xff] (%p80_p3)  ;;  %301 = vst [vmem:[%s1224_s30] sm:$0xff] (%p80_p3), %v300_v0  ;;  %303 = vst [vmem:[%s1224_s30 + $0x8] sm:$0xff] (%p80_p3), %v302_v1  ;;  %v306_v3 = vld [vmem:[%s1219_s29 + $0x30] sm:$0xff] (%p80_p3) }
  0x13   : > { %305 = vst [vmem:[%s1224_s30 + $0x10] sm:$0xff] (%p80_p3), %v304_v2  ;;  %v308_v4 = vld [vmem:[%s1219_s29 + $0x40] sm:$0xff] (%p80_p3)  ;;  %v310_v5 = vld [vmem:[%s1219_s29 + $0x50] sm:$0xff] (%p80_p3)  ;;  %307 = vst [vmem:[%s1224_s30 + $0x18] sm:$0xff] (%p80_p3), %v306_v3 }
  0x14   : > { %309 = vst [vmem:[%s1224_s30 + $0x20] sm:$0xff] (%p80_p3), %v308_v4  ;;  %311 = vst [vmem:[%s1224_s30 + $0x28] sm:$0xff] (%p80_p3), %v310_v5  ;;  %v312_v6 = vld [vmem:[%s1219_s29 + $0x60] sm:$0xff] (%p80_p3)  ;;  %v314_v7 = vld [vmem:[%s1219_s29 + $0x70] sm:$0xff] (%p80_p3) }
  0x15   : > { %v316_v8 = vld [vmem:[%s1219_s29 + $0x80] sm:$0xff]  ;;  %313 = vst [vmem:[%s1224_s30 + $0x30] sm:$0xff] %v312_v6  ;;  %315 = vst [vmem:[%s1224_s30 + $0x38] sm:$0xff] %v314_v7  ;;  %v318_v9 = vld [vmem:[%s1219_s29 + $0x90] sm:$0xff] }
  0x16   : > { %317 = vst [vmem:[%s1224_s30 + $0x40] sm:$0xff] %v316_v8  ;;  %v320_v10 = vld [vmem:[%s1219_s29 + $0xa0] sm:$0xff]  ;;  %v322_v11 = vld [vmem:[%s1219_s29 + $0xb0] sm:$0xff]  ;;  %319 = vst [vmem:[%s1224_s30 + $0x48] sm:$0xff] %v318_v9 }
  0x17   : > { %321 = vst [vmem:[%s1224_s30 + $0x50] sm:$0xff] %v320_v10  ;;  %323 = vst [vmem:[%s1224_s30 + $0x58] sm:$0xff] %v322_v11  ;;  %v324_v12 = vld [vmem:[%s1219_s29 + $0xc0] sm:$0xff]  ;;  %v326_v13 = vld [vmem:[%s1219_s29 + $0xd0] sm:$0xff] }
  0x18   : > { %v328_v14 = vld [vmem:[%s1219_s29 + $0xe0] sm:$0xff]  ;;  %325 = vst [vmem:[%s1224_s30 + $0x60] sm:$0xff] %v324_v12  ;;  %327 = vst [vmem:[%s1224_s30 + $0x68] sm:$0xff] %v326_v13  ;;  %v330_v15 = vld [vmem:[%s1219_s29 + $0xf0] sm:$0xff] }
  0x19   : > { %329 = vst [vmem:[%s1224_s30 + $0x70] sm:$0xff] %v328_v14  ;;  %v332_v16 = vld [vmem:[%s1219_s29 + $0x100] sm:$0xff]  ;;  %v334_v17 = vld [vmem:[%s1219_s29 + $0x110] sm:$0xff]  ;;  %331 = vst [vmem:[%s1224_s30 + $0x78] sm:$0xff] %v330_v15 }
  0x1a   : > { %333 = vst [vmem:[%s1224_s30 + $0x80] sm:$0xff] %v332_v16  ;;  %335 = vst [vmem:[%s1224_s30 + $0x88] sm:$0xff] %v334_v17  ;;  %v336_v18 = vld [vmem:[%s1219_s29 + $0x120] sm:$0xff]  ;;  %v338_v19 = vld [vmem:[%s1219_s29 + $0x130] sm:$0xff] }
  0x1b   : > { %v340_v20 = vld [vmem:[%s1219_s29 + $0x140] sm:$0xff]  ;;  %337 = vst [vmem:[%s1224_s30 + $0x90] sm:$0xff] %v336_v18  ;;  %339 = vst [vmem:[%s1224_s30 + $0x98] sm:$0xff] %v338_v19  ;;  %v342_v21 = vld [vmem:[%s1219_s29 + $0x150] sm:$0xff] }
  0x1c   : > { %341 = vst [vmem:[%s1224_s30 + $0xa0] sm:$0xff] %v340_v20  ;;  %v344_v22 = vld [vmem:[%s1219_s29 + $0x160] sm:$0xff]  ;;  %v346_v23 = vld [vmem:[%s1219_s29 + $0x170] sm:$0xff]  ;;  %343 = vst [vmem:[%s1224_s30 + $0xa8] sm:$0xff] %v342_v21 }
  0x1d   : > { %345 = vst [vmem:[%s1224_s30 + $0xb0] sm:$0xff] %v344_v22  ;;  %347 = vst [vmem:[%s1224_s30 + $0xb8] sm:$0xff] %v346_v23  ;;  %v348_v24 = vld [vmem:[%s1219_s29 + $0x180] sm:$0xff]  ;;  %v350_v25 = vld [vmem:[%s1219_s29 + $0x190] sm:$0xff] }
  0x1e   : > { %v352_v26 = vld [vmem:[%s1219_s29 + $0x1a0] sm:$0xff]  ;;  %349 = vst [vmem:[%s1224_s30 + $0xc0] sm:$0xff] %v348_v24  ;;  %351 = vst [vmem:[%s1224_s30 + $0xc8] sm:$0xff] %v350_v25  ;;  %v354_v27 = vld [vmem:[%s1219_s29 + $0x1b0] sm:$0xff] }
  0x1f   : > { %353 = vst [vmem:[%s1224_s30 + $0xd0] sm:$0xff] %v352_v26  ;;  %v356_v28 = vld [vmem:[%s1219_s29 + $0x1c0] sm:$0xff]  ;;  %v358_v29 = vld [vmem:[%s1219_s29 + $0x1d0] sm:$0xff]  ;;  %355 = vst [vmem:[%s1224_s30 + $0xd8] sm:$0xff] %v354_v27 }
  0x20   : > { %357 = vst [vmem:[%s1224_s30 + $0xe0] sm:$0xff] %v356_v28  ;;  %359 = vst [vmem:[%s1224_s30 + $0xe8] sm:$0xff] %v358_v29  ;;  %v360_v30 = vld [vmem:[%s1219_s29 + $0x1e0] sm:$0xff]  ;;  %v362_v31 = vld [vmem:[%s1219_s29 + $0x1f0] sm:$0xff] }
  0x21   : > { %361 = vst [vmem:[%s1224_s30 + $0xf0] sm:$0xff] %v360_v30  ;;  %363 = vst [vmem:[%s1224_s30 + $0xf8] sm:$0xff] %v362_v31 }
  0x22 PF: > { %p974_p6 = scmp.ge.s32.totalorder %s1147_s19, 1  ;;  %p368_p7 = scmp.lt.s32.totalorder %s1147_s19, 3 }
  0x24   : > { %p369_p8 = pnand %p974_p6, %p368_p7 }
  0x25   : > { %s375_s5 = sand.u32 (!%p369_p8), 1, %s1131_s15   ;;  %v1293_v32 = vld [vmem:[%s1387_s0] sm:$0xff] (!%p369_p8)  ;;  %s976_s8 = sshll.u32 (!%p369_p8), %s1139_s17, 1  ;;  %v464_v33 = vlaneseq (!%p369_p8)  ;;  %v1149_v40 = vmov (!%p369_p8), 0.0   ;;  %v1150_v17 = vmov (!%p369_p8), 1966171168  }
  0x26   : > { %372 = sbr.rel (%p369_p8) target bundleno = 341 (0x155), region = 62  ;;  %s975_s9 = sshll.u32 (!%p369_p8), %s375_s5, 8  ;;  %v981_v34 = vcombine.high (!%p369_p8), %v1293_v32, %v1293_v32  ;;  %v980_v5 = vcombine.low (!%p369_p8), %v1293_v32, %v1293_v32  ;;  %v741_v18 = vunpack.c.l.s4 (!%p369_p8), %v1150_v17 }
  0x27   : > { %p436_p9 = scmp.lt.s32.totalorder (!%p369_p8), %s976_s8, 3  ;;  %s1298_s10 = scalar_lea.vmem (!%p369_p8), [#allocation3], %s975_s9  ;;  %vm1304_vm0 = vcmp.lt.s32.totalorder (!%p369_p8), %v464_v33, 256  ;;  %v744_v28 = vshrl.u32 (!%p369_p8), %v464_v33, 7 }
  0x28   : > { %v1059_v35 = vld [vmem:[%s1298_s10 + $0x4] ss:$8 sps:$4 sm:$0xff] (!%p369_p8)   ;;  %704 = vmatprep.mubr.bf16.mxu0 (!%p369_p8), %v981_v34  ;;  %v1061_v37 = vld [vmem:[%s1298_s10] ss:$8 sps:$4 sm:$0xff] (!%p369_p8)   ;;  %v1062_v38 = vld [vmem:[%s1298_s10 + $0x14] ss:$8 sps:$4 sm:$0xff] (!%p369_p8)   ;;  %v742_v27 = vunpack.c.0.s8 (!%p369_p8), %v741_v18 }
  0x29   : > { %672 = vmatprep.subr.bf16.mxu0 (!%p369_p8), %v1059_v35  ;;  %v1064_v39 = vld [vmem:[%s1298_s10 + $0x10] ss:$8 sps:$4 sm:$0xff] (!%p369_p8)   ;;  %v1065_v41 = vld [vmem:[%s1298_s10 + $0x24] ss:$8 sps:$4 sm:$0xff] (!%p369_p8)   ;;  %v1067_v42 = vld [vmem:[%s1298_s10 + $0x20] ss:$8 sps:$4 sm:$0xff] (!%p369_p8)  }
  0x2a   : > { %673 = vmatpush1.bf16.msra.mxu0 (!%p369_p8), %v1061_v37  ;;  %v1068_v43 = vld [vmem:[%s1298_s10 + $0x34] ss:$8 sps:$4 sm:$0xff] (!%p369_p8)   ;;  %v1070_v44 = vld [vmem:[%s1298_s10 + $0x30] ss:$8 sps:$4 sm:$0xff] (!%p369_p8)   ;;  %v1071_v45 = vld [vmem:[%s1298_s10 + $0x44] ss:$8 sps:$4 sm:$0xff] (!%p369_p8)  }
  0x2b   : > { %674 = vmatprep.subr.bf16.mxu0 (!%p369_p8), %v1062_v38  ;;  %v1073_v46 = vld [vmem:[%s1298_s10 + $0x40] ss:$8 sps:$4 sm:$0xff] (!%p369_p8)   ;;  %v1074_v47 = vld [vmem:[%s1298_s10 + $0x54] ss:$8 sps:$4 sm:$0xff] (!%p369_p8)   ;;  %v1076_v48 = vld [vmem:[%s1298_s10 + $0x50] ss:$8 sps:$4 sm:$0xff] (!%p369_p8)  }
  0x2c   : > { %v1077_v49 = vld [vmem:[%s1298_s10 + $0x64] ss:$8 sps:$4 sm:$0xff] (!%p369_p8)   ;;  %v1079_v50 = vld [vmem:[%s1298_s10 + $0x60] ss:$8 sps:$4 sm:$0xff] (!%p369_p8)   ;;  %v1080_v51 = vld [vmem:[%s1298_s10 + $0x74] ss:$8 sps:$4 sm:$0xff] (!%p369_p8)  }
  0x2d   : > { %s1401_s8 = smov (!%p436_p9, %s976_s8), 3  ;;  %v1082_v52 = vld [vmem:[%s1298_s10 + $0x70] ss:$8 sps:$4 sm:$0xff]   ;;  %v1083_v53 = vld [vmem:[%s1298_s10 + $0x84] ss:$8 sps:$4 sm:$0xff]  }
  0x2e   : > { %s1314_s13 = scalar_lea.vmem %s1390_s3, %s1401_s8  ;;  %s1321_s17 = scalar_lea.vmem %s1391_s4, %s1401_s8  ;;  %675 = vmatpush1.bf16.msra.mxu0 %v1064_v39  ;;  %v1085_v54 = vld [vmem:[%s1298_s10 + $0x80] ss:$8 sps:$4 sm:$0xff]   ;;  %v1086_v55 = vld [vmem:[%s1298_s10 + $0x94] ss:$8 sps:$4 sm:$0xff]   ;;  %v1088_v56 = vld [vmem:[%s1298_s10 + $0x90] ss:$8 sps:$4 sm:$0xff]   ;;  %v745_v39 = vsub.s32 %v742_v27, %v744_v28 }
  0x2f   : > { %468 = vst.msk [vmem:[%s1314_s13] sm:$0x3] %vm1304_vm0, %v1149_v40  ;;  %469 = vst.msk [vmem:[%s1321_s17] sm:$0x3] %vm1304_vm0, %v1149_v40  ;;  %676 = vmatprep.subr.bf16.mxu0 %v1065_v41  ;;  %v1089_v57 = vld [vmem:[%s1298_s10 + $0xa4] ss:$8 sps:$4 sm:$0xff]  }
  0x30   : > { %v1091_v58 = vld [vmem:[%s1298_s10 + $0xa0] ss:$8 sps:$4 sm:$0xff]   ;;  %v1092_v59 = vld [vmem:[%s1298_s10 + $0xb4] ss:$8 sps:$4 sm:$0xff]   ;;  %v1094_v60 = vld [vmem:[%s1298_s10 + $0xb0] ss:$8 sps:$4 sm:$0xff]  }
  0x31   : > { %v1095_v61 = vld [vmem:[%s1298_s10 + $0xc4] ss:$8 sps:$4 sm:$0xff]   ;;  %v1097_v62 = vld [vmem:[%s1298_s10 + $0xc0] ss:$8 sps:$4 sm:$0xff]   ;;  %v1098_v63 = vld [vmem:[%s1298_s10 + $0xd4] ss:$8 sps:$4 sm:$0xff]  }
  0x32   : > { %677 = vmatpush1.bf16.msra.mxu0 %v1067_v42  ;;  %v1100_v0 = vld [vmem:[%s1298_s10 + $0xd0] ss:$8 sps:$4 sm:$0xff]   ;;  %v1101_v1 = vld [vmem:[%s1298_s10 + $0xe4] ss:$8 sps:$4 sm:$0xff]   ;;  %v1103_v2 = vld [vmem:[%s1298_s10 + $0xe0] ss:$8 sps:$4 sm:$0xff]  }
  0x33   : > { %678 = vmatprep.subr.bf16.mxu0 %v1068_v43  ;;  %v1104_v3 = vld [vmem:[%s1298_s10 + $0xf4] ss:$8 sps:$4 sm:$0xff]   ;;  %v1106_v4 = vld [vmem:[%s1298_s10 + $0xf0] ss:$8 sps:$4 sm:$0xff]   ;;  %s977_s21 = sshll.u32 %s1401_s8, 3 }
  0x34   : > { %s441_s25 = scalar_lea.vmem %s1389_s2, %s977_s21 }
  0x36   : > { %679 = vmatpush1.bf16.msra.mxu0 %v1070_v44  ;;  %v724_v33 = vld [vmem:[%s1314_s13] sm:$0x3] }
  0x37   : > { %680 = vmatprep.subr.bf16.mxu0 %v1071_v45 }
  0x3a   : > { %681 = vmatpush1.bf16.msra.mxu0 %v1073_v46 }
  0x3b   : > { %682 = vmatprep.subr.bf16.mxu0 %v1074_v47 }
  0x3e   : > { %683 = vmatpush1.bf16.msra.mxu0 %v1076_v48  ;;  %v761_v48 = vld [vmem:[%s1321_s17] sm:$0x3] }
  0x3f   : > { %684 = vmatprep.subr.bf16.mxu0 %v1077_v49 }
  0x42   : > { %685 = vmatpush1.bf16.msra.mxu0 %v1079_v50 }
  0x43   : > { %686 = vmatprep.subr.bf16.mxu0 %v1080_v51 }
  0x46   : > { %687 = vmatpush1.bf16.msra.mxu0 %v1082_v52 }
  0x47   : > { %688 = vmatprep.subr.bf16.mxu0 %v1083_v53 }
  0x4a   : > { %689 = vmatpush1.bf16.msra.mxu0 %v1085_v54 }
  0x4b   : > { %690 = vmatprep.subr.bf16.mxu0 %v1086_v55 }
  0x4e   : > { %691 = vmatpush1.bf16.msra.mxu0 %v1088_v56 }
  0x4f   : > { %692 = vmatprep.subr.bf16.mxu0 %v1089_v57 }
  0x52   : > { %693 = vmatpush1.bf16.msra.mxu0 %v1091_v58 }
  0x53   : > { %694 = vmatprep.subr.bf16.mxu0 %v1092_v59 }
  0x56   : > { %695 = vmatpush1.bf16.msra.mxu0 %v1094_v60 }
  0x57   : > { %696 = vmatprep.subr.bf16.mxu0 %v1095_v61 }
  0x5a   : > { %697 = vmatpush1.bf16.msra.mxu0 %v1097_v62 }
  0x5b   : > { %698 = vmatprep.subr.bf16.mxu0 %v1098_v63 }
  0x5e   : > { %699 = vmatpush1.bf16.msra.mxu0 %v1100_v0 }
  0x5f   : > { %700 = vmatprep.subr.bf16.mxu0 %v1101_v1 }
  0x62   : > { %701 = vmatpush1.bf16.msra.mxu0 %v1103_v2 }
  0x63   : > { %702 = vmatprep.subr.bf16.mxu0 %v1104_v3 }
  0x66   : > { %703 = vmatpush1.bf16.msra.mxu0 %v1106_v4 }
  0x69   : > { %705 = vmatmul.mubr.bf16.vlgmr.msra.gmra.mrb[0].mxu0 %v980_v5 }
 0x13c   : > { %v706_v6 = vpop.f32.mrb[0].mxu0 }
 0x13d   : > { %722 = vst [vmem:[%s441_s25] sm:$0xff] %v706_v6  ;;  %v725_v7 = vrot.slane %v706_v6, 4  ;;  %v762_v8 = vmul.f32 %v706_v6, %v706_v6  ;;  %v708_v9 = vpop.f32.mrb[1].mxu0 }
 0x13e   : > { %723 = vst [vmem:[%s441_s25 + $0x8] sm:$0xff] %v708_v9  ;;  %v731_v10 = vrot.slane %v708_v9, 4  ;;  %v763_v11 = vmul.f32 %v708_v9, %v708_v9  ;;  %v710_v12 = vpop.f32.mrb[2].mxu0 }
 0x13f   : > { %v726_v13 = vadd.f32 %v725_v7, %v706_v6  ;;  %v764_v14 = vrot.slane %v762_v8, 4  ;;  %v711_v15 = vpop.f32.mrb[3].mxu0 }
 0x140   : > { %v732_v16 = vadd.f32 %v731_v10, %v708_v9  ;;  %v770_v19 = vrot.slane %v763_v11, 4 }
 0x141   : > { %v727_v20 = vrot.slane %v726_v13, 2  ;;  %v765_v21 = vadd.f32 %v764_v14, %v762_v8 }
 0x142   : > { %v733_v22 = vrot.slane %v732_v16, 2  ;;  %v771_v23 = vadd.f32 %v770_v19, %v763_v11 }
 0x143   : > { %v728_v24 = vadd.f32 %v727_v20, %v726_v13  ;;  %v766_v25 = vrot.slane %v765_v21, 2 }
 0x144   : > { %v734_v26 = vadd.f32 %v733_v22, %v732_v16  ;;  %v772_v29 = vrot.slane %v771_v23, 2 }
 0x145   : > { %v729_v30 = vrot.slane %v728_v24, 1  ;;  %v767_v31 = vadd.f32 %v766_v25, %v765_v21 }
 0x146   : > { %v735_v32 = vrot.slane %v734_v26, 1  ;;  %v773_v34 = vadd.f32 %v772_v29, %v771_v23 }
 0x147   : > { %v730_v35 = vadd.f32 %v729_v30, %v728_v24  ;;  %v768_v37 = vrot.slane %v767_v31, 1 }
 0x148   : > { %v736_v38 = vadd.f32 %v735_v32, %v734_v26  ;;  %v774_v40 = vrot.slane %v773_v34, 1 }
 0x149   : > { %v769_v41 = vadd.f32 %v768_v37, %v767_v31 }
 0x14a   : > { %v739_v42 = vcombine.low %v730_v35, %v736_v38  ;;  %v775_v43 = vadd.f32 %v774_v40, %v773_v34 }
 0x14c   : > { %v746_v44 = vrot.slane %v739_v42, %v745_v39  ;;  %v778_v45 = vcombine.low %v769_v41, %v775_v43 }
 0x14e   : > { %v753_v46 = vrot.slane %v746_v44, %v745_v39  ;;  %v785_v47 = vrot.slane %v778_v45, %v745_v39 }
 0x150   : > { %v755_v49 = vadd.f32 %v753_v46, %v724_v33  ;;  %v792_v50 = vrot.slane %v785_v47, %v745_v39 }
 0x152   : > { %760 = vst.msk [vmem:[%s1314_s13] sm:$0x3] %vm1304_vm0, %v755_v49  ;;  %v794_v51 = vadd.f32 %v792_v50, %v761_v48 }
 0x154   : > { %795 = vst.msk [vmem:[%s1321_s17] sm:$0x3] %vm1304_vm0, %v794_v51 }
 0x155 PF: > { %s15_s19 = sadd.s32 1, %s1147_s19   ;;  %s1394_s15 = smov %s1135_s16 }
 0x156   : > { %p12_p10 = scmp.ge.s32.totalorder %s15_s19, 4   ;;  %s1395_s16 = smov %s1211_s23 }
 0x157   : > { %s1396_s17 = smov %s1143_s18  ;;  %s1397_s18 = smov %s1399_s20 }
 0x158   :  { %14 = sbr.rel (!%p12_p10) target bundleno = 3 (0x3), region = 140 }

// kernel: resnet_ultra_forward.76
= control target key start
LH: loop header
LB: loop body
LE: loop exit
PB: predicated region body
PF: predicated region fallthrough
CT: control target
= control target key end

     0   :  { %s622_s18 = smov 0   ;;  %s624_s19 = smov 0   ;;  %s675_s0 = inlined_call_operand.vmem [shape: f32[8,512], index: 0, kind: input, shape index: {}]   ;;  %s676_s1 = inlined_call_operand.vmem [shape: f32[1,512], index: 1, kind: input, shape index: {}]   ;;  %s677_s2 = inlined_call_operand.vmem [shape: f32[1,512], index: 2, kind: input, shape index: {}]   ;;  %s678_s3 = inlined_call_operand.vmem [shape: f32[1,512], index: 3, kind: input, shape index: {}]   ;;  %s679_s4 = inlined_call_operand.vmem [shape: f32[1,512], index: 4, kind: input, shape index: {}]   ;;  %s680_s5 = inlined_call_operand.vmem [shape: bf16[8,512], index: 5, kind: output, shape index: {}]  }
   0x1   :  { %s626_s20 = smov 0  }
   0x2 LB: > { %s24_s21 = sadd.s32 1, %s586_s19  ;;  %p529_p0 = scmp.ge.s32.totalorder %s590_s20, 1  ;;  %s590_s20 = sphi %s626_s20, %s15_s20   ;;  %s586_s19 = sphi %s624_s19, %s682_s19   ;;  %s582_s18 = sphi %s622_s18, %s681_s18  }
   0x3   : > { %p25_p1 = scmp.ge.s32.totalorder %s24_s21, 2  ;;  %p248_p2 = scmp.lt.s32.totalorder %s590_s20, 3 }
   0x5   : > { %s684_s21 = smov (%p25_p1, %s24_s21), 0  ;;  %p249_p3 = pnand %p529_p0, %p248_p2 }
   0x6   : > { %s530_s22 = sshll.u32 (!%p249_p3), %s582_s18, 1  ;;  %v354_v6 = vlaneseq (!%p249_p3) }
   0x7   : > { %252 = sbr.rel (%p249_p3) target bundleno = 49 (0x31), region = 40  ;;  %p303_p4 = scmp.lt.s32.totalorder (!%p249_p3), %s530_s22, 3 }
   0x8   : > { %v355_v9 = vshrl.u32 (!%p249_p3), %v354_v6, 7 }
   0xa   : > { %v356_v10 = vsub.s32 (!%p249_p3), 0, %v355_v9  ;;  %v360_v11 = vsub.s32 (!%p249_p3), 1, %v355_v9 }
   0xe   : > { %s686_s22 = smov (!%p303_p4, %s530_s22), 3 }
   0xf   : > { %s313_s25 = scalar_lea.vmem %s676_s1, %s686_s22  ;;  %s318_s28 = scalar_lea.vmem %s677_s2, %s686_s22 }
  0x10   : > { %v340_v0 = vld [vmem:[%s313_s25] sm:$0x3]  ;;  %s531_s29 = sshll.u32 %s686_s22, 3  ;;  %s323_s10 = scalar_lea.vmem %s678_s3, %s686_s22 }
  0x11   : > { %v341_v1 = vmul.f32 0.5, %v340_v0  ;;  %v342_v2 = vld [vmem:[%s318_s28] sm:$0x3]  ;;  %s308_s7 = scalar_lea.vmem %s675_s0, %s531_s29  ;;  %s328_s13 = scalar_lea.vmem %s679_s4, %s686_s22 }
  0x12   : > { %v343_v3 = vmul.f32 0.5, %v342_v2  ;;  %v349_v14 = vld [vmem:[%s323_s10] sm:$0x3]  ;;  %v352_v16 = vld [vmem:[%s308_s7 + $0x8] sm:$0xff]  ;;  %s537_s14 = sshll.u32 %s686_s22, 2 }
  0x13   : > { %v344_v4 = vmul.f32 %v341_v1, %v341_v1  ;;  %v357_v12 = vrot.slane %v341_v1, %v356_v10  ;;  %v361_v13 = vrot.slane %v341_v1, %v360_v11  ;;  %v351_v15 = vld [vmem:[%s308_s7] sm:$0xff]  ;;  %s338_s17 = scalar_lea.vmem %s680_s5, %s537_s14 }
  0x14   : > { %v379_v18 = vld [vmem:[%s328_s13] sm:$0x3] }
  0x15   : > { %v345_v5 = vsub.f32 %v343_v3, %v344_v4  ;;  %v364_v20 = vsub.f32 %v351_v15, %v357_v12  ;;  %v365_v21 = vsub.f32 %v352_v16, %v361_v13  ;;  %v384_v24 = vrot.slane %v379_v18, %v356_v10 }
  0x16   : > { %v388_v25 = vrot.slane %v379_v18, %v360_v11 }
  0x17   : > { %v346_v7 = vmax.f32 %v345_v5, 0.0 }
  0x19   : > { %v347_v8 = vadd.f32 1e-05, %v346_v7 }
  0x1b   : > { %566 = vrsqrt.f32 %v347_v8 }
  0x25   : > { %v567_v17 = vpop.eup %566 }
  0x26   : > { %v350_v19 = vmul.f32 %v567_v17, %v349_v14 }
  0x28   : > { %v370_v22 = vrot.slane %v350_v19, %v356_v10  ;;  %v374_v23 = vrot.slane %v350_v19, %v360_v11 }
  0x2a   : > { %v377_v26 = vmul.f32 %v370_v22, %v364_v20  ;;  %v378_v27 = vmul.f32 %v374_v23, %v365_v21 }
  0x2c   : > { %v391_v28 = vadd.f32 %v384_v24, %v377_v26  ;;  %v392_v29 = vadd.f32 %v388_v25, %v378_v27 }
  0x2e   : > { %v541_v30 = vpack.c.bf16 %v392_v29, %v391_v28 }
  0x30   : > { %401 = vst [vmem:[%s338_s17] sm:$0xff] %v541_v30 }
  0x31 PF: > { %s15_s20 = sadd.s32 1, %s590_s20   ;;  %s681_s18 = smov %s586_s19 }
  0x32   : > { %p12_p5 = scmp.ge.s32.totalorder %s15_s20, 4   ;;  %s682_s19 = smov %s684_s21 }
  0x34   :  { %14 = sbr.rel (!%p12_p5) target bundleno = 2 (0x2), region = 82 }

// kernel: resnet_ultra_forward.73
= control target key start
LH: loop header
LB: loop body
LE: loop exit
PB: predicated region body
PF: predicated region fallthrough
CT: control target
= control target key end

     0   :  { %s1467_s15 = smov 0   ;;  %s1469_s16 = smov 0   ;;  %s1738_s0 = inlined_call_operand.vmem [shape: bf16[8,2304], index: 0, kind: input, shape index: {}]   ;;  %s1739_s1 = inlined_call_operand.vmem [shape: bf16[2304,512], index: 1, kind: input, shape index: {}]   ;;  %s1740_s2 = inlined_call_operand.vmem [shape: f32[8,512], index: 2, kind: output, shape index: {0}]   ;;  %s1741_s3 = inlined_call_operand.vmem [shape: f32[1,512], index: 3, kind: output, shape index: {1}]   ;;  %s1742_s4 = inlined_call_operand.vmem [shape: f32[1,512], index: 4, kind: output, shape index: {2}]  }
   0x1   :  { %s1471_s17 = smov 0   ;;  %s1473_s18 = smov 0  }
   0x2   :  { %s1475_s19 = smov 0   ;;  %s1477_s20 = smov 0  }
   0x3   :  { %s1479_s21 = smov 0  }
   0x4 LB: > { %s27_s22 = sadd.s32 1, %s1428_s19  ;;  %s34_s23 = sadd.s32 1, %s1432_s20  ;;  %s1436_s21 = sphi %s1479_s21, %s15_s21   ;;  %s1432_s20 = sphi %s1477_s20, %s1748_s20   ;;  %s1428_s19 = sphi %s1475_s19, %s1747_s19   ;;  %s1424_s18 = sphi %s1473_s18, %s1746_s18   ;;  %s1420_s17 = sphi %s1471_s17, %s1745_s17   ;;  %s1416_s16 = sphi %s1469_s16, %s1744_s16   ;;  %s1412_s15 = sphi %s1467_s15, %s1743_s15  }
   0x5   : > { %p28_p0 = scmp.ge.s32.totalorder %s27_s22, 6  ;;  %p78_p1 = scmp.ne.s32.totalorder %s1416_s16, %s1412_s15 }
   0x6   : > { %p79_p2 = scmp.eq.s32.totalorder %s1436_s21, 0  ;;  %s71_s27 = sadd.s32 1, %s1416_s16 }
   0x7   : > { %s1750_s22 = smov (%p28_p0, %s27_s22), 0  ;;  %s1752_s23 = smov (!%p28_p0, %s34_s23), %s1432_s20 }
   0x8   : > { %p80_p3 = por %p79_p2, %p78_p1  ;;  %p36_p4 = scmp.ge.s32.totalorder %s1752_s23, 2 }
   0x9   : > { %s66_s24 = ssub.s32 %s1428_s19, %s1750_s22  ;;  %p1177_p6 = scmp.ge.s32.totalorder %s1436_s21, 12 }
   0xa   : > { %s1754_s23 = smov (%p36_p4, %s1752_s23), 0 }
   0xb   : > { %s67_s25 = ssub.s32 %s1432_s20, %s1754_s23  ;;  %184 = sbr.rel (%p1177_p6) target bundleno = 50 (0x32), region = 16 }
   0xc   : > { %s68_s26 = sor.u32 %s67_s25, %s66_s24 }
   0xd   : > { %p69_p5 = scmp.eq.s32.totalorder %s68_s26, 0 }
   0xf   : > { %s1518_s28 = scalar_select %p69_p5, %s1416_s16, %s71_s27  }
  0x12   : > { %200 = sbr.rel (!%p80_p3) target bundleno = 50 (0x32), region = 24  ;;  %s202_s29 = sand.u32 (%p80_p3), 1, %s1416_s16  }
  0x13   : > { %s1245_s30 = smul.u32 (%p80_p3), 384, %s202_s29  ;;  %s1178_s5 = sshll.u32 (%p80_p3), %s1432_s20, 1 }
  0x14   : > { %s1243_s6 = smul.u32 (%p80_p3), 192, %s1428_s19 }
  0x15   : > { %s1532_s12 = scalar_lea.vmem (%p80_p3), [#allocation3], %s1245_s30 }
  0x16   : > { %s208_s7 = sadd.s32 (%p80_p3), %s1243_s6, %s1178_s5 }
  0x17   : > { %s1180_s8 = sshll.u32 (%p80_p3), %s208_s7, 2 }
  0x18   : > { %s1527_s11 = scalar_lea.vmem (%p80_p3), %s1739_s1, %s1180_s8 }
  0x19   : > { %v332_v0 = vld [vmem:[%s1527_s11] sm:$0xff]  ;;  %v334_v1 = vld [vmem:[%s1527_s11 + $0x10] sm:$0xff] }
  0x1a   : > { %v336_v2 = vld [vmem:[%s1527_s11 + $0x20] sm:$0xff]  ;;  %333 = vst [vmem:[%s1532_s12] sm:$0xff] %v332_v0  ;;  %335 = vst [vmem:[%s1532_s12 + $0x8] sm:$0xff] %v334_v1  ;;  %v338_v3 = vld [vmem:[%s1527_s11 + $0x30] sm:$0xff] }
  0x1b   : > { %337 = vst [vmem:[%s1532_s12 + $0x10] sm:$0xff] %v336_v2  ;;  %v340_v4 = vld [vmem:[%s1527_s11 + $0x40] sm:$0xff]  ;;  %v342_v5 = vld [vmem:[%s1527_s11 + $0x50] sm:$0xff]  ;;  %339 = vst [vmem:[%s1532_s12 + $0x18] sm:$0xff] %v338_v3 }
  0x1c   : > { %341 = vst [vmem:[%s1532_s12 + $0x20] sm:$0xff] %v340_v4  ;;  %343 = vst [vmem:[%s1532_s12 + $0x28] sm:$0xff] %v342_v5  ;;  %v344_v6 = vld [vmem:[%s1527_s11 + $0x60] sm:$0xff]  ;;  %v346_v7 = vld [vmem:[%s1527_s11 + $0x70] sm:$0xff] }
  0x1d   : > { %v348_v8 = vld [vmem:[%s1527_s11 + $0x80] sm:$0xff]  ;;  %345 = vst [vmem:[%s1532_s12 + $0x30] sm:$0xff] %v344_v6  ;;  %347 = vst [vmem:[%s1532_s12 + $0x38] sm:$0xff] %v346_v7  ;;  %v350_v9 = vld [vmem:[%s1527_s11 + $0x90] sm:$0xff] }
  0x1e   : > { %349 = vst [vmem:[%s1532_s12 + $0x40] sm:$0xff] %v348_v8  ;;  %v352_v10 = vld [vmem:[%s1527_s11 + $0xa0] sm:$0xff]  ;;  %v354_v11 = vld [vmem:[%s1527_s11 + $0xb0] sm:$0xff]  ;;  %351 = vst [vmem:[%s1532_s12 + $0x48] sm:$0xff] %v350_v9 }
  0x1f   : > { %353 = vst [vmem:[%s1532_s12 + $0x50] sm:$0xff] %v352_v10  ;;  %355 = vst [vmem:[%s1532_s12 + $0x58] sm:$0xff] %v354_v11  ;;  %v356_v12 = vld [vmem:[%s1527_s11 + $0xc0] sm:$0xff]  ;;  %v358_v13 = vld [vmem:[%s1527_s11 + $0xd0] sm:$0xff] }
  0x20   : > { %v360_v14 = vld [vmem:[%s1527_s11 + $0xe0] sm:$0xff]  ;;  %357 = vst [vmem:[%s1532_s12 + $0x60] sm:$0xff] %v356_v12  ;;  %359 = vst [vmem:[%s1532_s12 + $0x68] sm:$0xff] %v358_v13  ;;  %v362_v15 = vld [vmem:[%s1527_s11 + $0xf0] sm:$0xff] }
  0x21   : > { %361 = vst [vmem:[%s1532_s12 + $0x70] sm:$0xff] %v360_v14  ;;  %v364_v16 = vld [vmem:[%s1527_s11 + $0x100] sm:$0xff]  ;;  %v366_v17 = vld [vmem:[%s1527_s11 + $0x110] sm:$0xff]  ;;  %363 = vst [vmem:[%s1532_s12 + $0x78] sm:$0xff] %v362_v15 }
  0x22   : > { %365 = vst [vmem:[%s1532_s12 + $0x80] sm:$0xff] %v364_v16  ;;  %367 = vst [vmem:[%s1532_s12 + $0x88] sm:$0xff] %v366_v17  ;;  %v368_v18 = vld [vmem:[%s1527_s11 + $0x120] sm:$0xff]  ;;  %v370_v19 = vld [vmem:[%s1527_s11 + $0x130] sm:$0xff] }
  0x23   : > { %v372_v20 = vld [vmem:[%s1527_s11 + $0x140] sm:$0xff]  ;;  %369 = vst [vmem:[%s1532_s12 + $0x90] sm:$0xff] %v368_v18  ;;  %371 = vst [vmem:[%s1532_s12 + $0x98] sm:$0xff] %v370_v19  ;;  %v374_v21 = vld [vmem:[%s1527_s11 + $0x150] sm:$0xff] }
  0x24   : > { %373 = vst [vmem:[%s1532_s12 + $0xa0] sm:$0xff] %v372_v20  ;;  %v376_v22 = vld [vmem:[%s1527_s11 + $0x160] sm:$0xff]  ;;  %v378_v23 = vld [vmem:[%s1527_s11 + $0x170] sm:$0xff]  ;;  %375 = vst [vmem:[%s1532_s12 + $0xa8] sm:$0xff] %v374_v21 }
  0x25   : > { %377 = vst [vmem:[%s1532_s12 + $0xb0] sm:$0xff] %v376_v22  ;;  %379 = vst [vmem:[%s1532_s12 + $0xb8] sm:$0xff] %v378_v23  ;;  %v380_v24 = vld [vmem:[%s1527_s11 + $0x180] sm:$0xff]  ;;  %v382_v25 = vld [vmem:[%s1527_s11 + $0x190] sm:$0xff] }
  0x26   : > { %v384_v26 = vld [vmem:[%s1527_s11 + $0x1a0] sm:$0xff]  ;;  %381 = vst [vmem:[%s1532_s12 + $0xc0] sm:$0xff] %v380_v24  ;;  %383 = vst [vmem:[%s1532_s12 + $0xc8] sm:$0xff] %v382_v25  ;;  %v386_v27 = vld [vmem:[%s1527_s11 + $0x1b0] sm:$0xff] }
  0x27   : > { %385 = vst [vmem:[%s1532_s12 + $0xd0] sm:$0xff] %v384_v26  ;;  %v388_v28 = vld [vmem:[%s1527_s11 + $0x1c0] sm:$0xff]  ;;  %v390_v29 = vld [vmem:[%s1527_s11 + $0x1d0] sm:$0xff]  ;;  %387 = vst [vmem:[%s1532_s12 + $0xd8] sm:$0xff] %v386_v27 }
  0x28   : > { %389 = vst [vmem:[%s1532_s12 + $0xe0] sm:$0xff] %v388_v28  ;;  %391 = vst [vmem:[%s1532_s12 + $0xe8] sm:$0xff] %v390_v29  ;;  %v392_v30 = vld [vmem:[%s1527_s11 + $0x1e0] sm:$0xff]  ;;  %v394_v31 = vld [vmem:[%s1527_s11 + $0x1f0] sm:$0xff] }
  0x29   : > { %v396_v32 = vld [vmem:[%s1527_s11 + $0x200] sm:$0xff]  ;;  %393 = vst [vmem:[%s1532_s12 + $0xf0] sm:$0xff] %v392_v30  ;;  %395 = vst [vmem:[%s1532_s12 + $0xf8] sm:$0xff] %v394_v31  ;;  %v398_v33 = vld [vmem:[%s1527_s11 + $0x210] sm:$0xff] }
  0x2a   : > { %397 = vst [vmem:[%s1532_s12 + $0x100] sm:$0xff] %v396_v32  ;;  %v400_v34 = vld [vmem:[%s1527_s11 + $0x220] sm:$0xff]  ;;  %v402_v35 = vld [vmem:[%s1527_s11 + $0x230] sm:$0xff]  ;;  %399 = vst [vmem:[%s1532_s12 + $0x108] sm:$0xff] %v398_v33 }
  0x2b   : > { %401 = vst [vmem:[%s1532_s12 + $0x110] sm:$0xff] %v400_v34  ;;  %403 = vst [vmem:[%s1532_s12 + $0x118] sm:$0xff] %v402_v35  ;;  %v404_v36 = vld [vmem:[%s1527_s11 + $0x240] sm:$0xff]  ;;  %v406_v37 = vld [vmem:[%s1527_s11 + $0x250] sm:$0xff] }
  0x2c   : > { %v408_v38 = vld [vmem:[%s1527_s11 + $0x260] sm:$0xff]  ;;  %405 = vst [vmem:[%s1532_s12 + $0x120] sm:$0xff] %v404_v36  ;;  %407 = vst [vmem:[%s1532_s12 + $0x128] sm:$0xff] %v406_v37  ;;  %v410_v39 = vld [vmem:[%s1527_s11 + $0x270] sm:$0xff] }
  0x2d   : > { %409 = vst [vmem:[%s1532_s12 + $0x130] sm:$0xff] %v408_v38  ;;  %v412_v40 = vld [vmem:[%s1527_s11 + $0x280] sm:$0xff]  ;;  %v414_v41 = vld [vmem:[%s1527_s11 + $0x290] sm:$0xff]  ;;  %411 = vst [vmem:[%s1532_s12 + $0x138] sm:$0xff] %v410_v39 }
  0x2e   : > { %413 = vst [vmem:[%s1532_s12 + $0x140] sm:$0xff] %v412_v40  ;;  %415 = vst [vmem:[%s1532_s12 + $0x148] sm:$0xff] %v414_v41  ;;  %v416_v42 = vld [vmem:[%s1527_s11 + $0x2a0] sm:$0xff]  ;;  %v418_v43 = vld [vmem:[%s1527_s11 + $0x2b0] sm:$0xff] }
  0x2f   : > { %v420_v44 = vld [vmem:[%s1527_s11 + $0x2c0] sm:$0xff]  ;;  %417 = vst [vmem:[%s1532_s12 + $0x150] sm:$0xff] %v416_v42  ;;  %419 = vst [vmem:[%s1532_s12 + $0x158] sm:$0xff] %v418_v43  ;;  %v422_v45 = vld [vmem:[%s1527_s11 + $0x2d0] sm:$0xff] }
  0x30   : > { %421 = vst [vmem:[%s1532_s12 + $0x160] sm:$0xff] %v420_v44  ;;  %v424_v46 = vld [vmem:[%s1527_s11 + $0x2e0] sm:$0xff]  ;;  %v426_v47 = vld [vmem:[%s1527_s11 + $0x2f0] sm:$0xff]  ;;  %423 = vst [vmem:[%s1532_s12 + $0x168] sm:$0xff] %v422_v45 }
  0x31   : > { %425 = vst [vmem:[%s1532_s12 + $0x170] sm:$0xff] %v424_v46  ;;  %427 = vst [vmem:[%s1532_s12 + $0x178] sm:$0xff] %v426_v47 }
  0x32 PF: > { %p1181_p7 = scmp.ge.s32.totalorder %s1436_s21, 1  ;;  %p432_p8 = scmp.lt.s32.totalorder %s1436_s21, 13 }
  0x34   : > { %p433_p9 = pnand %p1181_p7, %p432_p8 }
  0x35   : > { %s439_s13 = sand.u32 (!%p433_p9), 1, %s1412_s15   ;;  %s485_s14 = smul.u32 (!%p433_p9), 3, %s1420_s17 }
  0x36   : > { %436 = sbr.rel (%p433_p9) target bundleno = 392 (0x188), region = 62  ;;  %s1183_s25 = sshll.u32 (!%p433_p9), %s1424_s18, 1 }
  0x37   : > { %s1246_s24 = smul.u32 (!%p433_p9), 384, %s439_s13  ;;  %p488_p10 = scmp.lt.s32.totalorder (!%p433_p9), %s485_s14, 17 }
  0x38   : > { %p500_p11 = scmp.lt.s32.totalorder (!%p433_p9), %s1183_s25, 3  ;;  %p518_p12 = scmp.eq.s32.totalorder (!%p433_p9), %s1420_s17, 0 }
  0x39   : > { %s1653_s13 = scalar_lea.vmem (!%p433_p9), [#allocation3], %s1246_s24  ;;  %p1187_p13 = scmp.ne.s32.totalorder (!%p433_p9), %s1420_s17, 0 }
  0x3d   : > { %s1756_s14 = smov (!%p488_p10, %s485_s14), 17  ;;  %s1758_s25 = smov (!%p500_p11, %s1183_s25), 3 }
  0x3e   : > { %s1182_s26 = sshll.u32 %s1756_s14, 2  ;;  %s1184_s5 = sshll.u32 %s1758_s25, 3  ;;  %v1438_v48 = vmov (!%p1187_p13), 0.0  }
  0x3f   : > { %s1636_s30 = scalar_lea.vmem %s1738_s0, %s1182_s26  ;;  %s1641_s8 = scalar_lea.vmem %s1740_s2, %s1184_s5  ;;  %522 = vst [vmem:[#allocation2] sm:$0xff] (!%p1187_p13), %v1438_v48  ;;  %523 = vst [vmem:[#allocation2 + $0x8] sm:$0xff] (!%p1187_p13), %v1438_v48 }
  0x40   : > { %s1646_s18 = scalar_lea.vmem %s1741_s3, %s1758_s25  ;;  %s1651_s12 = scalar_lea.vmem %s1742_s4, %s1758_s25 }
  0x41   : > { %521 = sbr.rel (%p1187_p13) target bundleno = 72 (0x48), region = 70 }
  0x48 PF: > { %528 = sbr.rel (!%p518_p12) target bundleno = 79 (0x4f), region = 74  ;;  %v529_v49 = vlaneseq (%p518_p12)  ;;  %v1439_v50 = vmov (%p518_p12), 0.0  }
  0x4a   : > { %vm531_vm0 = vcmp.lt.s32.totalorder (%p518_p12), %v529_v49, 256 }
  0x4b   : > { %533 = vst.msk [vmem:[%s1646_s18] sm:$0x3] (%p518_p12), %vm531_vm0, %v1439_v50  ;;  %534 = vst.msk [vmem:[%s1651_s12] sm:$0x3] (%p518_p12), %vm531_vm0, %v1439_v50 }
  0x4f PF: > { %v1307_v51 = vld [vmem:[%s1653_s13 + $0x4] ss:$8 sps:$4 sm:$0xff]   ;;  %v1309_v52 = vld [vmem:[%s1653_s13] ss:$8 sps:$4 sm:$0xff]   ;;  %v1440_v53 = vmov 0   ;;  %v537_v20 = vld [vmem:[%s1636_s30] sm:$0xff] }
  0x50   : > { %911 = vmatprep.mubr.bf16.mxu1 %v1440_v53  ;;  %838 = vmatprep.subr.bf16.mxu0 %v1307_v51  ;;  %v1310_v54 = vld [vmem:[%s1653_s13 + $0x14] ss:$8 sps:$4 sm:$0xff]   ;;  %v1312_v55 = vld [vmem:[%s1653_s13 + $0x10] ss:$8 sps:$4 sm:$0xff]   ;;  %v1313_v56 = vld [vmem:[%s1653_s13 + $0x24] ss:$8 sps:$4 sm:$0xff]   ;;  %v1190_v21 = vcombine.high %v537_v20, %v537_v20  ;;  %v1189_v39 = vcombine.low %v537_v20, %v537_v20 }
  0x51   : > { %839 = vmatpush1.bf16.msra.mxu0 %v1309_v52  ;;  %v1315_v57 = vld [vmem:[%s1653_s13 + $0x20] ss:$8 sps:$4 sm:$0xff]   ;;  %v1316_v58 = vld [vmem:[%s1653_s13 + $0x34] ss:$8 sps:$4 sm:$0xff]   ;;  %v1318_v59 = vld [vmem:[%s1653_s13 + $0x30] ss:$8 sps:$4 sm:$0xff]  }
  0x52   : > { %840 = vmatprep.subr.bf16.mxu0 %v1310_v54  ;;  %v1331_v60 = vld [vmem:[%s1653_s13 + $0x104] ss:$8 sps:$4 sm:$0xff]   ;;  %v1333_v61 = vld [vmem:[%s1653_s13 + $0x100] ss:$8 sps:$4 sm:$0xff]   ;;  %v1337_v63 = vld [vmem:[%s1653_s13 + $0x114] ss:$8 sps:$4 sm:$0xff]   ;;  %870 = vmatprep.mubr.bf16.mxu0 %v1190_v21 }
  0x53   : > { %v1319_v62 = vld [vmem:[%s1653_s13 + $0x44] ss:$8 sps:$4 sm:$0xff]   ;;  %879 = vmatprep.subr.bf16.mxu1 %v1331_v60  ;;  %v1339_v0 = vld [vmem:[%s1653_s13 + $0x110] ss:$8 sps:$4 sm:$0xff]   ;;  %v1321_v1 = vld [vmem:[%s1653_s13 + $0x40] ss:$8 sps:$4 sm:$0xff]  }
  0x54   : > { %880 = vmatpush1.bf16.msra.mxu1 %v1333_v61  ;;  %v1322_v2 = vld [vmem:[%s1653_s13 + $0x54] ss:$8 sps:$4 sm:$0xff]   ;;  %v1343_v3 = vld [vmem:[%s1653_s13 + $0x124] ss:$8 sps:$4 sm:$0xff]   ;;  %v1345_v4 = vld [vmem:[%s1653_s13 + $0x120] ss:$8 sps:$4 sm:$0xff]  }
  0x55   : > { %841 = vmatpush1.bf16.msra.mxu0 %v1312_v55  ;;  %881 = vmatprep.subr.bf16.mxu1 %v1337_v63  ;;  %v1324_v5 = vld [vmem:[%s1653_s13 + $0x50] ss:$8 sps:$4 sm:$0xff]   ;;  %v1349_v6 = vld [vmem:[%s1653_s13 + $0x134] ss:$8 sps:$4 sm:$0xff]   ;;  %v1325_v7 = vld [vmem:[%s1653_s13 + $0x64] ss:$8 sps:$4 sm:$0xff]  }
  0x56   : > { %842 = vmatprep.subr.bf16.mxu0 %v1313_v56  ;;  %v1351_v8 = vld [vmem:[%s1653_s13 + $0x130] ss:$8 sps:$4 sm:$0xff]   ;;  %v1327_v9 = vld [vmem:[%s1653_s13 + $0x60] ss:$8 sps:$4 sm:$0xff]   ;;  %v1355_v10 = vld [vmem:[%s1653_s13 + $0x144] ss:$8 sps:$4 sm:$0xff]  }
  0x57   : > { %v1328_v11 = vld [vmem:[%s1653_s13 + $0x74] ss:$8 sps:$4 sm:$0xff]   ;;  %v1357_v12 = vld [vmem:[%s1653_s13 + $0x140] ss:$8 sps:$4 sm:$0xff]   ;;  %v1330_v13 = vld [vmem:[%s1653_s13 + $0x70] ss:$8 sps:$4 sm:$0xff]  }
  0x58   : > { %882 = vmatpush1.bf16.msra.mxu1 %v1339_v0  ;;  %v1361_v14 = vld [vmem:[%s1653_s13 + $0x154] ss:$8 sps:$4 sm:$0xff]   ;;  %v1334_v15 = vld [vmem:[%s1653_s13 + $0x84] ss:$8 sps:$4 sm:$0xff]   ;;  %v1363_v16 = vld [vmem:[%s1653_s13 + $0x150] ss:$8 sps:$4 sm:$0xff]  }
  0x59   : > { %843 = vmatpush1.bf16.msra.mxu0 %v1315_v57  ;;  %883 = vmatprep.subr.bf16.mxu1 %v1343_v3  ;;  %v1336_v17 = vld [vmem:[%s1653_s13 + $0x80] ss:$8 sps:$4 sm:$0xff]   ;;  %v1367_v18 = vld [vmem:[%s1653_s13 + $0x164] ss:$8 sps:$4 sm:$0xff]   ;;  %v1340_v19 = vld [vmem:[%s1653_s13 + $0x94] ss:$8 sps:$4 sm:$0xff]  }
  0x5a   : > { %844 = vmatprep.subr.bf16.mxu0 %v1316_v58  ;;  %v1369_v22 = vld [vmem:[%s1653_s13 + $0x160] ss:$8 sps:$4 sm:$0xff]   ;;  %v1342_v23 = vld [vmem:[%s1653_s13 + $0x90] ss:$8 sps:$4 sm:$0xff]   ;;  %v1373_v24 = vld [vmem:[%s1653_s13 + $0x174] ss:$8 sps:$4 sm:$0xff]  }
  0x5b   : > { %v1346_v25 = vld [vmem:[%s1653_s13 + $0xa4] ss:$8 sps:$4 sm:$0xff]   ;;  %v1375_v26 = vld [vmem:[%s1653_s13 + $0x170] ss:$8 sps:$4 sm:$0xff]   ;;  %v1348_v27 = vld [vmem:[%s1653_s13 + $0xa0] ss:$8 sps:$4 sm:$0xff]  }
  0x5c   : > { %884 = vmatpush1.bf16.msra.mxu1 %v1345_v4  ;;  %v1352_v28 = vld [vmem:[%s1653_s13 + $0xb4] ss:$8 sps:$4 sm:$0xff]   ;;  %v1379_v29 = vld [vmem:[%s1636_s30 + $0x8] ss:$0 sps:$4 sm:$0xff]   ;;  %v1358_v31 = vld [vmem:[%s1653_s13 + $0xc4] ss:$8 sps:$4 sm:$0xff]  }
  0x5d   : > { %845 = vmatpush1.bf16.msra.mxu0 %v1318_v59  ;;  %885 = vmatprep.subr.bf16.mxu1 %v1349_v6  ;;  %v1354_v30 = vld [vmem:[%s1653_s13 + $0xb0] ss:$8 sps:$4 sm:$0xff]   ;;  %v1360_v32 = vld [vmem:[%s1653_s13 + $0xc0] ss:$8 sps:$4 sm:$0xff]   ;;  %v1364_v33 = vld [vmem:[%s1653_s13 + $0xd4] ss:$8 sps:$4 sm:$0xff]  }
  0x5e   : > { %846 = vmatprep.subr.bf16.mxu0 %v1319_v62  ;;  %v1366_v34 = vld [vmem:[%s1653_s13 + $0xd0] ss:$8 sps:$4 sm:$0xff]   ;;  %v1370_v35 = vld [vmem:[%s1653_s13 + $0xe4] ss:$8 sps:$4 sm:$0xff]   ;;  %v1372_v36 = vld [vmem:[%s1653_s13 + $0xe0] ss:$8 sps:$4 sm:$0xff]  }
  0x5f   : > { %v1376_v37 = vld [vmem:[%s1653_s13 + $0xf4] ss:$8 sps:$4 sm:$0xff]   ;;  %v1378_v38 = vld [vmem:[%s1653_s13 + $0xf0] ss:$8 sps:$4 sm:$0xff]   ;;  %p1240_p0 = scmp.ne.s32.totalorder %s1420_s17, 5 }
  0x60   : > { %886 = vmatpush1.bf16.msra.mxu1 %v1351_v8  ;;  %v535_v44 = vld [vmem:[#allocation2] sm:$0xff]  ;;  %v536_v47 = vld [vmem:[#allocation2 + $0x8] sm:$0xff]  ;;  %v1441_v60 = vmov (!%p1240_p0), 1966171168   ;;  %v951_v62 = vlaneseq (!%p1240_p0) }
  0x61   : > { %847 = vmatpush1.bf16.msra.mxu0 %v1321_v1  ;;  %887 = vmatprep.subr.bf16.mxu1 %v1355_v10  ;;  %v949_v61 = vunpack.c.l.s4 (!%p1240_p0), %v1441_v60 }
  0x62   : > { %848 = vmatprep.subr.bf16.mxu0 %v1322_v2  ;;  %v952_v8 = vshrl.u32 (!%p1240_p0), %v951_v62, 7  ;;  %vm966_vm1 = vcmp.lt.s32.totalorder (!%p1240_p0), %v951_v62, 256 }
  0x64   : > { %888 = vmatpush1.bf16.msra.mxu1 %v1357_v12 }
  0x65   : > { %849 = vmatpush1.bf16.msra.mxu0 %v1324_v5  ;;  %889 = vmatprep.subr.bf16.mxu1 %v1361_v14 }
  0x66   : > { %850 = vmatprep.subr.bf16.mxu0 %v1325_v7  ;;  %v950_v7 = vunpack.c.0.s8 (!%p1240_p0), %v949_v61 }
  0x68   : > { %890 = vmatpush1.bf16.msra.mxu1 %v1363_v16 }
  0x69   : > { %851 = vmatpush1.bf16.msra.mxu0 %v1327_v9  ;;  %891 = vmatprep.subr.bf16.mxu1 %v1367_v18 }
  0x6a   : > { %852 = vmatprep.subr.bf16.mxu0 %v1328_v11 }
  0x6c   : > { %892 = vmatpush1.bf16.msra.mxu1 %v1369_v22 }
  0x6d   : > { %853 = vmatpush1.bf16.msra.mxu0 %v1330_v13  ;;  %893 = vmatprep.subr.bf16.mxu1 %v1373_v24 }
  0x6e   : > { %854 = vmatprep.subr.bf16.mxu0 %v1334_v15 }
  0x70   : > { %894 = vmatpush1.bf16.msra.mxu1 %v1375_v26 }
  0x71   : > { %855 = vmatpush1.bf16.msra.mxu0 %v1336_v17  ;;  %v953_v17 = vsub.s32 (!%p1240_p0), %v950_v7, %v952_v8 }
  0x72   : > { %856 = vmatprep.subr.bf16.mxu0 %v1340_v19 }
  0x73   : > { %912 = vmatmul.mubr.bf16.vlgmr.msra.gmra.mrb[0].mxu1 %v1379_v29 }
  0x75   : > { %857 = vmatpush1.bf16.msra.mxu0 %v1342_v23 }
  0x76   : > { %858 = vmatprep.subr.bf16.mxu0 %v1346_v25 }
  0x79   : > { %859 = vmatpush1.bf16.msra.mxu0 %v1348_v27  ;;  %v932_v27 = vld [vmem:[%s1646_s18] sm:$0x3] (!%p1240_p0) }
  0x7a   : > { %860 = vmatprep.subr.bf16.mxu0 %v1352_v28 }
  0x7d   : > { %861 = vmatpush1.bf16.msra.mxu0 %v1354_v30  ;;  %v969_v30 = vld [vmem:[%s1651_s12] sm:$0x3] (!%p1240_p0) }
  0x7e   : > { %862 = vmatprep.subr.bf16.mxu0 %v1358_v31 }
  0x81   : > { %863 = vmatpush1.bf16.msra.mxu0 %v1360_v32 }
  0x82   : > { %864 = vmatprep.subr.bf16.mxu0 %v1364_v33 }
  0x85   : > { %865 = vmatpush1.bf16.msra.mxu0 %v1366_v34 }
  0x86   : > { %866 = vmatprep.subr.bf16.mxu0 %v1370_v35 }
  0x89   : > { %867 = vmatpush1.bf16.msra.mxu0 %v1372_v36 }
  0x8a   : > { %868 = vmatprep.subr.bf16.mxu0 %v1376_v37 }
  0x8d   : > { %869 = vmatpush1.bf16.msra.mxu0 %v1378_v38 }
  0x90   : > { %871 = vmatmul.mubr.bf16.vlgmr.msra.gmra.mrb[0].mxu0 %v1189_v39 }
 0x146   : > { %v913_v40 = vpop.f32.mrb[0].mxu1 }
 0x147   : > { %v915_v41 = vpop.f32.mrb[1].mxu1 }
 0x148   : > { %v917_v42 = vpop.f32.mrb[2].mxu1 }
 0x149   : > { %v918_v43 = vpop.f32.mrb[3].mxu1 }
 0x163   : > { %v872_v45 = vpop.f32.mrb[0].mxu0  ;;  %927 = sbr.rel (%p1240_p0) target bundleno = 392 (0x188), region = 78 }
 0x164   : > { %v914_v46 = vadd.f32 %v913_v40, %v872_v45  ;;  %v874_v48 = vpop.f32.mrb[1].mxu0 }
 0x165   : > { %v916_v49 = vadd.f32 %v915_v41, %v874_v48  ;;  %v876_v50 = vpop.f32.mrb[2].mxu0 }
 0x166   : > { %v920_v51 = vadd.f32 %v914_v46, %v535_v44  ;;  %v877_v52 = vpop.f32.mrb[3].mxu0 }
 0x167   : > { %v921_v53 = vadd.f32 %v916_v49, %v536_v47 }
 0x168   : > { %922 = vst [vmem:[#allocation2] sm:$0xff] %v920_v51 }
 0x169   : > { %923 = vst [vmem:[#allocation2 + $0x8] sm:$0xff] %v921_v53 }
 0x16f   : > { %v928_v54 = vld [vmem:[#allocation2] sm:$0xff] }
 0x170   : > { %v929_v55 = vld [vmem:[#allocation2 + $0x8] sm:$0xff]  ;;  %930 = vst [vmem:[%s1641_s8] sm:$0xff] %v928_v54  ;;  %v933_v56 = vrot.slane %v928_v54, 4  ;;  %v970_v57 = vmul.f32 %v928_v54, %v928_v54 }
 0x171   : > { %v939_v58 = vrot.slane %v929_v55, 4  ;;  %v971_v59 = vmul.f32 %v929_v55, %v929_v55  ;;  %931 = vst [vmem:[%s1641_s8 + $0x8] sm:$0xff] %v929_v55 }
 0x172   : > { %v934_v63 = vadd.f32 %v933_v56, %v928_v54  ;;  %v972_v0 = vrot.slane %v970_v57, 4 }
 0x173   : > { %v940_v1 = vadd.f32 %v939_v58, %v929_v55  ;;  %v978_v2 = vrot.slane %v971_v59, 4 }
 0x174   : > { %v935_v3 = vrot.slane %v934_v63, 2  ;;  %v973_v4 = vadd.f32 %v972_v0, %v970_v57 }
 0x175   : > { %v941_v5 = vrot.slane %v940_v1, 2  ;;  %v979_v6 = vadd.f32 %v978_v2, %v971_v59 }
 0x176   : > { %v936_v9 = vadd.f32 %v935_v3, %v934_v63  ;;  %v974_v10 = vrot.slane %v973_v4, 2 }
 0x177   : > { %v942_v11 = vadd.f32 %v941_v5, %v940_v1  ;;  %v980_v12 = vrot.slane %v979_v6, 2 }
 0x178   : > { %v937_v13 = vrot.slane %v936_v9, 1  ;;  %v975_v14 = vadd.f32 %v974_v10, %v973_v4 }
 0x179   : > { %v943_v15 = vrot.slane %v942_v11, 1  ;;  %v981_v16 = vadd.f32 %v980_v12, %v979_v6 }
 0x17a   : > { %v938_v18 = vadd.f32 %v937_v13, %v936_v9  ;;  %v976_v20 = vrot.slane %v975_v14, 1 }
 0x17b   : > { %v944_v19 = vadd.f32 %v943_v15, %v942_v11  ;;  %v982_v21 = vrot.slane %v981_v16, 1 }
 0x17c   : > { %v977_v23 = vadd.f32 %v976_v20, %v975_v14 }
 0x17d   : > { %v947_v22 = vcombine.low %v938_v18, %v944_v19  ;;  %v983_v24 = vadd.f32 %v982_v21, %v981_v16 }
 0x17f   : > { %v954_v25 = vrot.slane %v947_v22, %v953_v17  ;;  %v986_v26 = vcombine.low %v977_v23, %v983_v24 }
 0x181   : > { %v961_v28 = vrot.slane %v954_v25, %v953_v17  ;;  %v993_v29 = vrot.slane %v986_v26, %v953_v17 }
 0x183   : > { %v963_v31 = vadd.f32 %v961_v28, %v932_v27  ;;  %v1000_v32 = vrot.slane %v993_v29, %v953_v17 }
 0x185   : > { %968 = vst.msk [vmem:[%s1646_s18] sm:$0x3] %vm966_vm1, %v963_v31  ;;  %v1002_v33 = vadd.f32 %v1000_v32, %v969_v30 }
 0x187   : > { %1003 = vst.msk [vmem:[%s1651_s12] sm:$0x3] %vm966_vm1, %v1002_v33 }
 0x188 PF: > { %s15_s21 = sadd.s32 1, %s1436_s21   ;;  %s1743_s15 = smov %s1416_s16 }
 0x189   : > { %p12_p1 = scmp.ge.s32.totalorder %s15_s21, 14   ;;  %s1744_s16 = smov %s1518_s28 }
 0x18a   : > { %s1745_s17 = smov %s1428_s19  ;;  %s1746_s18 = smov %s1432_s20 }
 0x18b   : > { %s1747_s19 = smov %s1750_s22  ;;  %s1748_s20 = smov %s1754_s23 }
 0x18c   :  { %14 = sbr.rel (!%p12_p1) target bundleno = 4 (0x4), region = 140 }

// kernel: resnet_ultra_forward.74
= control target key start
LH: loop header
LB: loop body
LE: loop exit
PB: predicated region body
PF: predicated region fallthrough
CT: control target
= control target key end

     0   :  { %s624_s18 = smov 0   ;;  %s626_s19 = smov 0   ;;  %s677_s0 = inlined_call_operand.vmem [shape: f32[8,512], index: 0, kind: input, shape index: {}]   ;;  %s678_s1 = inlined_call_operand.vmem [shape: f32[1,512], index: 1, kind: input, shape index: {}]   ;;  %s679_s2 = inlined_call_operand.vmem [shape: f32[1,512], index: 2, kind: input, shape index: {}]   ;;  %s680_s3 = inlined_call_operand.vmem [shape: f32[1,512], index: 3, kind: input, shape index: {}]   ;;  %s681_s4 = inlined_call_operand.vmem [shape: f32[1,512], index: 4, kind: input, shape index: {}]   ;;  %s682_s5 = inlined_call_operand.vmem [shape: bf16[8,512], index: 5, kind: output, shape index: {}]  }
   0x1   :  { %s628_s20 = smov 0  }
   0x2 LB: > { %s24_s21 = sadd.s32 1, %s588_s19  ;;  %p531_p0 = scmp.ge.s32.totalorder %s592_s20, 1  ;;  %s592_s20 = sphi %s628_s20, %s15_s20   ;;  %s588_s19 = sphi %s626_s19, %s684_s19   ;;  %s584_s18 = sphi %s624_s18, %s683_s18  }
   0x3   : > { %p25_p1 = scmp.ge.s32.totalorder %s24_s21, 2  ;;  %p248_p2 = scmp.lt.s32.totalorder %s592_s20, 3 }
   0x5   : > { %s686_s21 = smov (%p25_p1, %s24_s21), 0  ;;  %p249_p3 = pnand %p531_p0, %p248_p2 }
   0x6   : > { %s532_s22 = sshll.u32 (!%p249_p3), %s584_s18, 1  ;;  %v354_v6 = vlaneseq (!%p249_p3) }
   0x7   : > { %252 = sbr.rel (%p249_p3) target bundleno = 51 (0x33), region = 40  ;;  %p303_p4 = scmp.lt.s32.totalorder (!%p249_p3), %s532_s22, 3 }
   0x8   : > { %v355_v9 = vshrl.u32 (!%p249_p3), %v354_v6, 7 }
   0xa   : > { %v356_v10 = vsub.s32 (!%p249_p3), 0, %v355_v9  ;;  %v360_v11 = vsub.s32 (!%p249_p3), 1, %v355_v9 }
   0xe   : > { %s688_s22 = smov (!%p303_p4, %s532_s22), 3 }
   0xf   : > { %s313_s25 = scalar_lea.vmem %s678_s1, %s688_s22  ;;  %s318_s28 = scalar_lea.vmem %s679_s2, %s688_s22 }
  0x10   : > { %v340_v0 = vld [vmem:[%s313_s25] sm:$0x3]  ;;  %s533_s29 = sshll.u32 %s688_s22, 3  ;;  %s323_s10 = scalar_lea.vmem %s680_s3, %s688_s22 }
  0x11   : > { %v341_v1 = vmul.f32 0.5, %v340_v0  ;;  %v342_v2 = vld [vmem:[%s318_s28] sm:$0x3]  ;;  %s308_s7 = scalar_lea.vmem %s677_s0, %s533_s29  ;;  %s328_s13 = scalar_lea.vmem %s681_s4, %s688_s22 }
  0x12   : > { %v343_v3 = vmul.f32 0.5, %v342_v2  ;;  %v349_v14 = vld [vmem:[%s323_s10] sm:$0x3]  ;;  %v352_v16 = vld [vmem:[%s308_s7 + $0x8] sm:$0xff]  ;;  %s539_s14 = sshll.u32 %s688_s22, 2 }
  0x13   : > { %v344_v4 = vmul.f32 %v341_v1, %v341_v1  ;;  %v357_v12 = vrot.slane %v341_v1, %v356_v10  ;;  %v361_v13 = vrot.slane %v341_v1, %v360_v11  ;;  %v351_v15 = vld [vmem:[%s308_s7] sm:$0xff]  ;;  %s338_s17 = scalar_lea.vmem %s682_s5, %s539_s14 }
  0x14   : > { %v379_v18 = vld [vmem:[%s328_s13] sm:$0x3] }
  0x15   : > { %v345_v5 = vsub.f32 %v343_v3, %v344_v4  ;;  %v364_v20 = vsub.f32 %v351_v15, %v357_v12  ;;  %v365_v21 = vsub.f32 %v352_v16, %v361_v13  ;;  %v384_v24 = vrot.slane %v379_v18, %v356_v10 }
  0x16   : > { %v388_v25 = vrot.slane %v379_v18, %v360_v11 }
  0x17   : > { %v346_v7 = vmax.f32 %v345_v5, 0.0 }
  0x19   : > { %v347_v8 = vadd.f32 1e-05, %v346_v7 }
  0x1b   : > { %568 = vrsqrt.f32 %v347_v8 }
  0x25   : > { %v569_v17 = vpop.eup %568 }
  0x26   : > { %v350_v19 = vmul.f32 %v569_v17, %v349_v14 }
  0x28   : > { %v370_v22 = vrot.slane %v350_v19, %v356_v10  ;;  %v374_v23 = vrot.slane %v350_v19, %v360_v11 }
  0x2a   : > { %v377_v26 = vmul.f32 %v370_v22, %v364_v20  ;;  %v378_v27 = vmul.f32 %v374_v23, %v365_v21 }
  0x2c   : > { %v391_v28 = vadd.f32 %v384_v24, %v377_v26  ;;  %v392_v29 = vadd.f32 %v388_v25, %v378_v27 }
  0x2e   : > { %v393_v30 = vmax.f32 %v391_v28, 0.0  ;;  %v394_v31 = vmax.f32 %v392_v29, 0.0 }
  0x30   : > { %v543_v32 = vpack.c.bf16 %v394_v31, %v393_v30 }
  0x32   : > { %403 = vst [vmem:[%s338_s17] sm:$0xff] %v543_v32 }
  0x33 PF: > { %s15_s20 = sadd.s32 1, %s592_s20   ;;  %s683_s18 = smov %s588_s19 }
  0x34   : > { %p12_p5 = scmp.ge.s32.totalorder %s15_s20, 4   ;;  %s684_s19 = smov %s686_s21 }
  0x36   :  { %14 = sbr.rel (!%p12_p5) target bundleno = 2 (0x2), region = 82 }

// kernel: resnet_ultra_forward.78
= control target key start
LH: loop header
LB: loop body
LE: loop exit
PB: predicated region body
PF: predicated region fallthrough
CT: control target
= control target key end

     0   :  { %s717_s21 = smov 0   ;;  %s719_s22 = smov 0   ;;  %s773_s0 = inlined_call_operand.vmem [shape: f32[8,512], index: 0, kind: input, shape index: {}]   ;;  %s774_s1 = inlined_call_operand.vmem [shape: f32[1,512], index: 1, kind: input, shape index: {}]   ;;  %s775_s2 = inlined_call_operand.vmem [shape: f32[1,512], index: 2, kind: input, shape index: {}]   ;;  %s776_s3 = inlined_call_operand.vmem [shape: f32[1,512], index: 3, kind: input, shape index: {}]   ;;  %s777_s4 = inlined_call_operand.vmem [shape: f32[1,512], index: 4, kind: input, shape index: {}]   ;;  %s778_s5 = inlined_call_operand.vmem [shape: bf16[8,512], index: 5, kind: input, shape index: {}]   ;;  %s779_s6 = inlined_call_operand.vmem [shape: bf16[8,512], index: 6, kind: output, shape index: {}]  }
   0x1   :  { %s721_s23 = smov 0  }
   0x2 LB: > { %s25_s24 = sadd.s32 1, %s676_s22  ;;  %p617_p0 = scmp.ge.s32.totalorder %s680_s23, 1  ;;  %s680_s23 = sphi %s721_s23, %s16_s23   ;;  %s676_s22 = sphi %s719_s22, %s781_s22   ;;  %s672_s21 = sphi %s717_s21, %s780_s21  }
   0x3   : > { %p26_p1 = scmp.ge.s32.totalorder %s25_s24, 2  ;;  %p290_p2 = scmp.lt.s32.totalorder %s680_s23, 3 }
   0x5   : > { %s783_s24 = smov (%p26_p1, %s25_s24), 0  ;;  %p291_p3 = pnand %p617_p0, %p290_p2 }
   0x6   : > { %s618_s25 = sshll.u32 (!%p291_p3), %s672_s21, 1  ;;  %v417_v6 = vlaneseq (!%p291_p3) }
   0x7   : > { %294 = sbr.rel (%p291_p3) target bundleno = 53 (0x35), region = 44  ;;  %p356_p4 = scmp.lt.s32.totalorder (!%p291_p3), %s618_s25, 3 }
   0x8   : > { %v418_v9 = vshrl.u32 (!%p291_p3), %v417_v6, 7 }
   0xa   : > { %v419_v10 = vsub.s32 (!%p291_p3), 0, %v418_v9  ;;  %v423_v11 = vsub.s32 (!%p291_p3), 1, %v418_v9 }
   0xe   : > { %s785_s25 = smov (!%p356_p4, %s618_s25), 3 }
   0xf   : > { %s366_s28 = scalar_lea.vmem %s774_s1, %s785_s25  ;;  %s371_s7 = scalar_lea.vmem %s775_s2, %s785_s25 }
  0x10   : > { %v403_v0 = vld [vmem:[%s366_s28] sm:$0x3]  ;;  %s619_s8 = sshll.u32 %s785_s25, 3  ;;  %s376_s14 = scalar_lea.vmem %s776_s3, %s785_s25 }
  0x11   : > { %v404_v1 = vmul.f32 0.5, %v403_v0  ;;  %v405_v2 = vld [vmem:[%s371_s7] sm:$0x3]  ;;  %s361_s11 = scalar_lea.vmem %s773_s0, %s619_s8  ;;  %s625_s15 = sshll.u32 %s785_s25, 2 }
  0x12   : > { %v406_v3 = vmul.f32 0.5, %v405_v2  ;;  %s381_s18 = scalar_lea.vmem %s777_s4, %s785_s25  ;;  %v412_v14 = vld [vmem:[%s376_s14] sm:$0x3]  ;;  %v415_v16 = vld [vmem:[%s361_s11 + $0x8] sm:$0xff]  ;;  %s391_s21 = scalar_lea.vmem %s778_s5, %s625_s15 }
  0x13   : > { %v407_v4 = vmul.f32 %v404_v1, %v404_v1  ;;  %v420_v12 = vrot.slane %v404_v1, %v419_v10  ;;  %v424_v13 = vrot.slane %v404_v1, %v423_v11  ;;  %v414_v15 = vld [vmem:[%s361_s11] sm:$0xff]  ;;  %s401_s27 = scalar_lea.vmem %s779_s6, %s625_s15 }
  0x14   : > { %v442_v18 = vld [vmem:[%s381_s18] sm:$0x3] }
  0x15   : > { %v408_v5 = vsub.f32 %v406_v3, %v407_v4  ;;  %v427_v20 = vsub.f32 %v414_v15, %v420_v12  ;;  %v428_v21 = vsub.f32 %v415_v16, %v424_v13  ;;  %v456_v22 = vld [vmem:[%s391_s21] sm:$0xff]  ;;  %v447_v25 = vrot.slane %v442_v18, %v419_v10 }
  0x16   : > { %v451_v26 = vrot.slane %v442_v18, %v423_v11  ;;  %v457_v29 = vunpack.c.l.bf16 %v456_v22  ;;  %v458_v30 = vunpack.c.h.bf16 %v456_v22 }
  0x17   : > { %v409_v7 = vmax.f32 %v408_v5, 0.0 }
  0x19   : > { %v410_v8 = vadd.f32 1e-05, %v409_v7 }
  0x1b   : > { %656 = vrsqrt.f32 %v410_v8 }
  0x25   : > { %v657_v17 = vpop.eup %656 }
  0x26   : > { %v413_v19 = vmul.f32 %v657_v17, %v412_v14 }
  0x28   : > { %v433_v23 = vrot.slane %v413_v19, %v419_v10  ;;  %v437_v24 = vrot.slane %v413_v19, %v423_v11 }
  0x2a   : > { %v440_v27 = vmul.f32 %v433_v23, %v427_v20  ;;  %v441_v28 = vmul.f32 %v437_v24, %v428_v21 }
  0x2c   : > { %v454_v31 = vadd.f32 %v447_v25, %v440_v27  ;;  %v455_v32 = vadd.f32 %v451_v26, %v441_v28 }
  0x2e   : > { %v459_v33 = vadd.f32 %v457_v29, %v454_v31  ;;  %v460_v34 = vadd.f32 %v458_v30, %v455_v32 }
  0x30   : > { %v461_v35 = vmax.f32 %v459_v33, 0.0  ;;  %v462_v36 = vmax.f32 %v460_v34, 0.0 }
  0x32   : > { %v631_v37 = vpack.c.bf16 %v462_v36, %v461_v35 }
  0x34   : > { %471 = vst [vmem:[%s401_s27] sm:$0xff] %v631_v37 }
  0x35 PF: > { %s16_s23 = sadd.s32 1, %s680_s23   ;;  %s780_s21 = smov %s676_s22 }
  0x36   : > { %p13_p5 = scmp.ge.s32.totalorder %s16_s23, 4   ;;  %s781_s22 = smov %s783_s24 }
  0x38   :  { %15 = sbr.rel (!%p13_p5) target bundleno = 2 (0x2), region = 89 }

// kernel: resnet_ultra_forward.77
= control target key start
LH: loop header
LB: loop body
LE: loop exit
PB: predicated region body
PF: predicated region fallthrough
CT: control target
= control target key end

     0   :  { %s1671_s15 = smov 0   ;;  %s1673_s16 = smov 0   ;;  %s1990_s0 = inlined_call_operand.vmem [shape: bf16[8,4608], index: 0, kind: input, shape index: {}]   ;;  %s1991_s1 = inlined_call_operand.vmem [shape: bf16[4608,512], index: 1, kind: input, shape index: {}]   ;;  %s1992_s2 = inlined_call_operand.vmem [shape: f32[8,512], index: 2, kind: output, shape index: {0}]   ;;  %s1993_s3 = inlined_call_operand.vmem [shape: f32[1,512], index: 3, kind: output, shape index: {1}]   ;;  %s1994_s4 = inlined_call_operand.vmem [shape: f32[1,512], index: 4, kind: output, shape index: {2}]  }
   0x1   :  { %s1675_s17 = smov 0   ;;  %s1677_s18 = smov 0  }
   0x2   :  { %s1679_s19 = smov 0   ;;  %s1681_s20 = smov 0  }
   0x3   :  { %s1683_s21 = smov 0  }
   0x4 LB: > { %s27_s22 = sadd.s32 1, %s1633_s19  ;;  %s34_s23 = sadd.s32 1, %s1637_s20  ;;  %s1641_s21 = sphi %s1683_s21, %s15_s21   ;;  %s1637_s20 = sphi %s1681_s20, %s2000_s20   ;;  %s1633_s19 = sphi %s1679_s19, %s1999_s19   ;;  %s1629_s18 = sphi %s1677_s18, %s1998_s18   ;;  %s1625_s17 = sphi %s1675_s17, %s1997_s17   ;;  %s1621_s16 = sphi %s1673_s16, %s1996_s16   ;;  %s1617_s15 = sphi %s1671_s15, %s1995_s15  }
   0x5   : > { %p28_p0 = scmp.ge.s32.totalorder %s27_s22, 9  ;;  %p78_p1 = scmp.ne.s32.totalorder %s1621_s16, %s1617_s15 }
   0x6   : > { %p79_p2 = scmp.eq.s32.totalorder %s1641_s21, 0  ;;  %s71_s27 = sadd.s32 1, %s1621_s16 }
   0x7   : > { %s2002_s22 = smov (%p28_p0, %s27_s22), 0  ;;  %s2004_s23 = smov (!%p28_p0, %s34_s23), %s1637_s20 }
   0x8   : > { %p80_p3 = por %p79_p2, %p78_p1  ;;  %p36_p4 = scmp.ge.s32.totalorder %s2004_s23, 2 }
   0x9   : > { %s66_s24 = ssub.s32 %s1633_s19, %s2002_s22  ;;  %p1339_p6 = scmp.ge.s32.totalorder %s1641_s21, 18 }
   0xa   : > { %s2006_s23 = smov (%p36_p4, %s2004_s23), 0 }
   0xb   : > { %s67_s25 = ssub.s32 %s1637_s20, %s2006_s23  ;;  %184 = sbr.rel (%p1339_p6) target bundleno = 57 (0x39), region = 16 }
   0xc   : > { %s68_s26 = sor.u32 %s67_s25, %s66_s24 }
   0xd   : > { %p69_p5 = scmp.eq.s32.totalorder %s68_s26, 0 }
   0xf   : > { %s1722_s28 = scalar_select %p69_p5, %s1621_s16, %s71_s27  }
  0x12   : > { %200 = sbr.rel (!%p80_p3) target bundleno = 57 (0x39), region = 24  ;;  %s202_s29 = sand.u32 (%p80_p3), 1, %s1621_s16  }
  0x13   : > { %s1342_s30 = sshll.u32 (%p80_p3), %s1637_s20, 1  ;;  %s1340_s5 = sshll.u32 (%p80_p3), %s202_s29, 9 }
  0x14   : > { %s1426_s6 = sshll.u32 (%p80_p3), %s1633_s19, 8  ;;  %s1736_s12 = scalar_lea.vmem (%p80_p3), [#allocation3], %s1340_s5 }
  0x15   : > { %s208_s7 = sadd.s32 (%p80_p3), %s1426_s6, %s1342_s30 }
  0x16   : > { %s1344_s8 = sshll.u32 (%p80_p3), %s208_s7, 2 }
  0x17   : > { %s1731_s11 = scalar_lea.vmem (%p80_p3), %s1991_s1, %s1344_s8 }
  0x18   : > { %v364_v0 = vld [vmem:[%s1731_s11] sm:$0xff] (%p80_p3)  ;;  %v366_v1 = vld [vmem:[%s1731_s11 + $0x10] sm:$0xff] (%p80_p3) }
  0x19   : > { %v368_v2 = vld [vmem:[%s1731_s11 + $0x20] sm:$0xff]  ;;  %365 = vst [vmem:[%s1736_s12] sm:$0xff] %v364_v0  ;;  %367 = vst [vmem:[%s1736_s12 + $0x8] sm:$0xff] %v366_v1  ;;  %v370_v3 = vld [vmem:[%s1731_s11 + $0x30] sm:$0xff] }
  0x1a   : > { %369 = vst [vmem:[%s1736_s12 + $0x10] sm:$0xff] %v368_v2  ;;  %v372_v4 = vld [vmem:[%s1731_s11 + $0x40] sm:$0xff]  ;;  %v374_v5 = vld [vmem:[%s1731_s11 + $0x50] sm:$0xff]  ;;  %371 = vst [vmem:[%s1736_s12 + $0x18] sm:$0xff] %v370_v3 }
  0x1b   : > { %373 = vst [vmem:[%s1736_s12 + $0x20] sm:$0xff] %v372_v4  ;;  %375 = vst [vmem:[%s1736_s12 + $0x28] sm:$0xff] %v374_v5  ;;  %v376_v6 = vld [vmem:[%s1731_s11 + $0x60] sm:$0xff]  ;;  %v378_v7 = vld [vmem:[%s1731_s11 + $0x70] sm:$0xff] }
  0x1c   : > { %v380_v8 = vld [vmem:[%s1731_s11 + $0x80] sm:$0xff]  ;;  %377 = vst [vmem:[%s1736_s12 + $0x30] sm:$0xff] %v376_v6  ;;  %379 = vst [vmem:[%s1736_s12 + $0x38] sm:$0xff] %v378_v7  ;;  %v382_v9 = vld [vmem:[%s1731_s11 + $0x90] sm:$0xff] }
  0x1d   : > { %381 = vst [vmem:[%s1736_s12 + $0x40] sm:$0xff] %v380_v8  ;;  %v384_v10 = vld [vmem:[%s1731_s11 + $0xa0] sm:$0xff]  ;;  %v386_v11 = vld [vmem:[%s1731_s11 + $0xb0] sm:$0xff]  ;;  %383 = vst [vmem:[%s1736_s12 + $0x48] sm:$0xff] %v382_v9 }
  0x1e   : > { %385 = vst [vmem:[%s1736_s12 + $0x50] sm:$0xff] %v384_v10  ;;  %387 = vst [vmem:[%s1736_s12 + $0x58] sm:$0xff] %v386_v11  ;;  %v388_v12 = vld [vmem:[%s1731_s11 + $0xc0] sm:$0xff]  ;;  %v390_v13 = vld [vmem:[%s1731_s11 + $0xd0] sm:$0xff] }
  0x1f   : > { %v392_v14 = vld [vmem:[%s1731_s11 + $0xe0] sm:$0xff]  ;;  %389 = vst [vmem:[%s1736_s12 + $0x60] sm:$0xff] %v388_v12  ;;  %391 = vst [vmem:[%s1736_s12 + $0x68] sm:$0xff] %v390_v13  ;;  %v394_v15 = vld [vmem:[%s1731_s11 + $0xf0] sm:$0xff] }
  0x20   : > { %393 = vst [vmem:[%s1736_s12 + $0x70] sm:$0xff] %v392_v14  ;;  %v396_v16 = vld [vmem:[%s1731_s11 + $0x100] sm:$0xff]  ;;  %v398_v17 = vld [vmem:[%s1731_s11 + $0x110] sm:$0xff]  ;;  %395 = vst [vmem:[%s1736_s12 + $0x78] sm:$0xff] %v394_v15 }
  0x21   : > { %397 = vst [vmem:[%s1736_s12 + $0x80] sm:$0xff] %v396_v16  ;;  %399 = vst [vmem:[%s1736_s12 + $0x88] sm:$0xff] %v398_v17  ;;  %v400_v18 = vld [vmem:[%s1731_s11 + $0x120] sm:$0xff]  ;;  %v402_v19 = vld [vmem:[%s1731_s11 + $0x130] sm:$0xff] }
  0x22   : > { %v404_v20 = vld [vmem:[%s1731_s11 + $0x140] sm:$0xff]  ;;  %401 = vst [vmem:[%s1736_s12 + $0x90] sm:$0xff] %v400_v18  ;;  %403 = vst [vmem:[%s1736_s12 + $0x98] sm:$0xff] %v402_v19  ;;  %v406_v21 = vld [vmem:[%s1731_s11 + $0x150] sm:$0xff] }
  0x23   : > { %405 = vst [vmem:[%s1736_s12 + $0xa0] sm:$0xff] %v404_v20  ;;  %v408_v22 = vld [vmem:[%s1731_s11 + $0x160] sm:$0xff]  ;;  %v410_v23 = vld [vmem:[%s1731_s11 + $0x170] sm:$0xff]  ;;  %407 = vst [vmem:[%s1736_s12 + $0xa8] sm:$0xff] %v406_v21 }
  0x24   : > { %409 = vst [vmem:[%s1736_s12 + $0xb0] sm:$0xff] %v408_v22  ;;  %411 = vst [vmem:[%s1736_s12 + $0xb8] sm:$0xff] %v410_v23  ;;  %v412_v24 = vld [vmem:[%s1731_s11 + $0x180] sm:$0xff]  ;;  %v414_v25 = vld [vmem:[%s1731_s11 + $0x190] sm:$0xff] }
  0x25   : > { %v416_v26 = vld [vmem:[%s1731_s11 + $0x1a0] sm:$0xff]  ;;  %413 = vst [vmem:[%s1736_s12 + $0xc0] sm:$0xff] %v412_v24  ;;  %415 = vst [vmem:[%s1736_s12 + $0xc8] sm:$0xff] %v414_v25  ;;  %v418_v27 = vld [vmem:[%s1731_s11 + $0x1b0] sm:$0xff] }
  0x26   : > { %417 = vst [vmem:[%s1736_s12 + $0xd0] sm:$0xff] %v416_v26  ;;  %v420_v28 = vld [vmem:[%s1731_s11 + $0x1c0] sm:$0xff]  ;;  %v422_v29 = vld [vmem:[%s1731_s11 + $0x1d0] sm:$0xff]  ;;  %419 = vst [vmem:[%s1736_s12 + $0xd8] sm:$0xff] %v418_v27 }
  0x27   : > { %421 = vst [vmem:[%s1736_s12 + $0xe0] sm:$0xff] %v420_v28  ;;  %423 = vst [vmem:[%s1736_s12 + $0xe8] sm:$0xff] %v422_v29  ;;  %v424_v30 = vld [vmem:[%s1731_s11 + $0x1e0] sm:$0xff]  ;;  %v426_v31 = vld [vmem:[%s1731_s11 + $0x1f0] sm:$0xff] }
  0x28   : > { %v428_v32 = vld [vmem:[%s1731_s11 + $0x200] sm:$0xff]  ;;  %425 = vst [vmem:[%s1736_s12 + $0xf0] sm:$0xff] %v424_v30  ;;  %427 = vst [vmem:[%s1736_s12 + $0xf8] sm:$0xff] %v426_v31  ;;  %v430_v33 = vld [vmem:[%s1731_s11 + $0x210] sm:$0xff] }
  0x29   : > { %429 = vst [vmem:[%s1736_s12 + $0x100] sm:$0xff] %v428_v32  ;;  %v432_v34 = vld [vmem:[%s1731_s11 + $0x220] sm:$0xff]  ;;  %v434_v35 = vld [vmem:[%s1731_s11 + $0x230] sm:$0xff]  ;;  %431 = vst [vmem:[%s1736_s12 + $0x108] sm:$0xff] %v430_v33 }
  0x2a   : > { %433 = vst [vmem:[%s1736_s12 + $0x110] sm:$0xff] %v432_v34  ;;  %435 = vst [vmem:[%s1736_s12 + $0x118] sm:$0xff] %v434_v35  ;;  %v436_v36 = vld [vmem:[%s1731_s11 + $0x240] sm:$0xff]  ;;  %v438_v37 = vld [vmem:[%s1731_s11 + $0x250] sm:$0xff] }
  0x2b   : > { %v440_v38 = vld [vmem:[%s1731_s11 + $0x260] sm:$0xff]  ;;  %437 = vst [vmem:[%s1736_s12 + $0x120] sm:$0xff] %v436_v36  ;;  %439 = vst [vmem:[%s1736_s12 + $0x128] sm:$0xff] %v438_v37  ;;  %v442_v39 = vld [vmem:[%s1731_s11 + $0x270] sm:$0xff] }
  0x2c   : > { %441 = vst [vmem:[%s1736_s12 + $0x130] sm:$0xff] %v440_v38  ;;  %v444_v40 = vld [vmem:[%s1731_s11 + $0x280] sm:$0xff]  ;;  %v446_v41 = vld [vmem:[%s1731_s11 + $0x290] sm:$0xff]  ;;  %443 = vst [vmem:[%s1736_s12 + $0x138] sm:$0xff] %v442_v39 }
  0x2d   : > { %445 = vst [vmem:[%s1736_s12 + $0x140] sm:$0xff] %v444_v40  ;;  %447 = vst [vmem:[%s1736_s12 + $0x148] sm:$0xff] %v446_v41  ;;  %v448_v42 = vld [vmem:[%s1731_s11 + $0x2a0] sm:$0xff]  ;;  %v450_v43 = vld [vmem:[%s1731_s11 + $0x2b0] sm:$0xff] }
  0x2e   : > { %v452_v44 = vld [vmem:[%s1731_s11 + $0x2c0] sm:$0xff]  ;;  %449 = vst [vmem:[%s1736_s12 + $0x150] sm:$0xff] %v448_v42  ;;  %451 = vst [vmem:[%s1736_s12 + $0x158] sm:$0xff] %v450_v43  ;;  %v454_v45 = vld [vmem:[%s1731_s11 + $0x2d0] sm:$0xff] }
  0x2f   : > { %453 = vst [vmem:[%s1736_s12 + $0x160] sm:$0xff] %v452_v44  ;;  %v456_v46 = vld [vmem:[%s1731_s11 + $0x2e0] sm:$0xff]  ;;  %v458_v47 = vld [vmem:[%s1731_s11 + $0x2f0] sm:$0xff]  ;;  %455 = vst [vmem:[%s1736_s12 + $0x168] sm:$0xff] %v454_v45 }
  0x30   : > { %457 = vst [vmem:[%s1736_s12 + $0x170] sm:$0xff] %v456_v46  ;;  %459 = vst [vmem:[%s1736_s12 + $0x178] sm:$0xff] %v458_v47  ;;  %v460_v48 = vld [vmem:[%s1731_s11 + $0x300] sm:$0xff]  ;;  %v462_v49 = vld [vmem:[%s1731_s11 + $0x310] sm:$0xff] }
  0x31   : > { %v464_v50 = vld [vmem:[%s1731_s11 + $0x320] sm:$0xff]  ;;  %461 = vst [vmem:[%s1736_s12 + $0x180] sm:$0xff] %v460_v48  ;;  %463 = vst [vmem:[%s1736_s12 + $0x188] sm:$0xff] %v462_v49  ;;  %v466_v51 = vld [vmem:[%s1731_s11 + $0x330] sm:$0xff] }
  0x32   : > { %465 = vst [vmem:[%s1736_s12 + $0x190] sm:$0xff] %v464_v50  ;;  %v468_v52 = vld [vmem:[%s1731_s11 + $0x340] sm:$0xff]  ;;  %v470_v53 = vld [vmem:[%s1731_s11 + $0x350] sm:$0xff]  ;;  %467 = vst [vmem:[%s1736_s12 + $0x198] sm:$0xff] %v466_v51 }
  0x33   : > { %469 = vst [vmem:[%s1736_s12 + $0x1a0] sm:$0xff] %v468_v52  ;;  %471 = vst [vmem:[%s1736_s12 + $0x1a8] sm:$0xff] %v470_v53  ;;  %v472_v54 = vld [vmem:[%s1731_s11 + $0x360] sm:$0xff]  ;;  %v474_v55 = vld [vmem:[%s1731_s11 + $0x370] sm:$0xff] }
  0x34   : > { %v476_v56 = vld [vmem:[%s1731_s11 + $0x380] sm:$0xff]  ;;  %473 = vst [vmem:[%s1736_s12 + $0x1b0] sm:$0xff] %v472_v54  ;;  %475 = vst [vmem:[%s1736_s12 + $0x1b8] sm:$0xff] %v474_v55  ;;  %v478_v57 = vld [vmem:[%s1731_s11 + $0x390] sm:$0xff] }
  0x35   : > { %477 = vst [vmem:[%s1736_s12 + $0x1c0] sm:$0xff] %v476_v56  ;;  %v480_v58 = vld [vmem:[%s1731_s11 + $0x3a0] sm:$0xff]  ;;  %v482_v59 = vld [vmem:[%s1731_s11 + $0x3b0] sm:$0xff]  ;;  %479 = vst [vmem:[%s1736_s12 + $0x1c8] sm:$0xff] %v478_v57 }
  0x36   : > { %481 = vst [vmem:[%s1736_s12 + $0x1d0] sm:$0xff] %v480_v58  ;;  %483 = vst [vmem:[%s1736_s12 + $0x1d8] sm:$0xff] %v482_v59  ;;  %v484_v60 = vld [vmem:[%s1731_s11 + $0x3c0] sm:$0xff]  ;;  %v486_v61 = vld [vmem:[%s1731_s11 + $0x3d0] sm:$0xff] }
  0x37   : > { %v488_v62 = vld [vmem:[%s1731_s11 + $0x3e0] sm:$0xff]  ;;  %485 = vst [vmem:[%s1736_s12 + $0x1e0] sm:$0xff] %v484_v60  ;;  %487 = vst [vmem:[%s1736_s12 + $0x1e8] sm:$0xff] %v486_v61  ;;  %v490_v63 = vld [vmem:[%s1731_s11 + $0x3f0] sm:$0xff] }
  0x38   : > { %489 = vst [vmem:[%s1736_s12 + $0x1f0] sm:$0xff] %v488_v62  ;;  %491 = vst [vmem:[%s1736_s12 + $0x1f8] sm:$0xff] %v490_v63 }
  0x39 PF: > { %p1345_p7 = scmp.ge.s32.totalorder %s1641_s21, 1  ;;  %p496_p8 = scmp.lt.s32.totalorder %s1641_s21, 19 }
  0x3b   : > { %p497_p9 = pnand %p1345_p7, %p496_p8 }
  0x3c   : > { %s503_s13 = sand.u32 (!%p497_p9), 1, %s1617_s15   ;;  %s1347_s14 = sshll.u32 (!%p497_p9), %s1625_s17, 2 }
  0x3d   : > { %500 = sbr.rel (%p497_p9) target bundleno = 400 (0x190), region = 62  ;;  %s1346_s24 = sshll.u32 (!%p497_p9), %s503_s13, 9 }
  0x3e   : > { %p552_p10 = scmp.lt.s32.totalorder (!%p497_p9), %s1347_s14, 35  ;;  %s1349_s25 = sshll.u32 (!%p497_p9), %s1629_s18, 1 }
  0x3f   : > { %p564_p11 = scmp.lt.s32.totalorder (!%p497_p9), %s1349_s25, 3  ;;  %p581_p12 = scmp.eq.s32.totalorder (!%p497_p9), %s1625_s17, 0 }
  0x40   : > { %s1889_s13 = scalar_lea.vmem (!%p497_p9), [#allocation3], %s1346_s24  ;;  %p1353_p13 = scmp.ne.s32.totalorder (!%p497_p9), %s1625_s17, 0 }
  0x44   : > { %s2008_s14 = smov (!%p552_p10, %s1347_s14), 35  ;;  %s2010_s25 = smov (!%p564_p11, %s1349_s25), 3 }
  0x45   : > { %s1348_s26 = sshll.u32 %s2008_s14, 2  ;;  %s1350_s5 = sshll.u32 %s2010_s25, 3  ;;  %v1643_v0 = vmov (!%p1353_p13), 0.0  }
  0x46   : > { %s1872_s30 = scalar_lea.vmem %s1990_s0, %s1348_s26  ;;  %s1877_s8 = scalar_lea.vmem %s1993_s3, %s2010_s25  ;;  %585 = vst [vmem:[#allocation2] sm:$0xff] (!%p1353_p13), %v1643_v0  ;;  %586 = vst [vmem:[#allocation2 + $0x8] sm:$0xff] (!%p1353_p13), %v1643_v0 }
  0x47   : > { %s1882_s18 = scalar_lea.vmem %s1992_s2, %s1350_s5  ;;  %s1887_s12 = scalar_lea.vmem %s1994_s4, %s2010_s25 }
  0x48   : > { %584 = sbr.rel (%p1353_p13) target bundleno = 79 (0x4f), region = 70 }
  0x4f PF: > { %591 = sbr.rel (!%p581_p12) target bundleno = 86 (0x56), region = 74  ;;  %v592_v1 = vlaneseq (%p581_p12)  ;;  %v1644_v2 = vmov (%p581_p12), 0.0  }
  0x51   : > { %vm594_vm0 = vcmp.lt.s32.totalorder (%p581_p12), %v592_v1, 256 }
  0x52   : > { %596 = vst.msk [vmem:[%s1877_s8] sm:$0x3] (%p581_p12), %vm594_vm0, %v1644_v2  ;;  %597 = vst.msk [vmem:[%s1887_s12] sm:$0x3] (%p581_p12), %vm594_vm0, %v1644_v2 }
  0x56 PF: > { %v1487_v3 = vld [vmem:[%s1889_s13 + $0x4] ss:$8 sps:$4 sm:$0xff]   ;;  %v1491_v5 = vld [vmem:[%s1889_s13] ss:$8 sps:$4 sm:$0xff]   ;;  %v1493_v7 = vld [vmem:[%s1889_s13 + $0x14] ss:$8 sps:$4 sm:$0xff]  }
  0x57   : > { %v1489_v4 = vld [vmem:[%s1889_s13 + $0x104] ss:$8 sps:$4 sm:$0xff]   ;;  %1000 = vmatprep.subr.bf16.mxu0 %v1487_v3  ;;  %v1492_v6 = vld [vmem:[%s1889_s13 + $0x100] ss:$8 sps:$4 sm:$0xff]   ;;  %v1495_v8 = vld [vmem:[%s1889_s13 + $0x114] ss:$8 sps:$4 sm:$0xff]  }
  0x58   : > { %1041 = vmatprep.subr.bf16.mxu1 %v1489_v4  ;;  %1001 = vmatpush1.bf16.msra.mxu0 %v1491_v5  ;;  %v1497_v9 = vld [vmem:[%s1889_s13 + $0x10] ss:$8 sps:$4 sm:$0xff]   ;;  %v1499_v11 = vld [vmem:[%s1889_s13 + $0x24] ss:$8 sps:$4 sm:$0xff]   ;;  %v1503_v13 = vld [vmem:[%s1889_s13 + $0x20] ss:$8 sps:$4 sm:$0xff]  }
  0x59   : > { %1042 = vmatpush1.bf16.msra.mxu1 %v1492_v6  ;;  %1002 = vmatprep.subr.bf16.mxu0 %v1493_v7  ;;  %v1498_v10 = vld [vmem:[%s1889_s13 + $0x110] ss:$8 sps:$4 sm:$0xff]   ;;  %v1501_v12 = vld [vmem:[%s1889_s13 + $0x124] ss:$8 sps:$4 sm:$0xff]   ;;  %v1504_v14 = vld [vmem:[%s1889_s13 + $0x120] ss:$8 sps:$4 sm:$0xff]  }
  0x5a   : > { %1043 = vmatprep.subr.bf16.mxu1 %v1495_v8  ;;  %v1505_v15 = vld [vmem:[%s1889_s13 + $0x34] ss:$8 sps:$4 sm:$0xff]   ;;  %v1509_v17 = vld [vmem:[%s1889_s13 + $0x30] ss:$8 sps:$4 sm:$0xff]   ;;  %v1511_v19 = vld [vmem:[%s1889_s13 + $0x44] ss:$8 sps:$4 sm:$0xff]  }
  0x5b   : > { %v1507_v16 = vld [vmem:[%s1889_s13 + $0x134] ss:$8 sps:$4 sm:$0xff]   ;;  %v1510_v18 = vld [vmem:[%s1889_s13 + $0x130] ss:$8 sps:$4 sm:$0xff]   ;;  %v1513_v20 = vld [vmem:[%s1889_s13 + $0x144] ss:$8 sps:$4 sm:$0xff]  }
  0x5c   : > { %1003 = vmatpush1.bf16.msra.mxu0 %v1497_v9  ;;  %v1515_v21 = vld [vmem:[%s1889_s13 + $0x40] ss:$8 sps:$4 sm:$0xff]   ;;  %v1517_v23 = vld [vmem:[%s1889_s13 + $0x54] ss:$8 sps:$4 sm:$0xff]   ;;  %v1521_v25 = vld [vmem:[%s1889_s13 + $0x50] ss:$8 sps:$4 sm:$0xff]  }
  0x5d   : > { %1044 = vmatpush1.bf16.msra.mxu1 %v1498_v10  ;;  %1004 = vmatprep.subr.bf16.mxu0 %v1499_v11  ;;  %v1516_v22 = vld [vmem:[%s1889_s13 + $0x140] ss:$8 sps:$4 sm:$0xff]   ;;  %v1519_v24 = vld [vmem:[%s1889_s13 + $0x154] ss:$8 sps:$4 sm:$0xff]   ;;  %v1522_v26 = vld [vmem:[%s1889_s13 + $0x150] ss:$8 sps:$4 sm:$0xff]  }
  0x5e   : > { %1045 = vmatprep.subr.bf16.mxu1 %v1501_v12  ;;  %v1523_v27 = vld [vmem:[%s1889_s13 + $0x64] ss:$8 sps:$4 sm:$0xff]   ;;  %v1527_v29 = vld [vmem:[%s1889_s13 + $0x60] ss:$8 sps:$4 sm:$0xff]   ;;  %v1529_v31 = vld [vmem:[%s1889_s13 + $0x74] ss:$8 sps:$4 sm:$0xff]  }
  0x5f   : > { %v1525_v28 = vld [vmem:[%s1889_s13 + $0x164] ss:$8 sps:$4 sm:$0xff]   ;;  %v1528_v30 = vld [vmem:[%s1889_s13 + $0x160] ss:$8 sps:$4 sm:$0xff]   ;;  %v1531_v32 = vld [vmem:[%s1889_s13 + $0x174] ss:$8 sps:$4 sm:$0xff]  }
  0x60   : > { %1005 = vmatpush1.bf16.msra.mxu0 %v1503_v13  ;;  %v1533_v33 = vld [vmem:[%s1889_s13 + $0x70] ss:$8 sps:$4 sm:$0xff]   ;;  %v1535_v35 = vld [vmem:[%s1889_s13 + $0x84] ss:$8 sps:$4 sm:$0xff]   ;;  %v1539_v37 = vld [vmem:[%s1889_s13 + $0x80] ss:$8 sps:$4 sm:$0xff]  }
  0x61   : > { %1046 = vmatpush1.bf16.msra.mxu1 %v1504_v14  ;;  %1006 = vmatprep.subr.bf16.mxu0 %v1505_v15  ;;  %v1534_v34 = vld [vmem:[%s1889_s13 + $0x170] ss:$8 sps:$4 sm:$0xff]   ;;  %v1537_v36 = vld [vmem:[%s1889_s13 + $0x184] ss:$8 sps:$4 sm:$0xff]   ;;  %v1540_v38 = vld [vmem:[%s1889_s13 + $0x180] ss:$8 sps:$4 sm:$0xff]  }
  0x62   : > { %1047 = vmatprep.subr.bf16.mxu1 %v1507_v16  ;;  %v1541_v39 = vld [vmem:[%s1889_s13 + $0x94] ss:$8 sps:$4 sm:$0xff]   ;;  %v1545_v41 = vld [vmem:[%s1889_s13 + $0x90] ss:$8 sps:$4 sm:$0xff]   ;;  %v1547_v43 = vld [vmem:[%s1889_s13 + $0xa4] ss:$8 sps:$4 sm:$0xff]  }
  0x63   : > { %v1543_v40 = vld [vmem:[%s1889_s13 + $0x194] ss:$8 sps:$4 sm:$0xff]   ;;  %v1546_v42 = vld [vmem:[%s1889_s13 + $0x190] ss:$8 sps:$4 sm:$0xff]   ;;  %v1549_v44 = vld [vmem:[%s1889_s13 + $0x1a4] ss:$8 sps:$4 sm:$0xff]  }
  0x64   : > { %1007 = vmatpush1.bf16.msra.mxu0 %v1509_v17  ;;  %v1551_v45 = vld [vmem:[%s1889_s13 + $0xa0] ss:$8 sps:$4 sm:$0xff]   ;;  %v1553_v47 = vld [vmem:[%s1889_s13 + $0xb4] ss:$8 sps:$4 sm:$0xff]   ;;  %v1557_v52 = vld [vmem:[%s1889_s13 + $0xb0] ss:$8 sps:$4 sm:$0xff]  }
  0x65   : > { %1048 = vmatpush1.bf16.msra.mxu1 %v1510_v18  ;;  %1008 = vmatprep.subr.bf16.mxu0 %v1511_v19  ;;  %v1552_v46 = vld [vmem:[%s1889_s13 + $0x1a0] ss:$8 sps:$4 sm:$0xff]   ;;  %v1555_v48 = vld [vmem:[%s1889_s13 + $0x1b4] ss:$8 sps:$4 sm:$0xff]   ;;  %v1558_v53 = vld [vmem:[%s1889_s13 + $0x1b0] ss:$8 sps:$4 sm:$0xff]  }
  0x66   : > { %1049 = vmatprep.subr.bf16.mxu1 %v1513_v20  ;;  %v600_v49 = vld [vmem:[%s1872_s30] sm:$0xff]  ;;  %v601_v51 = vld [vmem:[%s1872_s30 + $0x8] sm:$0xff]  ;;  %v1559_v55 = vld [vmem:[%s1889_s13 + $0xc4] ss:$8 sps:$4 sm:$0xff]   ;;  %p1423_p0 = scmp.ne.s32.totalorder %s1625_s17, 8 }
  0x67   : > { %v1356_v50 = vcombine.high %v600_v49, %v600_v49  ;;  %v1358_v54 = vcombine.high %v601_v51, %v601_v51  ;;  %v1561_v56 = vld [vmem:[%s1889_s13 + $0x1c4] ss:$8 sps:$4 sm:$0xff]   ;;  %v1563_v57 = vld [vmem:[%s1889_s13 + $0xc0] ss:$8 sps:$4 sm:$0xff]   ;;  %v1565_v59 = vld [vmem:[%s1889_s13 + $0xd4] ss:$8 sps:$4 sm:$0xff]   ;;  %v1355_v7 = vcombine.low %v600_v49, %v600_v49  ;;  %v1357_v8 = vcombine.low %v601_v51, %v601_v51 }
  0x68   : > { %1009 = vmatpush1.bf16.msra.mxu0 %v1515_v21  ;;  %v1564_v58 = vld [vmem:[%s1889_s13 + $0x1c0] ss:$8 sps:$4 sm:$0xff]   ;;  %v1567_v60 = vld [vmem:[%s1889_s13 + $0x1d4] ss:$8 sps:$4 sm:$0xff]   ;;  %v1569_v61 = vld [vmem:[%s1889_s13 + $0xd0] ss:$8 sps:$4 sm:$0xff]  }
  0x69   : > { %1050 = vmatpush1.bf16.msra.mxu1 %v1516_v22  ;;  %1010 = vmatprep.subr.bf16.mxu0 %v1517_v23  ;;  %v1570_v62 = vld [vmem:[%s1889_s13 + $0x1d0] ss:$8 sps:$4 sm:$0xff]   ;;  %v1571_v63 = vld [vmem:[%s1889_s13 + $0xe4] ss:$8 sps:$4 sm:$0xff]   ;;  %v1575_v1 = vld [vmem:[%s1889_s13 + $0xe0] ss:$8 sps:$4 sm:$0xff]  }
  0x6a   : > { %1051 = vmatprep.subr.bf16.mxu1 %v1519_v24  ;;  %1032 = vmatprep.mubr.bf16.mxu0 %v1356_v50  ;;  %v1573_v0 = vld [vmem:[%s1889_s13 + $0x1e4] ss:$8 sps:$4 sm:$0xff]   ;;  %v1576_v2 = vld [vmem:[%s1889_s13 + $0x1e0] ss:$8 sps:$4 sm:$0xff]   ;;  %v1577_v3 = vld [vmem:[%s1889_s13 + $0xf4] ss:$8 sps:$4 sm:$0xff]  }
  0x6b   : > { %1073 = vmatprep.mubr.bf16.mxu1 %v1358_v54  ;;  %v1579_v4 = vld [vmem:[%s1889_s13 + $0x1f4] ss:$8 sps:$4 sm:$0xff]   ;;  %v1581_v5 = vld [vmem:[%s1889_s13 + $0xf0] ss:$8 sps:$4 sm:$0xff]  }
  0x6c   : > { %1011 = vmatpush1.bf16.msra.mxu0 %v1521_v25  ;;  %v1582_v6 = vld [vmem:[%s1889_s13 + $0x1f0] ss:$8 sps:$4 sm:$0xff]  }
  0x6d   : > { %1052 = vmatpush1.bf16.msra.mxu1 %v1522_v26  ;;  %1012 = vmatprep.subr.bf16.mxu0 %v1523_v27  ;;  %v598_v10 = vld [vmem:[#allocation2] sm:$0xff]  ;;  %v599_v14 = vld [vmem:[#allocation2 + $0x8] sm:$0xff] }
  0x6e   : > { %1053 = vmatprep.subr.bf16.mxu1 %v1525_v28 }
  0x70   : > { %1013 = vmatpush1.bf16.msra.mxu0 %v1527_v29  ;;  %v1645_v29 = vmov (!%p1423_p0), 1966171168  }
  0x71   : > { %1054 = vmatpush1.bf16.msra.mxu1 %v1528_v30  ;;  %1014 = vmatprep.subr.bf16.mxu0 %v1529_v31  ;;  %v1111_v30 = vunpack.c.l.s4 (!%p1423_p0), %v1645_v29  ;;  %v1113_v31 = vlaneseq (!%p1423_p0) }
  0x72   : > { %1055 = vmatprep.subr.bf16.mxu1 %v1531_v32 }
  0x73   : > { %vm1128_vm1 = vcmp.lt.s32.totalorder (!%p1423_p0), %v1113_v31, 256 }
  0x74   : > { %1015 = vmatpush1.bf16.msra.mxu0 %v1533_v33 }
  0x75   : > { %1056 = vmatpush1.bf16.msra.mxu1 %v1534_v34  ;;  %1016 = vmatprep.subr.bf16.mxu0 %v1535_v35 }
  0x76   : > { %1057 = vmatprep.subr.bf16.mxu1 %v1537_v36 }
  0x78   : > { %1017 = vmatpush1.bf16.msra.mxu0 %v1539_v37 }
  0x79   : > { %1058 = vmatpush1.bf16.msra.mxu1 %v1540_v38  ;;  %1018 = vmatprep.subr.bf16.mxu0 %v1541_v39 }
  0x7a   : > { %1059 = vmatprep.subr.bf16.mxu1 %v1543_v40  ;;  %v1112_v40 = vunpack.c.0.s8 (!%p1423_p0), %v1111_v30 }
  0x7c   : > { %1019 = vmatpush1.bf16.msra.mxu0 %v1545_v41  ;;  %v1114_v41 = vshrl.u32 (!%p1423_p0), %v1113_v31, 7 }
  0x7d   : > { %1060 = vmatpush1.bf16.msra.mxu1 %v1546_v42  ;;  %1020 = vmatprep.subr.bf16.mxu0 %v1547_v43 }
  0x7e   : > { %1061 = vmatprep.subr.bf16.mxu1 %v1549_v44  ;;  %v1115_v50 = vsub.s32 (!%p1423_p0), %v1112_v40, %v1114_v41 }
  0x80   : > { %1021 = vmatpush1.bf16.msra.mxu0 %v1551_v45 }
  0x81   : > { %1062 = vmatpush1.bf16.msra.mxu1 %v1552_v46  ;;  %1022 = vmatprep.subr.bf16.mxu0 %v1553_v47 }
  0x82   : > { %1063 = vmatprep.subr.bf16.mxu1 %v1555_v48 }
  0x84   : > { %1023 = vmatpush1.bf16.msra.mxu0 %v1557_v52 }
  0x85   : > { %1064 = vmatpush1.bf16.msra.mxu1 %v1558_v53  ;;  %1024 = vmatprep.subr.bf16.mxu0 %v1559_v55 }
  0x86   : > { %1065 = vmatprep.subr.bf16.mxu1 %v1561_v56 }
  0x88   : > { %1025 = vmatpush1.bf16.msra.mxu0 %v1563_v57 }
  0x89   : > { %1066 = vmatpush1.bf16.msra.mxu1 %v1564_v58  ;;  %1026 = vmatprep.subr.bf16.mxu0 %v1565_v59 }
  0x8a   : > { %1067 = vmatprep.subr.bf16.mxu1 %v1567_v60  ;;  %v1094_v60 = vld [vmem:[%s1877_s8] sm:$0x3] (!%p1423_p0) }
  0x8c   : > { %1027 = vmatpush1.bf16.msra.mxu0 %v1569_v61 }
  0x8d   : > { %1068 = vmatpush1.bf16.msra.mxu1 %v1570_v62  ;;  %1028 = vmatprep.subr.bf16.mxu0 %v1571_v63  ;;  %v1131_v63 = vld [vmem:[%s1887_s12] sm:$0x3] (!%p1423_p0) }
  0x8e   : > { %1069 = vmatprep.subr.bf16.mxu1 %v1573_v0 }
  0x90   : > { %1029 = vmatpush1.bf16.msra.mxu0 %v1575_v1 }
  0x91   : > { %1070 = vmatpush1.bf16.msra.mxu1 %v1576_v2  ;;  %1030 = vmatprep.subr.bf16.mxu0 %v1577_v3 }
  0x92   : > { %1071 = vmatprep.subr.bf16.mxu1 %v1579_v4 }
  0x94   : > { %1031 = vmatpush1.bf16.msra.mxu0 %v1581_v5 }
  0x95   : > { %1072 = vmatpush1.bf16.msra.mxu1 %v1582_v6 }
  0x97   : > { %1033 = vmatmul.mubr.bf16.vlgmr.msra.gmra.mrb[0].mxu0 %v1355_v7 }
  0x98   : > { %1074 = vmatmul.mubr.bf16.vlgmr.msra.gmra.mrb[0].mxu1 %v1357_v8 }
 0x16a   : > { %v1034_v9 = vpop.f32.mrb[0].mxu0 }
 0x16b   : > { %v1075_v11 = vpop.f32.mrb[0].mxu1  ;;  %v1036_v13 = vpop.f32.mrb[1].mxu0  ;;  %1089 = sbr.rel (%p1423_p0) target bundleno = 400 (0x190), region = 78 }
 0x16c   : > { %v1076_v12 = vadd.f32 %v1075_v11, %v1034_v9  ;;  %v1077_v15 = vpop.f32.mrb[1].mxu1  ;;  %v1038_v17 = vpop.f32.mrb[2].mxu0 }
 0x16d   : > { %v1078_v16 = vadd.f32 %v1077_v15, %v1036_v13  ;;  %v1079_v18 = vpop.f32.mrb[2].mxu1  ;;  %v1039_v20 = vpop.f32.mrb[3].mxu0 }
 0x16e   : > { %v1082_v19 = vadd.f32 %v1076_v12, %v598_v10  ;;  %v1080_v21 = vpop.f32.mrb[3].mxu1 }
 0x16f   : > { %v1083_v22 = vadd.f32 %v1078_v16, %v599_v14 }
 0x170   : > { %1084 = vst [vmem:[#allocation2] sm:$0xff] %v1082_v19 }
 0x171   : > { %1085 = vst [vmem:[#allocation2 + $0x8] sm:$0xff] %v1083_v22 }
 0x177   : > { %v1090_v23 = vld [vmem:[#allocation2] sm:$0xff] }
 0x178   : > { %v1091_v24 = vld [vmem:[#allocation2 + $0x8] sm:$0xff]  ;;  %1092 = vst [vmem:[%s1882_s18] sm:$0xff] %v1090_v23  ;;  %v1095_v25 = vrot.slane %v1090_v23, 4  ;;  %v1132_v26 = vmul.f32 %v1090_v23, %v1090_v23 }
 0x179   : > { %v1101_v27 = vrot.slane %v1091_v24, 4  ;;  %v1133_v28 = vmul.f32 %v1091_v24, %v1091_v24  ;;  %1093 = vst [vmem:[%s1882_s18 + $0x8] sm:$0xff] %v1091_v24 }
 0x17a   : > { %v1096_v32 = vadd.f32 %v1095_v25, %v1090_v23  ;;  %v1134_v33 = vrot.slane %v1132_v26, 4 }
 0x17b   : > { %v1102_v34 = vadd.f32 %v1101_v27, %v1091_v24  ;;  %v1140_v35 = vrot.slane %v1133_v28, 4 }
 0x17c   : > { %v1097_v36 = vrot.slane %v1096_v32, 2  ;;  %v1135_v37 = vadd.f32 %v1134_v33, %v1132_v26 }
 0x17d   : > { %v1103_v38 = vrot.slane %v1102_v34, 2  ;;  %v1141_v39 = vadd.f32 %v1140_v35, %v1133_v28 }
 0x17e   : > { %v1098_v42 = vadd.f32 %v1097_v36, %v1096_v32  ;;  %v1136_v43 = vrot.slane %v1135_v37, 2 }
 0x17f   : > { %v1104_v44 = vadd.f32 %v1103_v38, %v1102_v34  ;;  %v1142_v45 = vrot.slane %v1141_v39, 2 }
 0x180   : > { %v1099_v46 = vrot.slane %v1098_v42, 1  ;;  %v1137_v47 = vadd.f32 %v1136_v43, %v1135_v37 }
 0x181   : > { %v1105_v48 = vrot.slane %v1104_v44, 1  ;;  %v1143_v49 = vadd.f32 %v1142_v45, %v1141_v39 }
 0x182   : > { %v1100_v51 = vadd.f32 %v1099_v46, %v1098_v42  ;;  %v1138_v53 = vrot.slane %v1137_v47, 1 }
 0x183   : > { %v1106_v52 = vadd.f32 %v1105_v48, %v1104_v44  ;;  %v1144_v54 = vrot.slane %v1143_v49, 1 }
 0x184   : > { %v1139_v56 = vadd.f32 %v1138_v53, %v1137_v47 }
 0x185   : > { %v1109_v55 = vcombine.low %v1100_v51, %v1106_v52  ;;  %v1145_v57 = vadd.f32 %v1144_v54, %v1143_v49 }
 0x187   : > { %v1116_v58 = vrot.slane %v1109_v55, %v1115_v50  ;;  %v1148_v59 = vcombine.low %v1139_v56, %v1145_v57 }
 0x189   : > { %v1123_v61 = vrot.slane %v1116_v58, %v1115_v50  ;;  %v1155_v62 = vrot.slane %v1148_v59, %v1115_v50 }
 0x18b   : > { %v1125_v0 = vadd.f32 %v1123_v61, %v1094_v60  ;;  %v1162_v1 = vrot.slane %v1155_v62, %v1115_v50 }
 0x18d   : > { %1130 = vst.msk [vmem:[%s1877_s8] sm:$0x3] %vm1128_vm1, %v1125_v0  ;;  %v1164_v2 = vadd.f32 %v1162_v1, %v1131_v63 }
 0x18f   : > { %1165 = vst.msk [vmem:[%s1887_s12] sm:$0x3] %vm1128_vm1, %v1164_v2 }
 0x190 PF: > { %s15_s21 = sadd.s32 1, %s1641_s21   ;;  %s1995_s15 = smov %s1621_s16 }
 0x191   : > { %p12_p1 = scmp.ge.s32.totalorder %s15_s21, 20   ;;  %s1996_s16 = smov %s1722_s28 }
 0x192   : > { %s1997_s17 = smov %s1633_s19  ;;  %s1998_s18 = smov %s1637_s20 }
 0x193   : > { %s1999_s19 = smov %s2002_s22  ;;  %s2000_s20 = smov %s2006_s23 }
 0x194   :  { %14 = sbr.rel (!%p12_p1) target bundleno = 4 (0x4), region = 140 }

// kernel: resnet_ultra_forward.83
= control target key start
LH: loop header
LB: loop body
LE: loop exit
PB: predicated region body
PF: predicated region fallthrough
CT: control target
= control target key end

     0   :  { %v23_v38 = vlaneseq  ;;  %vm238_vm0 = vcmask 1041409   ;;  %s1908_s0 = inlined_call_operand.vmem [shape: bf16[2,1,512], index: 0, kind: input, shape index: {}]   ;;  %s1909_s1 = inlined_call_operand.vmem [shape: bf16[512,512], index: 1, kind: input, shape index: {}]   ;;  %s1910_s2 = inlined_call_operand.vmem [shape: f32[1,512], index: 2, kind: input, shape index: {}]   ;;  %s1911_s3 = inlined_call_operand.hbm [shape: f32[2,512], index: 3, kind: output, shape index: {}]  }
   0x1   :  { %v1241_v0 = vld [vmem:[%s1909_s1 + $0x4] ss:$16 sps:$4 sm:$0xff]   ;;  %v1243_v1 = vld [vmem:[%s1909_s1 + $0xc] ss:$16 sps:$4 sm:$0xff]   ;;  %v1245_v2 = vld [vmem:[%s1909_s1] ss:$16 sps:$4 sm:$0xff]  }
   0x2   :  { %894 = vmatprep.subr.bf16.mxu0 %v1241_v0  ;;  %v1246_v3 = vld [vmem:[%s1909_s1 + $0x8] ss:$16 sps:$4 sm:$0xff]   ;;  %976 = vmatprep.subr.bf16.mxu1 %v1243_v1  ;;  %v1247_v4 = vld [vmem:[%s1909_s1 + $0x24] ss:$16 sps:$4 sm:$0xff]   ;;  %v1249_v5 = vld [vmem:[%s1909_s1 + $0x2c] ss:$16 sps:$4 sm:$0xff]  }
   0x3   :  { %895 = vmatpush1.bf16.msra.mxu0 %v1245_v2  ;;  %977 = vmatpush1.bf16.msra.mxu1 %v1246_v3  ;;  %v1251_v6 = vld [vmem:[%s1909_s1 + $0x20] ss:$16 sps:$4 sm:$0xff]   ;;  %v1252_v7 = vld [vmem:[%s1909_s1 + $0x28] ss:$16 sps:$4 sm:$0xff]   ;;  %v1253_v8 = vld [vmem:[%s1909_s1 + $0x44] ss:$16 sps:$4 sm:$0xff]  }
   0x4   :  { %896 = vmatprep.subr.bf16.mxu0 %v1247_v4  ;;  %978 = vmatprep.subr.bf16.mxu1 %v1249_v5  ;;  %v1255_v9 = vld [vmem:[%s1909_s1 + $0x4c] ss:$16 sps:$4 sm:$0xff]   ;;  %v1257_v10 = vld [vmem:[%s1909_s1 + $0x40] ss:$16 sps:$4 sm:$0xff]   ;;  %v1258_v11 = vld [vmem:[%s1909_s1 + $0x48] ss:$16 sps:$4 sm:$0xff]  }
   0x5   :  { %v1259_v12 = vld [vmem:[%s1909_s1 + $0x64] ss:$16 sps:$4 sm:$0xff]   ;;  %v1261_v13 = vld [vmem:[%s1909_s1 + $0x6c] ss:$16 sps:$4 sm:$0xff]   ;;  %v1263_v14 = vld [vmem:[%s1909_s1 + $0x60] ss:$16 sps:$4 sm:$0xff]  }
   0x6   :  { %v1264_v15 = vld [vmem:[%s1909_s1 + $0x68] ss:$16 sps:$4 sm:$0xff]   ;;  %v1265_v16 = vld [vmem:[%s1909_s1 + $0x84] ss:$16 sps:$4 sm:$0xff]   ;;  %v1267_v17 = vld [vmem:[%s1909_s1 + $0x8c] ss:$16 sps:$4 sm:$0xff]  }
   0x7   :  { %897 = vmatpush1.bf16.msra.mxu0 %v1251_v6  ;;  %979 = vmatpush1.bf16.msra.mxu1 %v1252_v7  ;;  %v1269_v18 = vld [vmem:[%s1909_s1 + $0x80] ss:$16 sps:$4 sm:$0xff]   ;;  %v1270_v19 = vld [vmem:[%s1909_s1 + $0x88] ss:$16 sps:$4 sm:$0xff]   ;;  %v1271_v20 = vld [vmem:[%s1909_s1 + $0xa4] ss:$16 sps:$4 sm:$0xff]  }
   0x8   :  { %898 = vmatprep.subr.bf16.mxu0 %v1253_v8  ;;  %980 = vmatprep.subr.bf16.mxu1 %v1255_v9  ;;  %v1273_v21 = vld [vmem:[%s1909_s1 + $0xac] ss:$16 sps:$4 sm:$0xff]   ;;  %v1275_v22 = vld [vmem:[%s1909_s1 + $0xa0] ss:$16 sps:$4 sm:$0xff]   ;;  %v1276_v23 = vld [vmem:[%s1909_s1 + $0xa8] ss:$16 sps:$4 sm:$0xff]  }
   0x9   :  { %v1277_v24 = vld [vmem:[%s1909_s1 + $0xc4] ss:$16 sps:$4 sm:$0xff]   ;;  %v1279_v25 = vld [vmem:[%s1909_s1 + $0xcc] ss:$16 sps:$4 sm:$0xff]   ;;  %v1281_v26 = vld [vmem:[%s1909_s1 + $0xc0] ss:$16 sps:$4 sm:$0xff]  }
   0xa   :  { %v1282_v27 = vld [vmem:[%s1909_s1 + $0xc8] ss:$16 sps:$4 sm:$0xff]   ;;  %v1283_v28 = vld [vmem:[%s1909_s1 + $0xe4] ss:$16 sps:$4 sm:$0xff]   ;;  %v1285_v29 = vld [vmem:[%s1909_s1 + $0xec] ss:$16 sps:$4 sm:$0xff]  }
   0xb   :  { %899 = vmatpush1.bf16.msra.mxu0 %v1257_v10  ;;  %981 = vmatpush1.bf16.msra.mxu1 %v1258_v11  ;;  %v1287_v30 = vld [vmem:[%s1909_s1 + $0xe0] ss:$16 sps:$4 sm:$0xff]   ;;  %v1288_v31 = vld [vmem:[%s1909_s1 + $0xe8] ss:$16 sps:$4 sm:$0xff]   ;;  %v1289_v32 = vld [vmem:[%s1909_s1 + $0x104] ss:$16 sps:$4 sm:$0xff]  }
   0xc   :  { %900 = vmatprep.subr.bf16.mxu0 %v1259_v12  ;;  %982 = vmatprep.subr.bf16.mxu1 %v1261_v13  ;;  %v1291_v33 = vld [vmem:[%s1909_s1 + $0x10c] ss:$16 sps:$4 sm:$0xff]   ;;  %v1293_v34 = vld [vmem:[%s1909_s1 + $0x100] ss:$16 sps:$4 sm:$0xff]   ;;  %v1294_v35 = vld [vmem:[%s1909_s1 + $0x108] ss:$16 sps:$4 sm:$0xff]  }
   0xd   :  { %v1295_v36 = vld [vmem:[%s1909_s1 + $0x124] ss:$16 sps:$4 sm:$0xff]   ;;  %v1297_v37 = vld [vmem:[%s1909_s1 + $0x12c] ss:$16 sps:$4 sm:$0xff]   ;;  %v1299_v39 = vld [vmem:[%s1909_s1 + $0x120] ss:$16 sps:$4 sm:$0xff]  }
   0xe   :  { %v1300_v40 = vld [vmem:[%s1909_s1 + $0x128] ss:$16 sps:$4 sm:$0xff]   ;;  %v1301_v41 = vld [vmem:[%s1909_s1 + $0x144] ss:$16 sps:$4 sm:$0xff]   ;;  %v1303_v42 = vld [vmem:[%s1909_s1 + $0x14c] ss:$16 sps:$4 sm:$0xff]  }
   0xf   :  { %901 = vmatpush1.bf16.msra.mxu0 %v1263_v14  ;;  %983 = vmatpush1.bf16.msra.mxu1 %v1264_v15  ;;  %v1605_v43 = vshrl.u32 %v23_v38, 7  ;;  %v1305_v44 = vld [vmem:[%s1909_s1 + $0x140] ss:$16 sps:$4 sm:$0xff]   ;;  %v1306_v45 = vld [vmem:[%s1909_s1 + $0x148] ss:$16 sps:$4 sm:$0xff]  }
  0x10   :  { %902 = vmatprep.subr.bf16.mxu0 %v1265_v16  ;;  %984 = vmatprep.subr.bf16.mxu1 %v1267_v17  ;;  %v1307_v46 = vld [vmem:[%s1909_s1 + $0x164] ss:$16 sps:$4 sm:$0xff]   ;;  %v1309_v47 = vld [vmem:[%s1909_s1 + $0x16c] ss:$16 sps:$4 sm:$0xff]   ;;  %v1311_v51 = vld [vmem:[%s1909_s1 + $0x160] ss:$16 sps:$4 sm:$0xff]  }
  0x11   :  { %v1620_v48 = vsub.s32 2, %v1605_v43  ;;  %v1224_v49 = vld [vmem:[%s1908_s0] sm:$0xff]   ;;  %v1626_v50 = vsub.s32 0, %v1605_v43  ;;  %v37_v54 = vsub.s32 6, %v1605_v43  ;;  %v33_v55 = vsub.s32 4, %v1605_v43 }
  0x12   :  { %v1225_v52 = vunpack.c.l.bf16 %v1224_v49  ;;  %v1226_v53 = vunpack.c.h.bf16 %v1224_v49  ;;  %v1312_v56 = vld [vmem:[%s1909_s1 + $0x168] ss:$16 sps:$4 sm:$0xff]   ;;  %v1313_v57 = vld [vmem:[%s1909_s1 + $0x184] ss:$16 sps:$4 sm:$0xff]   ;;  %v1315_v58 = vld [vmem:[%s1909_s1 + $0x18c] ss:$16 sps:$4 sm:$0xff]  }
  0x13   :  { %903 = vmatpush1.bf16.msra.mxu0 %v1269_v18  ;;  %985 = vmatpush1.bf16.msra.mxu1 %v1270_v19  ;;  %v1317_v63 = vld [vmem:[%s1909_s1 + $0x180] ss:$16 sps:$4 sm:$0xff]   ;;  %v1318_v4 = vld [vmem:[%s1909_s1 + $0x188] ss:$16 sps:$4 sm:$0xff]   ;;  %v1319_v7 = vld [vmem:[%s1909_s1 + $0x1a4] ss:$16 sps:$4 sm:$0xff]  }
  0x14   :  { %904 = vmatprep.subr.bf16.mxu0 %v1271_v20  ;;  %986 = vmatprep.subr.bf16.mxu1 %v1273_v21  ;;  %v30_v59 = vrot.slane %v1225_v52, %v1620_v48  ;;  %v46_v60 = vrot.slane %v1226_v53, %v1620_v48  ;;  %v42_v61 = vrot.slane %v1226_v53, %v1626_v50  ;;  %v1321_v8 = vld [vmem:[%s1909_s1 + $0x1ac] ss:$16 sps:$4 sm:$0xff]   ;;  %v1323_v13 = vld [vmem:[%s1909_s1 + $0x1a0] ss:$16 sps:$4 sm:$0xff]   ;;  %v1324_v17 = vld [vmem:[%s1909_s1 + $0x1a8] ss:$16 sps:$4 sm:$0xff]  }
  0x15   :  { %v34_v62 = vrot.slane %v1225_v52, %v33_v55  ;;  %v54_v2 = vrot.slane %v1226_v53, %v37_v54  ;;  %v50_v3 = vrot.slane %v1226_v53, %v33_v55  ;;  %v26_v5 = vrot.slane %v1225_v52, %v1626_v50  ;;  %v1345_v49 = vld [vmem:[%s1909_s1 + $0x224] ss:$16 sps:$4 sm:$0xff]   ;;  %v1343_v53 = vld [vmem:[%s1909_s1 + $0x220] ss:$16 sps:$4 sm:$0xff]  }
  0x16   :  { %v64_v0 = vpack.c.bf16 %v30_v59, %v30_v59  ;;  %v68_v1 = vpack.c.bf16 %v46_v60, %v46_v60  ;;  %v67_v6 = vpack.c.bf16 %v42_v61, %v42_v61  ;;  %v38_v15 = vrot.slane %v1225_v52, %v37_v54  ;;  %v1346_v54 = vld [vmem:[%s1909_s1 + $0x228] ss:$16 sps:$4 sm:$0xff]   ;;  %v1351_v55 = vld [vmem:[%s1909_s1 + $0x244] ss:$16 sps:$4 sm:$0xff]   ;;  %v1360_v60 = vld [vmem:[%s1909_s1 + $0x26c] ss:$16 sps:$4 sm:$0xff]  }
  0x17   :  { %905 = vmatpush1.bf16.msra.mxu0 %v1275_v22  ;;  %987 = vmatpush1.bf16.msra.mxu1 %v1276_v23  ;;  %v65_v11 = vpack.c.bf16 %v34_v62, %v34_v62  ;;  %v69_v12 = vpack.c.bf16 %v50_v3, %v50_v3  ;;  %v70_v16 = vpack.c.bf16 %v54_v2, %v54_v2  ;;  %v1325_v22 = vld [vmem:[%s1909_s1 + $0x1c4] ss:$16 sps:$4 sm:$0xff]   ;;  %v1327_v23 = vld [vmem:[%s1909_s1 + $0x1cc] ss:$16 sps:$4 sm:$0xff]   ;;  %v1355_v61 = vld [vmem:[%s1909_s1 + $0x260] ss:$16 sps:$4 sm:$0xff]  }
  0x18   :  { %906 = vmatprep.subr.bf16.mxu0 %v1277_v24  ;;  %988 = vmatprep.subr.bf16.mxu1 %v1279_v25  ;;  %v230_v9 = vunpack.c.l.b16 %v64_v0  ;;  %v234_v10 = vunpack.c.l.b16 %v68_v1  ;;  %v63_v18 = vpack.c.bf16 %v26_v5, %v26_v5  ;;  %v233_v19 = vunpack.c.l.b16 %v67_v6  ;;  %v1357_v59 = vld [vmem:[%s1909_s1 + $0x264] ss:$16 sps:$4 sm:$0xff]   ;;  %v1358_v62 = vld [vmem:[%s1909_s1 + $0x268] ss:$16 sps:$4 sm:$0xff]   ;;  %v1366_v0 = vld [vmem:[%s1909_s1 + $0x28c] ss:$16 sps:$4 sm:$0xff]  }
  0x19   :  { %v231_v20 = vunpack.c.l.b16 %v65_v11  ;;  %v235_v21 = vunpack.c.l.b16 %v69_v12  ;;  %v1361_v1 = vld [vmem:[%s1909_s1 + $0x280] ss:$16 sps:$4 sm:$0xff]   ;;  %v1364_v2 = vld [vmem:[%s1909_s1 + $0x288] ss:$16 sps:$4 sm:$0xff]   ;;  %v1369_v3 = vld [vmem:[%s1909_s1 + $0x2a4] ss:$16 sps:$4 sm:$0xff]  }
  0x1a   :  { %v240_v14 = vrot.slane %v234_v10, 7  ;;  %v1367_v5 = vld [vmem:[%s1909_s1 + $0x2a0] ss:$16 sps:$4 sm:$0xff]   ;;  %v1370_v6 = vld [vmem:[%s1909_s1 + $0x2a8] ss:$16 sps:$4 sm:$0xff]  }
  0x1b   :  { %907 = vmatpush1.bf16.msra.mxu0 %v1281_v26  ;;  %989 = vmatpush1.bf16.msra.mxu1 %v1282_v27  ;;  %v242_v26 = vrot.slane %v235_v21, 7  ;;  %v1329_v27 = vld [vmem:[%s1909_s1 + $0x1c0] ss:$16 sps:$4 sm:$0xff]  }
  0x1c   :  { %908 = vmatprep.subr.bf16.mxu0 %v1283_v28  ;;  %990 = vmatprep.subr.bf16.mxu1 %v1285_v29  ;;  %v241_v24 = vsel %vm238_vm0, %v240_v14, %v230_v9  ;;  %v66_v28 = vpack.c.bf16 %v38_v15, %v38_v15  ;;  %v236_v29 = vunpack.c.l.b16 %v70_v16 }
  0x1d   :  { %v247_v25 = vpack.c.b16 %v241_v24, %v241_v24 }
  0x1e   :  { %v244_v38 = vrot.slane %v236_v29, 7 }
  0x1f   :  { %909 = vmatpush1.bf16.msra.mxu0 %v1287_v30  ;;  %991 = vmatpush1.bf16.msra.mxu1 %v1288_v31  ;;  %v1330_v30 = vld [vmem:[%s1909_s1 + $0x1c8] ss:$16 sps:$4 sm:$0xff]   ;;  %v229_v31 = vunpack.c.l.b16 %v63_v18 }
  0x20   :  { %910 = vmatprep.subr.bf16.mxu0 %v1289_v32  ;;  %992 = vmatprep.subr.bf16.mxu1 %v1291_v33  ;;  %v237_v32 = vrot.slane %v233_v19, 7  ;;  %v1678_v33 = vsel %vm238_vm0, %v242_v26, %v231_v20 }
  0x21   :  { %926 = vmatprep.mubr.bf16.mxu0 %v247_v25  ;;  %1008 = vmatprep.mubr.bf16.mxu1 %v247_v25 }
  0x23   :  { %911 = vmatpush1.bf16.msra.mxu0 %v1293_v34  ;;  %993 = vmatpush1.bf16.msra.mxu1 %v1294_v35  ;;  %v1331_v34 = vld [vmem:[%s1909_s1 + $0x1e4] ss:$16 sps:$4 sm:$0xff]   ;;  %v1333_v35 = vld [vmem:[%s1909_s1 + $0x1ec] ss:$16 sps:$4 sm:$0xff]  }
  0x24   :  { %912 = vmatprep.subr.bf16.mxu0 %v1295_v36  ;;  %994 = vmatprep.subr.bf16.mxu1 %v1297_v37  ;;  %v1335_v36 = vld [vmem:[%s1909_s1 + $0x1e0] ss:$16 sps:$4 sm:$0xff]   ;;  %v232_v37 = vunpack.c.l.b16 %v66_v28 }
  0x27   :  { %913 = vmatpush1.bf16.msra.mxu0 %v1299_v39  ;;  %995 = vmatpush1.bf16.msra.mxu1 %v1300_v40  ;;  %v1336_v39 = vld [vmem:[%s1909_s1 + $0x1e8] ss:$16 sps:$4 sm:$0xff]   ;;  %v239_v40 = vsel %vm238_vm0, %v237_v32, %v229_v31 }
  0x28   :  { %914 = vmatprep.subr.bf16.mxu0 %v1301_v41  ;;  %996 = vmatprep.subr.bf16.mxu1 %v1303_v42  ;;  %v1339_v41 = vld [vmem:[%s1909_s1 + $0x204] ss:$16 sps:$4 sm:$0xff]   ;;  %v1342_v42 = vld [vmem:[%s1909_s1 + $0x20c] ss:$16 sps:$4 sm:$0xff]  }
  0x2b   :  { %915 = vmatpush1.bf16.msra.mxu0 %v1305_v44  ;;  %997 = vmatpush1.bf16.msra.mxu1 %v1306_v45  ;;  %v1337_v44 = vld [vmem:[%s1909_s1 + $0x200] ss:$16 sps:$4 sm:$0xff]   ;;  %v246_v45 = vpack.c.b16 %v239_v40, %v239_v40 }
  0x2c   :  { %916 = vmatprep.subr.bf16.mxu0 %v1307_v46  ;;  %998 = vmatprep.subr.bf16.mxu1 %v1309_v47  ;;  %v245_v46 = vsel %vm238_vm0, %v244_v38, %v232_v37  ;;  %v1340_v47 = vld [vmem:[%s1909_s1 + $0x208] ss:$16 sps:$4 sm:$0xff]  }
  0x2d   :  { %v249_v52 = vpack.c.b16 %v245_v46, %v245_v46 }
  0x2f   :  { %917 = vmatpush1.bf16.msra.mxu0 %v1311_v51  ;;  %999 = vmatpush1.bf16.msra.mxu1 %v1312_v56  ;;  %v1348_v51 = vld [vmem:[%s1909_s1 + $0x22c] ss:$16 sps:$4 sm:$0xff]  }
  0x30   :  { %918 = vmatprep.subr.bf16.mxu0 %v1313_v57  ;;  %1000 = vmatprep.subr.bf16.mxu1 %v1315_v58  ;;  %v1354_v56 = vld [vmem:[%s1909_s1 + $0x24c] ss:$16 sps:$4 sm:$0xff]   ;;  %v1349_v57 = vld [vmem:[%s1909_s1 + $0x240] ss:$16 sps:$4 sm:$0xff]   ;;  %v1352_v58 = vld [vmem:[%s1909_s1 + $0x248] ss:$16 sps:$4 sm:$0xff]  }
  0x33   :  { %919 = vmatpush1.bf16.msra.mxu0 %v1317_v63  ;;  %1001 = vmatpush1.bf16.msra.mxu1 %v1318_v4  ;;  %v1363_v63 = vld [vmem:[%s1909_s1 + $0x284] ss:$16 sps:$4 sm:$0xff]   ;;  %v1372_v4 = vld [vmem:[%s1909_s1 + $0x2ac] ss:$16 sps:$4 sm:$0xff]  }
  0x34   :  { %920 = vmatprep.subr.bf16.mxu0 %v1319_v7  ;;  %1002 = vmatprep.subr.bf16.mxu1 %v1321_v8  ;;  %v1375_v7 = vld [vmem:[%s1909_s1 + $0x2c4] ss:$16 sps:$4 sm:$0xff]   ;;  %v1378_v8 = vld [vmem:[%s1909_s1 + $0x2cc] ss:$16 sps:$4 sm:$0xff]  }
  0x37   :  { %921 = vmatpush1.bf16.msra.mxu0 %v1323_v13  ;;  %1003 = vmatpush1.bf16.msra.mxu1 %v1324_v17 }
  0x38   :  { %922 = vmatprep.subr.bf16.mxu0 %v1325_v22  ;;  %1004 = vmatprep.subr.bf16.mxu1 %v1327_v23 }
  0x3b   :  { %923 = vmatpush1.bf16.msra.mxu0 %v1329_v27  ;;  %1005 = vmatpush1.bf16.msra.mxu1 %v1330_v30 }
  0x3c   :  { %924 = vmatprep.subr.bf16.mxu0 %v1331_v34  ;;  %1006 = vmatprep.subr.bf16.mxu1 %v1333_v35 }
  0x3f   :  { %925 = vmatpush1.bf16.msra.mxu0 %v1335_v36  ;;  %1007 = vmatpush1.bf16.msra.mxu1 %v1336_v39 }
  0x40   :  { %935 = vmatprep.subr.bf16.mxu0 %v1339_v41  ;;  %1017 = vmatprep.subr.bf16.mxu1 %v1342_v42 }
  0x42   :  { %927 = vmatmul.mubr.bf16.vlgmr.msra.gmra.mrb[0].mxu0 %v246_v45  ;;  %1009 = vmatmul.mubr.bf16.vlgmr.msra.gmra.mrb[0].mxu1 %v246_v45 }
  0x43   :  { %936 = vmatpush1.bf16.msra.mxu0 %v1337_v44  ;;  %1018 = vmatpush1.bf16.msra.mxu1 %v1340_v47 }
  0x44   :  { %937 = vmatprep.subr.bf16.mxu0 %v1345_v49  ;;  %1019 = vmatprep.subr.bf16.mxu1 %v1348_v51 }
  0x45   :  { %967 = vmatprep.mubr.bf16.mxu0 %v249_v52  ;;  %1049 = vmatprep.mubr.bf16.mxu1 %v249_v52 }
  0x47   :  { %938 = vmatpush1.bf16.msra.mxu0 %v1343_v53  ;;  %1020 = vmatpush1.bf16.msra.mxu1 %v1346_v54 }
  0x48   :  { %939 = vmatprep.subr.bf16.mxu0 %v1351_v55  ;;  %1021 = vmatprep.subr.bf16.mxu1 %v1354_v56 }
  0x4b   :  { %940 = vmatpush1.bf16.msra.mxu0 %v1349_v57  ;;  %1022 = vmatpush1.bf16.msra.mxu1 %v1352_v58 }
  0x4c   :  { %941 = vmatprep.subr.bf16.mxu0 %v1357_v59  ;;  %1023 = vmatprep.subr.bf16.mxu1 %v1360_v60 }
  0x4f   :  { %942 = vmatpush1.bf16.msra.mxu0 %v1355_v61  ;;  %1024 = vmatpush1.bf16.msra.mxu1 %v1358_v62 }
  0x50   :  { %943 = vmatprep.subr.bf16.mxu0 %v1363_v63  ;;  %1025 = vmatprep.subr.bf16.mxu1 %v1366_v0 }
  0x53   :  { %944 = vmatpush1.bf16.msra.mxu0 %v1361_v1  ;;  %1026 = vmatpush1.bf16.msra.mxu1 %v1364_v2 }
  0x54   :  { %945 = vmatprep.subr.bf16.mxu0 %v1369_v3  ;;  %1027 = vmatprep.subr.bf16.mxu1 %v1372_v4 }
  0x55   :  { %8 = vsyncpa [#allocation3], 0  ;;  %v1373_v9 = vld [vmem:[%s1909_s1 + $0x2c0] ss:$16 sps:$4 sm:$0xff]   ;;  %v1376_v10 = vld [vmem:[%s1909_s1 + $0x2c8] ss:$16 sps:$4 sm:$0xff]   ;;  %v248_v51 = vpack.c.b16 %v1678_v33, %v1678_v33 }
  0x56   :  { %v1381_v11 = vld [vmem:[%s1909_s1 + $0x2e4] ss:$16 sps:$4 sm:$0xff]   ;;  %v1384_v12 = vld [vmem:[%s1909_s1 + $0x2ec] ss:$16 sps:$4 sm:$0xff]   ;;  %v1379_v13 = vld [vmem:[%s1909_s1 + $0x2e0] ss:$16 sps:$4 sm:$0xff]  }
  0x57   :  { %946 = vmatpush1.bf16.msra.mxu0 %v1367_v5  ;;  %1028 = vmatpush1.bf16.msra.mxu1 %v1370_v6  ;;  %v1382_v14 = vld [vmem:[%s1909_s1 + $0x2e8] ss:$16 sps:$4 sm:$0xff]   ;;  %v1387_v15 = vld [vmem:[%s1909_s1 + $0x304] ss:$16 sps:$4 sm:$0xff]   ;;  %v1390_v16 = vld [vmem:[%s1909_s1 + $0x30c] ss:$16 sps:$4 sm:$0xff]  }
  0x58   :  { %947 = vmatprep.subr.bf16.mxu0 %v1375_v7  ;;  %1029 = vmatprep.subr.bf16.mxu1 %v1378_v8  ;;  %v1385_v17 = vld [vmem:[%s1909_s1 + $0x300] ss:$16 sps:$4 sm:$0xff]   ;;  %v1388_v18 = vld [vmem:[%s1909_s1 + $0x308] ss:$16 sps:$4 sm:$0xff]   ;;  %v1393_v19 = vld [vmem:[%s1909_s1 + $0x324] ss:$16 sps:$4 sm:$0xff]  }
  0x59   :  { %v1396_v20 = vld [vmem:[%s1909_s1 + $0x32c] ss:$16 sps:$4 sm:$0xff]   ;;  %v1391_v21 = vld [vmem:[%s1909_s1 + $0x320] ss:$16 sps:$4 sm:$0xff]   ;;  %v1394_v22 = vld [vmem:[%s1909_s1 + $0x328] ss:$16 sps:$4 sm:$0xff]  }
  0x5a   :  { %v1399_v23 = vld [vmem:[%s1909_s1 + $0x344] ss:$16 sps:$4 sm:$0xff]   ;;  %v1402_v24 = vld [vmem:[%s1909_s1 + $0x34c] ss:$16 sps:$4 sm:$0xff]   ;;  %v1397_v25 = vld [vmem:[%s1909_s1 + $0x340] ss:$16 sps:$4 sm:$0xff]  }
  0x5b   :  { %948 = vmatpush1.bf16.msra.mxu0 %v1373_v9  ;;  %1030 = vmatpush1.bf16.msra.mxu1 %v1376_v10  ;;  %v1400_v26 = vld [vmem:[%s1909_s1 + $0x348] ss:$16 sps:$4 sm:$0xff]   ;;  %v1405_v27 = vld [vmem:[%s1909_s1 + $0x364] ss:$16 sps:$4 sm:$0xff]   ;;  %v1408_v28 = vld [vmem:[%s1909_s1 + $0x36c] ss:$16 sps:$4 sm:$0xff]  }
  0x5c   :  { %949 = vmatprep.subr.bf16.mxu0 %v1381_v11  ;;  %1031 = vmatprep.subr.bf16.mxu1 %v1384_v12  ;;  %v1403_v29 = vld [vmem:[%s1909_s1 + $0x360] ss:$16 sps:$4 sm:$0xff]   ;;  %v1406_v30 = vld [vmem:[%s1909_s1 + $0x368] ss:$16 sps:$4 sm:$0xff]   ;;  %v1411_v31 = vld [vmem:[%s1909_s1 + $0x384] ss:$16 sps:$4 sm:$0xff]  }
  0x5d   :  { %v1414_v32 = vld [vmem:[%s1909_s1 + $0x38c] ss:$16 sps:$4 sm:$0xff]   ;;  %v1409_v34 = vld [vmem:[%s1909_s1 + $0x380] ss:$16 sps:$4 sm:$0xff]   ;;  %v1412_v35 = vld [vmem:[%s1909_s1 + $0x388] ss:$16 sps:$4 sm:$0xff]  }
  0x5e   :  { %v1417_v36 = vld [vmem:[%s1909_s1 + $0x3a4] ss:$16 sps:$4 sm:$0xff]   ;;  %v1420_v37 = vld [vmem:[%s1909_s1 + $0x3ac] ss:$16 sps:$4 sm:$0xff]   ;;  %v1415_v38 = vld [vmem:[%s1909_s1 + $0x3a0] ss:$16 sps:$4 sm:$0xff]  }
  0x5f   :  { %950 = vmatpush1.bf16.msra.mxu0 %v1379_v13  ;;  %1032 = vmatpush1.bf16.msra.mxu1 %v1382_v14  ;;  %v1418_v39 = vld [vmem:[%s1909_s1 + $0x3a8] ss:$16 sps:$4 sm:$0xff]   ;;  %v1423_v40 = vld [vmem:[%s1909_s1 + $0x3c4] ss:$16 sps:$4 sm:$0xff]   ;;  %v1426_v41 = vld [vmem:[%s1909_s1 + $0x3cc] ss:$16 sps:$4 sm:$0xff]  }
  0x60   :  { %951 = vmatprep.subr.bf16.mxu0 %v1387_v15  ;;  %1033 = vmatprep.subr.bf16.mxu1 %v1390_v16  ;;  %v1421_v42 = vld [vmem:[%s1909_s1 + $0x3c0] ss:$16 sps:$4 sm:$0xff]   ;;  %v1424_v44 = vld [vmem:[%s1909_s1 + $0x3c8] ss:$16 sps:$4 sm:$0xff]   ;;  %v1429_v45 = vld [vmem:[%s1909_s1 + $0x3e4] ss:$16 sps:$4 sm:$0xff]  }
  0x61   :  { %v1432_v46 = vld [vmem:[%s1909_s1 + $0x3ec] ss:$16 sps:$4 sm:$0xff]   ;;  %v1427_v47 = vld [vmem:[%s1909_s1 + $0x3e0] ss:$16 sps:$4 sm:$0xff]   ;;  %v1430_v49 = vld [vmem:[%s1909_s1 + $0x3e8] ss:$16 sps:$4 sm:$0xff]  }
  0x62   :  { %v199_v52 = vld [vmem:[%s1910_s2] sm:$0xf]  ;;  %v207_v53 = vsub.s32 1, %v1605_v43  ;;  %v215_v54 = vsub.s32 3, %v1605_v43  ;;  %v1457_v55 = vmov 1983009808  }
  0x63   :  { %952 = vmatpush1.bf16.msra.mxu0 %v1385_v17  ;;  %1034 = vmatpush1.bf16.msra.mxu1 %v1388_v18  ;;  %v1065_v56 = vunpack.c.l.s4 %v1457_v55  ;;  %v204_v57 = vrot.slane %v199_v52, %v1626_v50  ;;  %v212_v58 = vrot.slane %v199_v52, %v1620_v48  ;;  %s1458_s1 = smov [#allocation2]  }
  0x64   :  { %953 = vmatprep.subr.bf16.mxu0 %v1393_v19  ;;  %1035 = vmatprep.subr.bf16.mxu1 %v1396_v20  ;;  %v208_v59 = vrot.slane %v199_v52, %v207_v53  ;;  %v216_v33 = vrot.slane %v199_v52, %v215_v54  ;;  %s1087_s2 = sshll.u32 %s1458_s1, 4  ;;  %s1088_s2 = int_to_ptr.vmem [resolvable:$true] %s1087_s2 }
  0x65   :  { %v1066_v60 = vunpack.c.0.s8 %v1065_v56  ;;  %s1433_s23 = scalar_lea.vmem %s1088_s2, 128  ;;  %p1438_p1 = scmp.lt.s32.totalorder %s1088_s2, %s1088_s2 }
  0x66   :  { %p1434_p0 = scmp.ne.s32.totalorder %s1088_s2, %s1433_s23  ;;  %p1439_p2 = scmp.lt.s32.totalorder %s1433_s23, %s1433_s23 }
  0x67   :  { %954 = vmatpush1.bf16.msra.mxu0 %v1391_v21  ;;  %1036 = vmatpush1.bf16.msra.mxu1 %v1394_v22  ;;  %v1069_v7 = vsub.s32 %v1066_v60, %v1605_v43 }
  0x68   :  { %955 = vmatprep.subr.bf16.mxu0 %v1399_v23  ;;  %1037 = vmatprep.subr.bf16.mxu1 %v1402_v24  ;;  %p1440_p3 = por %p1439_p2, %p1438_p1 }
  0x6a   :  { %p1441_p4 = pnand %p1440_p3, %p1434_p0 }
  0x6b   :  { %956 = vmatpush1.bf16.msra.mxu0 %v1397_v25  ;;  %1038 = vmatpush1.bf16.msra.mxu1 %v1400_v26 }
  0x6c   :  { %957 = vmatprep.subr.bf16.mxu0 %v1405_v27  ;;  %1039 = vmatprep.subr.bf16.mxu1 %v1408_v28 }
  0x6f   :  { %958 = vmatpush1.bf16.msra.mxu0 %v1403_v29  ;;  %1040 = vmatpush1.bf16.msra.mxu1 %v1406_v30 }
  0x70   :  { %959 = vmatprep.subr.bf16.mxu0 %v1411_v31  ;;  %1041 = vmatprep.subr.bf16.mxu1 %v1414_v32 }
  0x73   :  { %960 = vmatpush1.bf16.msra.mxu0 %v1409_v34  ;;  %1042 = vmatpush1.bf16.msra.mxu1 %v1412_v35 }
  0x74   :  { %961 = vmatprep.subr.bf16.mxu0 %v1417_v36  ;;  %1043 = vmatprep.subr.bf16.mxu1 %v1420_v37 }
  0x77   :  { %962 = vmatpush1.bf16.msra.mxu0 %v1415_v38  ;;  %1044 = vmatpush1.bf16.msra.mxu1 %v1418_v39 }
  0x78   :  { %963 = vmatprep.subr.bf16.mxu0 %v1423_v40  ;;  %1045 = vmatprep.subr.bf16.mxu1 %v1426_v41 }
  0x7b   :  { %964 = vmatpush1.bf16.msra.mxu0 %v1421_v42  ;;  %1046 = vmatpush1.bf16.msra.mxu1 %v1424_v44 }
  0x7c   :  { %965 = vmatprep.subr.bf16.mxu0 %v1429_v45  ;;  %1047 = vmatprep.subr.bf16.mxu1 %v1432_v46 }
  0x7f   :  { %966 = vmatpush1.bf16.msra.mxu0 %v1427_v47  ;;  %1048 = vmatpush1.bf16.msra.mxu1 %v1430_v49 }
  0x82   :  { %968 = vmatmul.mubr.bf16.vlgmr.msra.gmra.mrb[0].mxu0 %v248_v51  ;;  %1050 = vmatmul.mubr.bf16.vlgmr.msra.gmra.mrb[0].mxu1 %v248_v51 }
 0x155   :  { %v969_v61 = vpop.f32.mrb[0].mxu0  ;;  %v1051_v62 = vpop.f32.mrb[0].mxu1 }
 0x156   :  { %v1227_v63 = vadd.f32 %v969_v61, %v204_v57  ;;  %v1229_v0 = vadd.f32 %v1051_v62, %v212_v58  ;;  %v971_v1 = vpop.f32.mrb[1].mxu0  ;;  %v1053_v2 = vpop.f32.mrb[1].mxu1 }
 0x157   :  { %v1228_v3 = vadd.f32 %v971_v1, %v208_v59  ;;  %v1230_v4 = vadd.f32 %v1053_v2, %v216_v33  ;;  %v973_v5 = vpop.f32.mrb[2].mxu0  ;;  %v1055_v6 = vpop.f32.mrb[2].mxu1 }
 0x158   :  { %v974_v8 = vpop.f32.mrb[3].mxu0  ;;  %v1056_v9 = vpop.f32.mrb[3].mxu1 }
 0x159   :  { %v1062_v50 = vcombine.low %v1227_v63, %v1228_v3  ;;  %v1063_v10 = vcombine.low %v1229_v0, %v1230_v4 }
 0x15b   :  { %v1070_v48 = vrot.slane %v1062_v50, %v1069_v7  ;;  %v1077_v11 = vrot.slane %v1063_v10, %v1069_v7 }
 0x15d   :  { %v1078_v12 = vcombine.low %v1070_v48, %v1077_v11 }
 0x15f   :  { %1080 = vst [vmem:[#allocation2] sm:$0xff] %v1078_v12 }
 0x160   :  { %1444 = shalt.err (!%p1441_p4)
}
 0x161   :  { %s1445_s26 = scalar_lea.hbm %s1911_s3, 128 }
 0x162   :  { %p1446_p5 = scmp.ne.s32.totalorder %s1911_s3, %s1445_s26  ;;  %p1449_p6 = scmp.lt.u32.totalorder %s1445_s26, %s1911_s3 }
 0x164   :  { %p1451_p7 = pnand %p1449_p6, %p1446_p5 }
 0x166   :  { %1454 = shalt.err (!%p1451_p7)
}
 0x167   :  { %1090 = dma.vmem_to_hbm [thread:$0]  %s1088_s2, 128, %s1911_s3, [#allocation3]  }
 0x168   :  { %1455 = dma.done.wait [#allocation3], 128  }
 0x169   :  { %1456 = vsyncadd [#allocation3], 4294967168 }
 0x16a   :  { %1094 = vsyncpa [#allocation3], 1 }

</bundles_post_ra>
